<compile_context>
chip_gen: v7x
topology: tpu7x:2x2x1
jax: 0.10.0
libtpu: 0.0.40
codegen_flags: <defaults>
</compile_context>

<pallas_src>
import functools
import math

import jax
import jax.numpy as jnp
from jax import lax
from jax.experimental import pallas as pl
from jax.experimental.pallas import tpu as pltpu

CFG = dict(
    model_max_sensors=4,
    seq_len=8,
    sensor_input_dim=1,
    sensor_tcn_proj_dim=24,
    sensor_tcn_out_dim=32,
    tcn_levels=2,
    tcn_kernel_size=3,
    tcn_dropout=0.1,          # eval mode -> identity
    transformer_d_model=32,
    transformer_nhead=4,
    transformer_nlayers=1,
    num_shared_experts=4,
    moe_expert_input_dim=32,  # == transformer_d_model
    moe_hidden_dim_expert=32,
    moe_output_dim=16,
    pred_horizons_len=3,
    fail_horizons_len=3,
    moe_top_k=2,
    moe_noise_std=0.0,        # eval mode -> no gating noise
    aux_loss_coeff=0.01,
    entropy_reg_coeff=0.001,
)

LN_EPS = 1e-5
LANES = 128


# --------------------------- pallas_call plumbing ----------------------------

def _full_spec(shape):
    nd = len(shape)
    return pl.BlockSpec(tuple(shape), lambda i, _nd=nd: (0,) * _nd)


def pallas_single_block(kernel_fn, inputs, out_shape):
    """One fused kernel invocation; every operand is a single full-array block.

    At these shapes (<=72 rows, <=128 lanes, <1 MiB of weights) the model is
    launch/dispatch-bound, so one VMEM-resident block per kernel is the right
    tiling on every TPU generation (well under the v7x 32 MiB scoped default).
    """
    in_specs = [_full_spec(a.shape) for a in inputs]
    return pl.pallas_call(
        kernel_fn,
        out_shape=out_shape,
        grid_spec=pltpu.PrefetchScalarGridSpec(
            num_scalar_prefetch=0,
            grid=(1,),
            in_specs=in_specs,
            out_specs=_full_spec(out_shape.shape),
        ),
        compiler_params=pltpu.CompilerParams(
            dimension_semantics=("arbitrary",)),
    )(*inputs)


def _ln(x, g, b, eps=LN_EPS):
    mu = jnp.mean(x, axis=-1, keepdims=True)
    var = jnp.mean(jnp.square(x - mu), axis=-1, keepdims=True)
    return (x - mu) * lax.rsqrt(var + eps) * g + b


def _softmax(x):
    m = jnp.max(x, axis=-1, keepdims=True)
    e = jnp.exp(x - m)
    return e / jnp.sum(e, axis=-1, keepdims=True)


def _log_softmax(x):
    m = jnp.max(x, axis=-1, keepdims=True)
    s = x - m
    return s - jnp.log(jnp.sum(jnp.exp(s), axis=-1, keepdims=True))


def _fiota(shape, dim):
    # float iota (int iota + convert): avoids any integer mul/div lowering.
    return lax.broadcasted_iota(jnp.int32, shape, dim).astype(jnp.float32)


def _rowsum(x):
    # Row (axis=0) reduction expressed as a tiny ones-vector matmul (MXU-safe).
    return jnp.dot(jnp.ones((1, x.shape[0]), jnp.float32), x,
                   preferred_element_type=jnp.float32)


# --------------------------- kernel 1: per-sensor TCN ------------------------

def make_tcn_kernel(cfg, down_flags):
    """Fused per-sensor TCN encoder: TemporalBlocks + final LayerNorm + masked
    pooling epilogue.  Output: (N, 128) slab = [pooled | h_cls | tcn_last | 0]."""
    k = cfg["tcn_kernel_size"]
    T = cfg["seq_len"]
    L = T + 1
    C = cfg["sensor_tcn_out_dim"]
    dilations = [2 ** i for i in range(cfg["tcn_levels"])]

    def kernel(*refs):
        out_ref = refs[-1]
        it = iter(refs[:-1])
        xc_ref, tcol_ref, mask_ref = next(it), next(it), next(it)

        h = xc_ref[...]                      # (NL, P)
        t_col = tcol_ref[...]                # (NL, 1) within-sequence time index
        NL = h.shape[0]

        def shifted(x, s):
            # Causal shift by s rows within each length-L sequence (zero padding),
            # built from an iota shift matrix generated at the use site (no HBM
            # operand, no long live range).
            ro = _fiota((NL, NL), 0)
            ri = _fiota((NL, NL), 1)
            sh = jnp.where(ro - ri == float(s), 1.0, 0.0)
            xs = jnp.dot(sh, x, preferred_element_type=jnp.float32)
            return xs * (t_col >= float(s)).astype(jnp.float32)
            # TODO(synk): replace with pltpu.roll along sublanes at production scale.

        def causal_conv(x, w_ref, b_ref, dil):
            cin = x.shape[1]
            acc = jnp.zeros((NL, w_ref.shape[1]), jnp.float32) + b_ref[...]
            for j in range(k):
                s = (k - 1 - j) * dil
                xs = x if s == 0 else shifted(x, s)
                acc = acc + jnp.dot(xs, w_ref[j * cin:(j + 1) * cin, :],
                                    preferred_element_type=jnp.float32)
            return acc

        for dil, down in zip(dilations, down_flags):
            w1, b1, w2, b2 = next(it), next(it), next(it), next(it)
            if down:
                wd, bd = next(it), next(it)
                res = jnp.dot(h, wd[...], preferred_element_type=jnp.float32) + bd[...]
            else:
                res = h
            # eval mode: dropout1 / dropout2 are identity
            c1 = jnp.maximum(causal_conv(h, w1, b1, dil), 0.0)
            c2 = jnp.maximum(causal_conv(c1, w2, b2, dil), 0.0)
            h = jnp.maximum(c2 + res, 0.0)

        g_ref, bl_ref = next(it), next(it)
        hn = _ln(h, g_ref[...], bl_ref[...])          # (NL, C)

        # Pooling epilogue: selectors from iota (no extra operands, one matmul each).
        N = mask_ref.shape[0]
        ni = _fiota((N, NL), 0)
        ri = _fiota((N, NL), 1)
        d = ri - ni * float(L)
        p_mean = jnp.where((d >= 1.0) & (d <= float(T)), 1.0 / float(T), 0.0)
        p_cls = jnp.where(d == 0.0, 1.0, 0.0)
        p_last = jnp.where(d == float(L - 1), 1.0, 0.0)

        mask = mask_ref[...]                          # (N, 1)
        pooled = jnp.dot(p_mean, hn, preferred_element_type=jnp.float32) * mask
        h_cls = jnp.dot(p_cls, hn, preferred_element_type=jnp.float32) * mask
        t_last = jnp.dot(p_last, hn, preferred_element_type=jnp.float32) * mask

        pad = out_ref.shape[1] - 3 * C
        out_ref[...] = jnp.concatenate(
            [pooled, h_cls, t_last, jnp.zeros((N, pad), jnp.float32)], axis=-1)

    return kernel


# ------------- kernel 2: transformer + stats + MoE + routing + heads ---------

def make_fused_kernel(cfg, use_pool_proj):
    nl = cfg["transformer_nlayers"]
    nhead = cfg["transformer_nhead"]
    D = cfg["transformer_d_model"]
    C = cfg["sensor_tcn_out_dim"]
    E = cfg["num_shared_experts"]
    Mo = cfg["moe_output_dim"]
    ph = cfg["pred_horizons_len"]
    fh = cfg["fail_horizons_len"]
    S = cfg["model_max_sensors"]
    top_k = min(cfg["moe_top_k"], E)
    aux_coeff = cfg["aux_loss_coeff"]
    ent_coeff = cfg["entropy_reg_coeff"]
    dh = D // nhead
    scale = 1.0 / math.sqrt(dh)

    def kernel(*refs):
        out_ref = refs[-1]
        it = iter(refs[:-1])
        nxt = lambda: next(it)

        packed_r, mask_r, pos_r, bias_r, pm_r = nxt(), nxt(), nxt(), nxt(), nxt()
        if use_pool_proj:
            wp_r, bp_r = nxt(), nxt()
        ln1g_r, ln1b_r, wqkv_r, bqkv_r, wo_r, bo_r = (nxt(), nxt(), nxt(), nxt(),
                                                      nxt(), nxt())
        ln2g_r, ln2b_r, wf1_r, bf1_r, wf2_r, bf2_r = (nxt(), nxt(), nxt(), nxt(),
                                                      nxt(), nxt())
        ong_r, onb_r = nxt(), nxt()
        ew1_r, eb1_r, ew2_r, eb2_r = nxt(), nxt(), nxt(), nxt()
        gwm_r, gws_r, gwh_r, gfb_r = nxt(), nxt(), nxt(), nxt()
        grw_r, grb_r = nxt(), nxt()
        pwt_r, pwc_r, pwm_r, pb_r = nxt(), nxt(), nxt(), nxt()
        fw_r, fb_r = nxt(), nxt()
        rwt_r, rwc_r, rwm_r, rwd_r, rb_r = nxt(), nxt(), nxt(), nxt(), nxt()
        lastv_r, lastk_r = nxt(), nxt()

        packed = packed_r[...]
        mask = mask_r[...]                    # (N, 1)
        bias = bias_r[...]                    # (N, N) additive attention mask
        pm = pm_r[...]                        # (B, N) masked-mean pooling matrix
        N = packed.shape[0]
        B = pm.shape[0]

        pooled = packed[:, 0:C]
        h_cls = packed[:, C:2 * C]            # already masked in kernel 1
        tcn_last = packed[:, 2 * C:3 * C]

        if use_pool_proj:
            x = jnp.dot(pooled, wp_r[...], preferred_element_type=jnp.float32) + bp_r[...]
        else:
            x = pooled                        # nn.Identity() when C == D
        x = x + pos_r[...]

        # ---- pre-LN transformer encoder layer(s) ----
        for l in range(nl):
            hpre = _ln(x, ln1g_r[l], ln1b_r[l])
            qkv = jnp.dot(hpre, wqkv_r[l], preferred_element_type=jnp.float32) + bqkv_r[l]
            wo_l = wo_r[l]
            attn = jnp.zeros((N, D), jnp.float32)
            for hh in range(nhead):
                qh = qkv[:, hh * dh:(hh + 1) * dh]
                kh = qkv[:, D + hh * dh:D + (hh + 1) * dh]
                vh = qkv[:, 2 * D + hh * dh:2 * D + (hh + 1) * dh]
                sc = lax.dot_general(qh, kh, (((1,), (1,)), ((), ())),
                                     preferred_element_type=jnp.float32) * scale + bias
                sc = sc - jnp.max(sc, axis=-1, keepdims=True)
                e = jnp.exp(sc)
                att = e * pl.reciprocal(jnp.sum(e, axis=-1, keepdims=True), approx=True)
                hv = jnp.dot(att, vh, preferred_element_type=jnp.float32)
                attn = attn + jnp.dot(hv, wo_l[hh * dh:(hh + 1) * dh, :],
                                      preferred_element_type=jnp.float32)
            x = x + attn + bo_r[l]
            h2 = _ln(x, ln2g_r[l], ln2b_r[l])
            ff = jnp.maximum(
                jnp.dot(h2, wf1_r[l], preferred_element_type=jnp.float32) + bf1_r[l], 0.0)
            x = x + jnp.dot(ff, wf2_r[l], preferred_element_type=jnp.float32) + bf2_r[l]

        ctx = _ln(x, ong_r[...], onb_r[...])
        ctx_m = ctx * mask

        # ---- masked global stats ----
        mean_ctx = jnp.dot(pm, ctx_m, preferred_element_type=jnp.float32)        # (B, D)
        mean_sq = jnp.dot(pm, ctx_m * ctx_m, preferred_element_type=jnp.float32)
        std_ctx = jnp.sqrt(jnp.maximum(mean_sq - mean_ctx * mean_ctx, 1e-6))
        h_avg = jnp.dot(pm, h_cls, preferred_element_type=jnp.float32)           # (B, C)

        # ---- gate logits (chunked weights instead of lane concats) ----
        lff = (jnp.dot(mean_ctx, gwm_r[...], preferred_element_type=jnp.float32)
               + jnp.dot(std_ctx, gws_r[...], preferred_element_type=jnp.float32)
               + jnp.dot(h_avg, gwh_r[...], preferred_element_type=jnp.float32)
               + gfb_r[...])                                                     # (B, 2E)
        lrca = jnp.dot(ctx_m, grw_r[...], preferred_element_type=jnp.float32) + grb_r[...]

        # ---- stacked shared experts (computed once, shared by all gates) ----
        def experts(z):
            h1 = jnp.maximum(
                jnp.dot(z, ew1_r[...], preferred_element_type=jnp.float32) + eb1_r[...], 0.0)
            return jnp.dot(h1, ew2_r[...], preferred_element_type=jnp.float32) + eb2_r[...]

        eglob = experts(mean_ctx)             # (B, E*Mo)
        erca = experts(ctx_m)                 # (N, E*Mo)

        # ---- in-kernel top-k routing + load-balance / entropy losses ----
        def route(logits, eout, row_mask=None):
            R = logits.shape[0]
            idxf = _fiota(logits.shape, 1)
            work = logits
            ohs, vals = [], []
            for _ in range(top_k):
                m = jnp.max(work, axis=-1, keepdims=True)
                cand = jnp.where(work >= m, idxf, float(E))
                pick = jnp.min(cand, axis=-1, keepdims=True)    # lowest-index tie-break
                oh = jnp.where(idxf == pick, 1.0, 0.0)
                ohs.append(oh)
                vals.append(m)
                work = jnp.where(oh > 0.0, -1e30, work)
            exps = [jnp.exp(v - vals[0]) for v in vals]
            tot = exps[0]
            for t_ in exps[1:]:
                tot = tot + t_
            w_e = jnp.zeros_like(logits)
            sel = jnp.zeros_like(logits)
            for oh, ex in zip(ohs, exps):
                w_e = w_e + oh * (ex / tot)
                sel = sel + oh
            y = jnp.zeros((R, Mo), jnp.float32)
            for e_ in range(E):
                y = y + w_e[:, e_:e_ + 1] * eout[:, e_ * Mo:(e_ + 1) * Mo]

            probs = _softmax(logits)
            logp = _log_softmax(logits)
            neg_ent = jnp.sum(probs * logp, axis=-1, keepdims=True)             # (R, 1)
            if row_mask is None:
                avg_prob = _rowsum(probs) / float(R)
                counts = _rowsum(sel)
                mean_ne = _rowsum(neg_ent) / float(R)
                denom = float(R * top_k)
            else:
                nv = jnp.maximum(_rowsum(row_mask), 1.0)                         # (1, 1)
                avg_prob = _rowsum(probs * row_mask) / nv
                counts = _rowsum(sel * row_mask)
                mean_ne = _rowsum(neg_ent * row_mask) / nv
                denom = nv * float(top_k)
            load = float(E) * jnp.sum(avg_prob * (counts / denom),
                                      axis=-1, keepdims=True)                    # (1, 1)
            return y, load, mean_ne

        logits_f = lff[:, 0:E]
        logits_fail = lff[:, E:2 * E]
        y_f, aux_f, ne_f = route(logits_f, eglob)
        y_fail, aux_fail, ne_fail = route(logits_fail, eglob)
        y_rca, aux_rca, ne_rca = route(lrca, erca, row_mask=mask)
        y_rca = y_rca * mask

        total_aux = aux_coeff * (aux_f + aux_fail + aux_rca)                      # (1, 1)
        if ent_coeff > 0:
            total_ent = -ent_coeff * (ne_f + ne_fail + ne_rca)
        else:
            total_ent = jnp.zeros((1, 1), jnp.float32)

        # ---- heads ----
        nif = _fiota((N, B), 0)
        bif = _fiota((N, B), 1)
        expand = jnp.where((nif >= bif * float(S)) & (nif < (bif + 1.0) * float(S)),
                           1.0, 0.0)                                              # (N, B)
        row_eq = jnp.where(nif == bif, 1.0, 0.0)                                  # (N, B)

        moe_f_rows = jnp.dot(expand, y_f, preferred_element_type=jnp.float32)     # (N, Mo)

        delta = (jnp.dot(tcn_last, pwt_r[...], preferred_element_type=jnp.float32)
                 + jnp.dot(ctx_m, pwc_r[...], preferred_element_type=jnp.float32)
                 + jnp.dot(moe_f_rows, pwm_r[...], preferred_element_type=jnp.float32)
                 + pb_r[...])
        pred_abs = (lastv_r[...] + delta) * mask                                  # (N, ph)

        fail_logits = jnp.dot(y_fail, fw_r[...],
                              preferred_element_type=jnp.float32) + fb_r[...]     # (B, fh)
        fail_rows = jnp.dot(row_eq, fail_logits, preferred_element_type=jnp.float32)

        dnov = jnp.abs(pred_abs[:, 0:1] - lastk_r[...]) * mask                    # (N, 1)
        rca = (jnp.dot(tcn_last, rwt_r[...], preferred_element_type=jnp.float32)
               + jnp.dot(ctx_m, rwc_r[...], preferred_element_type=jnp.float32)
               + jnp.dot(y_rca, rwm_r[...], preferred_element_type=jnp.float32)
               + dnov * rwd_r[...] + rb_r[...])                                   # (N, 1)

        aux_col = jnp.zeros((N, 1), jnp.float32) + total_aux
        ent_col = jnp.zeros((N, 1), jnp.float32) + total_ent
        pad = out_ref.shape[1] - (ph + 1 + fh + 2)
        out_ref[...] = jnp.concatenate(
            [pred_abs, rca, fail_rows, aux_col, ent_col,
             jnp.zeros((N, pad), jnp.float32)], axis=-1)

    return kernel


# --------------------------- parameter init ----------------------------------

def make_positional_encoding(d_model, max_len):
    position = jnp.arange(max_len, dtype=jnp.float32)[:, None]
    div_term = jnp.exp(jnp.arange(0, d_model, 2, dtype=jnp.float32)
                       * (-math.log(10000.0) / d_model))
    pe = jnp.zeros((max_len, d_model), jnp.float32)
    pe = pe.at[:, 0::2].set(jnp.sin(position * div_term))
    pe = pe.at[:, 1::2].set(jnp.cos(position * div_term))
    return pe[None]


def init_params(key, cfg):
    keys = iter(jax.random.split(key, 256))

    def nrm(shape, scale=0.05):
        return jax.random.normal(next(keys), shape, jnp.float32) * scale

    p_dim = cfg["sensor_tcn_proj_dim"]
    c = cfg["sensor_tcn_out_dim"]
    d = cfg["transformer_d_model"]
    k = cfg["tcn_kernel_size"]
    E = cfg["num_shared_experts"]
    Mo = cfg["moe_output_dim"]
    He = cfg["moe_hidden_dim_expert"]
    nl = cfg["transformer_nlayers"]

    P = {}
    P["input_proj_w"] = nrm((1, p_dim))
    P["input_proj_b"] = nrm((p_dim,), 0.01)
    P["cls_token"] = jax.random.normal(next(keys), (1, 1, p_dim), jnp.float32)
    P["pe"] = make_positional_encoding(p_dim, max(cfg["seq_len"] + 1, 5000))

    blocks = []
    cin = p_dim
    for _ in range(cfg["tcn_levels"]):
        blk = {"w1": nrm((k * cin, c)), "b1": nrm((1, c), 0.01),
               "w2": nrm((k * c, c)), "b2": nrm((1, c), 0.01)}
        if cin != c:
            blk["wd"] = nrm((cin, c))
            blk["bd"] = nrm((1, c), 0.01)
        else:
            blk["wd"] = None
            blk["bd"] = None
        blocks.append(blk)
        cin = c
    P["tcn_blocks"] = blocks
    P["final_norm_g"] = jnp.ones((1, c), jnp.float32)
    P["final_norm_b"] = jnp.zeros((1, c), jnp.float32)

    if c != d:
        P["pool_proj_w"] = nrm((c, d))
        P["pool_proj_b"] = nrm((1, d), 0.01)
    else:  # torch uses nn.Identity(); skipped at trace time in the kernel
        P["pool_proj_w"] = None
        P["pool_proj_b"] = None

    P["inter_pos"] = jnp.zeros((1, cfg["model_max_sensors"], d), jnp.float32)
    P["ln1_g"] = jnp.ones((nl, 1, d), jnp.float32)
    P["ln1_b"] = jnp.zeros((nl, 1, d), jnp.float32)
    P["wqkv"] = nrm((nl, d, 3 * d))              # fused Q|K|V projection
    P["bqkv"] = nrm((nl, 1, 3 * d), 0.01)
    P["wo"] = nrm((nl, d, d))
    P["bo"] = nrm((nl, 1, d), 0.01)
    P["ln2_g"] = jnp.ones((nl, 1, d), jnp.float32)
    P["ln2_b"] = jnp.zeros((nl, 1, d), jnp.float32)
    P["wf1"] = nrm((nl, d, 2 * d))
    P["bf1"] = nrm((nl, 1, 2 * d), 0.01)
    P["wf2"] = nrm((nl, 2 * d, d))
    P["bf2"] = nrm((nl, 1, d), 0.01)
    P["out_norm_g"] = jnp.ones((1, d), jnp.float32)
    P["out_norm_b"] = jnp.zeros((1, d), jnp.float32)

    # Stacked shared experts: W1 lane-dense (in, E*He) = (32, 128); W2 block-
    # diagonal (E*He, E*Mo) so expert e maps cols [e*He,(e+1)*He) -> [e*Mo,(e+1)*Mo)
    # (identical math to E separate 2-layer MLPs).
    ein = cfg["moe_expert_input_dim"]
    P["ew1"] = nrm((ein, E * He))
    P["eb1"] = nrm((1, E * He), 0.01)
    w2bd = jnp.zeros((E * He, E * Mo), jnp.float32)
    for e in range(E):
        w2bd = w2bd.at[e * He:(e + 1) * He, e * Mo:(e + 1) * Mo].set(nrm((He, Mo)))
    P["ew2"] = w2bd
    P["eb2"] = nrm((1, E * Mo), 0.01)

    gin = d * 2 + c
    P["gate_ff_w"] = nrm((gin, 2 * E))           # forecast gate | fail gate, fused
    P["gate_ff_b"] = nrm((1, 2 * E), 0.01)
    P["gate_rca_w"] = nrm((d, E))
    P["gate_rca_b"] = nrm((1, E), 0.01)

    P["pred_w"] = nrm((c + d + Mo, cfg["pred_horizons_len"]))
    P["pred_b"] = nrm((1, cfg["pred_horizons_len"]), 0.01)
    P["fail_w"] = nrm((Mo, cfg["fail_horizons_len"]))
    P["fail_b"] = nrm((1, cfg["fail_horizons_len"]), 0.01)
    P["rca_w"] = nrm((c + d + Mo + 1, 1))
    P["rca_b"] = nrm((1, 1), 0.01)
    return P


# --------------------------- full forward ------------------------------------

def forward(cfg, params, x_features, sensor_mask, last_known):
    B, T, _ = x_features.shape
    S = cfg["model_max_sensors"]
    C = cfg["sensor_tcn_out_dim"]
    D = cfg["transformer_d_model"]
    Mo = cfg["moe_output_dim"]
    P_dim = cfg["sensor_tcn_proj_dim"]
    ph = cfg["pred_horizons_len"]
    fh = cfg["fail_horizons_len"]
    N = B * S
    L = T + 1

    # ---- tiny input prep in XLA glue (K=1 input_proj is a VPU scale+bias) ----
    # Raw reshape (B,T,S) -> (B*S,T,1) matches the reference torch code exactly.
    x_rows = x_features.reshape(N, T, cfg["sensor_input_dim"])
    x_proj = (x_rows * params["input_proj_w"].reshape(1, 1, P_dim)
              + params["input_proj_b"])
    cls = jnp.broadcast_to(params["cls_token"], (N, 1, P_dim))
    xc = jnp.concatenate([cls, x_proj], axis=1) + params["pe"][:, :L, :]
    xc_flat = xc.reshape(N * L, P_dim)
    t_col = (jnp.arange(N * L) % L).astype(jnp.float32).reshape(N * L, 1)
    mask_col = sensor_mask.reshape(N, 1)

    # ---- kernel 1: per-sensor TCN + pooling epilogue -------------------------
    down_flags = [blk["wd"] is not None for blk in params["tcn_blocks"]]
    k1_args = [xc_flat, t_col, mask_col]
    for blk in params["tcn_blocks"]:
        k1_args += [blk["w1"], blk["b1"], blk["w2"], blk["b2"]]
        if blk["wd"] is not None:
            k1_args += [blk["wd"], blk["bd"]]
    k1_args += [params["final_norm_g"], params["final_norm_b"]]

    pack1_w = ((3 * C + LANES - 1) // LANES) * LANES
    packed1 = pallas_single_block(
        make_tcn_kernel(cfg, down_flags), k1_args,
        jax.ShapeDtypeStruct((N, pack1_w), jnp.float32))

    # ---- constants / masks for kernel 2 --------------------------------------
    active = jnp.maximum(jnp.sum(sensor_mask, axis=1, keepdims=True), 1.0)
    batch_ids = jnp.repeat(jnp.arange(B), S)
    pool_mat = ((jnp.arange(B)[:, None] == batch_ids[None, :])
                .astype(jnp.float32) / active)                       # (B, N)
    key_valid = sensor_mask.reshape(N) > 0
    # -1e9 instead of -inf: identical softmax when >=1 sensor is valid, no NaNs
    # if a batch element has every sensor masked (safe softmax).
    attn_bias = jnp.where((batch_ids[:, None] == batch_ids[None, :])
                          & key_valid[None, :], 0.0, -1e9).astype(jnp.float32)
    pos_bs = jnp.tile(params["inter_pos"][0, :S, :], (B, 1))
    last_val = x_features[:, -1, :].reshape(N, 1)
    last_known_col = last_known.reshape(N, 1)

    use_pool_proj = params["pool_proj_w"] is not None
    gw = params["gate_ff_w"]
    pw = params["pred_w"]
    rw = params["rca_w"]

    # ---- kernel 2: transformer + stats + experts + routing + losses + heads --
    k2_args = [packed1, mask_col, pos_bs, attn_bias, pool_mat]
    if use_pool_proj:
        k2_args += [params["pool_proj_w"], params["pool_proj_b"]]
    k2_args += [params["ln1_g"], params["ln1_b"], params["wqkv"], params["bqkv"],
                params["wo"], params["bo"], params["ln2_g"], params["ln2_b"],
                params["wf1"], params["bf1"], params["wf2"], params["bf2"],
                params["out_norm_g"], params["out_norm_b"],
                params["ew1"], params["eb1"], params["ew2"], params["eb2"],
                gw[:D], gw[D:2 * D], gw[2 * D:], params["gate_ff_b"],
                params["gate_rca_w"], params["gate_rca_b"],
                pw[:C], pw[C:C + D], pw[C + D:], params["pred_b"],
                params["fail_w"], params["fail_b"],
                rw[:C], rw[C:C + D], rw[C + D:C + D + Mo], rw[C + D + Mo:],
                params["rca_b"],
                last_val, last_known_col]

    slab = pallas_single_block(
        make_fused_kernel(cfg, use_pool_proj), k2_args,
        jax.ShapeDtypeStruct((N, LANES), jnp.float32))

    # ---- slice the lane-dense result slab ------------------------------------
    pred_abs = slab[:, 0:ph].reshape(B, S, ph)
    rca_logits = slab[:, ph].reshape(B, S)
    fail_logits = slab[:B, ph + 1:ph + 1 + fh]
    total_aux = slab[0, ph + 1 + fh]
    total_entropy = slab[0, ph + 2 + fh]
    return pred_abs, fail_logits, rca_logits, total_aux, total_entropy


# --------------------------- main ---------------------------------------------

if __name__ == "__main__":
    cfg = CFG
    key = jax.random.PRNGKey(0)
    kp, kx, kl = jax.random.split(key, 3)
    params = init_params(kp, cfg)

    B = 2
    x_features = jax.random.normal(
        kx, (B, cfg["seq_len"], cfg["model_max_sensors"]), jnp.float32)
    sensor_mask = jnp.array([[1., 1., 1., 0.],
                             [1., 1., 0., 0.]], jnp.float32)
    last_known = jax.random.normal(kl, (B, cfg["model_max_sensors"]), jnp.float32)

    fwd = jax.jit(functools.partial(forward, cfg))
    outs = jax.block_until_ready(fwd(params, x_features, sensor_mask, last_known))
    pred_abs, fail_logits, rca_logits, total_aux, total_entropy = outs

    assert pred_abs.shape == (B, cfg["model_max_sensors"], cfg["pred_horizons_len"])
    assert fail_logits.shape == (B, cfg["fail_horizons_len"])
    assert rca_logits.shape == (B, cfg["model_max_sensors"])
    assert total_aux.shape == () and total_entropy.shape == ()
    for o in (pred_abs, fail_logits, rca_logits, total_aux, total_entropy):
        assert bool(jnp.all(jnp.isfinite(o)))
    print("KERNEL_OK")
</pallas_src>

<mosaic_0001>
module attributes {stable_mosaic.version = 11 : i64} {
  func.func @kernel(%arg0: i32, %arg1: memref<72x24xf32, #tpu.memory_space<vmem>>, %arg2: memref<72x1xf32, #tpu.memory_space<vmem>>, %arg3: memref<8x1xf32, #tpu.memory_space<vmem>>, %arg4: memref<72x32xf32, #tpu.memory_space<vmem>>, %arg5: memref<1x32xf32, #tpu.memory_space<vmem>>, %arg6: memref<96x32xf32, #tpu.memory_space<vmem>>, %arg7: memref<1x32xf32, #tpu.memory_space<vmem>>, %arg8: memref<24x32xf32, #tpu.memory_space<vmem>>, %arg9: memref<1x32xf32, #tpu.memory_space<vmem>>, %arg10: memref<96x32xf32, #tpu.memory_space<vmem>>, %arg11: memref<1x32xf32, #tpu.memory_space<vmem>>, %arg12: memref<96x32xf32, #tpu.memory_space<vmem>>, %arg13: memref<1x32xf32, #tpu.memory_space<vmem>>, %arg14: memref<1x32xf32, #tpu.memory_space<vmem>>, %arg15: memref<1x32xf32, #tpu.memory_space<vmem>>, %arg16: memref<8x128xf32, #tpu.memory_space<vmem>>) attributes {dimension_semantics = [#tpu.dimension_semantics<arbitrary>], iteration_bounds = array<i64: 1>, scalar_prefetch = 0 : i64, scratch_operands = 0 : i64, tpu.core_type = #tpu.core_type<tc>, window_params = [{pipeline_mode = #tpu.pipeline_mode<synchronous>, transform_indices = @transform_0, window_bounds = array<i64: 72, 24>}, {pipeline_mode = #tpu.pipeline_mode<synchronous>, transform_indices = @transform_1, window_bounds = array<i64: 72, 1>}, {pipeline_mode = #tpu.pipeline_mode<synchronous>, transform_indices = @transform_2, window_bounds = array<i64: 8, 1>}, {pipeline_mode = #tpu.pipeline_mode<synchronous>, transform_indices = @transform_3, window_bounds = array<i64: 72, 32>}, {pipeline_mode = #tpu.pipeline_mode<synchronous>, transform_indices = @transform_4, window_bounds = array<i64: 1, 32>}, {pipeline_mode = #tpu.pipeline_mode<synchronous>, transform_indices = @transform_5, window_bounds = array<i64: 96, 32>}, {pipeline_mode = #tpu.pipeline_mode<synchronous>, transform_indices = @transform_6, window_bounds = array<i64: 1, 32>}, {pipeline_mode = #tpu.pipeline_mode<synchronous>, transform_indices = @transform_7, window_bounds = array<i64: 24, 32>}, {pipeline_mode = #tpu.pipeline_mode<synchronous>, transform_indices = @transform_8, window_bounds = array<i64: 1, 32>}, {pipeline_mode = #tpu.pipeline_mode<synchronous>, transform_indices = @transform_9, window_bounds = array<i64: 96, 32>}, {pipeline_mode = #tpu.pipeline_mode<synchronous>, transform_indices = @transform_10, window_bounds = array<i64: 1, 32>}, {pipeline_mode = #tpu.pipeline_mode<synchronous>, transform_indices = @transform_11, window_bounds = array<i64: 96, 32>}, {pipeline_mode = #tpu.pipeline_mode<synchronous>, transform_indices = @transform_12, window_bounds = array<i64: 1, 32>}, {pipeline_mode = #tpu.pipeline_mode<synchronous>, transform_indices = @transform_13, window_bounds = array<i64: 1, 32>}, {pipeline_mode = #tpu.pipeline_mode<synchronous>, transform_indices = @transform_14, window_bounds = array<i64: 1, 32>}, {pipeline_mode = #tpu.pipeline_mode<synchronous>, transform_indices = @transform_15, window_bounds = array<i64: 8, 128>}]} {
    %c0 = arith.constant 0 : index
    %c0_0 = arith.constant 0 : index
    %0 = vector.load %arg1[%c0, %c0_0] : memref<72x24xf32, #tpu.memory_space<vmem>>, vector<72x24xf32>
    %c0_1 = arith.constant 0 : index
    %c0_2 = arith.constant 0 : index
    %1 = vector.load %arg2[%c0_1, %c0_2] : memref<72x1xf32, #tpu.memory_space<vmem>>, vector<72x1xf32>
    %c0_3 = arith.constant 0 : index
    %c0_4 = arith.constant 0 : index
    %2 = vector.load %arg8[%c0_3, %c0_4] : memref<24x32xf32, #tpu.memory_space<vmem>>, vector<24x32xf32>
    %cst = arith.constant dense<0.000000e+00> : vector<72x32xf32>
    %3 = tpu.matmul %0, %2, %cst {dimension_numbers = #tpu.dot_dimension_numbers<[1], [0], [0], [1], [0, 0, 1, 1], [], []>} : vector<72x24xf32>, vector<24x32xf32>, vector<72x32xf32> -> vector<72x32xf32>
    %c0_5 = arith.constant 0 : index
    %c0_6 = arith.constant 0 : index
    %4 = vector.load %arg9[%c0_5, %c0_6] : memref<1x32xf32, #tpu.memory_space<vmem>>, vector<1x32xf32>
    %5 = vector.broadcast %4 : vector<1x32xf32> to vector<72x32xf32>
    %6 = arith.addf %3, %5 : vector<72x32xf32>
    %cst_7 = arith.constant 0.000000e+00 : f32
    %7 = vector.broadcast %cst_7 : f32 to vector<72x32xf32>
    %c0_8 = arith.constant 0 : index
    %c0_9 = arith.constant 0 : index
    %8 = vector.load %arg5[%c0_8, %c0_9] : memref<1x32xf32, #tpu.memory_space<vmem>>, vector<1x32xf32>
    %9 = vector.broadcast %8 : vector<1x32xf32> to vector<72x32xf32>
    %10 = arith.addf %7, %9 : vector<72x32xf32>
    %11 = tpu.iota {dimensions = array<i32: 0>} : vector<72x72xi32>
    %12 = arith.sitofp %11 : vector<72x72xi32> to vector<72x72xf32>
    %13 = tpu.iota {dimensions = array<i32: 1>} : vector<72x72xi32>
    %14 = arith.sitofp %13 : vector<72x72xi32> to vector<72x72xf32>
    %15 = arith.subf %12, %14 : vector<72x72xf32>
    %cst_10 = arith.constant 2.000000e+00 : f32
    %16 = vector.broadcast %cst_10 : f32 to vector<72x72xf32>
    %17 = arith.cmpf oeq, %15, %16 : vector<72x72xf32>
    %cst_11 = arith.constant 1.000000e+00 : f32
    %cst_12 = arith.constant 0.000000e+00 : f32
    %18 = vector.broadcast %cst_11 : f32 to vector<72x72xf32>
    %19 = vector.broadcast %cst_12 : f32 to vector<72x72xf32>
    %20 = arith.select %17, %18, %19 : vector<72x72xi1>, vector<72x72xf32>
    %cst_13 = arith.constant dense<0.000000e+00> : vector<72x24xf32>
    %21 = tpu.matmul %20, %0, %cst_13 {dimension_numbers = #tpu.dot_dimension_numbers<[1], [0], [0], [1], [0, 0, 1, 1], [], []>} : vector<72x72xf32>, vector<72x24xf32>, vector<72x24xf32> -> vector<72x24xf32>
    %cst_14 = arith.constant 2.000000e+00 : f32
    %22 = vector.broadcast %cst_14 : f32 to vector<72x1xf32>
    %23 = arith.cmpf oge, %1, %22 : vector<72x1xf32>
    %24 = arith.extui %23 : vector<72x1xi1> to vector<72x1xi32>
    %25 = arith.sitofp %24 : vector<72x1xi32> to vector<72x1xf32>
    %26 = vector.broadcast %25 : vector<72x1xf32> to vector<72x24xf32>
    %27 = arith.mulf %21, %26 : vector<72x24xf32>
    %c0_15 = arith.constant 0 : index
    %c0_16 = arith.constant 0 : index
    %28 = vector.load %arg4[%c0_15, %c0_16] : memref<72x32xf32, #tpu.memory_space<vmem>>, vector<24x32xf32>
    %cst_17 = arith.constant dense<0.000000e+00> : vector<72x32xf32>
    %29 = tpu.matmul %27, %28, %cst_17 {dimension_numbers = #tpu.dot_dimension_numbers<[1], [0], [0], [1], [0, 0, 1, 1], [], []>} : vector<72x24xf32>, vector<24x32xf32>, vector<72x32xf32> -> vector<72x32xf32>
    %30 = arith.addf %10, %29 : vector<72x32xf32>
    %31 = tpu.iota {dimensions = array<i32: 0>} : vector<72x72xi32>
    %32 = arith.sitofp %31 : vector<72x72xi32> to vector<72x72xf32>
    %33 = tpu.iota {dimensions = array<i32: 1>} : vector<72x72xi32>
    %34 = arith.sitofp %33 : vector<72x72xi32> to vector<72x72xf32>
    %35 = arith.subf %32, %34 : vector<72x72xf32>
    %cst_18 = arith.constant 1.000000e+00 : f32
    %36 = vector.broadcast %cst_18 : f32 to vector<72x72xf32>
    %37 = arith.cmpf oeq, %35, %36 : vector<72x72xf32>
    %cst_19 = arith.constant 1.000000e+00 : f32
    %cst_20 = arith.constant 0.000000e+00 : f32
    %38 = vector.broadcast %cst_19 : f32 to vector<72x72xf32>
    %39 = vector.broadcast %cst_20 : f32 to vector<72x72xf32>
    %40 = arith.select %37, %38, %39 : vector<72x72xi1>, vector<72x72xf32>
    %cst_21 = arith.constant dense<0.000000e+00> : vector<72x24xf32>
    %41 = tpu.matmul %40, %0, %cst_21 {dimension_numbers = #tpu.dot_dimension_numbers<[1], [0], [0], [1], [0, 0, 1, 1], [], []>} : vector<72x72xf32>, vector<72x24xf32>, vector<72x24xf32> -> vector<72x24xf32>
    %cst_22 = arith.constant 1.000000e+00 : f32
    %42 = vector.broadcast %cst_22 : f32 to vector<72x1xf32>
    %43 = arith.cmpf oge, %1, %42 : vector<72x1xf32>
    %44 = arith.extui %43 : vector<72x1xi1> to vector<72x1xi32>
    %45 = arith.sitofp %44 : vector<72x1xi32> to vector<72x1xf32>
    %46 = vector.broadcast %45 : vector<72x1xf32> to vector<72x24xf32>
    %47 = arith.mulf %41, %46 : vector<72x24xf32>
    %c24 = arith.constant 24 : index
    %c0_23 = arith.constant 0 : index
    %48 = vector.load %arg4[%c24, %c0_23] : memref<72x32xf32, #tpu.memory_space<vmem>>, vector<24x32xf32>
    %cst_24 = arith.constant dense<0.000000e+00> : vector<72x32xf32>
    %49 = tpu.matmul %47, %48, %cst_24 {dimension_numbers = #tpu.dot_dimension_numbers<[1], [0], [0], [1], [0, 0, 1, 1], [], []>} : vector<72x24xf32>, vector<24x32xf32>, vector<72x32xf32> -> vector<72x32xf32>
    %50 = arith.addf %30, %49 : vector<72x32xf32>
    %c48 = arith.constant 48 : index
    %c0_25 = arith.constant 0 : index
    %51 = vector.load %arg4[%c48, %c0_25] : memref<72x32xf32, #tpu.memory_space<vmem>>, vector<24x32xf32>
    %cst_26 = arith.constant dense<0.000000e+00> : vector<72x32xf32>
    %52 = tpu.matmul %0, %51, %cst_26 {dimension_numbers = #tpu.dot_dimension_numbers<[1], [0], [0], [1], [0, 0, 1, 1], [], []>} : vector<72x24xf32>, vector<24x32xf32>, vector<72x32xf32> -> vector<72x32xf32>
    %53 = arith.addf %50, %52 : vector<72x32xf32>
    %cst_27 = arith.constant 0.000000e+00 : f32
    %54 = vector.broadcast %cst_27 : f32 to vector<72x32xf32>
    %55 = arith.maximumf %53, %54 : vector<72x32xf32>
    %cst_28 = arith.constant 0.000000e+00 : f32
    %56 = vector.broadcast %cst_28 : f32 to vector<72x32xf32>
    %c0_29 = arith.constant 0 : index
    %c0_30 = arith.constant 0 : index
    %57 = vector.load %arg7[%c0_29, %c0_30] : memref<1x32xf32, #tpu.memory_space<vmem>>, vector<1x32xf32>
    %58 = vector.broadcast %57 : vector<1x32xf32> to vector<72x32xf32>
    %59 = arith.addf %56, %58 : vector<72x32xf32>
    %60 = tpu.iota {dimensions = array<i32: 0>} : vector<72x72xi32>
    %61 = arith.sitofp %60 : vector<72x72xi32> to vector<72x72xf32>
    %62 = tpu.iota {dimensions = array<i32: 1>} : vector<72x72xi32>
    %63 = arith.sitofp %62 : vector<72x72xi32> to vector<72x72xf32>
    %64 = arith.subf %61, %63 : vector<72x72xf32>
    %cst_31 = arith.constant 2.000000e+00 : f32
    %65 = vector.broadcast %cst_31 : f32 to vector<72x72xf32>
    %66 = arith.cmpf oeq, %64, %65 : vector<72x72xf32>
    %cst_32 = arith.constant 1.000000e+00 : f32
    %cst_33 = arith.constant 0.000000e+00 : f32
    %67 = vector.broadcast %cst_32 : f32 to vector<72x72xf32>
    %68 = vector.broadcast %cst_33 : f32 to vector<72x72xf32>
    %69 = arith.select %66, %67, %68 : vector<72x72xi1>, vector<72x72xf32>
    %cst_34 = arith.constant dense<0.000000e+00> : vector<72x32xf32>
    %70 = tpu.matmul %69, %55, %cst_34 {dimension_numbers = #tpu.dot_dimension_numbers<[1], [0], [0], [1], [0, 0, 1, 1], [], []>} : vector<72x72xf32>, vector<72x32xf32>, vector<72x32xf32> -> vector<72x32xf32>
    %cst_35 = arith.constant 2.000000e+00 : f32
    %71 = vector.broadcast %cst_35 : f32 to vector<72x1xf32>
    %72 = arith.cmpf oge, %1, %71 : vector<72x1xf32>
    %73 = arith.extui %72 : vector<72x1xi1> to vector<72x1xi32>
    %74 = arith.sitofp %73 : vector<72x1xi32> to vector<72x1xf32>
    %75 = vector.broadcast %74 : vector<72x1xf32> to vector<72x32xf32>
    %76 = arith.mulf %70, %75 : vector<72x32xf32>
    %c0_36 = arith.constant 0 : index
    %c0_37 = arith.constant 0 : index
    %77 = vector.load %arg6[%c0_36, %c0_37] : memref<96x32xf32, #tpu.memory_space<vmem>>, vector<32x32xf32>
    %cst_38 = arith.constant dense<0.000000e+00> : vector<72x32xf32>
    %78 = tpu.matmul %76, %77, %cst_38 {dimension_numbers = #tpu.dot_dimension_numbers<[1], [0], [0], [1], [0, 0, 1, 1], [], []>} : vector<72x32xf32>, vector<32x32xf32>, vector<72x32xf32> -> vector<72x32xf32>
    %79 = arith.addf %59, %78 : vector<72x32xf32>
    %80 = tpu.iota {dimensions = array<i32: 0>} : vector<72x72xi32>
    %81 = arith.sitofp %80 : vector<72x72xi32> to vector<72x72xf32>
    %82 = tpu.iota {dimensions = array<i32: 1>} : vector<72x72xi32>
    %83 = arith.sitofp %82 : vector<72x72xi32> to vector<72x72xf32>
    %84 = arith.subf %81, %83 : vector<72x72xf32>
    %cst_39 = arith.constant 1.000000e+00 : f32
    %85 = vector.broadcast %cst_39 : f32 to vector<72x72xf32>
    %86 = arith.cmpf oeq, %84, %85 : vector<72x72xf32>
    %cst_40 = arith.constant 1.000000e+00 : f32
    %cst_41 = arith.constant 0.000000e+00 : f32
    %87 = vector.broadcast %cst_40 : f32 to vector<72x72xf32>
    %88 = vector.broadcast %cst_41 : f32 to vector<72x72xf32>
    %89 = arith.select %86, %87, %88 : vector<72x72xi1>, vector<72x72xf32>
    %cst_42 = arith.constant dense<0.000000e+00> : vector<72x32xf32>
    %90 = tpu.matmul %89, %55, %cst_42 {dimension_numbers = #tpu.dot_dimension_numbers<[1], [0], [0], [1], [0, 0, 1, 1], [], []>} : vector<72x72xf32>, vector<72x32xf32>, vector<72x32xf32> -> vector<72x32xf32>
    %cst_43 = arith.constant 1.000000e+00 : f32
    %91 = vector.broadcast %cst_43 : f32 to vector<72x1xf32>
    %92 = arith.cmpf oge, %1, %91 : vector<72x1xf32>
    %93 = arith.extui %92 : vector<72x1xi1> to vector<72x1xi32>
    %94 = arith.sitofp %93 : vector<72x1xi32> to vector<72x1xf32>
    %95 = vector.broadcast %94 : vector<72x1xf32> to vector<72x32xf32>
    %96 = arith.mulf %90, %95 : vector<72x32xf32>
    %c32 = arith.constant 32 : index
    %c0_44 = arith.constant 0 : index
    %97 = vector.load %arg6[%c32, %c0_44] : memref<96x32xf32, #tpu.memory_space<vmem>>, vector<32x32xf32>
    %cst_45 = arith.constant dense<0.000000e+00> : vector<72x32xf32>
    %98 = tpu.matmul %96, %97, %cst_45 {dimension_numbers = #tpu.dot_dimension_numbers<[1], [0], [0], [1], [0, 0, 1, 1], [], []>} : vector<72x32xf32>, vector<32x32xf32>, vector<72x32xf32> -> vector<72x32xf32>
    %99 = arith.addf %79, %98 : vector<72x32xf32>
    %c64 = arith.constant 64 : index
    %c0_46 = arith.constant 0 : index
    %100 = vector.load %arg6[%c64, %c0_46] : memref<96x32xf32, #tpu.memory_space<vmem>>, vector<32x32xf32>
    %cst_47 = arith.constant dense<0.000000e+00> : vector<72x32xf32>
    %101 = tpu.matmul %55, %100, %cst_47 {dimension_numbers = #tpu.dot_dimension_numbers<[1], [0], [0], [1], [0, 0, 1, 1], [], []>} : vector<72x32xf32>, vector<32x32xf32>, vector<72x32xf32> -> vector<72x32xf32>
    %102 = arith.addf %99, %101 : vector<72x32xf32>
    %cst_48 = arith.constant 0.000000e+00 : f32
    %103 = vector.broadcast %cst_48 : f32 to vector<72x32xf32>
    %104 = arith.maximumf %102, %103 : vector<72x32xf32>
    %105 = arith.addf %104, %6 : vector<72x32xf32>
    %cst_49 = arith.constant 0.000000e+00 : f32
    %106 = vector.broadcast %cst_49 : f32 to vector<72x32xf32>
    %107 = arith.maximumf %105, %106 : vector<72x32xf32>
    %cst_50 = arith.constant 0.000000e+00 : f32
    %108 = vector.broadcast %cst_50 : f32 to vector<72x32xf32>
    %c0_51 = arith.constant 0 : index
    %c0_52 = arith.constant 0 : index
    %109 = vector.load %arg11[%c0_51, %c0_52] : memref<1x32xf32, #tpu.memory_space<vmem>>, vector<1x32xf32>
    %110 = vector.broadcast %109 : vector<1x32xf32> to vector<72x32xf32>
    %111 = arith.addf %108, %110 : vector<72x32xf32>
    %112 = tpu.iota {dimensions = array<i32: 0>} : vector<72x72xi32>
    %113 = arith.sitofp %112 : vector<72x72xi32> to vector<72x72xf32>
    %114 = tpu.iota {dimensions = array<i32: 1>} : vector<72x72xi32>
    %115 = arith.sitofp %114 : vector<72x72xi32> to vector<72x72xf32>
    %116 = arith.subf %113, %115 : vector<72x72xf32>
    %cst_53 = arith.constant 4.000000e+00 : f32
    %117 = vector.broadcast %cst_53 : f32 to vector<72x72xf32>
    %118 = arith.cmpf oeq, %116, %117 : vector<72x72xf32>
    %cst_54 = arith.constant 1.000000e+00 : f32
    %cst_55 = arith.constant 0.000000e+00 : f32
    %119 = vector.broadcast %cst_54 : f32 to vector<72x72xf32>
    %120 = vector.broadcast %cst_55 : f32 to vector<72x72xf32>
    %121 = arith.select %118, %119, %120 : vector<72x72xi1>, vector<72x72xf32>
    %cst_56 = arith.constant dense<0.000000e+00> : vector<72x32xf32>
    %122 = tpu.matmul %121, %107, %cst_56 {dimension_numbers = #tpu.dot_dimension_numbers<[1], [0], [0], [1], [0, 0, 1, 1], [], []>} : vector<72x72xf32>, vector<72x32xf32>, vector<72x32xf32> -> vector<72x32xf32>
    %cst_57 = arith.constant 4.000000e+00 : f32
    %123 = vector.broadcast %cst_57 : f32 to vector<72x1xf32>
    %124 = arith.cmpf oge, %1, %123 : vector<72x1xf32>
    %125 = arith.extui %124 : vector<72x1xi1> to vector<72x1xi32>
    %126 = arith.sitofp %125 : vector<72x1xi32> to vector<72x1xf32>
    %127 = vector.broadcast %126 : vector<72x1xf32> to vector<72x32xf32>
    %128 = arith.mulf %122, %127 : vector<72x32xf32>
    %c0_58 = arith.constant 0 : index
    %c0_59 = arith.constant 0 : index
    %129 = vector.load %arg10[%c0_58, %c0_59] : memref<96x32xf32, #tpu.memory_space<vmem>>, vector<32x32xf32>
    %cst_60 = arith.constant dense<0.000000e+00> : vector<72x32xf32>
    %130 = tpu.matmul %128, %129, %cst_60 {dimension_numbers = #tpu.dot_dimension_numbers<[1], [0], [0], [1], [0, 0, 1, 1], [], []>} : vector<72x32xf32>, vector<32x32xf32>, vector<72x32xf32> -> vector<72x32xf32>
    %131 = arith.addf %111, %130 : vector<72x32xf32>
    %132 = tpu.iota {dimensions = array<i32: 0>} : vector<72x72xi32>
    %133 = arith.sitofp %132 : vector<72x72xi32> to vector<72x72xf32>
    %134 = tpu.iota {dimensions = array<i32: 1>} : vector<72x72xi32>
    %135 = arith.sitofp %134 : vector<72x72xi32> to vector<72x72xf32>
    %136 = arith.subf %133, %135 : vector<72x72xf32>
    %cst_61 = arith.constant 2.000000e+00 : f32
    %137 = vector.broadcast %cst_61 : f32 to vector<72x72xf32>
    %138 = arith.cmpf oeq, %136, %137 : vector<72x72xf32>
    %cst_62 = arith.constant 1.000000e+00 : f32
    %cst_63 = arith.constant 0.000000e+00 : f32
    %139 = vector.broadcast %cst_62 : f32 to vector<72x72xf32>
    %140 = vector.broadcast %cst_63 : f32 to vector<72x72xf32>
    %141 = arith.select %138, %139, %140 : vector<72x72xi1>, vector<72x72xf32>
    %cst_64 = arith.constant dense<0.000000e+00> : vector<72x32xf32>
    %142 = tpu.matmul %141, %107, %cst_64 {dimension_numbers = #tpu.dot_dimension_numbers<[1], [0], [0], [1], [0, 0, 1, 1], [], []>} : vector<72x72xf32>, vector<72x32xf32>, vector<72x32xf32> -> vector<72x32xf32>
    %cst_65 = arith.constant 2.000000e+00 : f32
    %143 = vector.broadcast %cst_65 : f32 to vector<72x1xf32>
    %144 = arith.cmpf oge, %1, %143 : vector<72x1xf32>
    %145 = arith.extui %144 : vector<72x1xi1> to vector<72x1xi32>
    %146 = arith.sitofp %145 : vector<72x1xi32> to vector<72x1xf32>
    %147 = vector.broadcast %146 : vector<72x1xf32> to vector<72x32xf32>
    %148 = arith.mulf %142, %147 : vector<72x32xf32>
    %c32_66 = arith.constant 32 : index
    %c0_67 = arith.constant 0 : index
    %149 = vector.load %arg10[%c32_66, %c0_67] : memref<96x32xf32, #tpu.memory_space<vmem>>, vector<32x32xf32>
    %cst_68 = arith.constant dense<0.000000e+00> : vector<72x32xf32>
    %150 = tpu.matmul %148, %149, %cst_68 {dimension_numbers = #tpu.dot_dimension_numbers<[1], [0], [0], [1], [0, 0, 1, 1], [], []>} : vector<72x32xf32>, vector<32x32xf32>, vector<72x32xf32> -> vector<72x32xf32>
    %151 = arith.addf %131, %150 : vector<72x32xf32>
    %c64_69 = arith.constant 64 : index
    %c0_70 = arith.constant 0 : index
    %152 = vector.load %arg10[%c64_69, %c0_70] : memref<96x32xf32, #tpu.memory_space<vmem>>, vector<32x32xf32>
    %cst_71 = arith.constant dense<0.000000e+00> : vector<72x32xf32>
    %153 = tpu.matmul %107, %152, %cst_71 {dimension_numbers = #tpu.dot_dimension_numbers<[1], [0], [0], [1], [0, 0, 1, 1], [], []>} : vector<72x32xf32>, vector<32x32xf32>, vector<72x32xf32> -> vector<72x32xf32>
    %154 = arith.addf %151, %153 : vector<72x32xf32>
    %cst_72 = arith.constant 0.000000e+00 : f32
    %155 = vector.broadcast %cst_72 : f32 to vector<72x32xf32>
    %156 = arith.maximumf %154, %155 : vector<72x32xf32>
    %cst_73 = arith.constant 0.000000e+00 : f32
    %157 = vector.broadcast %cst_73 : f32 to vector<72x32xf32>
    %c0_74 = arith.constant 0 : index
    %c0_75 = arith.constant 0 : index
    %158 = vector.load %arg13[%c0_74, %c0_75] : memref<1x32xf32, #tpu.memory_space<vmem>>, vector<1x32xf32>
    %159 = vector.broadcast %158 : vector<1x32xf32> to vector<72x32xf32>
    %160 = arith.addf %157, %159 : vector<72x32xf32>
    %161 = tpu.iota {dimensions = array<i32: 0>} : vector<72x72xi32>
    %162 = arith.sitofp %161 : vector<72x72xi32> to vector<72x72xf32>
    %163 = tpu.iota {dimensions = array<i32: 1>} : vector<72x72xi32>
    %164 = arith.sitofp %163 : vector<72x72xi32> to vector<72x72xf32>
    %165 = arith.subf %162, %164 : vector<72x72xf32>
    %cst_76 = arith.constant 4.000000e+00 : f32
    %166 = vector.broadcast %cst_76 : f32 to vector<72x72xf32>
    %167 = arith.cmpf oeq, %165, %166 : vector<72x72xf32>
    %cst_77 = arith.constant 1.000000e+00 : f32
    %cst_78 = arith.constant 0.000000e+00 : f32
    %168 = vector.broadcast %cst_77 : f32 to vector<72x72xf32>
    %169 = vector.broadcast %cst_78 : f32 to vector<72x72xf32>
    %170 = arith.select %167, %168, %169 : vector<72x72xi1>, vector<72x72xf32>
    %cst_79 = arith.constant dense<0.000000e+00> : vector<72x32xf32>
    %171 = tpu.matmul %170, %156, %cst_79 {dimension_numbers = #tpu.dot_dimension_numbers<[1], [0], [0], [1], [0, 0, 1, 1], [], []>} : vector<72x72xf32>, vector<72x32xf32>, vector<72x32xf32> -> vector<72x32xf32>
    %cst_80 = arith.constant 4.000000e+00 : f32
    %172 = vector.broadcast %cst_80 : f32 to vector<72x1xf32>
    %173 = arith.cmpf oge, %1, %172 : vector<72x1xf32>
    %174 = arith.extui %173 : vector<72x1xi1> to vector<72x1xi32>
    %175 = arith.sitofp %174 : vector<72x1xi32> to vector<72x1xf32>
    %176 = vector.broadcast %175 : vector<72x1xf32> to vector<72x32xf32>
    %177 = arith.mulf %171, %176 : vector<72x32xf32>
    %c0_81 = arith.constant 0 : index
    %c0_82 = arith.constant 0 : index
    %178 = vector.load %arg12[%c0_81, %c0_82] : memref<96x32xf32, #tpu.memory_space<vmem>>, vector<32x32xf32>
    %cst_83 = arith.constant dense<0.000000e+00> : vector<72x32xf32>
    %179 = tpu.matmul %177, %178, %cst_83 {dimension_numbers = #tpu.dot_dimension_numbers<[1], [0], [0], [1], [0, 0, 1, 1], [], []>} : vector<72x32xf32>, vector<32x32xf32>, vector<72x32xf32> -> vector<72x32xf32>
    %180 = arith.addf %160, %179 : vector<72x32xf32>
    %181 = tpu.iota {dimensions = array<i32: 0>} : vector<72x72xi32>
    %182 = arith.sitofp %181 : vector<72x72xi32> to vector<72x72xf32>
    %183 = tpu.iota {dimensions = array<i32: 1>} : vector<72x72xi32>
    %184 = arith.sitofp %183 : vector<72x72xi32> to vector<72x72xf32>
    %185 = arith.subf %182, %184 : vector<72x72xf32>
    %cst_84 = arith.constant 2.000000e+00 : f32
    %186 = vector.broadcast %cst_84 : f32 to vector<72x72xf32>
    %187 = arith.cmpf oeq, %185, %186 : vector<72x72xf32>
    %cst_85 = arith.constant 1.000000e+00 : f32
    %cst_86 = arith.constant 0.000000e+00 : f32
    %188 = vector.broadcast %cst_85 : f32 to vector<72x72xf32>
    %189 = vector.broadcast %cst_86 : f32 to vector<72x72xf32>
    %190 = arith.select %187, %188, %189 : vector<72x72xi1>, vector<72x72xf32>
    %cst_87 = arith.constant dense<0.000000e+00> : vector<72x32xf32>
    %191 = tpu.matmul %190, %156, %cst_87 {dimension_numbers = #tpu.dot_dimension_numbers<[1], [0], [0], [1], [0, 0, 1, 1], [], []>} : vector<72x72xf32>, vector<72x32xf32>, vector<72x32xf32> -> vector<72x32xf32>
    %cst_88 = arith.constant 2.000000e+00 : f32
    %192 = vector.broadcast %cst_88 : f32 to vector<72x1xf32>
    %193 = arith.cmpf oge, %1, %192 : vector<72x1xf32>
    %194 = arith.extui %193 : vector<72x1xi1> to vector<72x1xi32>
    %195 = arith.sitofp %194 : vector<72x1xi32> to vector<72x1xf32>
    %196 = vector.broadcast %195 : vector<72x1xf32> to vector<72x32xf32>
    %197 = arith.mulf %191, %196 : vector<72x32xf32>
    %c32_89 = arith.constant 32 : index
    %c0_90 = arith.constant 0 : index
    %198 = vector.load %arg12[%c32_89, %c0_90] : memref<96x32xf32, #tpu.memory_space<vmem>>, vector<32x32xf32>
    %cst_91 = arith.constant dense<0.000000e+00> : vector<72x32xf32>
    %199 = tpu.matmul %197, %198, %cst_91 {dimension_numbers = #tpu.dot_dimension_numbers<[1], [0], [0], [1], [0, 0, 1, 1], [], []>} : vector<72x32xf32>, vector<32x32xf32>, vector<72x32xf32> -> vector<72x32xf32>
    %200 = arith.addf %180, %199 : vector<72x32xf32>
    %c64_92 = arith.constant 64 : index
    %c0_93 = arith.constant 0 : index
    %201 = vector.load %arg12[%c64_92, %c0_93] : memref<96x32xf32, #tpu.memory_space<vmem>>, vector<32x32xf32>
    %cst_94 = arith.constant dense<0.000000e+00> : vector<72x32xf32>
    %202 = tpu.matmul %156, %201, %cst_94 {dimension_numbers = #tpu.dot_dimension_numbers<[1], [0], [0], [1], [0, 0, 1, 1], [], []>} : vector<72x32xf32>, vector<32x32xf32>, vector<72x32xf32> -> vector<72x32xf32>
    %203 = arith.addf %200, %202 : vector<72x32xf32>
    %cst_95 = arith.constant 0.000000e+00 : f32
    %204 = vector.broadcast %cst_95 : f32 to vector<72x32xf32>
    %205 = arith.maximumf %203, %204 : vector<72x32xf32>
    %206 = arith.addf %205, %107 : vector<72x32xf32>
    %cst_96 = arith.constant 0.000000e+00 : f32
    %207 = vector.broadcast %cst_96 : f32 to vector<72x32xf32>
    %208 = arith.maximumf %206, %207 : vector<72x32xf32>
    %c0_97 = arith.constant 0 : index
    %c0_98 = arith.constant 0 : index
    %209 = vector.load %arg14[%c0_97, %c0_98] : memref<1x32xf32, #tpu.memory_space<vmem>>, vector<1x32xf32>
    %c0_99 = arith.constant 0 : index
    %c0_100 = arith.constant 0 : index
    %210 = vector.load %arg15[%c0_99, %c0_100] : memref<1x32xf32, #tpu.memory_space<vmem>>, vector<1x32xf32>
    %cst_101 = arith.constant dense<0.000000e+00> : vector<72xf32>
    %211 = vector.multi_reduction <add>, %208, %cst_101 [1] : vector<72x32xf32> to vector<72xf32>
    %212 = vector.shape_cast %211 : vector<72xf32> to vector<72x1xf32>
    %cst_102 = arith.constant 3.200000e+01 : f32
    %213 = vector.broadcast %cst_102 : f32 to vector<72x1xf32>
    %214 = arith.divf %212, %213 : vector<72x1xf32>
    %215 = vector.broadcast %214 : vector<72x1xf32> to vector<72x32xf32>
    %216 = arith.subf %208, %215 : vector<72x32xf32>
    %217 = arith.mulf %216, %216 : vector<72x32xf32>
    %cst_103 = arith.constant dense<0.000000e+00> : vector<72xf32>
    %218 = vector.multi_reduction <add>, %217, %cst_103 [1] : vector<72x32xf32> to vector<72xf32>
    %219 = vector.shape_cast %218 : vector<72xf32> to vector<72x1xf32>
    %cst_104 = arith.constant 3.200000e+01 : f32
    %220 = vector.broadcast %cst_104 : f32 to vector<72x1xf32>
    %221 = arith.divf %219, %220 : vector<72x1xf32>
    %222 = vector.broadcast %214 : vector<72x1xf32> to vector<72x32xf32>
    %223 = arith.subf %208, %222 : vector<72x32xf32>
    %cst_105 = arith.constant 9.99999974E-6 : f32
    %224 = vector.broadcast %cst_105 : f32 to vector<72x1xf32>
    %225 = arith.addf %221, %224 : vector<72x1xf32>
    %226 = math.rsqrt %225 : vector<72x1xf32>
    %227 = vector.broadcast %226 : vector<72x1xf32> to vector<72x32xf32>
    %228 = arith.mulf %223, %227 : vector<72x32xf32>
    %229 = vector.broadcast %209 : vector<1x32xf32> to vector<72x32xf32>
    %230 = arith.mulf %228, %229 : vector<72x32xf32>
    %231 = vector.broadcast %210 : vector<1x32xf32> to vector<72x32xf32>
    %232 = arith.addf %230, %231 : vector<72x32xf32>
    %233 = tpu.iota {dimensions = array<i32: 0>} : vector<8x72xi32>
    %234 = arith.sitofp %233 : vector<8x72xi32> to vector<8x72xf32>
    %235 = tpu.iota {dimensions = array<i32: 1>} : vector<8x72xi32>
    %236 = arith.sitofp %235 : vector<8x72xi32> to vector<8x72xf32>
    %cst_106 = arith.constant 9.000000e+00 : f32
    %237 = vector.broadcast %cst_106 : f32 to vector<8x72xf32>
    %238 = arith.mulf %234, %237 : vector<8x72xf32>
    %239 = arith.subf %236, %238 : vector<8x72xf32>
    %cst_107 = arith.constant 1.000000e+00 : f32
    %240 = vector.broadcast %cst_107 : f32 to vector<8x72xf32>
    %241 = arith.cmpf oge, %239, %240 : vector<8x72xf32>
    %cst_108 = arith.constant 8.000000e+00 : f32
    %242 = vector.broadcast %cst_108 : f32 to vector<8x72xf32>
    %243 = arith.cmpf ole, %239, %242 : vector<8x72xf32>
    %244 = arith.andi %241, %243 : vector<8x72xi1>
    %cst_109 = arith.constant 1.250000e-01 : f32
    %cst_110 = arith.constant 0.000000e+00 : f32
    %245 = vector.broadcast %cst_109 : f32 to vector<8x72xf32>
    %246 = vector.broadcast %cst_110 : f32 to vector<8x72xf32>
    %247 = arith.select %244, %245, %246 : vector<8x72xi1>, vector<8x72xf32>
    %cst_111 = arith.constant 0.000000e+00 : f32
    %248 = vector.broadcast %cst_111 : f32 to vector<8x72xf32>
    %249 = arith.cmpf oeq, %239, %248 : vector<8x72xf32>
    %cst_112 = arith.constant 1.000000e+00 : f32
    %cst_113 = arith.constant 0.000000e+00 : f32
    %250 = vector.broadcast %cst_112 : f32 to vector<8x72xf32>
    %251 = vector.broadcast %cst_113 : f32 to vector<8x72xf32>
    %252 = arith.select %249, %250, %251 : vector<8x72xi1>, vector<8x72xf32>
    %cst_114 = arith.constant 8.000000e+00 : f32
    %253 = vector.broadcast %cst_114 : f32 to vector<8x72xf32>
    %254 = arith.cmpf oeq, %239, %253 : vector<8x72xf32>
    %cst_115 = arith.constant 1.000000e+00 : f32
    %cst_116 = arith.constant 0.000000e+00 : f32
    %255 = vector.broadcast %cst_115 : f32 to vector<8x72xf32>
    %256 = vector.broadcast %cst_116 : f32 to vector<8x72xf32>
    %257 = arith.select %254, %255, %256 : vector<8x72xi1>, vector<8x72xf32>
    %c0_117 = arith.constant 0 : index
    %c0_118 = arith.constant 0 : index
    %258 = vector.load %arg3[%c0_117, %c0_118] : memref<8x1xf32, #tpu.memory_space<vmem>>, vector<8x1xf32>
    %cst_119 = arith.constant dense<0.000000e+00> : vector<8x32xf32>
    %259 = tpu.matmul %247, %232, %cst_119 {dimension_numbers = #tpu.dot_dimension_numbers<[1], [0], [0], [1], [0, 0, 1, 1], [], []>} : vector<8x72xf32>, vector<72x32xf32>, vector<8x32xf32> -> vector<8x32xf32>
    %260 = vector.broadcast %258 : vector<8x1xf32> to vector<8x32xf32>
    %261 = arith.mulf %259, %260 : vector<8x32xf32>
    %cst_120 = arith.constant dense<0.000000e+00> : vector<8x32xf32>
    %262 = tpu.matmul %252, %232, %cst_120 {dimension_numbers = #tpu.dot_dimension_numbers<[1], [0], [0], [1], [0, 0, 1, 1], [], []>} : vector<8x72xf32>, vector<72x32xf32>, vector<8x32xf32> -> vector<8x32xf32>
    %263 = vector.broadcast %258 : vector<8x1xf32> to vector<8x32xf32>
    %264 = arith.mulf %262, %263 : vector<8x32xf32>
    %cst_121 = arith.constant dense<0.000000e+00> : vector<8x32xf32>
    %265 = tpu.matmul %257, %232, %cst_121 {dimension_numbers = #tpu.dot_dimension_numbers<[1], [0], [0], [1], [0, 0, 1, 1], [], []>} : vector<8x72xf32>, vector<72x32xf32>, vector<8x32xf32> -> vector<8x32xf32>
    %266 = vector.broadcast %258 : vector<8x1xf32> to vector<8x32xf32>
    %267 = arith.mulf %265, %266 : vector<8x32xf32>
    %cst_122 = arith.constant 0.000000e+00 : f32
    %268 = vector.broadcast %cst_122 : f32 to vector<8x32xf32>
    %269 = tpu.concatenate %261, %264, %267, %268 in 1 : vector<8x32xf32>, vector<8x32xf32>, vector<8x32xf32>, vector<8x32xf32> -> vector<8x128xf32>
    %c0_123 = arith.constant 0 : index
    %c0_124 = arith.constant 0 : index
    %270 = vector.load %arg16[%c0_123, %c0_124] : memref<8x128xf32, #tpu.memory_space<vmem>>, vector<8x128xf32>
    tpu.vector_store %arg16[%c0_123, %c0_124], %269 {strides = array<i32>} : memref<8x128xf32, #tpu.memory_space<vmem>>, vector<8x128xf32>,
    return
  }
  func.func @transform_0(%arg0: i32) -> (i32, i32) {
    %c0_i32 = arith.constant 0 : i32
    %c0_i32_0 = arith.constant 0 : i32
    %c0_i32_1 = arith.constant 0 : i32
    return %c0_i32, %c0_i32_0 : i32, i32
  }
  func.func @transform_1(%arg0: i32) -> (i32, i32) {
    %c0_i32 = arith.constant 0 : i32
    %c0_i32_0 = arith.constant 0 : i32
    %c0_i32_1 = arith.constant 0 : i32
    return %c0_i32, %c0_i32_0 : i32, i32
  }
  func.func @transform_2(%arg0: i32) -> (i32, i32) {
    %c0_i32 = arith.constant 0 : i32
    %c0_i32_0 = arith.constant 0 : i32
    %c0_i32_1 = arith.constant 0 : i32
    return %c0_i32, %c0_i32_0 : i32, i32
  }
  func.func @transform_3(%arg0: i32) -> (i32, i32) {
    %c0_i32 = arith.constant 0 : i32
    %c0_i32_0 = arith.constant 0 : i32
    %c0_i32_1 = arith.constant 0 : i32
    return %c0_i32, %c0_i32_0 : i32, i32
  }
  func.func @transform_4(%arg0: i32) -> (i32, i32) {
    %c0_i32 = arith.constant 0 : i32
    %c0_i32_0 = arith.constant 0 : i32
    %c0_i32_1 = arith.constant 0 : i32
    return %c0_i32, %c0_i32_0 : i32, i32
  }
  func.func @transform_5(%arg0: i32) -> (i32, i32) {
    %c0_i32 = arith.constant 0 : i32
    %c0_i32_0 = arith.constant 0 : i32
    %c0_i32_1 = arith.constant 0 : i32
    return %c0_i32, %c0_i32_0 : i32, i32
  }
  func.func @transform_6(%arg0: i32) -> (i32, i32) {
    %c0_i32 = arith.constant 0 : i32
    %c0_i32_0 = arith.constant 0 : i32
    %c0_i32_1 = arith.constant 0 : i32
    return %c0_i32, %c0_i32_0 : i32, i32
  }
  func.func @transform_7(%arg0: i32) -> (i32, i32) {
    %c0_i32 = arith.constant 0 : i32
    %c0_i32_0 = arith.constant 0 : i32
    %c0_i32_1 = arith.constant 0 : i32
    return %c0_i32, %c0_i32_0 : i32, i32
  }
  func.func @transform_8(%arg0: i32) -> (i32, i32) {
    %c0_i32 = arith.constant 0 : i32
    %c0_i32_0 = arith.constant 0 : i32
    %c0_i32_1 = arith.constant 0 : i32
    return %c0_i32, %c0_i32_0 : i32, i32
  }
  func.func @transform_9(%arg0: i32) -> (i32, i32) {
    %c0_i32 = arith.constant 0 : i32
    %c0_i32_0 = arith.constant 0 : i32
    %c0_i32_1 = arith.constant 0 : i32
    return %c0_i32, %c0_i32_0 : i32, i32
  }
  func.func @transform_10(%arg0: i32) -> (i32, i32) {
    %c0_i32 = arith.constant 0 : i32
    %c0_i32_0 = arith.constant 0 : i32
    %c0_i32_1 = arith.constant 0 : i32
    return %c0_i32, %c0_i32_0 : i32, i32
  }
  func.func @transform_11(%arg0: i32) -> (i32, i32) {
    %c0_i32 = arith.constant 0 : i32
    %c0_i32_0 = arith.constant 0 : i32
    %c0_i32_1 = arith.constant 0 : i32
    return %c0_i32, %c0_i32_0 : i32, i32
  }
  func.func @transform_12(%arg0: i32) -> (i32, i32) {
    %c0_i32 = arith.constant 0 : i32
    %c0_i32_0 = arith.constant 0 : i32
    %c0_i32_1 = arith.constant 0 : i32
    return %c0_i32, %c0_i32_0 : i32, i32
  }
  func.func @transform_13(%arg0: i32) -> (i32, i32) {
    %c0_i32 = arith.constant 0 : i32
    %c0_i32_0 = arith.constant 0 : i32
    %c0_i32_1 = arith.constant 0 : i32
    return %c0_i32, %c0_i32_0 : i32, i32
  }
  func.func @transform_14(%arg0: i32) -> (i32, i32) {
    %c0_i32 = arith.constant 0 : i32
    %c0_i32_0 = arith.constant 0 : i32
    %c0_i32_1 = arith.constant 0 : i32
    return %c0_i32, %c0_i32_0 : i32, i32
  }
  func.func @transform_15(%arg0: i32) -> (i32, i32) {
    %c0_i32 = arith.constant 0 : i32
    %c0_i32_0 = arith.constant 0 : i32
    %c0_i32_1 = arith.constant 0 : i32
    return %c0_i32, %c0_i32_0 : i32, i32
  }
}

module attributes {stable_mosaic.version = 11 : i64} {
  func.func @kernel(%arg0: i32, %arg1: memref<8x128xf32, #tpu.memory_space<vmem>>, %arg2: memref<8x1xf32, #tpu.memory_space<vmem>>, %arg3: memref<8x32xf32, #tpu.memory_space<vmem>>, %arg4: memref<8x8xf32, #tpu.memory_space<vmem>>, %arg5: memref<2x8xf32, #tpu.memory_space<vmem>>, %arg6: memref<1x1x32xf32, #tpu.memory_space<vmem>>, %arg7: memref<1x1x32xf32, #tpu.memory_space<vmem>>, %arg8: memref<1x32x96xf32, #tpu.memory_space<vmem>>, %arg9: memref<1x1x96xf32, #tpu.memory_space<vmem>>, %arg10: memref<1x32x32xf32, #tpu.memory_space<vmem>>, %arg11: memref<1x1x32xf32, #tpu.memory_space<vmem>>, %arg12: memref<1x1x32xf32, #tpu.memory_space<vmem>>, %arg13: memref<1x1x32xf32, #tpu.memory_space<vmem>>, %arg14: memref<1x32x64xf32, #tpu.memory_space<vmem>>, %arg15: memref<1x1x64xf32, #tpu.memory_space<vmem>>, %arg16: memref<1x64x32xf32, #tpu.memory_space<vmem>>, %arg17: memref<1x1x32xf32, #tpu.memory_space<vmem>>, %arg18: memref<1x32xf32, #tpu.memory_space<vmem>>, %arg19: memref<1x32xf32, #tpu.memory_space<vmem>>, %arg20: memref<32x128xf32, #tpu.memory_space<vmem>>, %arg21: memref<1x128xf32, #tpu.memory_space<vmem>>, %arg22: memref<128x64xf32, #tpu.memory_space<vmem>>, %arg23: memref<1x64xf32, #tpu.memory_space<vmem>>, %arg24: memref<32x8xf32, #tpu.memory_space<vmem>>, %arg25: memref<32x8xf32, #tpu.memory_space<vmem>>, %arg26: memref<32x8xf32, #tpu.memory_space<vmem>>, %arg27: memref<1x8xf32, #tpu.memory_space<vmem>>, %arg28: memref<32x4xf32, #tpu.memory_space<vmem>>, %arg29: memref<1x4xf32, #tpu.memory_space<vmem>>, %arg30: memref<32x3xf32, #tpu.memory_space<vmem>>, %arg31: memref<32x3xf32, #tpu.memory_space<vmem>>, %arg32: memref<16x3xf32, #tpu.memory_space<vmem>>, %arg33: memref<1x3xf32, #tpu.memory_space<vmem>>, %arg34: memref<16x3xf32, #tpu.memory_space<vmem>>, %arg35: memref<1x3xf32, #tpu.memory_space<vmem>>, %arg36: memref<32x1xf32, #tpu.memory_space<vmem>>, %arg37: memref<32x1xf32, #tpu.memory_space<vmem>>, %arg38: memref<16x1xf32, #tpu.memory_space<vmem>>, %arg39: memref<1x1xf32, #tpu.memory_space<vmem>>, %arg40: memref<1x1xf32, #tpu.memory_space<vmem>>, %arg41: memref<8x1xf32, #tpu.memory_space<vmem>>, %arg42: memref<8x1xf32, #tpu.memory_space<vmem>>, %arg43: memref<8x128xf32, #tpu.memory_space<vmem>>) attributes {dimension_semantics = [#tpu.dimension_semantics<arbitrary>], iteration_bounds = array<i64: 1>, scalar_prefetch = 0 : i64, scratch_operands = 0 : i64, tpu.core_type = #tpu.core_type<tc>, window_params = [{pipeline_mode = #tpu.pipeline_mode<synchronous>, transform_indices = @transform_0, window_bounds = array<i64: 8, 128>}, {pipeline_mode = #tpu.pipeline_mode<synchronous>, transform_indices = @transform_1, window_bounds = array<i64: 8, 1>}, {pipeline_mode = #tpu.pipeline_mode<synchronous>, transform_indices = @transform_2, window_bounds = array<i64: 8, 32>}, {pipeline_mode = #tpu.pipeline_mode<synchronous>, transform_indices = @transform_3, window_bounds = array<i64: 8, 8>}, {pipeline_mode = #tpu.pipeline_mode<synchronous>, transform_indices = @transform_4, window_bounds = array<i64: 2, 8>}, {pipeline_mode = #tpu.pipeline_mode<synchronous>, transform_indices = @transform_5, window_bounds = array<i64: 1, 1, 32>}, {pipeline_mode = #tpu.pipeline_mode<synchronous>, transform_indices = @transform_6, window_bounds = array<i64: 1, 1, 32>}, {pipeline_mode = #tpu.pipeline_mode<synchronous>, transform_indices = @transform_7, window_bounds = array<i64: 1, 32, 96>}, {pipeline_mode = #tpu.pipeline_mode<synchronous>, transform_indices = @transform_8, window_bounds = array<i64: 1, 1, 96>}, {pipeline_mode = #tpu.pipeline_mode<synchronous>, transform_indices = @transform_9, window_bounds = array<i64: 1, 32, 32>}, {pipeline_mode = #tpu.pipeline_mode<synchronous>, transform_indices = @transform_10, window_bounds = array<i64: 1, 1, 32>}, {pipeline_mode = #tpu.pipeline_mode<synchronous>, transform_indices = @transform_11, window_bounds = array<i64: 1, 1, 32>}, {pipeline_mode = #tpu.pipeline_mode<synchronous>, transform_indices = @transform_12, window_bounds = array<i64: 1, 1, 32>}, {pipeline_mode = #tpu.pipeline_mode<synchronous>, transform_indices = @transform_13, window_bounds = array<i64: 1, 32, 64>}, {pipeline_mode = #tpu.pipeline_mode<synchronous>, transform_indices = @transform_14, window_bounds = array<i64: 1, 1, 64>}, {pipeline_mode = #tpu.pipeline_mode<synchronous>, transform_indices = @transform_15, window_bounds = array<i64: 1, 64, 32>}, {pipeline_mode = #tpu.pipeline_mode<synchronous>, transform_indices = @transform_16, window_bounds = array<i64: 1, 1, 32>}, {pipeline_mode = #tpu.pipeline_mode<synchronous>, transform_indices = @transform_17, window_bounds = array<i64: 1, 32>}, {pipeline_mode = #tpu.pipeline_mode<synchronous>, transform_indices = @transform_18, window_bounds = array<i64: 1, 32>}, {pipeline_mode = #tpu.pipeline_mode<synchronous>, transform_indices = @transform_19, window_bounds = array<i64: 32, 128>}, {pipeline_mode = #tpu.pipeline_mode<synchronous>, transform_indices = @transform_20, window_bounds = array<i64: 1, 128>}, {pipeline_mode = #tpu.pipeline_mode<synchronous>, transform_indices = @transform_21, window_bounds = array<i64: 128, 64>}, {pipeline_mode = #tpu.pipeline_mode<synchronous>, transform_indices = @transform_22, window_bounds = array<i64: 1, 64>}, {pipeline_mode = #tpu.pipeline_mode<synchronous>, transform_indices = @transform_23, window_bounds = array<i64: 32, 8>}, {pipeline_mode = #tpu.pipeline_mode<synchronous>, transform_indices = @transform_24, window_bounds = array<i64: 32, 8>}, {pipeline_mode = #tpu.pipeline_mode<synchronous>, transform_indices = @transform_25, window_bounds = array<i64: 32, 8>}, {pipeline_mode = #tpu.pipeline_mode<synchronous>, transform_indices = @transform_26, window_bounds = array<i64: 1, 8>}, {pipeline_mode = #tpu.pipeline_mode<synchronous>, transform_indices = @transform_27, window_bounds = array<i64: 32, 4>}, {pipeline_mode = #tpu.pipeline_mode<synchronous>, transform_indices = @transform_28, window_bounds = array<i64: 1, 4>}, {pipeline_mode = #tpu.pipeline_mode<synchronous>, transform_indices = @transform_29, window_bounds = array<i64: 32, 3>}, {pipeline_mode = #tpu.pipeline_mode<synchronous>, transform_indices = @transform_30, window_bounds = array<i64: 32, 3>}, {pipeline_mode = #tpu.pipeline_mode<synchronous>, transform_indices = @transform_31, window_bounds = array<i64: 16, 3>}, {pipeline_mode = #tpu.pipeline_mode<synchronous>, transform_indices = @transform_32, window_bounds = array<i64: 1, 3>}, {pipeline_mode = #tpu.pipeline_mode<synchronous>, transform_indices = @transform_33, window_bounds = array<i64: 16, 3>}, {pipeline_mode = #tpu.pipeline_mode<synchronous>, transform_indices = @transform_34, window_bounds = array<i64: 1, 3>}, {pipeline_mode = #tpu.pipeline_mode<synchronous>, transform_indices = @transform_35, window_bounds = array<i64: 32, 1>}, {pipeline_mode = #tpu.pipeline_mode<synchronous>, transform_indices = @transform_36, window_bounds = array<i64: 32, 1>}, {pipeline_mode = #tpu.pipeline_mode<synchronous>, transform_indices = @transform_37, window_bounds = array<i64: 16, 1>}, {pipeline_mode = #tpu.pipeline_mode<synchronous>, transform_indices = @transform_38, window_bounds = array<i64: 1, 1>}, {pipeline_mode = #tpu.pipeline_mode<synchronous>, transform_indices = @transform_39, window_bounds = array<i64: 1, 1>}, {pipeline_mode = #tpu.pipeline_mode<synchronous>, transform_indices = @transform_40, window_bounds = array<i64: 8, 1>}, {pipeline_mode = #tpu.pipeline_mode<synchronous>, transform_indices = @transform_41, window_bounds = array<i64: 8, 1>}, {pipeline_mode = #tpu.pipeline_mode<synchronous>, transform_indices = @transform_42, window_bounds = array<i64: 8, 128>}]} {
    %c0 = arith.constant 0 : index
    %c0_0 = arith.constant 0 : index
    %0 = vector.load %arg1[%c0, %c0_0] : memref<8x128xf32, #tpu.memory_space<vmem>>, vector<8x128xf32>
    %c0_1 = arith.constant 0 : index
    %c0_2 = arith.constant 0 : index
    %1 = vector.load %arg2[%c0_1, %c0_2] : memref<8x1xf32, #tpu.memory_space<vmem>>, vector<8x1xf32>
    %c0_3 = arith.constant 0 : index
    %c0_4 = arith.constant 0 : index
    %2 = vector.load %arg4[%c0_3, %c0_4] : memref<8x8xf32, #tpu.memory_space<vmem>>, vector<8x8xf32>
    %c0_5 = arith.constant 0 : index
    %c0_6 = arith.constant 0 : index
    %3 = vector.load %arg5[%c0_5, %c0_6] : memref<2x8xf32, #tpu.memory_space<vmem>>, vector<2x8xf32>
    %4 = vector.extract_strided_slice %0 {offsets = [0, 0], sizes = [8, 32], strides = [1, 1]} : vector<8x128xf32> to vector<8x32xf32>
    %5 = vector.extract_strided_slice %0 {offsets = [0, 32], sizes = [8, 32], strides = [1, 1]} : vector<8x128xf32> to vector<8x32xf32>
    %6 = vector.extract_strided_slice %0 {offsets = [0, 64], sizes = [8, 32], strides = [1, 1]} : vector<8x128xf32> to vector<8x32xf32>
    %c0_7 = arith.constant 0 : index
    %c0_8 = arith.constant 0 : index
    %7 = vector.load %arg3[%c0_7, %c0_8] : memref<8x32xf32, #tpu.memory_space<vmem>>, vector<8x32xf32>
    %8 = arith.addf %4, %7 : vector<8x32xf32>
    %c0_9 = arith.constant 0 : index
    %c0_10 = arith.constant 0 : index
    %c0_11 = arith.constant 0 : index
    %9 = vector.load %arg6[%c0_9, %c0_10, %c0_11] : memref<1x1x32xf32, #tpu.memory_space<vmem>>, vector<1x1x32xf32>
    %10 = vector.shape_cast %9 : vector<1x1x32xf32> to vector<1x32xf32>
    %c0_12 = arith.constant 0 : index
    %c0_13 = arith.constant 0 : index
    %c0_14 = arith.constant 0 : index
    %11 = vector.load %arg7[%c0_12, %c0_13, %c0_14] : memref<1x1x32xf32, #tpu.memory_space<vmem>>, vector<1x1x32xf32>
    %12 = vector.shape_cast %11 : vector<1x1x32xf32> to vector<1x32xf32>
    %cst = arith.constant dense<0.000000e+00> : vector<8xf32>
    %13 = vector.multi_reduction <add>, %8, %cst [1] : vector<8x32xf32> to vector<8xf32>
    %14 = vector.shape_cast %13 : vector<8xf32> to vector<8x1xf32>
    %cst_15 = arith.constant 3.200000e+01 : f32
    %15 = vector.broadcast %cst_15 : f32 to vector<8x1xf32>
    %16 = arith.divf %14, %15 : vector<8x1xf32>
    %17 = vector.broadcast %16 : vector<8x1xf32> to vector<8x32xf32>
    %18 = arith.subf %8, %17 : vector<8x32xf32>
    %19 = arith.mulf %18, %18 : vector<8x32xf32>
    %cst_16 = arith.constant dense<0.000000e+00> : vector<8xf32>
    %20 = vector.multi_reduction <add>, %19, %cst_16 [1] : vector<8x32xf32> to vector<8xf32>
    %21 = vector.shape_cast %20 : vector<8xf32> to vector<8x1xf32>
    %cst_17 = arith.constant 3.200000e+01 : f32
    %22 = vector.broadcast %cst_17 : f32 to vector<8x1xf32>
    %23 = arith.divf %21, %22 : vector<8x1xf32>
    %24 = vector.broadcast %16 : vector<8x1xf32> to vector<8x32xf32>
    %25 = arith.subf %8, %24 : vector<8x32xf32>
    %cst_18 = arith.constant 9.99999974E-6 : f32
    %26 = vector.broadcast %cst_18 : f32 to vector<8x1xf32>
    %27 = arith.addf %23, %26 : vector<8x1xf32>
    %28 = math.rsqrt %27 : vector<8x1xf32>
    %29 = vector.broadcast %28 : vector<8x1xf32> to vector<8x32xf32>
    %30 = arith.mulf %25, %29 : vector<8x32xf32>
    %31 = vector.broadcast %10 : vector<1x32xf32> to vector<8x32xf32>
    %32 = arith.mulf %30, %31 : vector<8x32xf32>
    %33 = vector.broadcast %12 : vector<1x32xf32> to vector<8x32xf32>
    %34 = arith.addf %32, %33 : vector<8x32xf32>
    %c0_19 = arith.constant 0 : index
    %c0_20 = arith.constant 0 : index
    %c0_21 = arith.constant 0 : index
    %35 = vector.load %arg8[%c0_19, %c0_20, %c0_21] : memref<1x32x96xf32, #tpu.memory_space<vmem>>, vector<1x32x96xf32>
    %36 = vector.shape_cast %35 : vector<1x32x96xf32> to vector<32x96xf32>
    %cst_22 = arith.constant dense<0.000000e+00> : vector<8x96xf32>
    %37 = tpu.matmul %34, %36, %cst_22 {dimension_numbers = #tpu.dot_dimension_numbers<[1], [0], [0], [1], [0, 0, 1, 1], [], []>} : vector<8x32xf32>, vector<32x96xf32>, vector<8x96xf32> -> vector<8x96xf32>
    %c0_23 = arith.constant 0 : index
    %c0_24 = arith.constant 0 : index
    %c0_25 = arith.constant 0 : index
    %38 = vector.load %arg9[%c0_23, %c0_24, %c0_25] : memref<1x1x96xf32, #tpu.memory_space<vmem>>, vector<1x1x96xf32>
    %39 = vector.shape_cast %38 : vector<1x1x96xf32> to vector<1x96xf32>
    %40 = vector.broadcast %39 : vector<1x96xf32> to vector<8x96xf32>
    %41 = arith.addf %37, %40 : vector<8x96xf32>
    %c0_26 = arith.constant 0 : index
    %c0_27 = arith.constant 0 : index
    %c0_28 = arith.constant 0 : index
    %42 = vector.load %arg10[%c0_26, %c0_27, %c0_28] : memref<1x32x32xf32, #tpu.memory_space<vmem>>, vector<1x32x32xf32>
    %43 = vector.shape_cast %42 : vector<1x32x32xf32> to vector<32x32xf32>
    %cst_29 = arith.constant 0.000000e+00 : f32
    %44 = vector.broadcast %cst_29 : f32 to vector<8x32xf32>
    %45 = vector.extract_strided_slice %41 {offsets = [0, 0], sizes = [8, 8], strides = [1, 1]} : vector<8x96xf32> to vector<8x8xf32>
    %46 = vector.extract_strided_slice %41 {offsets = [0, 32], sizes = [8, 8], strides = [1, 1]} : vector<8x96xf32> to vector<8x8xf32>
    %47 = vector.extract_strided_slice %41 {offsets = [0, 64], sizes = [8, 8], strides = [1, 1]} : vector<8x96xf32> to vector<8x8xf32>
    %cst_30 = arith.constant dense<0.000000e+00> : vector<8x8xf32>
    %48 = tpu.matmul %45, %46, %cst_30 {dimension_numbers = #tpu.dot_dimension_numbers<[1], [1], [0], [0], [0, 0, 1, 0], [], []>} : vector<8x8xf32>, vector<8x8xf32>, vector<8x8xf32> -> vector<8x8xf32>
    %cst_31 = arith.constant 0.353553385 : f32
    %49 = vector.broadcast %cst_31 : f32 to vector<8x8xf32>
    %50 = arith.mulf %48, %49 : vector<8x8xf32>
    %51 = arith.addf %50, %2 : vector<8x8xf32>
    %cst_32 = arith.constant dense<0xFF800000> : vector<8xf32>
    %52 = vector.multi_reduction <maximumf>, %51, %cst_32 [1] : vector<8x8xf32> to vector<8xf32>
    %53 = vector.shape_cast %52 : vector<8xf32> to vector<8x1xf32>
    %54 = vector.broadcast %53 : vector<8x1xf32> to vector<8x8xf32>
    %55 = arith.subf %51, %54 : vector<8x8xf32>
    %56 = math.exp %55 : vector<8x8xf32>
    %cst_33 = arith.constant dense<0.000000e+00> : vector<8xf32>
    %57 = vector.multi_reduction <add>, %56, %cst_33 [1] : vector<8x8xf32> to vector<8xf32>
    %58 = vector.shape_cast %57 : vector<8xf32> to vector<8x1xf32>
    %59 = tpu.reciprocal %58 {approx = true} : vector<8x1xf32> -> vector<8x1xf32>
    %60 = vector.broadcast %59 : vector<8x1xf32> to vector<8x8xf32>
    %61 = arith.mulf %56, %60 : vector<8x8xf32>
    %cst_34 = arith.constant dense<0.000000e+00> : vector<8x8xf32>
    %62 = tpu.matmul %61, %47, %cst_34 {dimension_numbers = #tpu.dot_dimension_numbers<[1], [0], [0], [1], [0, 0, 1, 1], [], []>} : vector<8x8xf32>, vector<8x8xf32>, vector<8x8xf32> -> vector<8x8xf32>
    %63 = vector.extract_strided_slice %43 {offsets = [0, 0], sizes = [8, 32], strides = [1, 1]} : vector<32x32xf32> to vector<8x32xf32>
    %cst_35 = arith.constant dense<0.000000e+00> : vector<8x32xf32>
    %64 = tpu.matmul %62, %63, %cst_35 {dimension_numbers = #tpu.dot_dimension_numbers<[1], [0], [0], [1], [0, 0, 1, 1], [], []>} : vector<8x8xf32>, vector<8x32xf32>, vector<8x32xf32> -> vector<8x32xf32>
    %65 = arith.addf %44, %64 : vector<8x32xf32>
    %66 = vector.extract_strided_slice %41 {offsets = [0, 8], sizes = [8, 8], strides = [1, 1]} : vector<8x96xf32> to vector<8x8xf32>
    %67 = vector.extract_strided_slice %41 {offsets = [0, 40], sizes = [8, 8], strides = [1, 1]} : vector<8x96xf32> to vector<8x8xf32>
    %68 = vector.extract_strided_slice %41 {offsets = [0, 72], sizes = [8, 8], strides = [1, 1]} : vector<8x96xf32> to vector<8x8xf32>
    %cst_36 = arith.constant dense<0.000000e+00> : vector<8x8xf32>
    %69 = tpu.matmul %66, %67, %cst_36 {dimension_numbers = #tpu.dot_dimension_numbers<[1], [1], [0], [0], [0, 0, 1, 0], [], []>} : vector<8x8xf32>, vector<8x8xf32>, vector<8x8xf32> -> vector<8x8xf32>
    %cst_37 = arith.constant 0.353553385 : f32
    %70 = vector.broadcast %cst_37 : f32 to vector<8x8xf32>
    %71 = arith.mulf %69, %70 : vector<8x8xf32>
    %72 = arith.addf %71, %2 : vector<8x8xf32>
    %cst_38 = arith.constant dense<0xFF800000> : vector<8xf32>
    %73 = vector.multi_reduction <maximumf>, %72, %cst_38 [1] : vector<8x8xf32> to vector<8xf32>
    %74 = vector.shape_cast %73 : vector<8xf32> to vector<8x1xf32>
    %75 = vector.broadcast %74 : vector<8x1xf32> to vector<8x8xf32>
    %76 = arith.subf %72, %75 : vector<8x8xf32>
    %77 = math.exp %76 : vector<8x8xf32>
    %cst_39 = arith.constant dense<0.000000e+00> : vector<8xf32>
    %78 = vector.multi_reduction <add>, %77, %cst_39 [1] : vector<8x8xf32> to vector<8xf32>
    %79 = vector.shape_cast %78 : vector<8xf32> to vector<8x1xf32>
    %80 = tpu.reciprocal %79 {approx = true} : vector<8x1xf32> -> vector<8x1xf32>
    %81 = vector.broadcast %80 : vector<8x1xf32> to vector<8x8xf32>
    %82 = arith.mulf %77, %81 : vector<8x8xf32>
    %cst_40 = arith.constant dense<0.000000e+00> : vector<8x8xf32>
    %83 = tpu.matmul %82, %68, %cst_40 {dimension_numbers = #tpu.dot_dimension_numbers<[1], [0], [0], [1], [0, 0, 1, 1], [], []>} : vector<8x8xf32>, vector<8x8xf32>, vector<8x8xf32> -> vector<8x8xf32>
    %84 = vector.extract_strided_slice %43 {offsets = [8, 0], sizes = [8, 32], strides = [1, 1]} : vector<32x32xf32> to vector<8x32xf32>
    %cst_41 = arith.constant dense<0.000000e+00> : vector<8x32xf32>
    %85 = tpu.matmul %83, %84, %cst_41 {dimension_numbers = #tpu.dot_dimension_numbers<[1], [0], [0], [1], [0, 0, 1, 1], [], []>} : vector<8x8xf32>, vector<8x32xf32>, vector<8x32xf32> -> vector<8x32xf32>
    %86 = arith.addf %65, %85 : vector<8x32xf32>
    %87 = vector.extract_strided_slice %41 {offsets = [0, 16], sizes = [8, 8], strides = [1, 1]} : vector<8x96xf32> to vector<8x8xf32>
    %88 = vector.extract_strided_slice %41 {offsets = [0, 48], sizes = [8, 8], strides = [1, 1]} : vector<8x96xf32> to vector<8x8xf32>
    %89 = vector.extract_strided_slice %41 {offsets = [0, 80], sizes = [8, 8], strides = [1, 1]} : vector<8x96xf32> to vector<8x8xf32>
    %cst_42 = arith.constant dense<0.000000e+00> : vector<8x8xf32>
    %90 = tpu.matmul %87, %88, %cst_42 {dimension_numbers = #tpu.dot_dimension_numbers<[1], [1], [0], [0], [0, 0, 1, 0], [], []>} : vector<8x8xf32>, vector<8x8xf32>, vector<8x8xf32> -> vector<8x8xf32>
    %cst_43 = arith.constant 0.353553385 : f32
    %91 = vector.broadcast %cst_43 : f32 to vector<8x8xf32>
    %92 = arith.mulf %90, %91 : vector<8x8xf32>
    %93 = arith.addf %92, %2 : vector<8x8xf32>
    %cst_44 = arith.constant dense<0xFF800000> : vector<8xf32>
    %94 = vector.multi_reduction <maximumf>, %93, %cst_44 [1] : vector<8x8xf32> to vector<8xf32>
    %95 = vector.shape_cast %94 : vector<8xf32> to vector<8x1xf32>
    %96 = vector.broadcast %95 : vector<8x1xf32> to vector<8x8xf32>
    %97 = arith.subf %93, %96 : vector<8x8xf32>
    %98 = math.exp %97 : vector<8x8xf32>
    %cst_45 = arith.constant dense<0.000000e+00> : vector<8xf32>
    %99 = vector.multi_reduction <add>, %98, %cst_45 [1] : vector<8x8xf32> to vector<8xf32>
    %100 = vector.shape_cast %99 : vector<8xf32> to vector<8x1xf32>
    %101 = tpu.reciprocal %100 {approx = true} : vector<8x1xf32> -> vector<8x1xf32>
    %102 = vector.broadcast %101 : vector<8x1xf32> to vector<8x8xf32>
    %103 = arith.mulf %98, %102 : vector<8x8xf32>
    %cst_46 = arith.constant dense<0.000000e+00> : vector<8x8xf32>
    %104 = tpu.matmul %103, %89, %cst_46 {dimension_numbers = #tpu.dot_dimension_numbers<[1], [0], [0], [1], [0, 0, 1, 1], [], []>} : vector<8x8xf32>, vector<8x8xf32>, vector<8x8xf32> -> vector<8x8xf32>
    %105 = vector.extract_strided_slice %43 {offsets = [16, 0], sizes = [8, 32], strides = [1, 1]} : vector<32x32xf32> to vector<8x32xf32>
    %cst_47 = arith.constant dense<0.000000e+00> : vector<8x32xf32>
    %106 = tpu.matmul %104, %105, %cst_47 {dimension_numbers = #tpu.dot_dimension_numbers<[1], [0], [0], [1], [0, 0, 1, 1], [], []>} : vector<8x8xf32>, vector<8x32xf32>, vector<8x32xf32> -> vector<8x32xf32>
    %107 = arith.addf %86, %106 : vector<8x32xf32>
    %108 = vector.extract_strided_slice %41 {offsets = [0, 24], sizes = [8, 8], strides = [1, 1]} : vector<8x96xf32> to vector<8x8xf32>
    %109 = vector.extract_strided_slice %41 {offsets = [0, 56], sizes = [8, 8], strides = [1, 1]} : vector<8x96xf32> to vector<8x8xf32>
    %110 = vector.extract_strided_slice %41 {offsets = [0, 88], sizes = [8, 8], strides = [1, 1]} : vector<8x96xf32> to vector<8x8xf32>
    %cst_48 = arith.constant dense<0.000000e+00> : vector<8x8xf32>
    %111 = tpu.matmul %108, %109, %cst_48 {dimension_numbers = #tpu.dot_dimension_numbers<[1], [1], [0], [0], [0, 0, 1, 0], [], []>} : vector<8x8xf32>, vector<8x8xf32>, vector<8x8xf32> -> vector<8x8xf32>
    %cst_49 = arith.constant 0.353553385 : f32
    %112 = vector.broadcast %cst_49 : f32 to vector<8x8xf32>
    %113 = arith.mulf %111, %112 : vector<8x8xf32>
    %114 = arith.addf %113, %2 : vector<8x8xf32>
    %cst_50 = arith.constant dense<0xFF800000> : vector<8xf32>
    %115 = vector.multi_reduction <maximumf>, %114, %cst_50 [1] : vector<8x8xf32> to vector<8xf32>
    %116 = vector.shape_cast %115 : vector<8xf32> to vector<8x1xf32>
    %117 = vector.broadcast %116 : vector<8x1xf32> to vector<8x8xf32>
    %118 = arith.subf %114, %117 : vector<8x8xf32>
    %119 = math.exp %118 : vector<8x8xf32>
    %cst_51 = arith.constant dense<0.000000e+00> : vector<8xf32>
    %120 = vector.multi_reduction <add>, %119, %cst_51 [1] : vector<8x8xf32> to vector<8xf32>
    %121 = vector.shape_cast %120 : vector<8xf32> to vector<8x1xf32>
    %122 = tpu.reciprocal %121 {approx = true} : vector<8x1xf32> -> vector<8x1xf32>
    %123 = vector.broadcast %122 : vector<8x1xf32> to vector<8x8xf32>
    %124 = arith.mulf %119, %123 : vector<8x8xf32>
    %cst_52 = arith.constant dense<0.000000e+00> : vector<8x8xf32>
    %125 = tpu.matmul %124, %110, %cst_52 {dimension_numbers = #tpu.dot_dimension_numbers<[1], [0], [0], [1], [0, 0, 1, 1], [], []>} : vector<8x8xf32>, vector<8x8xf32>, vector<8x8xf32> -> vector<8x8xf32>
    %126 = vector.extract_strided_slice %43 {offsets = [24, 0], sizes = [8, 32], strides = [1, 1]} : vector<32x32xf32> to vector<8x32xf32>
    %cst_53 = arith.constant dense<0.000000e+00> : vector<8x32xf32>
    %127 = tpu.matmul %125, %126, %cst_53 {dimension_numbers = #tpu.dot_dimension_numbers<[1], [0], [0], [1], [0, 0, 1, 1], [], []>} : vector<8x8xf32>, vector<8x32xf32>, vector<8x32xf32> -> vector<8x32xf32>
    %128 = arith.addf %107, %127 : vector<8x32xf32>
    %129 = arith.addf %8, %128 : vector<8x32xf32>
    %c0_54 = arith.constant 0 : index
    %c0_55 = arith.constant 0 : index
    %c0_56 = arith.constant 0 : index
    %130 = vector.load %arg11[%c0_54, %c0_55, %c0_56] : memref<1x1x32xf32, #tpu.memory_space<vmem>>, vector<1x1x32xf32>
    %131 = vector.shape_cast %130 : vector<1x1x32xf32> to vector<1x32xf32>
    %132 = vector.broadcast %131 : vector<1x32xf32> to vector<8x32xf32>
    %133 = arith.addf %129, %132 : vector<8x32xf32>
    %c0_57 = arith.constant 0 : index
    %c0_58 = arith.constant 0 : index
    %c0_59 = arith.constant 0 : index
    %134 = vector.load %arg12[%c0_57, %c0_58, %c0_59] : memref<1x1x32xf32, #tpu.memory_space<vmem>>, vector<1x1x32xf32>
    %135 = vector.shape_cast %134 : vector<1x1x32xf32> to vector<1x32xf32>
    %c0_60 = arith.constant 0 : index
    %c0_61 = arith.constant 0 : index
    %c0_62 = arith.constant 0 : index
    %136 = vector.load %arg13[%c0_60, %c0_61, %c0_62] : memref<1x1x32xf32, #tpu.memory_space<vmem>>, vector<1x1x32xf32>
    %137 = vector.shape_cast %136 : vector<1x1x32xf32> to vector<1x32xf32>
    %cst_63 = arith.constant dense<0.000000e+00> : vector<8xf32>
    %138 = vector.multi_reduction <add>, %133, %cst_63 [1] : vector<8x32xf32> to vector<8xf32>
    %139 = vector.shape_cast %138 : vector<8xf32> to vector<8x1xf32>
    %cst_64 = arith.constant 3.200000e+01 : f32
    %140 = vector.broadcast %cst_64 : f32 to vector<8x1xf32>
    %141 = arith.divf %139, %140 : vector<8x1xf32>
    %142 = vector.broadcast %141 : vector<8x1xf32> to vector<8x32xf32>
    %143 = arith.subf %133, %142 : vector<8x32xf32>
    %144 = arith.mulf %143, %143 : vector<8x32xf32>
    %cst_65 = arith.constant dense<0.000000e+00> : vector<8xf32>
    %145 = vector.multi_reduction <add>, %144, %cst_65 [1] : vector<8x32xf32> to vector<8xf32>
    %146 = vector.shape_cast %145 : vector<8xf32> to vector<8x1xf32>
    %cst_66 = arith.constant 3.200000e+01 : f32
    %147 = vector.broadcast %cst_66 : f32 to vector<8x1xf32>
    %148 = arith.divf %146, %147 : vector<8x1xf32>
    %149 = vector.broadcast %141 : vector<8x1xf32> to vector<8x32xf32>
    %150 = arith.subf %133, %149 : vector<8x32xf32>
    %cst_67 = arith.constant 9.99999974E-6 : f32
    %151 = vector.broadcast %cst_67 : f32 to vector<8x1xf32>
    %152 = arith.addf %148, %151 : vector<8x1xf32>
    %153 = math.rsqrt %152 : vector<8x1xf32>
    %154 = vector.broadcast %153 : vector<8x1xf32> to vector<8x32xf32>
    %155 = arith.mulf %150, %154 : vector<8x32xf32>
    %156 = vector.broadcast %135 : vector<1x32xf32> to vector<8x32xf32>
    %157 = arith.mulf %155, %156 : vector<8x32xf32>
    %158 = vector.broadcast %137 : vector<1x32xf32> to vector<8x32xf32>
    %159 = arith.addf %157, %158 : vector<8x32xf32>
    %c0_68 = arith.constant 0 : index
    %c0_69 = arith.constant 0 : index
    %c0_70 = arith.constant 0 : index
    %160 = vector.load %arg14[%c0_68, %c0_69, %c0_70] : memref<1x32x64xf32, #tpu.memory_space<vmem>>, vector<1x32x64xf32>
    %161 = vector.shape_cast %160 : vector<1x32x64xf32> to vector<32x64xf32>
    %cst_71 = arith.constant dense<0.000000e+00> : vector<8x64xf32>
    %162 = tpu.matmul %159, %161, %cst_71 {dimension_numbers = #tpu.dot_dimension_numbers<[1], [0], [0], [1], [0, 0, 1, 1], [], []>} : vector<8x32xf32>, vector<32x64xf32>, vector<8x64xf32> -> vector<8x64xf32>
    %c0_72 = arith.constant 0 : index
    %c0_73 = arith.constant 0 : index
    %c0_74 = arith.constant 0 : index
    %163 = vector.load %arg15[%c0_72, %c0_73, %c0_74] : memref<1x1x64xf32, #tpu.memory_space<vmem>>, vector<1x1x64xf32>
    %164 = vector.shape_cast %163 : vector<1x1x64xf32> to vector<1x64xf32>
    %165 = vector.broadcast %164 : vector<1x64xf32> to vector<8x64xf32>
    %166 = arith.addf %162, %165 : vector<8x64xf32>
    %cst_75 = arith.constant 0.000000e+00 : f32
    %167 = vector.broadcast %cst_75 : f32 to vector<8x64xf32>
    %168 = arith.maximumf %166, %167 : vector<8x64xf32>
    %c0_76 = arith.constant 0 : index
    %c0_77 = arith.constant 0 : index
    %c0_78 = arith.constant 0 : index
    %169 = vector.load %arg16[%c0_76, %c0_77, %c0_78] : memref<1x64x32xf32, #tpu.memory_space<vmem>>, vector<1x64x32xf32>
    %170 = vector.shape_cast %169 : vector<1x64x32xf32> to vector<64x32xf32>
    %cst_79 = arith.constant dense<0.000000e+00> : vector<8x32xf32>
    %171 = tpu.matmul %168, %170, %cst_79 {dimension_numbers = #tpu.dot_dimension_numbers<[1], [0], [0], [1], [0, 0, 1, 1], [], []>} : vector<8x64xf32>, vector<64x32xf32>, vector<8x32xf32> -> vector<8x32xf32>
    %172 = arith.addf %133, %171 : vector<8x32xf32>
    %c0_80 = arith.constant 0 : index
    %c0_81 = arith.constant 0 : index
    %c0_82 = arith.constant 0 : index
    %173 = vector.load %arg17[%c0_80, %c0_81, %c0_82] : memref<1x1x32xf32, #tpu.memory_space<vmem>>, vector<1x1x32xf32>
    %174 = vector.shape_cast %173 : vector<1x1x32xf32> to vector<1x32xf32>
    %175 = vector.broadcast %174 : vector<1x32xf32> to vector<8x32xf32>
    %176 = arith.addf %172, %175 : vector<8x32xf32>
    %c0_83 = arith.constant 0 : index
    %c0_84 = arith.constant 0 : index
    %177 = vector.load %arg18[%c0_83, %c0_84] : memref<1x32xf32, #tpu.memory_space<vmem>>, vector<1x32xf32>
    %c0_85 = arith.constant 0 : index
    %c0_86 = arith.constant 0 : index
    %178 = vector.load %arg19[%c0_85, %c0_86] : memref<1x32xf32, #tpu.memory_space<vmem>>, vector<1x32xf32>
    %cst_87 = arith.constant dense<0.000000e+00> : vector<8xf32>
    %179 = vector.multi_reduction <add>, %176, %cst_87 [1] : vector<8x32xf32> to vector<8xf32>
    %180 = vector.shape_cast %179 : vector<8xf32> to vector<8x1xf32>
    %cst_88 = arith.constant 3.200000e+01 : f32
    %181 = vector.broadcast %cst_88 : f32 to vector<8x1xf32>
    %182 = arith.divf %180, %181 : vector<8x1xf32>
    %183 = vector.broadcast %182 : vector<8x1xf32> to vector<8x32xf32>
    %184 = arith.subf %176, %183 : vector<8x32xf32>
    %185 = arith.mulf %184, %184 : vector<8x32xf32>
    %cst_89 = arith.constant dense<0.000000e+00> : vector<8xf32>
    %186 = vector.multi_reduction <add>, %185, %cst_89 [1] : vector<8x32xf32> to vector<8xf32>
    %187 = vector.shape_cast %186 : vector<8xf32> to vector<8x1xf32>
    %cst_90 = arith.constant 3.200000e+01 : f32
    %188 = vector.broadcast %cst_90 : f32 to vector<8x1xf32>
    %189 = arith.divf %187, %188 : vector<8x1xf32>
    %190 = vector.broadcast %182 : vector<8x1xf32> to vector<8x32xf32>
    %191 = arith.subf %176, %190 : vector<8x32xf32>
    %cst_91 = arith.constant 9.99999974E-6 : f32
    %192 = vector.broadcast %cst_91 : f32 to vector<8x1xf32>
    %193 = arith.addf %189, %192 : vector<8x1xf32>
    %194 = math.rsqrt %193 : vector<8x1xf32>
    %195 = vector.broadcast %194 : vector<8x1xf32> to vector<8x32xf32>
    %196 = arith.mulf %191, %195 : vector<8x32xf32>
    %197 = vector.broadcast %177 : vector<1x32xf32> to vector<8x32xf32>
    %198 = arith.mulf %196, %197 : vector<8x32xf32>
    %199 = vector.broadcast %178 : vector<1x32xf32> to vector<8x32xf32>
    %200 = arith.addf %198, %199 : vector<8x32xf32>
    %201 = vector.broadcast %1 : vector<8x1xf32> to vector<8x32xf32>
    %202 = arith.mulf %200, %201 : vector<8x32xf32>
    %cst_92 = arith.constant dense<0.000000e+00> : vector<2x32xf32>
    %203 = tpu.matmul %3, %202, %cst_92 {dimension_numbers = #tpu.dot_dimension_numbers<[1], [0], [0], [1], [0, 0, 1, 1], [], []>} : vector<2x8xf32>, vector<8x32xf32>, vector<2x32xf32> -> vector<2x32xf32>
    %204 = arith.mulf %202, %202 : vector<8x32xf32>
    %cst_93 = arith.constant dense<0.000000e+00> : vector<2x32xf32>
    %205 = tpu.matmul %3, %204, %cst_93 {dimension_numbers = #tpu.dot_dimension_numbers<[1], [0], [0], [1], [0, 0, 1, 1], [], []>} : vector<2x8xf32>, vector<8x32xf32>, vector<2x32xf32> -> vector<2x32xf32>
    %206 = arith.mulf %203, %203 : vector<2x32xf32>
    %207 = arith.subf %205, %206 : vector<2x32xf32>
    %cst_94 = arith.constant 9.99999997E-7 : f32
    %208 = vector.broadcast %cst_94 : f32 to vector<2x32xf32>
    %209 = arith.maximumf %207, %208 : vector<2x32xf32>
    %210 = math.sqrt %209 : vector<2x32xf32>
    %cst_95 = arith.constant dense<0.000000e+00> : vector<2x32xf32>
    %211 = tpu.matmul %3, %5, %cst_95 {dimension_numbers = #tpu.dot_dimension_numbers<[1], [0], [0], [1], [0, 0, 1, 1], [], []>} : vector<2x8xf32>, vector<8x32xf32>, vector<2x32xf32> -> vector<2x32xf32>
    %c0_96 = arith.constant 0 : index
    %c0_97 = arith.constant 0 : index
    %212 = vector.load %arg24[%c0_96, %c0_97] : memref<32x8xf32, #tpu.memory_space<vmem>>, vector<32x8xf32>
    %cst_98 = arith.constant dense<0.000000e+00> : vector<2x8xf32>
    %213 = tpu.matmul %203, %212, %cst_98 {dimension_numbers = #tpu.dot_dimension_numbers<[1], [0], [0], [1], [0, 0, 1, 1], [], []>} : vector<2x32xf32>, vector<32x8xf32>, vector<2x8xf32> -> vector<2x8xf32>
    %c0_99 = arith.constant 0 : index
    %c0_100 = arith.constant 0 : index
    %214 = vector.load %arg25[%c0_99, %c0_100] : memref<32x8xf32, #tpu.memory_space<vmem>>, vector<32x8xf32>
    %cst_101 = arith.constant dense<0.000000e+00> : vector<2x8xf32>
    %215 = tpu.matmul %210, %214, %cst_101 {dimension_numbers = #tpu.dot_dimension_numbers<[1], [0], [0], [1], [0, 0, 1, 1], [], []>} : vector<2x32xf32>, vector<32x8xf32>, vector<2x8xf32> -> vector<2x8xf32>
    %216 = arith.addf %213, %215 : vector<2x8xf32>
    %c0_102 = arith.constant 0 : index
    %c0_103 = arith.constant 0 : index
    %217 = vector.load %arg26[%c0_102, %c0_103] : memref<32x8xf32, #tpu.memory_space<vmem>>, vector<32x8xf32>
    %cst_104 = arith.constant dense<0.000000e+00> : vector<2x8xf32>
    %218 = tpu.matmul %211, %217, %cst_104 {dimension_numbers = #tpu.dot_dimension_numbers<[1], [0], [0], [1], [0, 0, 1, 1], [], []>} : vector<2x32xf32>, vector<32x8xf32>, vector<2x8xf32> -> vector<2x8xf32>
    %219 = arith.addf %216, %218 : vector<2x8xf32>
    %c0_105 = arith.constant 0 : index
    %c0_106 = arith.constant 0 : index
    %220 = vector.load %arg27[%c0_105, %c0_106] : memref<1x8xf32, #tpu.memory_space<vmem>>, vector<1x8xf32>
    %221 = vector.broadcast %220 : vector<1x8xf32> to vector<2x8xf32>
    %222 = arith.addf %219, %221 : vector<2x8xf32>
    %c0_107 = arith.constant 0 : index
    %c0_108 = arith.constant 0 : index
    %223 = vector.load %arg28[%c0_107, %c0_108] : memref<32x4xf32, #tpu.memory_space<vmem>>, vector<32x4xf32>
    %cst_109 = arith.constant dense<0.000000e+00> : vector<8x4xf32>
    %224 = tpu.matmul %202, %223, %cst_109 {dimension_numbers = #tpu.dot_dimension_numbers<[1], [0], [0], [1], [0, 0, 1, 1], [], []>} : vector<8x32xf32>, vector<32x4xf32>, vector<8x4xf32> -> vector<8x4xf32>
    %c0_110 = arith.constant 0 : index
    %c0_111 = arith.constant 0 : index
    %225 = vector.load %arg29[%c0_110, %c0_111] : memref<1x4xf32, #tpu.memory_space<vmem>>, vector<1x4xf32>
    %226 = vector.broadcast %225 : vector<1x4xf32> to vector<8x4xf32>
    %227 = arith.addf %224, %226 : vector<8x4xf32>
    %c0_112 = arith.constant 0 : index
    %c0_113 = arith.constant 0 : index
    %228 = vector.load %arg20[%c0_112, %c0_113] : memref<32x128xf32, #tpu.memory_space<vmem>>, vector<32x128xf32>
    %cst_114 = arith.constant dense<0.000000e+00> : vector<2x128xf32>
    %229 = tpu.matmul %203, %228, %cst_114 {dimension_numbers = #tpu.dot_dimension_numbers<[1], [0], [0], [1], [0, 0, 1, 1], [], []>} : vector<2x32xf32>, vector<32x128xf32>, vector<2x128xf32> -> vector<2x128xf32>
    %c0_115 = arith.constant 0 : index
    %c0_116 = arith.constant 0 : index
    %230 = vector.load %arg21[%c0_115, %c0_116] : memref<1x128xf32, #tpu.memory_space<vmem>>, vector<1x128xf32>
    %231 = vector.broadcast %230 : vector<1x128xf32> to vector<2x128xf32>
    %232 = arith.addf %229, %231 : vector<2x128xf32>
    %cst_117 = arith.constant 0.000000e+00 : f32
    %233 = vector.broadcast %cst_117 : f32 to vector<2x128xf32>
    %234 = arith.maximumf %232, %233 : vector<2x128xf32>
    %c0_118 = arith.constant 0 : index
    %c0_119 = arith.constant 0 : index
    %235 = vector.load %arg22[%c0_118, %c0_119] : memref<128x64xf32, #tpu.memory_space<vmem>>, vector<128x64xf32>
    %cst_120 = arith.constant dense<0.000000e+00> : vector<2x64xf32>
    %236 = tpu.matmul %234, %235, %cst_120 {dimension_numbers = #tpu.dot_dimension_numbers<[1], [0], [0], [1], [0, 0, 1, 1], [], []>} : vector<2x128xf32>, vector<128x64xf32>, vector<2x64xf32> -> vector<2x64xf32>
    %c0_121 = arith.constant 0 : index
    %c0_122 = arith.constant 0 : index
    %237 = vector.load %arg23[%c0_121, %c0_122] : memref<1x64xf32, #tpu.memory_space<vmem>>, vector<1x64xf32>
    %238 = vector.broadcast %237 : vector<1x64xf32> to vector<2x64xf32>
    %239 = arith.addf %236, %238 : vector<2x64xf32>
    %c0_123 = arith.constant 0 : index
    %c0_124 = arith.constant 0 : index
    %240 = vector.load %arg20[%c0_123, %c0_124] : memref<32x128xf32, #tpu.memory_space<vmem>>, vector<32x128xf32>
    %cst_125 = arith.constant dense<0.000000e+00> : vector<8x128xf32>
    %241 = tpu.matmul %202, %240, %cst_125 {dimension_numbers = #tpu.dot_dimension_numbers<[1], [0], [0], [1], [0, 0, 1, 1], [], []>} : vector<8x32xf32>, vector<32x128xf32>, vector<8x128xf32> -> vector<8x128xf32>
    %c0_126 = arith.constant 0 : index
    %c0_127 = arith.constant 0 : index
    %242 = vector.load %arg21[%c0_126, %c0_127] : memref<1x128xf32, #tpu.memory_space<vmem>>, vector<1x128xf32>
    %243 = vector.broadcast %242 : vector<1x128xf32> to vector<8x128xf32>
    %244 = arith.addf %241, %243 : vector<8x128xf32>
    %cst_128 = arith.constant 0.000000e+00 : f32
    %245 = vector.broadcast %cst_128 : f32 to vector<8x128xf32>
    %246 = arith.maximumf %244, %245 : vector<8x128xf32>
    %c0_129 = arith.constant 0 : index
    %c0_130 = arith.constant 0 : index
    %247 = vector.load %arg22[%c0_129, %c0_130] : memref<128x64xf32, #tpu.memory_space<vmem>>, vector<128x64xf32>
    %cst_131 = arith.constant dense<0.000000e+00> : vector<8x64xf32>
    %248 = tpu.matmul %246, %247, %cst_131 {dimension_numbers = #tpu.dot_dimension_numbers<[1], [0], [0], [1], [0, 0, 1, 1], [], []>} : vector<8x128xf32>, vector<128x64xf32>, vector<8x64xf32> -> vector<8x64xf32>
    %c0_132 = arith.constant 0 : index
    %c0_133 = arith.constant 0 : index
    %249 = vector.load %arg23[%c0_132, %c0_133] : memref<1x64xf32, #tpu.memory_space<vmem>>, vector<1x64xf32>
    %250 = vector.broadcast %249 : vector<1x64xf32> to vector<8x64xf32>
    %251 = arith.addf %248, %250 : vector<8x64xf32>
    %252 = vector.extract_strided_slice %222 {offsets = [0, 0], sizes = [2, 4], strides = [1, 1]} : vector<2x8xf32> to vector<2x4xf32>
    %253 = vector.extract_strided_slice %222 {offsets = [0, 4], sizes = [2, 4], strides = [1, 1]} : vector<2x8xf32> to vector<2x4xf32>
    %254 = tpu.iota {dimensions = array<i32: 1>} : vector<2x4xi32>
    %255 = arith.sitofp %254 : vector<2x4xi32> to vector<2x4xf32>
    %cst_134 = arith.constant dense<0xFF800000> : vector<2xf32>
    %256 = vector.multi_reduction <maximumf>, %252, %cst_134 [1] : vector<2x4xf32> to vector<2xf32>
    %257 = vector.shape_cast %256 : vector<2xf32> to vector<2x1xf32>
    %258 = vector.broadcast %257 : vector<2x1xf32> to vector<2x4xf32>
    %259 = arith.cmpf oge, %252, %258 : vector<2x4xf32>
    %cst_135 = arith.constant 4.000000e+00 : f32
    %260 = vector.broadcast %cst_135 : f32 to vector<2x4xf32>
    %261 = arith.select %259, %255, %260 : vector<2x4xi1>, vector<2x4xf32>
    %cst_136 = arith.constant dense<0x7F800000> : vector<2xf32>
    %262 = vector.multi_reduction <minimumf>, %261, %cst_136 [1] : vector<2x4xf32> to vector<2xf32>
    %263 = vector.shape_cast %262 : vector<2xf32> to vector<2x1xf32>
    %264 = vector.broadcast %263 : vector<2x1xf32> to vector<2x4xf32>
    %265 = arith.cmpf oeq, %255, %264 : vector<2x4xf32>
    %cst_137 = arith.constant 1.000000e+00 : f32
    %cst_138 = arith.constant 0.000000e+00 : f32
    %266 = vector.broadcast %cst_137 : f32 to vector<2x4xf32>
    %267 = vector.broadcast %cst_138 : f32 to vector<2x4xf32>
    %268 = arith.select %265, %266, %267 : vector<2x4xi1>, vector<2x4xf32>
    %cst_139 = arith.constant 0.000000e+00 : f32
    %269 = vector.broadcast %cst_139 : f32 to vector<2x4xf32>
    %270 = arith.cmpf ogt, %268, %269 : vector<2x4xf32>
    %cst_140 = arith.constant -1.000000e+30 : f32
    %271 = vector.broadcast %cst_140 : f32 to vector<2x4xf32>
    %272 = arith.select %270, %271, %252 : vector<2x4xi1>, vector<2x4xf32>
    %cst_141 = arith.constant dense<0xFF800000> : vector<2xf32>
    %273 = vector.multi_reduction <maximumf>, %272, %cst_141 [1] : vector<2x4xf32> to vector<2xf32>
    %274 = vector.shape_cast %273 : vector<2xf32> to vector<2x1xf32>
    %275 = vector.broadcast %274 : vector<2x1xf32> to vector<2x4xf32>
    %276 = arith.cmpf oge, %272, %275 : vector<2x4xf32>
    %cst_142 = arith.constant 4.000000e+00 : f32
    %277 = vector.broadcast %cst_142 : f32 to vector<2x4xf32>
    %278 = arith.select %276, %255, %277 : vector<2x4xi1>, vector<2x4xf32>
    %cst_143 = arith.constant dense<0x7F800000> : vector<2xf32>
    %279 = vector.multi_reduction <minimumf>, %278, %cst_143 [1] : vector<2x4xf32> to vector<2xf32>
    %280 = vector.shape_cast %279 : vector<2xf32> to vector<2x1xf32>
    %281 = vector.broadcast %280 : vector<2x1xf32> to vector<2x4xf32>
    %282 = arith.cmpf oeq, %255, %281 : vector<2x4xf32>
    %cst_144 = arith.constant 1.000000e+00 : f32
    %cst_145 = arith.constant 0.000000e+00 : f32
    %283 = vector.broadcast %cst_144 : f32 to vector<2x4xf32>
    %284 = vector.broadcast %cst_145 : f32 to vector<2x4xf32>
    %285 = arith.select %282, %283, %284 : vector<2x4xi1>, vector<2x4xf32>
    %286 = arith.subf %257, %257 : vector<2x1xf32>
    %287 = math.exp %286 : vector<2x1xf32>
    %288 = arith.subf %274, %257 : vector<2x1xf32>
    %289 = math.exp %288 : vector<2x1xf32>
    %290 = arith.addf %287, %289 : vector<2x1xf32>
    %cst_146 = arith.constant 0.000000e+00 : f32
    %291 = vector.broadcast %cst_146 : f32 to vector<2x4xf32>
    %cst_147 = arith.constant 0.000000e+00 : f32
    %292 = vector.broadcast %cst_147 : f32 to vector<2x4xf32>
    %293 = arith.divf %287, %290 : vector<2x1xf32>
    %294 = vector.broadcast %293 : vector<2x1xf32> to vector<2x4xf32>
    %295 = arith.mulf %268, %294 : vector<2x4xf32>
    %296 = arith.addf %291, %295 : vector<2x4xf32>
    %297 = arith.addf %292, %268 : vector<2x4xf32>
    %298 = arith.divf %289, %290 : vector<2x1xf32>
    %299 = vector.broadcast %298 : vector<2x1xf32> to vector<2x4xf32>
    %300 = arith.mulf %285, %299 : vector<2x4xf32>
    %301 = arith.addf %296, %300 : vector<2x4xf32>
    %302 = arith.addf %297, %285 : vector<2x4xf32>
    %cst_148 = arith.constant 0.000000e+00 : f32
    %303 = vector.broadcast %cst_148 : f32 to vector<2x16xf32>
    %304 = vector.extract_strided_slice %301 {offsets = [0, 0], sizes = [2, 1], strides = [1, 1]} : vector<2x4xf32> to vector<2x1xf32>
    %305 = vector.extract_strided_slice %239 {offsets = [0, 0], sizes = [2, 16], strides = [1, 1]} : vector<2x64xf32> to vector<2x16xf32>
    %306 = vector.broadcast %304 : vector<2x1xf32> to vector<2x16xf32>
    %307 = arith.mulf %306, %305 : vector<2x16xf32>
    %308 = arith.addf %303, %307 : vector<2x16xf32>
    %309 = vector.extract_strided_slice %301 {offsets = [0, 1], sizes = [2, 1], strides = [1, 1]} : vector<2x4xf32> to vector<2x1xf32>
    %310 = vector.extract_strided_slice %239 {offsets = [0, 16], sizes = [2, 16], strides = [1, 1]} : vector<2x64xf32> to vector<2x16xf32>
    %311 = vector.broadcast %309 : vector<2x1xf32> to vector<2x16xf32>
    %312 = arith.mulf %311, %310 : vector<2x16xf32>
    %313 = arith.addf %308, %312 : vector<2x16xf32>
    %314 = vector.extract_strided_slice %301 {offsets = [0, 2], sizes = [2, 1], strides = [1, 1]} : vector<2x4xf32> to vector<2x1xf32>
    %315 = vector.extract_strided_slice %239 {offsets = [0, 32], sizes = [2, 16], strides = [1, 1]} : vector<2x64xf32> to vector<2x16xf32>
    %316 = vector.broadcast %314 : vector<2x1xf32> to vector<2x16xf32>
    %317 = arith.mulf %316, %315 : vector<2x16xf32>
    %318 = arith.addf %313, %317 : vector<2x16xf32>
    %319 = vector.extract_strided_slice %301 {offsets = [0, 3], sizes = [2, 1], strides = [1, 1]} : vector<2x4xf32> to vector<2x1xf32>
    %320 = vector.extract_strided_slice %239 {offsets = [0, 48], sizes = [2, 16], strides = [1, 1]} : vector<2x64xf32> to vector<2x16xf32>
    %321 = vector.broadcast %319 : vector<2x1xf32> to vector<2x16xf32>
    %322 = arith.mulf %321, %320 : vector<2x16xf32>
    %323 = arith.addf %318, %322 : vector<2x16xf32>
    %cst_149 = arith.constant dense<0xFF800000> : vector<2xf32>
    %324 = vector.multi_reduction <maximumf>, %252, %cst_149 [1] : vector<2x4xf32> to vector<2xf32>
    %325 = vector.shape_cast %324 : vector<2xf32> to vector<2x1xf32>
    %326 = vector.broadcast %325 : vector<2x1xf32> to vector<2x4xf32>
    %327 = arith.subf %252, %326 : vector<2x4xf32>
    %328 = math.exp %327 : vector<2x4xf32>
    %cst_150 = arith.constant dense<0.000000e+00> : vector<2xf32>
    %329 = vector.multi_reduction <add>, %328, %cst_150 [1] : vector<2x4xf32> to vector<2xf32>
    %330 = vector.shape_cast %329 : vector<2xf32> to vector<2x1xf32>
    %331 = vector.broadcast %330 : vector<2x1xf32> to vector<2x4xf32>
    %332 = arith.divf %328, %331 : vector<2x4xf32>
    %cst_151 = arith.constant dense<0xFF800000> : vector<2xf32>
    %333 = vector.multi_reduction <maximumf>, %252, %cst_151 [1] : vector<2x4xf32> to vector<2xf32>
    %334 = vector.shape_cast %333 : vector<2xf32> to vector<2x1xf32>
    %335 = vector.broadcast %334 : vector<2x1xf32> to vector<2x4xf32>
    %336 = arith.subf %252, %335 : vector<2x4xf32>
    %337 = math.exp %336 : vector<2x4xf32>
    %cst_152 = arith.constant dense<0.000000e+00> : vector<2xf32>
    %338 = vector.multi_reduction <add>, %337, %cst_152 [1] : vector<2x4xf32> to vector<2xf32>
    %339 = vector.shape_cast %338 : vector<2xf32> to vector<2x1xf32>
    %340 = math.log %339 : vector<2x1xf32>
    %341 = vector.broadcast %340 : vector<2x1xf32> to vector<2x4xf32>
    %342 = arith.subf %336, %341 : vector<2x4xf32>
    %343 = arith.mulf %332, %342 : vector<2x4xf32>
    %cst_153 = arith.constant dense<0.000000e+00> : vector<2xf32>
    %344 = vector.multi_reduction <add>, %343, %cst_153 [1] : vector<2x4xf32> to vector<2xf32>
    %345 = vector.shape_cast %344 : vector<2xf32> to vector<2x1xf32>
    %cst_154 = arith.constant 1.000000e+00 : f32
    %346 = vector.broadcast %cst_154 : f32 to vector<1x2xf32>
    %cst_155 = arith.constant dense<0.000000e+00> : vector<1x4xf32>
    %347 = tpu.matmul %346, %332, %cst_155 {dimension_numbers = #tpu.dot_dimension_numbers<[1], [0], [0], [1], [0, 0, 1, 1], [], []>} : vector<1x2xf32>, vector<2x4xf32>, vector<1x4xf32> -> vector<1x4xf32>
    %cst_156 = arith.constant 2.000000e+00 : f32
    %348 = vector.broadcast %cst_156 : f32 to vector<1x4xf32>
    %349 = arith.divf %347, %348 : vector<1x4xf32>
    %cst_157 = arith.constant 1.000000e+00 : f32
    %350 = vector.broadcast %cst_157 : f32 to vector<1x2xf32>
    %cst_158 = arith.constant dense<0.000000e+00> : vector<1x4xf32>
    %351 = tpu.matmul %350, %302, %cst_158 {dimension_numbers = #tpu.dot_dimension_numbers<[1], [0], [0], [1], [0, 0, 1, 1], [], []>} : vector<1x2xf32>, vector<2x4xf32>, vector<1x4xf32> -> vector<1x4xf32>
    %cst_159 = arith.constant 1.000000e+00 : f32
    %352 = vector.broadcast %cst_159 : f32 to vector<1x2xf32>
    %cst_160 = arith.constant dense<0.000000e+00> : vector<1x1xf32>
    %353 = tpu.matmul %352, %345, %cst_160 {dimension_numbers = #tpu.dot_dimension_numbers<[1], [0], [0], [1], [0, 0, 1, 1], [], []>} : vector<1x2xf32>, vector<2x1xf32>, vector<1x1xf32> -> vector<1x1xf32>
    %cst_161 = arith.constant 2.000000e+00 : f32
    %354 = vector.broadcast %cst_161 : f32 to vector<1x1xf32>
    %355 = arith.divf %353, %354 : vector<1x1xf32>
    %cst_162 = arith.constant 4.000000e+00 : f32
    %356 = vector.broadcast %cst_162 : f32 to vector<1x4xf32>
    %357 = arith.divf %351, %356 : vector<1x4xf32>
    %358 = arith.mulf %349, %357 : vector<1x4xf32>
    %cst_163 = arith.constant dense<0.000000e+00> : vector<1xf32>
    %359 = vector.multi_reduction <add>, %358, %cst_163 [1] : vector<1x4xf32> to vector<1xf32>
    %360 = vector.shape_cast %359 : vector<1xf32> to vector<1x1xf32>
    %cst_164 = arith.constant 4.000000e+00 : f32
    %361 = vector.broadcast %cst_164 : f32 to vector<1x1xf32>
    %362 = arith.mulf %361, %360 : vector<1x1xf32>
    %363 = tpu.iota {dimensions = array<i32: 1>} : vector<2x4xi32>
    %364 = arith.sitofp %363 : vector<2x4xi32> to vector<2x4xf32>
    %cst_165 = arith.constant dense<0xFF800000> : vector<2xf32>
    %365 = vector.multi_reduction <maximumf>, %253, %cst_165 [1] : vector<2x4xf32> to vector<2xf32>
    %366 = vector.shape_cast %365 : vector<2xf32> to vector<2x1xf32>
    %367 = vector.broadcast %366 : vector<2x1xf32> to vector<2x4xf32>
    %368 = arith.cmpf oge, %253, %367 : vector<2x4xf32>
    %cst_166 = arith.constant 4.000000e+00 : f32
    %369 = vector.broadcast %cst_166 : f32 to vector<2x4xf32>
    %370 = arith.select %368, %364, %369 : vector<2x4xi1>, vector<2x4xf32>
    %cst_167 = arith.constant dense<0x7F800000> : vector<2xf32>
    %371 = vector.multi_reduction <minimumf>, %370, %cst_167 [1] : vector<2x4xf32> to vector<2xf32>
    %372 = vector.shape_cast %371 : vector<2xf32> to vector<2x1xf32>
    %373 = vector.broadcast %372 : vector<2x1xf32> to vector<2x4xf32>
    %374 = arith.cmpf oeq, %364, %373 : vector<2x4xf32>
    %cst_168 = arith.constant 1.000000e+00 : f32
    %cst_169 = arith.constant 0.000000e+00 : f32
    %375 = vector.broadcast %cst_168 : f32 to vector<2x4xf32>
    %376 = vector.broadcast %cst_169 : f32 to vector<2x4xf32>
    %377 = arith.select %374, %375, %376 : vector<2x4xi1>, vector<2x4xf32>
    %cst_170 = arith.constant 0.000000e+00 : f32
    %378 = vector.broadcast %cst_170 : f32 to vector<2x4xf32>
    %379 = arith.cmpf ogt, %377, %378 : vector<2x4xf32>
    %cst_171 = arith.constant -1.000000e+30 : f32
    %380 = vector.broadcast %cst_171 : f32 to vector<2x4xf32>
    %381 = arith.select %379, %380, %253 : vector<2x4xi1>, vector<2x4xf32>
    %cst_172 = arith.constant dense<0xFF800000> : vector<2xf32>
    %382 = vector.multi_reduction <maximumf>, %381, %cst_172 [1] : vector<2x4xf32> to vector<2xf32>
    %383 = vector.shape_cast %382 : vector<2xf32> to vector<2x1xf32>
    %384 = vector.broadcast %383 : vector<2x1xf32> to vector<2x4xf32>
    %385 = arith.cmpf oge, %381, %384 : vector<2x4xf32>
    %cst_173 = arith.constant 4.000000e+00 : f32
    %386 = vector.broadcast %cst_173 : f32 to vector<2x4xf32>
    %387 = arith.select %385, %364, %386 : vector<2x4xi1>, vector<2x4xf32>
    %cst_174 = arith.constant dense<0x7F800000> : vector<2xf32>
    %388 = vector.multi_reduction <minimumf>, %387, %cst_174 [1] : vector<2x4xf32> to vector<2xf32>
    %389 = vector.shape_cast %388 : vector<2xf32> to vector<2x1xf32>
    %390 = vector.broadcast %389 : vector<2x1xf32> to vector<2x4xf32>
    %391 = arith.cmpf oeq, %364, %390 : vector<2x4xf32>
    %cst_175 = arith.constant 1.000000e+00 : f32
    %cst_176 = arith.constant 0.000000e+00 : f32
    %392 = vector.broadcast %cst_175 : f32 to vector<2x4xf32>
    %393 = vector.broadcast %cst_176 : f32 to vector<2x4xf32>
    %394 = arith.select %391, %392, %393 : vector<2x4xi1>, vector<2x4xf32>
    %395 = arith.subf %366, %366 : vector<2x1xf32>
    %396 = math.exp %395 : vector<2x1xf32>
    %397 = arith.subf %383, %366 : vector<2x1xf32>
    %398 = math.exp %397 : vector<2x1xf32>
    %399 = arith.addf %396, %398 : vector<2x1xf32>
    %cst_177 = arith.constant 0.000000e+00 : f32
    %400 = vector.broadcast %cst_177 : f32 to vector<2x4xf32>
    %cst_178 = arith.constant 0.000000e+00 : f32
    %401 = vector.broadcast %cst_178 : f32 to vector<2x4xf32>
    %402 = arith.divf %396, %399 : vector<2x1xf32>
    %403 = vector.broadcast %402 : vector<2x1xf32> to vector<2x4xf32>
    %404 = arith.mulf %377, %403 : vector<2x4xf32>
    %405 = arith.addf %400, %404 : vector<2x4xf32>
    %406 = arith.addf %401, %377 : vector<2x4xf32>
    %407 = arith.divf %398, %399 : vector<2x1xf32>
    %408 = vector.broadcast %407 : vector<2x1xf32> to vector<2x4xf32>
    %409 = arith.mulf %394, %408 : vector<2x4xf32>
    %410 = arith.addf %405, %409 : vector<2x4xf32>
    %411 = arith.addf %406, %394 : vector<2x4xf32>
    %cst_179 = arith.constant 0.000000e+00 : f32
    %412 = vector.broadcast %cst_179 : f32 to vector<2x16xf32>
    %413 = vector.extract_strided_slice %410 {offsets = [0, 0], sizes = [2, 1], strides = [1, 1]} : vector<2x4xf32> to vector<2x1xf32>
    %414 = vector.extract_strided_slice %239 {offsets = [0, 0], sizes = [2, 16], strides = [1, 1]} : vector<2x64xf32> to vector<2x16xf32>
    %415 = vector.broadcast %413 : vector<2x1xf32> to vector<2x16xf32>
    %416 = arith.mulf %415, %414 : vector<2x16xf32>
    %417 = arith.addf %412, %416 : vector<2x16xf32>
    %418 = vector.extract_strided_slice %410 {offsets = [0, 1], sizes = [2, 1], strides = [1, 1]} : vector<2x4xf32> to vector<2x1xf32>
    %419 = vector.extract_strided_slice %239 {offsets = [0, 16], sizes = [2, 16], strides = [1, 1]} : vector<2x64xf32> to vector<2x16xf32>
    %420 = vector.broadcast %418 : vector<2x1xf32> to vector<2x16xf32>
    %421 = arith.mulf %420, %419 : vector<2x16xf32>
    %422 = arith.addf %417, %421 : vector<2x16xf32>
    %423 = vector.extract_strided_slice %410 {offsets = [0, 2], sizes = [2, 1], strides = [1, 1]} : vector<2x4xf32> to vector<2x1xf32>
    %424 = vector.extract_strided_slice %239 {offsets = [0, 32], sizes = [2, 16], strides = [1, 1]} : vector<2x64xf32> to vector<2x16xf32>
    %425 = vector.broadcast %423 : vector<2x1xf32> to vector<2x16xf32>
    %426 = arith.mulf %425, %424 : vector<2x16xf32>
    %427 = arith.addf %422, %426 : vector<2x16xf32>
    %428 = vector.extract_strided_slice %410 {offsets = [0, 3], sizes = [2, 1], strides = [1, 1]} : vector<2x4xf32> to vector<2x1xf32>
    %429 = vector.extract_strided_slice %239 {offsets = [0, 48], sizes = [2, 16], strides = [1, 1]} : vector<2x64xf32> to vector<2x16xf32>
    %430 = vector.broadcast %428 : vector<2x1xf32> to vector<2x16xf32>
    %431 = arith.mulf %430, %429 : vector<2x16xf32>
    %432 = arith.addf %427, %431 : vector<2x16xf32>
    %cst_180 = arith.constant dense<0xFF800000> : vector<2xf32>
    %433 = vector.multi_reduction <maximumf>, %253, %cst_180 [1] : vector<2x4xf32> to vector<2xf32>
    %434 = vector.shape_cast %433 : vector<2xf32> to vector<2x1xf32>
    %435 = vector.broadcast %434 : vector<2x1xf32> to vector<2x4xf32>
    %436 = arith.subf %253, %435 : vector<2x4xf32>
    %437 = math.exp %436 : vector<2x4xf32>
    %cst_181 = arith.constant dense<0.000000e+00> : vector<2xf32>
    %438 = vector.multi_reduction <add>, %437, %cst_181 [1] : vector<2x4xf32> to vector<2xf32>
    %439 = vector.shape_cast %438 : vector<2xf32> to vector<2x1xf32>
    %440 = vector.broadcast %439 : vector<2x1xf32> to vector<2x4xf32>
    %441 = arith.divf %437, %440 : vector<2x4xf32>
    %cst_182 = arith.constant dense<0xFF800000> : vector<2xf32>
    %442 = vector.multi_reduction <maximumf>, %253, %cst_182 [1] : vector<2x4xf32> to vector<2xf32>
    %443 = vector.shape_cast %442 : vector<2xf32> to vector<2x1xf32>
    %444 = vector.broadcast %443 : vector<2x1xf32> to vector<2x4xf32>
    %445 = arith.subf %253, %444 : vector<2x4xf32>
    %446 = math.exp %445 : vector<2x4xf32>
    %cst_183 = arith.constant dense<0.000000e+00> : vector<2xf32>
    %447 = vector.multi_reduction <add>, %446, %cst_183 [1] : vector<2x4xf32> to vector<2xf32>
    %448 = vector.shape_cast %447 : vector<2xf32> to vector<2x1xf32>
    %449 = math.log %448 : vector<2x1xf32>
    %450 = vector.broadcast %449 : vector<2x1xf32> to vector<2x4xf32>
    %451 = arith.subf %445, %450 : vector<2x4xf32>
    %452 = arith.mulf %441, %451 : vector<2x4xf32>
    %cst_184 = arith.constant dense<0.000000e+00> : vector<2xf32>
    %453 = vector.multi_reduction <add>, %452, %cst_184 [1] : vector<2x4xf32> to vector<2xf32>
    %454 = vector.shape_cast %453 : vector<2xf32> to vector<2x1xf32>
    %cst_185 = arith.constant 1.000000e+00 : f32
    %455 = vector.broadcast %cst_185 : f32 to vector<1x2xf32>
    %cst_186 = arith.constant dense<0.000000e+00> : vector<1x4xf32>
    %456 = tpu.matmul %455, %441, %cst_186 {dimension_numbers = #tpu.dot_dimension_numbers<[1], [0], [0], [1], [0, 0, 1, 1], [], []>} : vector<1x2xf32>, vector<2x4xf32>, vector<1x4xf32> -> vector<1x4xf32>
    %cst_187 = arith.constant 2.000000e+00 : f32
    %457 = vector.broadcast %cst_187 : f32 to vector<1x4xf32>
    %458 = arith.divf %456, %457 : vector<1x4xf32>
    %cst_188 = arith.constant 1.000000e+00 : f32
    %459 = vector.broadcast %cst_188 : f32 to vector<1x2xf32>
    %cst_189 = arith.constant dense<0.000000e+00> : vector<1x4xf32>
    %460 = tpu.matmul %459, %411, %cst_189 {dimension_numbers = #tpu.dot_dimension_numbers<[1], [0], [0], [1], [0, 0, 1, 1], [], []>} : vector<1x2xf32>, vector<2x4xf32>, vector<1x4xf32> -> vector<1x4xf32>
    %cst_190 = arith.constant 1.000000e+00 : f32
    %461 = vector.broadcast %cst_190 : f32 to vector<1x2xf32>
    %cst_191 = arith.constant dense<0.000000e+00> : vector<1x1xf32>
    %462 = tpu.matmul %461, %454, %cst_191 {dimension_numbers = #tpu.dot_dimension_numbers<[1], [0], [0], [1], [0, 0, 1, 1], [], []>} : vector<1x2xf32>, vector<2x1xf32>, vector<1x1xf32> -> vector<1x1xf32>
    %cst_192 = arith.constant 2.000000e+00 : f32
    %463 = vector.broadcast %cst_192 : f32 to vector<1x1xf32>
    %464 = arith.divf %462, %463 : vector<1x1xf32>
    %cst_193 = arith.constant 4.000000e+00 : f32
    %465 = vector.broadcast %cst_193 : f32 to vector<1x4xf32>
    %466 = arith.divf %460, %465 : vector<1x4xf32>
    %467 = arith.mulf %458, %466 : vector<1x4xf32>
    %cst_194 = arith.constant dense<0.000000e+00> : vector<1xf32>
    %468 = vector.multi_reduction <add>, %467, %cst_194 [1] : vector<1x4xf32> to vector<1xf32>
    %469 = vector.shape_cast %468 : vector<1xf32> to vector<1x1xf32>
    %cst_195 = arith.constant 4.000000e+00 : f32
    %470 = vector.broadcast %cst_195 : f32 to vector<1x1xf32>
    %471 = arith.mulf %470, %469 : vector<1x1xf32>
    %472 = tpu.iota {dimensions = array<i32: 1>} : vector<8x4xi32>
    %473 = arith.sitofp %472 : vector<8x4xi32> to vector<8x4xf32>
    %cst_196 = arith.constant dense<0xFF800000> : vector<8xf32>
    %474 = vector.multi_reduction <maximumf>, %227, %cst_196 [1] : vector<8x4xf32> to vector<8xf32>
    %475 = vector.shape_cast %474 : vector<8xf32> to vector<8x1xf32>
    %476 = vector.broadcast %475 : vector<8x1xf32> to vector<8x4xf32>
    %477 = arith.cmpf oge, %227, %476 : vector<8x4xf32>
    %cst_197 = arith.constant 4.000000e+00 : f32
    %478 = vector.broadcast %cst_197 : f32 to vector<8x4xf32>
    %479 = arith.select %477, %473, %478 : vector<8x4xi1>, vector<8x4xf32>
    %cst_198 = arith.constant dense<0x7F800000> : vector<8xf32>
    %480 = vector.multi_reduction <minimumf>, %479, %cst_198 [1] : vector<8x4xf32> to vector<8xf32>
    %481 = vector.shape_cast %480 : vector<8xf32> to vector<8x1xf32>
    %482 = vector.broadcast %481 : vector<8x1xf32> to vector<8x4xf32>
    %483 = arith.cmpf oeq, %473, %482 : vector<8x4xf32>
    %cst_199 = arith.constant 1.000000e+00 : f32
    %cst_200 = arith.constant 0.000000e+00 : f32
    %484 = vector.broadcast %cst_199 : f32 to vector<8x4xf32>
    %485 = vector.broadcast %cst_200 : f32 to vector<8x4xf32>
    %486 = arith.select %483, %484, %485 : vector<8x4xi1>, vector<8x4xf32>
    %cst_201 = arith.constant 0.000000e+00 : f32
    %487 = vector.broadcast %cst_201 : f32 to vector<8x4xf32>
    %488 = arith.cmpf ogt, %486, %487 : vector<8x4xf32>
    %cst_202 = arith.constant -1.000000e+30 : f32
    %489 = vector.broadcast %cst_202 : f32 to vector<8x4xf32>
    %490 = arith.select %488, %489, %227 : vector<8x4xi1>, vector<8x4xf32>
    %cst_203 = arith.constant dense<0xFF800000> : vector<8xf32>
    %491 = vector.multi_reduction <maximumf>, %490, %cst_203 [1] : vector<8x4xf32> to vector<8xf32>
    %492 = vector.shape_cast %491 : vector<8xf32> to vector<8x1xf32>
    %493 = vector.broadcast %492 : vector<8x1xf32> to vector<8x4xf32>
    %494 = arith.cmpf oge, %490, %493 : vector<8x4xf32>
    %cst_204 = arith.constant 4.000000e+00 : f32
    %495 = vector.broadcast %cst_204 : f32 to vector<8x4xf32>
    %496 = arith.select %494, %473, %495 : vector<8x4xi1>, vector<8x4xf32>
    %cst_205 = arith.constant dense<0x7F800000> : vector<8xf32>
    %497 = vector.multi_reduction <minimumf>, %496, %cst_205 [1] : vector<8x4xf32> to vector<8xf32>
    %498 = vector.shape_cast %497 : vector<8xf32> to vector<8x1xf32>
    %499 = vector.broadcast %498 : vector<8x1xf32> to vector<8x4xf32>
    %500 = arith.cmpf oeq, %473, %499 : vector<8x4xf32>
    %cst_206 = arith.constant 1.000000e+00 : f32
    %cst_207 = arith.constant 0.000000e+00 : f32
    %501 = vector.broadcast %cst_206 : f32 to vector<8x4xf32>
    %502 = vector.broadcast %cst_207 : f32 to vector<8x4xf32>
    %503 = arith.select %500, %501, %502 : vector<8x4xi1>, vector<8x4xf32>
    %504 = arith.subf %475, %475 : vector<8x1xf32>
    %505 = math.exp %504 : vector<8x1xf32>
    %506 = arith.subf %492, %475 : vector<8x1xf32>
    %507 = math.exp %506 : vector<8x1xf32>
    %508 = arith.addf %505, %507 : vector<8x1xf32>
    %cst_208 = arith.constant 0.000000e+00 : f32
    %509 = vector.broadcast %cst_208 : f32 to vector<8x4xf32>
    %cst_209 = arith.constant 0.000000e+00 : f32
    %510 = vector.broadcast %cst_209 : f32 to vector<8x4xf32>
    %511 = arith.divf %505, %508 : vector<8x1xf32>
    %512 = vector.broadcast %511 : vector<8x1xf32> to vector<8x4xf32>
    %513 = arith.mulf %486, %512 : vector<8x4xf32>
    %514 = arith.addf %509, %513 : vector<8x4xf32>
    %515 = arith.addf %510, %486 : vector<8x4xf32>
    %516 = arith.divf %507, %508 : vector<8x1xf32>
    %517 = vector.broadcast %516 : vector<8x1xf32> to vector<8x4xf32>
    %518 = arith.mulf %503, %517 : vector<8x4xf32>
    %519 = arith.addf %514, %518 : vector<8x4xf32>
    %520 = arith.addf %515, %503 : vector<8x4xf32>
    %cst_210 = arith.constant 0.000000e+00 : f32
    %521 = vector.broadcast %cst_210 : f32 to vector<8x16xf32>
    %522 = vector.extract_strided_slice %519 {offsets = [0, 0], sizes = [8, 1], strides = [1, 1]} : vector<8x4xf32> to vector<8x1xf32>
    %523 = vector.extract_strided_slice %251 {offsets = [0, 0], sizes = [8, 16], strides = [1, 1]} : vector<8x64xf32> to vector<8x16xf32>
    %524 = vector.broadcast %522 : vector<8x1xf32> to vector<8x16xf32>
    %525 = arith.mulf %524, %523 : vector<8x16xf32>
    %526 = arith.addf %521, %525 : vector<8x16xf32>
    %527 = vector.extract_strided_slice %519 {offsets = [0, 1], sizes = [8, 1], strides = [1, 1]} : vector<8x4xf32> to vector<8x1xf32>
    %528 = vector.extract_strided_slice %251 {offsets = [0, 16], sizes = [8, 16], strides = [1, 1]} : vector<8x64xf32> to vector<8x16xf32>
    %529 = vector.broadcast %527 : vector<8x1xf32> to vector<8x16xf32>
    %530 = arith.mulf %529, %528 : vector<8x16xf32>
    %531 = arith.addf %526, %530 : vector<8x16xf32>
    %532 = vector.extract_strided_slice %519 {offsets = [0, 2], sizes = [8, 1], strides = [1, 1]} : vector<8x4xf32> to vector<8x1xf32>
    %533 = vector.extract_strided_slice %251 {offsets = [0, 32], sizes = [8, 16], strides = [1, 1]} : vector<8x64xf32> to vector<8x16xf32>
    %534 = vector.broadcast %532 : vector<8x1xf32> to vector<8x16xf32>
    %535 = arith.mulf %534, %533 : vector<8x16xf32>
    %536 = arith.addf %531, %535 : vector<8x16xf32>
    %537 = vector.extract_strided_slice %519 {offsets = [0, 3], sizes = [8, 1], strides = [1, 1]} : vector<8x4xf32> to vector<8x1xf32>
    %538 = vector.extract_strided_slice %251 {offsets = [0, 48], sizes = [8, 16], strides = [1, 1]} : vector<8x64xf32> to vector<8x16xf32>
    %539 = vector.broadcast %537 : vector<8x1xf32> to vector<8x16xf32>
    %540 = arith.mulf %539, %538 : vector<8x16xf32>
    %541 = arith.addf %536, %540 : vector<8x16xf32>
    %cst_211 = arith.constant dense<0xFF800000> : vector<8xf32>
    %542 = vector.multi_reduction <maximumf>, %227, %cst_211 [1] : vector<8x4xf32> to vector<8xf32>
    %543 = vector.shape_cast %542 : vector<8xf32> to vector<8x1xf32>
    %544 = vector.broadcast %543 : vector<8x1xf32> to vector<8x4xf32>
    %545 = arith.subf %227, %544 : vector<8x4xf32>
    %546 = math.exp %545 : vector<8x4xf32>
    %cst_212 = arith.constant dense<0.000000e+00> : vector<8xf32>
    %547 = vector.multi_reduction <add>, %546, %cst_212 [1] : vector<8x4xf32> to vector<8xf32>
    %548 = vector.shape_cast %547 : vector<8xf32> to vector<8x1xf32>
    %549 = vector.broadcast %548 : vector<8x1xf32> to vector<8x4xf32>
    %550 = arith.divf %546, %549 : vector<8x4xf32>
    %cst_213 = arith.constant dense<0xFF800000> : vector<8xf32>
    %551 = vector.multi_reduction <maximumf>, %227, %cst_213 [1] : vector<8x4xf32> to vector<8xf32>
    %552 = vector.shape_cast %551 : vector<8xf32> to vector<8x1xf32>
    %553 = vector.broadcast %552 : vector<8x1xf32> to vector<8x4xf32>
    %554 = arith.subf %227, %553 : vector<8x4xf32>
    %555 = math.exp %554 : vector<8x4xf32>
    %cst_214 = arith.constant dense<0.000000e+00> : vector<8xf32>
    %556 = vector.multi_reduction <add>, %555, %cst_214 [1] : vector<8x4xf32> to vector<8xf32>
    %557 = vector.shape_cast %556 : vector<8xf32> to vector<8x1xf32>
    %558 = math.log %557 : vector<8x1xf32>
    %559 = vector.broadcast %558 : vector<8x1xf32> to vector<8x4xf32>
    %560 = arith.subf %554, %559 : vector<8x4xf32>
    %561 = arith.mulf %550, %560 : vector<8x4xf32>
    %cst_215 = arith.constant dense<0.000000e+00> : vector<8xf32>
    %562 = vector.multi_reduction <add>, %561, %cst_215 [1] : vector<8x4xf32> to vector<8xf32>
    %563 = vector.shape_cast %562 : vector<8xf32> to vector<8x1xf32>
    %cst_216 = arith.constant 1.000000e+00 : f32
    %564 = vector.broadcast %cst_216 : f32 to vector<1x8xf32>
    %cst_217 = arith.constant dense<0.000000e+00> : vector<1x1xf32>
    %565 = tpu.matmul %564, %1, %cst_217 {dimension_numbers = #tpu.dot_dimension_numbers<[1], [0], [0], [1], [0, 0, 1, 1], [], []>} : vector<1x8xf32>, vector<8x1xf32>, vector<1x1xf32> -> vector<1x1xf32>
    %cst_218 = arith.constant 1.000000e+00 : f32
    %566 = vector.broadcast %cst_218 : f32 to vector<1x1xf32>
    %567 = arith.maximumf %565, %566 : vector<1x1xf32>
    %568 = vector.broadcast %1 : vector<8x1xf32> to vector<8x4xf32>
    %569 = arith.mulf %550, %568 : vector<8x4xf32>
    %cst_219 = arith.constant 1.000000e+00 : f32
    %570 = vector.broadcast %cst_219 : f32 to vector<1x8xf32>
    %cst_220 = arith.constant dense<0.000000e+00> : vector<1x4xf32>
    %571 = tpu.matmul %570, %569, %cst_220 {dimension_numbers = #tpu.dot_dimension_numbers<[1], [0], [0], [1], [0, 0, 1, 1], [], []>} : vector<1x8xf32>, vector<8x4xf32>, vector<1x4xf32> -> vector<1x4xf32>
    %572 = vector.broadcast %567 : vector<1x1xf32> to vector<1x4xf32>
    %573 = arith.divf %571, %572 : vector<1x4xf32>
    %574 = vector.broadcast %1 : vector<8x1xf32> to vector<8x4xf32>
    %575 = arith.mulf %520, %574 : vector<8x4xf32>
    %cst_221 = arith.constant 1.000000e+00 : f32
    %576 = vector.broadcast %cst_221 : f32 to vector<1x8xf32>
    %cst_222 = arith.constant dense<0.000000e+00> : vector<1x4xf32>
    %577 = tpu.matmul %576, %575, %cst_222 {dimension_numbers = #tpu.dot_dimension_numbers<[1], [0], [0], [1], [0, 0, 1, 1], [], []>} : vector<1x8xf32>, vector<8x4xf32>, vector<1x4xf32> -> vector<1x4xf32>
    %578 = arith.mulf %563, %1 : vector<8x1xf32>
    %cst_223 = arith.constant 1.000000e+00 : f32
    %579 = vector.broadcast %cst_223 : f32 to vector<1x8xf32>
    %cst_224 = arith.constant dense<0.000000e+00> : vector<1x1xf32>
    %580 = tpu.matmul %579, %578, %cst_224 {dimension_numbers = #tpu.dot_dimension_numbers<[1], [0], [0], [1], [0, 0, 1, 1], [], []>} : vector<1x8xf32>, vector<8x1xf32>, vector<1x1xf32> -> vector<1x1xf32>
    %581 = arith.divf %580, %567 : vector<1x1xf32>
    %cst_225 = arith.constant 2.000000e+00 : f32
    %582 = vector.broadcast %cst_225 : f32 to vector<1x1xf32>
    %583 = arith.mulf %567, %582 : vector<1x1xf32>
    %584 = vector.broadcast %583 : vector<1x1xf32> to vector<1x4xf32>
    %585 = arith.divf %577, %584 : vector<1x4xf32>
    %586 = arith.mulf %573, %585 : vector<1x4xf32>
    %cst_226 = arith.constant dense<0.000000e+00> : vector<1xf32>
    %587 = vector.multi_reduction <add>, %586, %cst_226 [1] : vector<1x4xf32> to vector<1xf32>
    %588 = vector.shape_cast %587 : vector<1xf32> to vector<1x1xf32>
    %cst_227 = arith.constant 4.000000e+00 : f32
    %589 = vector.broadcast %cst_227 : f32 to vector<1x1xf32>
    %590 = arith.mulf %589, %588 : vector<1x1xf32>
    %591 = vector.broadcast %1 : vector<8x1xf32> to vector<8x16xf32>
    %592 = arith.mulf %541, %591 : vector<8x16xf32>
    %593 = arith.addf %362, %471 : vector<1x1xf32>
    %594 = arith.addf %593, %590 : vector<1x1xf32>
    %cst_228 = arith.constant 0.00999999977 : f32
    %595 = vector.broadcast %cst_228 : f32 to vector<1x1xf32>
    %596 = arith.mulf %595, %594 : vector<1x1xf32>
    %597 = arith.addf %355, %464 : vector<1x1xf32>
    %598 = arith.addf %597, %581 : vector<1x1xf32>
    %cst_229 = arith.constant -1.000000e-03 : f32
    %599 = vector.broadcast %cst_229 : f32 to vector<1x1xf32>
    %600 = arith.mulf %599, %598 : vector<1x1xf32>
    %601 = tpu.iota {dimensions = array<i32: 0>} : vector<8x2xi32>
    %602 = arith.sitofp %601 : vector<8x2xi32> to vector<8x2xf32>
    %603 = tpu.iota {dimensions = array<i32: 1>} : vector<8x2xi32>
    %604 = arith.sitofp %603 : vector<8x2xi32> to vector<8x2xf32>
    %cst_230 = arith.constant 4.000000e+00 : f32
    %605 = vector.broadcast %cst_230 : f32 to vector<8x2xf32>
    %606 = arith.mulf %604, %605 : vector<8x2xf32>
    %607 = arith.cmpf oge, %602, %606 : vector<8x2xf32>
    %cst_231 = arith.constant 1.000000e+00 : f32
    %608 = vector.broadcast %cst_231 : f32 to vector<8x2xf32>
    %609 = arith.addf %604, %608 : vector<8x2xf32>
    %cst_232 = arith.constant 4.000000e+00 : f32
    %610 = vector.broadcast %cst_232 : f32 to vector<8x2xf32>
    %611 = arith.mulf %609, %610 : vector<8x2xf32>
    %612 = arith.cmpf olt, %602, %611 : vector<8x2xf32>
    %613 = arith.andi %607, %612 : vector<8x2xi1>
    %cst_233 = arith.constant 1.000000e+00 : f32
    %cst_234 = arith.constant 0.000000e+00 : f32
    %614 = vector.broadcast %cst_233 : f32 to vector<8x2xf32>
    %615 = vector.broadcast %cst_234 : f32 to vector<8x2xf32>
    %616 = arith.select %613, %614, %615 : vector<8x2xi1>, vector<8x2xf32>
    %617 = arith.cmpf oeq, %602, %604 : vector<8x2xf32>
    %cst_235 = arith.constant 1.000000e+00 : f32
    %cst_236 = arith.constant 0.000000e+00 : f32
    %618 = vector.broadcast %cst_235 : f32 to vector<8x2xf32>
    %619 = vector.broadcast %cst_236 : f32 to vector<8x2xf32>
    %620 = arith.select %617, %618, %619 : vector<8x2xi1>, vector<8x2xf32>
    %cst_237 = arith.constant dense<0.000000e+00> : vector<8x16xf32>
    %621 = tpu.matmul %616, %323, %cst_237 {dimension_numbers = #tpu.dot_dimension_numbers<[1], [0], [0], [1], [0, 0, 1, 1], [], []>} : vector<8x2xf32>, vector<2x16xf32>, vector<8x16xf32> -> vector<8x16xf32>
    %c0_238 = arith.constant 0 : index
    %c0_239 = arith.constant 0 : index
    %622 = vector.load %arg30[%c0_238, %c0_239] : memref<32x3xf32, #tpu.memory_space<vmem>>, vector<32x3xf32>
    %cst_240 = arith.constant dense<0.000000e+00> : vector<8x3xf32>
    %623 = tpu.matmul %6, %622, %cst_240 {dimension_numbers = #tpu.dot_dimension_numbers<[1], [0], [0], [1], [0, 0, 1, 1], [], []>} : vector<8x32xf32>, vector<32x3xf32>, vector<8x3xf32> -> vector<8x3xf32>
    %c0_241 = arith.constant 0 : index
    %c0_242 = arith.constant 0 : index
    %624 = vector.load %arg31[%c0_241, %c0_242] : memref<32x3xf32, #tpu.memory_space<vmem>>, vector<32x3xf32>
    %cst_243 = arith.constant dense<0.000000e+00> : vector<8x3xf32>
    %625 = tpu.matmul %202, %624, %cst_243 {dimension_numbers = #tpu.dot_dimension_numbers<[1], [0], [0], [1], [0, 0, 1, 1], [], []>} : vector<8x32xf32>, vector<32x3xf32>, vector<8x3xf32> -> vector<8x3xf32>
    %626 = arith.addf %623, %625 : vector<8x3xf32>
    %c0_244 = arith.constant 0 : index
    %c0_245 = arith.constant 0 : index
    %627 = vector.load %arg32[%c0_244, %c0_245] : memref<16x3xf32, #tpu.memory_space<vmem>>, vector<16x3xf32>
    %cst_246 = arith.constant dense<0.000000e+00> : vector<8x3xf32>
    %628 = tpu.matmul %621, %627, %cst_246 {dimension_numbers = #tpu.dot_dimension_numbers<[1], [0], [0], [1], [0, 0, 1, 1], [], []>} : vector<8x16xf32>, vector<16x3xf32>, vector<8x3xf32> -> vector<8x3xf32>
    %629 = arith.addf %626, %628 : vector<8x3xf32>
    %c0_247 = arith.constant 0 : index
    %c0_248 = arith.constant 0 : index
    %630 = vector.load %arg33[%c0_247, %c0_248] : memref<1x3xf32, #tpu.memory_space<vmem>>, vector<1x3xf32>
    %631 = vector.broadcast %630 : vector<1x3xf32> to vector<8x3xf32>
    %632 = arith.addf %629, %631 : vector<8x3xf32>
    %c0_249 = arith.constant 0 : index
    %c0_250 = arith.constant 0 : index
    %633 = vector.load %arg41[%c0_249, %c0_250] : memref<8x1xf32, #tpu.memory_space<vmem>>, vector<8x1xf32>
    %634 = vector.broadcast %633 : vector<8x1xf32> to vector<8x3xf32>
    %635 = arith.addf %634, %632 : vector<8x3xf32>
    %636 = vector.broadcast %1 : vector<8x1xf32> to vector<8x3xf32>
    %637 = arith.mulf %635, %636 : vector<8x3xf32>
    %c0_251 = arith.constant 0 : index
    %c0_252 = arith.constant 0 : index
    %638 = vector.load %arg34[%c0_251, %c0_252] : memref<16x3xf32, #tpu.memory_space<vmem>>, vector<16x3xf32>
    %cst_253 = arith.constant dense<0.000000e+00> : vector<2x3xf32>
    %639 = tpu.matmul %432, %638, %cst_253 {dimension_numbers = #tpu.dot_dimension_numbers<[1], [0], [0], [1], [0, 0, 1, 1], [], []>} : vector<2x16xf32>, vector<16x3xf32>, vector<2x3xf32> -> vector<2x3xf32>
    %c0_254 = arith.constant 0 : index
    %c0_255 = arith.constant 0 : index
    %640 = vector.load %arg35[%c0_254, %c0_255] : memref<1x3xf32, #tpu.memory_space<vmem>>, vector<1x3xf32>
    %641 = vector.broadcast %640 : vector<1x3xf32> to vector<2x3xf32>
    %642 = arith.addf %639, %641 : vector<2x3xf32>
    %cst_256 = arith.constant dense<0.000000e+00> : vector<8x3xf32>
    %643 = tpu.matmul %620, %642, %cst_256 {dimension_numbers = #tpu.dot_dimension_numbers<[1], [0], [0], [1], [0, 0, 1, 1], [], []>} : vector<8x2xf32>, vector<2x3xf32>, vector<8x3xf32> -> vector<8x3xf32>
    %644 = vector.extract_strided_slice %637 {offsets = [0, 0], sizes = [8, 1], strides = [1, 1]} : vector<8x3xf32> to vector<8x1xf32>
    %c0_257 = arith.constant 0 : index
    %c0_258 = arith.constant 0 : index
    %645 = vector.load %arg42[%c0_257, %c0_258] : memref<8x1xf32, #tpu.memory_space<vmem>>, vector<8x1xf32>
    %646 = arith.subf %644, %645 : vector<8x1xf32>
    %647 = math.absf %646 : vector<8x1xf32>
    %648 = arith.mulf %647, %1 : vector<8x1xf32>
    %c0_259 = arith.constant 0 : index
    %c0_260 = arith.constant 0 : index
    %649 = vector.load %arg36[%c0_259, %c0_260] : memref<32x1xf32, #tpu.memory_space<vmem>>, vector<32x1xf32>
    %cst_261 = arith.constant dense<0.000000e+00> : vector<8x1xf32>
    %650 = tpu.matmul %6, %649, %cst_261 {dimension_numbers = #tpu.dot_dimension_numbers<[1], [0], [0], [1], [0, 0, 1, 1], [], []>} : vector<8x32xf32>, vector<32x1xf32>, vector<8x1xf32> -> vector<8x1xf32>
    %c0_262 = arith.constant 0 : index
    %c0_263 = arith.constant 0 : index
    %651 = vector.load %arg37[%c0_262, %c0_263] : memref<32x1xf32, #tpu.memory_space<vmem>>, vector<32x1xf32>
    %cst_264 = arith.constant dense<0.000000e+00> : vector<8x1xf32>
    %652 = tpu.matmul %202, %651, %cst_264 {dimension_numbers = #tpu.dot_dimension_numbers<[1], [0], [0], [1], [0, 0, 1, 1], [], []>} : vector<8x32xf32>, vector<32x1xf32>, vector<8x1xf32> -> vector<8x1xf32>
    %653 = arith.addf %650, %652 : vector<8x1xf32>
    %c0_265 = arith.constant 0 : index
    %c0_266 = arith.constant 0 : index
    %654 = vector.load %arg38[%c0_265, %c0_266] : memref<16x1xf32, #tpu.memory_space<vmem>>, vector<16x1xf32>
    %cst_267 = arith.constant dense<0.000000e+00> : vector<8x1xf32>
    %655 = tpu.matmul %592, %654, %cst_267 {dimension_numbers = #tpu.dot_dimension_numbers<[1], [0], [0], [1], [0, 0, 1, 1], [], []>} : vector<8x16xf32>, vector<16x1xf32>, vector<8x1xf32> -> vector<8x1xf32>
    %656 = arith.addf %653, %655 : vector<8x1xf32>
    %c0_268 = arith.constant 0 : index
    %c0_269 = arith.constant 0 : index
    %657 = vector.load %arg39[%c0_268, %c0_269] : memref<1x1xf32, #tpu.memory_space<vmem>>, vector<1x1xf32>
    %658 = vector.broadcast %657 : vector<1x1xf32> to vector<8x1xf32>
    %659 = arith.mulf %648, %658 : vector<8x1xf32>
    %660 = arith.addf %656, %659 : vector<8x1xf32>
    %c0_270 = arith.constant 0 : index
    %c0_271 = arith.constant 0 : index
    %661 = vector.load %arg40[%c0_270, %c0_271] : memref<1x1xf32, #tpu.memory_space<vmem>>, vector<1x1xf32>
    %662 = vector.broadcast %661 : vector<1x1xf32> to vector<8x1xf32>
    %663 = arith.addf %660, %662 : vector<8x1xf32>
    %cst_272 = arith.constant 0.000000e+00 : f32
    %664 = vector.broadcast %cst_272 : f32 to vector<8x1xf32>
    %665 = vector.broadcast %596 : vector<1x1xf32> to vector<8x1xf32>
    %666 = arith.addf %664, %665 : vector<8x1xf32>
    %cst_273 = arith.constant 0.000000e+00 : f32
    %667 = vector.broadcast %cst_273 : f32 to vector<8x1xf32>
    %668 = vector.broadcast %600 : vector<1x1xf32> to vector<8x1xf32>
    %669 = arith.addf %667, %668 : vector<8x1xf32>
    %cst_274 = arith.constant 0.000000e+00 : f32
    %670 = vector.broadcast %cst_274 : f32 to vector<8x119xf32>
    %671 = tpu.concatenate %637, %663, %643, %666, %669, %670 in 1 : vector<8x3xf32>, vector<8x1xf32>, vector<8x3xf32>, vector<8x1xf32>, vector<8x1xf32>, vector<8x119xf32> -> vector<8x128xf32>
    %c0_275 = arith.constant 0 : index
    %c0_276 = arith.constant 0 : index
    %672 = vector.load %arg43[%c0_275, %c0_276] : memref<8x128xf32, #tpu.memory_space<vmem>>, vector<8x128xf32>
    tpu.vector_store %arg43[%c0_275, %c0_276], %671 {strides = array<i32>} : memref<8x128xf32, #tpu.memory_space<vmem>>, vector<8x128xf32>,
    return
  }
  func.func @transform_0(%arg0: i32) -> (i32, i32) {
    %c0_i32 = arith.constant 0 : i32
    %c0_i32_0 = arith.constant 0 : i32
    %c0_i32_1 = arith.constant 0 : i32
    return %c0_i32, %c0_i32_0 : i32, i32
  }
  func.func @transform_1(%arg0: i32) -> (i32, i32) {
    %c0_i32 = arith.constant 0 : i32
    %c0_i32_0 = arith.constant 0 : i32
    %c0_i32_1 = arith.constant 0 : i32
    return %c0_i32, %c0_i32_0 : i32, i32
  }
  func.func @transform_2(%arg0: i32) -> (i32, i32) {
    %c0_i32 = arith.constant 0 : i32
    %c0_i32_0 = arith.constant 0 : i32
    %c0_i32_1 = arith.constant 0 : i32
    return %c0_i32, %c0_i32_0 : i32, i32
  }
  func.func @transform_3(%arg0: i32) -> (i32, i32) {
    %c0_i32 = arith.constant 0 : i32
    %c0_i32_0 = arith.constant 0 : i32
    %c0_i32_1 = arith.constant 0 : i32
    return %c0_i32, %c0_i32_0 : i32, i32
  }
  func.func @transform_4(%arg0: i32) -> (i32, i32) {
    %c0_i32 = arith.constant 0 : i32
    %c0_i32_0 = arith.constant 0 : i32
    %c0_i32_1 = arith.constant 0 : i32
    return %c0_i32, %c0_i32_0 : i32, i32
  }
  func.func @transform_5(%arg0: i32) -> (i32, i32, i32) {
    %c0_i32 = arith.constant 0 : i32
    %c0_i32_0 = arith.constant 0 : i32
    %c0_i32_1 = arith.constant 0 : i32
    %c0_i32_2 = arith.constant 0 : i32
    return %c0_i32, %c0_i32_0, %c0_i32_1 : i32, i32, i32
  }
  func.func @transform_6(%arg0: i32) -> (i32, i32, i32) {
    %c0_i32 = arith.constant 0 : i32
    %c0_i32_0 = arith.constant 0 : i32
    %c0_i32_1 = arith.constant 0 : i32
    %c0_i32_2 = arith.constant 0 : i32
    return %c0_i32, %c0_i32_0, %c0_i32_1 : i32, i32, i32
  }
  func.func @transform_7(%arg0: i32) -> (i32, i32, i32) {
    %c0_i32 = arith.constant 0 : i32
    %c0_i32_0 = arith.constant 0 : i32
    %c0_i32_1 = arith.constant 0 : i32
    %c0_i32_2 = arith.constant 0 : i32
    return %c0_i32, %c0_i32_0, %c0_i32_1 : i32, i32, i32
  }
  func.func @transform_8(%arg0: i32) -> (i32, i32, i32) {
    %c0_i32 = arith.constant 0 : i32
    %c0_i32_0 = arith.constant 0 : i32
    %c0_i32_1 = arith.constant 0 : i32
    %c0_i32_2 = arith.constant 0 : i32
    return %c0_i32, %c0_i32_0, %c0_i32_1 : i32, i32, i32
  }
  func.func @transform_9(%arg0: i32) -> (i32, i32, i32) {
    %c0_i32 = arith.constant 0 : i32
    %c0_i32_0 = arith.constant 0 : i32
    %c0_i32_1 = arith.constant 0 : i32
    %c0_i32_2 = arith.constant 0 : i32
    return %c0_i32, %c0_i32_0, %c0_i32_1 : i32, i32, i32
  }
  func.func @transform_10(%arg0: i32) -> (i32, i32, i32) {
    %c0_i32 = arith.constant 0 : i32
    %c0_i32_0 = arith.constant 0 : i32
    %c0_i32_1 = arith.constant 0 : i32
    %c0_i32_2 = arith.constant 0 : i32
    return %c0_i32, %c0_i32_0, %c0_i32_1 : i32, i32, i32
  }
  func.func @transform_11(%arg0: i32) -> (i32, i32, i32) {
    %c0_i32 = arith.constant 0 : i32
    %c0_i32_0 = arith.constant 0 : i32
    %c0_i32_1 = arith.constant 0 : i32
    %c0_i32_2 = arith.constant 0 : i32
    return %c0_i32, %c0_i32_0, %c0_i32_1 : i32, i32, i32
  }
  func.func @transform_12(%arg0: i32) -> (i32, i32, i32) {
    %c0_i32 = arith.constant 0 : i32
    %c0_i32_0 = arith.constant 0 : i32
    %c0_i32_1 = arith.constant 0 : i32
    %c0_i32_2 = arith.constant 0 : i32
    return %c0_i32, %c0_i32_0, %c0_i32_1 : i32, i32, i32
  }
  func.func @transform_13(%arg0: i32) -> (i32, i32, i32) {
    %c0_i32 = arith.constant 0 : i32
    %c0_i32_0 = arith.constant 0 : i32
    %c0_i32_1 = arith.constant 0 : i32
    %c0_i32_2 = arith.constant 0 : i32
    return %c0_i32, %c0_i32_0, %c0_i32_1 : i32, i32, i32
  }
  func.func @transform_14(%arg0: i32) -> (i32, i32, i32) {
    %c0_i32 = arith.constant 0 : i32
    %c0_i32_0 = arith.constant 0 : i32
    %c0_i32_1 = arith.constant 0 : i32
    %c0_i32_2 = arith.constant 0 : i32
    return %c0_i32, %c0_i32_0, %c0_i32_1 : i32, i32, i32
  }
  func.func @transform_15(%arg0: i32) -> (i32, i32, i32) {
    %c0_i32 = arith.constant 0 : i32
    %c0_i32_0 = arith.constant 0 : i32
    %c0_i32_1 = arith.constant 0 : i32
    %c0_i32_2 = arith.constant 0 : i32
    return %c0_i32, %c0_i32_0, %c0_i32_1 : i32, i32, i32
  }
  func.func @transform_16(%arg0: i32) -> (i32, i32, i32) {
    %c0_i32 = arith.constant 0 : i32
    %c0_i32_0 = arith.constant 0 : i32
    %c0_i32_1 = arith.constant 0 : i32
    %c0_i32_2 = arith.constant 0 : i32
    return %c0_i32, %c0_i32_0, %c0_i32_1 : i32, i32, i32
  }
  func.func @transform_17(%arg0: i32) -> (i32, i32) {
    %c0_i32 = arith.constant 0 : i32
    %c0_i32_0 = arith.constant 0 : i32
    %c0_i32_1 = arith.constant 0 : i32
    return %c0_i32, %c0_i32_0 : i32, i32
  }
  func.func @transform_18(%arg0: i32) -> (i32, i32) {
    %c0_i32 = arith.constant 0 : i32
    %c0_i32_0 = arith.constant 0 : i32
    %c0_i32_1 = arith.constant 0 : i32
    return %c0_i32, %c0_i32_0 : i32, i32
  }
  func.func @transform_19(%arg0: i32) -> (i32, i32) {
    %c0_i32 = arith.constant 0 : i32
    %c0_i32_0 = arith.constant 0 : i32
    %c0_i32_1 = arith.constant 0 : i32
    return %c0_i32, %c0_i32_0 : i32, i32
  }
  func.func @transform_20(%arg0: i32) -> (i32, i32) {
    %c0_i32 = arith.constant 0 : i32
    %c0_i32_0 = arith.constant 0 : i32
    %c0_i32_1 = arith.constant 0 : i32
    return %c0_i32, %c0_i32_0 : i32, i32
  }
  func.func @transform_21(%arg0: i32) -> (i32, i32) {
    %c0_i32 = arith.constant 0 : i32
    %c0_i32_0 = arith.constant 0 : i32
    %c0_i32_1 = arith.constant 0 : i32
    return %c0_i32, %c0_i32_0 : i32, i32
  }
  func.func @transform_22(%arg0: i32) -> (i32, i32) {
    %c0_i32 = arith.constant 0 : i32
    %c0_i32_0 = arith.constant 0 : i32
    %c0_i32_1 = arith.constant 0 : i32
    return %c0_i32, %c0_i32_0 : i32, i32
  }
  func.func @transform_23(%arg0: i32) -> (i32, i32) {
    %c0_i32 = arith.constant 0 : i32
    %c0_i32_0 = arith.constant 0 : i32
    %c0_i32_1 = arith.constant 0 : i32
    return %c0_i32, %c0_i32_0 : i32, i32
  }
  func.func @transform_24(%arg0: i32) -> (i32, i32) {
    %c0_i32 = arith.constant 0 : i32
    %c0_i32_0 = arith.constant 0 : i32
    %c0_i32_1 = arith.constant 0 : i32
    return %c0_i32, %c0_i32_0 : i32, i32
  }
  func.func @transform_25(%arg0: i32) -> (i32, i32) {
    %c0_i32 = arith.constant 0 : i32
    %c0_i32_0 = arith.constant 0 : i32
    %c0_i32_1 = arith.constant 0 : i32
    return %c0_i32, %c0_i32_0 : i32, i32
  }
  func.func @transform_26(%arg0: i32) -> (i32, i32) {
    %c0_i32 = arith.constant 0 : i32
    %c0_i32_0 = arith.constant 0 : i32
    %c0_i32_1 = arith.constant 0 : i32
    return %c0_i32, %c0_i32_0 : i32, i32
  }
  func.func @transform_27(%arg0: i32) -> (i32, i32) {
    %c0_i32 = arith.constant 0 : i32
    %c0_i32_0 = arith.constant 0 : i32
    %c0_i32_1 = arith.constant 0 : i32
    return %c0_i32, %c0_i32_0 : i32, i32
  }
  func.func @transform_28(%arg0: i32) -> (i32, i32) {
    %c0_i32 = arith.constant 0 : i32
    %c0_i32_0 = arith.constant 0 : i32
    %c0_i32_1 = arith.constant 0 : i32
    return %c0_i32, %c0_i32_0 : i32, i32
  }
  func.func @transform_29(%arg0: i32) -> (i32, i32) {
    %c0_i32 = arith.constant 0 : i32
    %c0_i32_0 = arith.constant 0 : i32
    %c0_i32_1 = arith.constant 0 : i32
    return %c0_i32, %c0_i32_0 : i32, i32
  }
  func.func @transform_30(%arg0: i32) -> (i32, i32) {
    %c0_i32 = arith.constant 0 : i32
    %c0_i32_0 = arith.constant 0 : i32
    %c0_i32_1 = arith.constant 0 : i32
    return %c0_i32, %c0_i32_0 : i32, i32
  }
  func.func @transform_31(%arg0: i32) -> (i32, i32) {
    %c0_i32 = arith.constant 0 : i32
    %c0_i32_0 = arith.constant 0 : i32
    %c0_i32_1 = arith.constant 0 : i32
    return %c0_i32, %c0_i32_0 : i32, i32
  }
  func.func @transform_32(%arg0: i32) -> (i32, i32) {
    %c0_i32 = arith.constant 0 : i32
    %c0_i32_0 = arith.constant 0 : i32
    %c0_i32_1 = arith.constant 0 : i32
    return %c0_i32, %c0_i32_0 : i32, i32
  }
  func.func @transform_33(%arg0: i32) -> (i32, i32) {
    %c0_i32 = arith.constant 0 : i32
    %c0_i32_0 = arith.constant 0 : i32
    %c0_i32_1 = arith.constant 0 : i32
    return %c0_i32, %c0_i32_0 : i32, i32
  }
  func.func @transform_34(%arg0: i32) -> (i32, i32) {
    %c0_i32 = arith.constant 0 : i32
    %c0_i32_0 = arith.constant 0 : i32
    %c0_i32_1 = arith.constant 0 : i32
    return %c0_i32, %c0_i32_0 : i32, i32
  }
  func.func @transform_35(%arg0: i32) -> (i32, i32) {
    %c0_i32 = arith.constant 0 : i32
    %c0_i32_0 = arith.constant 0 : i32
    %c0_i32_1 = arith.constant 0 : i32
    return %c0_i32, %c0_i32_0 : i32, i32
  }
  func.func @transform_36(%arg0: i32) -> (i32, i32) {
    %c0_i32 = arith.constant 0 : i32
    %c0_i32_0 = arith.constant 0 : i32
    %c0_i32_1 = arith.constant 0 : i32
    return %c0_i32, %c0_i32_0 : i32, i32
  }
  func.func @transform_37(%arg0: i32) -> (i32, i32) {
    %c0_i32 = arith.constant 0 : i32
    %c0_i32_0 = arith.constant 0 : i32
    %c0_i32_1 = arith.constant 0 : i32
    return %c0_i32, %c0_i32_0 : i32, i32
  }
  func.func @transform_38(%arg0: i32) -> (i32, i32) {
    %c0_i32 = arith.constant 0 : i32
    %c0_i32_0 = arith.constant 0 : i32
    %c0_i32_1 = arith.constant 0 : i32
    return %c0_i32, %c0_i32_0 : i32, i32
  }
  func.func @transform_39(%arg0: i32) -> (i32, i32) {
    %c0_i32 = arith.constant 0 : i32
    %c0_i32_0 = arith.constant 0 : i32
    %c0_i32_1 = arith.constant 0 : i32
    return %c0_i32, %c0_i32_0 : i32, i32
  }
  func.func @transform_40(%arg0: i32) -> (i32, i32) {
    %c0_i32 = arith.constant 0 : i32
    %c0_i32_0 = arith.constant 0 : i32
    %c0_i32_1 = arith.constant 0 : i32
    return %c0_i32, %c0_i32_0 : i32, i32
  }
  func.func @transform_41(%arg0: i32) -> (i32, i32) {
    %c0_i32 = arith.constant 0 : i32
    %c0_i32_0 = arith.constant 0 : i32
    %c0_i32_1 = arith.constant 0 : i32
    return %c0_i32, %c0_i32_0 : i32, i32
  }
  func.func @transform_42(%arg0: i32) -> (i32, i32) {
    %c0_i32 = arith.constant 0 : i32
    %c0_i32_0 = arith.constant 0 : i32
    %c0_i32_1 = arith.constant 0 : i32
    return %c0_i32, %c0_i32_0 : i32, i32
  }
}

</mosaic_0001>

<bundles_post_ra>
// kernel: mul.8
= control target key start
LH: loop header
LB: loop body
LE: loop exit
PB: predicated region body
PF: predicated region fallthrough
CT: control target
= control target key end

     0   :  { %vm3_vm0 = vcmask 31744   ;;  %s13_s11 = smov 4   ;;  %vm9_vm1 = vcmask 64544   ;;  %s36_s0 = inlined_call_operand.vmem [shape: f32[2,8,4], index: 0, kind: input, shape index: {}]   ;;  %s37_s1 = inlined_call_operand.vmem [shape: f32[8,8], index: 1, kind: output, shape index: {}]  }
   0x1   :  { %v2_v0 = vld [vmem:[%s36_s0] ss:$2 sm:$0xff]   ;;  %v11_v1 = vld [vmem:[%s36_s0 + $0x1] ss:$2 sm:$0xff]  }
   0x2   :  { %4 = vst.msk [vmem:[%s37_s1] sm:$0xff] %vm3_vm0, %v2_v0   ;;  %7 = vrot.lane.b32.xlu0 %v11_v1, %s13_s11 }
  0x74   :  { %v8_v2 = vpop.permute.xlu0 %7  }
  0x75   :  { %10 = vst.msk [vmem:[%s37_s1] sm:$0xff] %vm9_vm1, %v8_v2  }

// kernel: eq.24
= control target key start
LH: loop header
LB: loop body
LE: loop exit
PB: predicated region body
PF: predicated region fallthrough
CT: control target
= control target key end

     0   :  { %vm7_vm0 = vcmask 31744   ;;  %vm13_vm1 = vcmask 64544   ;;  %s39_s0 = inlined_call_operand.vmem [shape: s32[2,4], index: 0, kind: input, shape index: {}]   ;;  %s40_s1 = inlined_call_operand.vmem [shape: s32[8], index: 1, kind: output, shape index: {}]  }
   0x1   :  { %v4_v0 = vld [vmem:[%s39_s0] sm:$0x3]  ;;  %s22_s0 = smov 4  }
   0x2   :  { %5 = vst [vmem:[#allocation1] sm:$0x3] %v4_v0 }
   0x9   :  { %v10_v1 = vld [vmem:[#allocation1 + $0x1] sm:$0x1]   ;;  %v6_v2 = vld [vmem:[#allocation1] sm:$0x1]  }
   0xa   :  { %11 = vrot.lane.b32.xlu0 %v10_v1, %s22_s0  ;;  %8 = vst.msk [vmem:[#allocation0] sm:$0x1] %vm7_vm0, %v6_v2  }
  0x7c   :  { %v12_v3 = vpop.permute.xlu0 %11  }
  0x7d   :  { %14 = vst.msk [vmem:[#allocation0] sm:$0x1] %vm13_vm1, %v12_v3  }
  0x84   :  { %v18_v4 = vld [vmem:[#allocation0] sm:$0x1] }
  0x85   :  { %20 = vst [vmem:[%s40_s1] sm:$0x1] %v18_v4 }

// kernel: squeeze.7
= control target key start
LH: loop header
LB: loop body
LE: loop exit
PB: predicated region body
PF: predicated region fallthrough
CT: control target
= control target key end

     0   :  { %s85_s0 = inlined_call_operand.vmem [shape: f32[8], index: 0, kind: input, shape index: {}]   ;;  %s86_s1 = inlined_call_operand.hbm [shape: f32[2,4], index: 1, kind: output, shape index: {}]  }
   0x1   :  { %v5_v0 = vld [vmem:[%s85_s0] sm:$0x1] }
   0x2   :  { %2 = vsyncpa [#allocation1], 0  ;;  %6 = vst [vmem:[#allocation3] sm:$0x1] %v5_v0  ;;  %vm8_vm0 = vcmask 31744   ;;  %s58_s0 = smov 124  }
   0x3   :  { %s59_s8 = smov [#allocation0]  }
   0x4   :  { %s26_s9 = sshll.u32 %s59_s8, 4  ;;  %s27_s9 = int_to_ptr.vmem [resolvable:$true] %s26_s9 }
   0x5   :  { %s34_s10 = scalar_lea.vmem %s27_s9, 32  ;;  %p39_p1 = scmp.lt.s32.totalorder %s27_s9, %s27_s9 }
   0x6   :  { %p35_p0 = scmp.ne.s32.totalorder %s27_s9, %s34_s10  ;;  %p40_p2 = scmp.lt.s32.totalorder %s34_s10, %s34_s10 }
   0x8   :  { %p41_p3 = por %p40_p2, %p39_p1 }
   0x9   :  { %v10_v1 = vld [vmem:[#allocation3] sm:$0x1]  }
   0xa   :  { %v7_v2 = vld [vmem:[#allocation3] sm:$0x1]   ;;  %11 = vrot.lane.b32.xlu0 %v10_v1, %s58_s0  ;;  %p42_p4 = pnand %p41_p3, %p35_p0 }
   0xb   :  { %9 = vst.msk [vmem:[#allocation2] sm:$0x1] %vm8_vm0, %v7_v2  }
  0x7c   :  { %v12_v3 = vpop.permute.xlu0 %11  }
  0x7d   :  { %15 = vst.msk [vmem:[#allocation2 + $0x1] sm:$0x1] %vm8_vm0, %v12_v3  }
  0x84   :  { %v19_v4 = vld [vmem:[#allocation2] sm:$0x3] }
  0x85   :  { %21 = vst [vmem:[#allocation0] sm:$0x3] %v19_v4 }
  0x86   :  { %45 = shalt.err (!%p42_p4)
}
  0x87   :  { %s46_s13 = scalar_lea.hbm %s86_s1, 32 }
  0x88   :  { %p47_p5 = scmp.ne.s32.totalorder %s86_s1, %s46_s13  ;;  %p50_p6 = scmp.lt.u32.totalorder %s46_s13, %s86_s1 }
  0x8a   :  { %p52_p7 = pnand %p50_p6, %p47_p5 }
  0x8c   :  { %55 = shalt.err (!%p52_p7)
}
  0x8d   :  { %29 = dma.vmem_to_hbm [thread:$0]  %s27_s9, 32, %s86_s1, [#allocation1]  }
  0x8e   :  { %56 = dma.done.wait [#allocation1], 32  }
  0x8f   :  { %57 = vsyncadd [#allocation1], 4294967264 }
  0x90   :  { %31 = vsyncpa [#allocation1], 1 }

// kernel: forward.2
= control target key start
LH: loop header
LB: loop body
LE: loop exit
PB: predicated region body
PF: predicated region fallthrough
CT: control target
= control target key end

     0   :  { %v224_v0 = vlaneseq  ;;  %v7485_v1 = vmov 0.0|0.0   ;;  %vm5672_vm0 = vmmov 0   ;;  %v7498_v5 = vmov 0.0   ;;  %s7469_s0 = inlined_call_operand.vmem [shape: f32[72,24], index: 0, kind: input, shape index: {}]   ;;  %s7470_s1 = inlined_call_operand.vmem [shape: f32[72,1], index: 1, kind: input, shape index: {}]   ;;  %s7471_s7 = inlined_call_operand.vmem [shape: f32[24,32], index: 7, kind: input, shape index: {}]   ;;  %s7472_s3 = inlined_call_operand.vmem [shape: f32[72,32], index: 3, kind: input, shape index: {}]   ;;  %s7473_s4 = inlined_call_operand.vmem [shape: f32[1,32], index: 4, kind: input, shape index: {}]   ;;  %s7474_s5 = inlined_call_operand.vmem [shape: f32[96,32], index: 5, kind: input, shape index: {}]   ;;  %s7475_s6 = inlined_call_operand.vmem [shape: f32[1,32], index: 6, kind: input, shape index: {}]   ;;  %s7476_s8 = inlined_call_operand.vmem [shape: f32[1,32], index: 8, kind: input, shape index: {}]   ;;  %s7477_s9 = inlined_call_operand.vmem [shape: f32[96,32], index: 9, kind: input, shape index: {}]   ;;  %s7478_s10 = inlined_call_operand.vmem [shape: f32[1,32], index: 10, kind: input, shape index: {}]   ;;  %s7479_s11 = inlined_call_operand.vmem [shape: f32[96,32], index: 11, kind: input, shape index: {}]   ;;  %s7480_s12 = inlined_call_operand.vmem [shape: f32[1,32], index: 12, kind: input, shape index: {}]   ;;  %s7481_s2 = inlined_call_operand.vmem [shape: f32[8,1], index: 2, kind: input, shape index: {}]   ;;  %s7482_s13 = inlined_call_operand.vmem [shape: f32[1,32], index: 13, kind: input, shape index: {}]   ;;  %s7483_s14 = inlined_call_operand.vmem [shape: f32[1,32], index: 14, kind: input, shape index: {}]   ;;  %s7484_s15 = inlined_call_operand.vmem [shape: f32[8,128], index: 15, kind: output, shape index: {}]  }
   0x1   :  { %5270 = vmatprep.subr.bf16.mxu1 %v7485_v1  ;;  %v5761_v2 = vld [vmem:[%s7469_s0] sm:$0xff]  ;;  %v5766_v3 = vld [vmem:[%s7469_s0 + $0x8] sm:$0xff]  ;;  %v5771_v4 = vld [vmem:[%s7469_s0 + $0x10] sm:$0xff]  ;;  %4448 = vmatprep.mubr.msk.f32.mxu1 %vm5672_vm0, %v7498_v5  ;;  %v5674_v10 = vmov 0   ;;  %vm273_vm6 = vcmask 588800  }
   0x2   :  { %v5777_v6 = vpack.c.bf16 %v5766_v3, %v5761_v2  ;;  %v5782_v7 = vld [vmem:[%s7469_s0 + $0x18] sm:$0xff]  ;;  %v5784_v8 = vshrl.u32 %v224_v0, 7  ;;  %v244_v9 = vand.u32 127, %v224_v0  ;;  %5651 = vset.pattern.permute.xlu0 %v5674_v10  ;;  %5652 = vset.pattern.permute.xlu1 %v5674_v10  ;;  %v5799_v13 = vld [vmem:[%s7469_s0 + $0x20] sm:$0xff]  ;;  %v5804_v14 = vld [vmem:[%s7469_s0 + $0x28] sm:$0xff] }
   0x3   :  { %5267 = vmatprep.subr.bf16.mxu0 %v7485_v1  ;;  %4403 = vmatprep.mubr.msk.f32.mxu0 %vm5672_vm0, %v7498_v5  ;;  %v5792_v11 = vpack.c.bf16 %v5782_v7, %v5771_v4  ;;  %v5812_v18 = vpack.c.bf16 %v5804_v14, %v5799_v13  ;;  %v5821_v20 = vld [vmem:[%s7469_s0 + $0x30] sm:$0xff]  ;;  %v5826_v21 = vld [vmem:[%s7469_s0 + $0x38] sm:$0xff]  ;;  %v5831_v22 = vld [vmem:[%s7470_s1] sm:$0xff] }
   0x4   :  { %5272 = vmatpush3.bf16.msra.mxu1 %v5777_v6  ;;  %v234_v12 = vcvt.s32.f32 %v5784_v8  ;;  %v5806_v15 = vcvt.s32.f32 %v244_v9  ;;  %v226_v17 = vadd.s32 8, %v5784_v8  ;;  %v227_v25 = vadd.s32 16, %v5784_v8  ;;  %v5840_v26 = vld [vmem:[%s7470_s1 + $0x8] sm:$0xff]  ;;  %v5854_v29 = vld [vmem:[%s7470_s1 + $0x20] sm:$0xff]  ;;  %v5859_v30 = vld [vmem:[%s7470_s1 + $0x10] sm:$0xff] }
   0x5   :  { %5273 = vmatprep.subr.bf16.mxu1 %v7485_v1  ;;  %v5845_v27 = vpack.c.bf16 %v5826_v21, %v5821_v20  ;;  %vm411_vm1 = vcmp.ge.f32.partialorder %v5831_v22, 2.0  ;;  %vm412_vm2 = vcmp.ge.f32.partialorder %v5840_v26, 2.0  ;;  %v228_v33 = vadd.s32 24, %v5784_v8  ;;  %v5871_v35 = vld [vmem:[%s7470_s1 + $0x18] sm:$0xff]  ;;  %v5877_v36 = vld [vmem:[%s7469_s0 + $0x40] sm:$0xff]  ;;  %v5889_v40 = vld [vmem:[%s7470_s1 + $0x30] sm:$0xff] }
   0x6   :  { %v3576_v16 = vmul.f32 9.0, %v234_v12  ;;  %v5834_v23 = vsub.f32 %v234_v12, %v5806_v15  ;;  %v235_v24 = vcvt.s32.f32 %v226_v17  ;;  %v3852_v28 = vsel %vm411_vm1, 1.0, %v7498_v5  ;;  %v5899_v43 = vld [vmem:[%s7470_s1 + $0x28] sm:$0xff]  ;;  %v5917_v47 = vld [vmem:[%s7470_s1 + $0x40] sm:$0xff]  ;;  %v5929_v51 = vld [vmem:[%s7470_s1 + $0x38] sm:$0xff] }
   0x7   :  { %v236_v32 = vcvt.s32.f32 %v227_v25  ;;  %440 = vperm.xlu0 %5651, %v3852_v28   ;;  %v3853_v34 = vsel %vm412_vm2, 1.0, %v7498_v5  ;;  %vm415_vm4 = vcmp.ge.f32.partialorder %v5854_v29, 2.0  ;;  %vm413_vm5 = vcmp.ge.f32.partialorder %v5859_v30, 2.0  ;;  %v68_v61 = vld [vmem:[%s7471_s7] sm:$0xff]  ;;  %v69_v62 = vld [vmem:[%s7471_s7 + $0x8] sm:$0xff] }
   0x8   :  { %5275 = vmatpush3.bf16.msra.mxu1 %v5792_v11  ;;  %v5815_v19 = vsub.f32 %v5806_v15, %v3576_v16  ;;  %7515 = vst [vmem:[#allocation3_spill] sm:$0xff] %v5834_v23  ;;  %vm255_vm3 = vcmp.eq.f32.partialorder %v5834_v23, 2.0  ;;  %v5863_v31 = vsub.f32 %v235_v24, %v5806_v15  ;;  %v229_v38 = vadd.s32 32, %v5784_v8 }
   0x9   :  { %5276 = vmatprep.subr.bf16.mxu1 %v7485_v1  ;;  %v5882_v37 = vsel %vm255_vm3, 1.0, %v7498_v5  ;;  %v3854_v39 = vsel %vm413_vm5, 1.0, %v7498_v5  ;;  %v5893_v41 = vsub.f32 %v236_v32, %v5806_v15  ;;  %v237_v42 = vcvt.s32.f32 %v228_v33 }
   0xa   :  { %7514 = vst [vmem:[#allocation2_spill] sm:$0xff] %v5815_v19  ;;  %7516 = vst [vmem:[#allocation4_spill] sm:$0xff] %v5863_v31  ;;  %vm256_vm7 = vcmp.eq.f32.partialorder %v5863_v31, 2.0  ;;  %450 = vperm.xlu1 %5652, %v3854_v39   ;;  %vm414_vm8 = vcmp.ge.f32.partialorder %v5871_v35, 2.0  ;;  %v3856_v44 = vsel %vm415_vm4, 1.0, %v7498_v5  ;;  %vm417_vm9 = vcmp.ge.f32.partialorder %v5889_v40, 2.0 }
   0xb   :  { %7517 = vst [vmem:[#allocation5_spill] sm:$0xff] %v5893_v41  ;;  %445 = vperm.xlu0 %5651, %v3853_v34   ;;  %v3855_v45 = vsel %vm414_vm8, 1.0, %v7498_v5  ;;  %v5911_v46 = vsel %vm256_vm7, 1.0, %v7498_v5  ;;  %vm416_vm10 = vcmp.ge.f32.partialorder %v5899_v43, 2.0  ;;  %vm257_vm11 = vcmp.eq.f32.partialorder %v5893_v41, 2.0 }
   0xc   :  { %5278 = vmatpush3.bf16.msra.mxu1 %v5812_v18  ;;  %v5922_v48 = vsub.f32 %v237_v42, %v5806_v15  ;;  %v238_v49 = vcvt.s32.f32 %v229_v38  ;;  %v230_v50 = vadd.s32 40, %v5784_v8  ;;  %v3858_v52 = vsel %vm417_vm9, 1.0, %v7498_v5  ;;  %v492_v42 = vld [vmem:[%s7472_s3] sm:$0xff] }
   0xd   :  { %5279 = vmatprep.subr.bf16.mxu1 %v7485_v1  ;;  %vm419_vm12 = vcmp.ge.f32.partialorder %v5917_v47, 2.0  ;;  %v3857_v53 = vsel %vm416_vm10, 1.0, %v7498_v5  ;;  %v5939_v54 = vsel %vm257_vm11, 1.0, %v7498_v5  ;;  %vm418_vm13 = vcmp.ge.f32.partialorder %v5929_v51, 2.0 }
   0xe   :  { %7518 = vst [vmem:[#allocation6_spill] sm:$0xff] %v5922_v48  ;;  %455 = vperm.xlu1 %5652, %v3855_v45   ;;  %vm258_vm14 = vcmp.eq.f32.partialorder %v5922_v48, 2.0  ;;  %v5945_v55 = vsub.f32 %v238_v49, %v5806_v15  ;;  %v239_v56 = vcvt.s32.f32 %v230_v50  ;;  %v231_v57 = vadd.s32 48, %v5784_v8 }
   0xf   :  { %460 = vperm.xlu0 %5651, %v3856_v44   ;;  %v3860_v58 = vsel %vm419_vm12, 1.0, %v7498_v5  ;;  %vm797_vm15 = vcmp.ge.f32.partialorder %v5840_v26, 1.0  ;;  %v3859_v59 = vsel %vm418_vm13, 1.0, %v7498_v5  ;;  %v5957_v60 = vsel %vm258_vm14, 1.0, %v7498_v5  ;;  %v493_v44 = vld [vmem:[%s7472_s3 + $0x8] sm:$0xff] }
  0x10   :  { %5281 = vmatpush3.bf16.msra.mxu1 %v5845_v27  ;;  %7519 = vst [vmem:[#allocation7_spill] sm:$0xff] %v5945_v55  ;;  %vm796_vm1 = vcmp.ge.f32.partialorder %v5831_v22, 1.0  ;;  %vm259_vm2 = vcmp.eq.f32.partialorder %v5945_v55, 2.0  ;;  %v5969_v63 = vsub.f32 %v239_v56, %v5806_v15  ;;  %v240_v0 = vcvt.s32.f32 %v231_v57 }
  0x11   :  { %4446 = vmatprep.subr.mxu1 %v7498_v5  ;;  %v3880_v9 = vsel %vm797_vm15, 1.0, %v7498_v5  ;;  %vm799_vm3 = vcmp.ge.f32.partialorder %v5871_v35, 1.0  ;;  %v3879_v10 = vsel %vm796_vm1, 1.0, %v7498_v5  ;;  %v5981_v12 = vsel %vm259_vm2, 1.0, %v7498_v5 }
  0x12   :  { %465 = vperm.xlu1 %5652, %v3857_v53   ;;  %7520 = vst [vmem:[#allocation8_spill] sm:$0xff] %v5969_v63  ;;  %vm798_vm4 = vcmp.ge.f32.partialorder %v5859_v30, 1.0  ;;  %vm260_vm5 = vcmp.eq.f32.partialorder %v5969_v63, 2.0  ;;  %v5987_v16 = vsub.f32 %v240_v0, %v5806_v15  ;;  %v3882_v24 = vsel %vm799_vm3, 1.0, %v7498_v5 }
  0x13   :  { %470 = vperm.xlu0 %5651, %v3858_v52   ;;  %vm801_vm7 = vcmp.ge.f32.partialorder %v5899_v43, 1.0  ;;  %v3881_v25 = vsel %vm798_vm4, 1.0, %v7498_v5  ;;  %vm800_vm8 = vcmp.ge.f32.partialorder %v5854_v29, 1.0  ;;  %vm78_vm9 = vcmask 195584  }
  0x14   :  { %4447 = vmatpush3.msra.mxu1 %v5877_v36  ;;  %7521 = vst [vmem:[#allocation9_spill] sm:$0xff] %v5987_v16  ;;  %vm261_vm10 = vcmp.eq.f32.partialorder %v5987_v16, 2.0  ;;  %v3884_v33 = vsel %vm801_vm7, 1.0, %v7498_v5  ;;  %vm803_vm11 = vcmp.ge.f32.partialorder %v5929_v51, 1.0  ;;  %v3883_v34 = vsel %vm800_vm8, 1.0, %v7498_v5 }
  0x15   :  { %4449 = vmatmul.mubr.msk.f32.vlgmr.msra.gmra.mrb[0].mxu1 %vm273_vm6, %v5882_v37  ;;  %5285 = vmatprep.subr.bf16.mxu1 %v7485_v1  ;;  %v6022_v38 = vsel %vm261_vm10, 1.0, %v7498_v5  ;;  %vm802_vm12 = vcmp.ge.f32.partialorder %v5889_v40, 1.0  ;;  %v3886_v45 = vsel %vm803_vm11, 1.0, %v7498_v5  ;;  %v5283_v49 = vpack.c.bf16 %v493_v44, %v492_v42 }
  0x16   :  { %4451 = vmatprep.mubr.msk.f32.mxu1 %vm5672_vm0, %v7498_v5  ;;  %5287 = vmatpush3.bf16.msra.mxu1 %v5777_v6  ;;  %v232_v6 = vadd.s32 56, %v5784_v8  ;;  %vm2044_vm14 = vcmp.ge.f32.partialorder %v5831_v22, 4.0  ;;  %vm804_vm15 = vcmp.ge.f32.partialorder %v5917_v47, 1.0  ;;  %vm2046_vm2 = vcmp.ge.f32.partialorder %v5859_v30, 4.0 }
  0x17   :  { %5288 = vmatprep.subr.bf16.mxu1 %v7485_v1  ;;  %480 = vperm.xlu0 %5651, %v3860_v58   ;;  %v3962_v22 = vsel %vm2044_vm14, 1.0, %v7498_v5  ;;  %v3887_v52 = vsel %vm804_vm15, 1.0, %v7498_v5  ;;  %vm2045_vm3 = vcmp.ge.f32.partialorder %v5840_v26, 4.0  ;;  %vm641_vm4 = vcmp.eq.f32.partialorder %v5834_v23, 1.0 }
  0x18   :  { %475 = vperm.xlu1 %5652, %v3859_v59   ;;  %v241_v17 = vcvt.s32.f32 %v232_v6  ;;  %v3964_v30 = vsel %vm2046_vm2, 1.0, %v7498_v5  ;;  %v3963_v56 = vsel %vm2045_vm3, 1.0, %v7498_v5  ;;  %v6081_v26 = vsel %vm641_vm4, 1.0, %v7498_v5 }
  0x19   :  { %4452 = vmatmul.mubr.msk.f32.gmra.mrb[2].mxu1 %vm273_vm6, %v5911_v46  ;;  %vm2047_vm7 = vcmp.ge.f32.partialorder %v5871_v35, 4.0  ;;  %vm642_vm8 = vcmp.eq.f32.partialorder %v5863_v31, 1.0  ;;  %vm2050_vm10 = vcmp.ge.f32.partialorder %v5889_v40, 4.0  ;;  %vm2049_vm11 = vcmp.ge.f32.partialorder %v5899_v43, 4.0  ;;  %v494_v40 = vld [vmem:[%s7472_s3 + $0x10] sm:$0xff] }
  0x1a   :  { %4454 = vmatprep.mubr.msk.f32.mxu1 %vm5672_vm0, %v7498_v5  ;;  %5290 = vmatpush3.bf16.msra.mxu1 %v5792_v11  ;;  %v5268_v11 = vpack.c.bf16 %v69_v62, %v68_v61  ;;  %v6009_v28 = vsub.f32 %v241_v17, %v5806_v15  ;;  %v3965_v57 = vsel %vm2047_vm7, 1.0, %v7498_v5  ;;  %v6097_v35 = vsel %vm642_vm8, 1.0, %v7498_v5  ;;  %v878_v17 = vld [vmem:[%s7472_s3 + $0x20] sm:$0xff] }
  0x1b   :  { %5291 = vmatprep.subr.bf16.mxu1 %v7485_v1  ;;  %830 = vperm.xlu0 %5651, %v3880_v9   ;;  %v3968_v58 = vsel %vm2050_vm10, 1.0, %v7498_v5  ;;  %v3967_v43 = vsel %vm2049_vm11, 1.0, %v7498_v5  ;;  %vm2051_vm14 = vcmp.ge.f32.partialorder %v5929_v51, 4.0  ;;  %vm644_vm15 = vcmp.eq.f32.partialorder %v5922_v48, 1.0 }
  0x1c   :  { %825 = vperm.xlu1 %5652, %v3879_v10   ;;  %5269 = vmatpush3.bf16.msra.mxu0 %v5268_v11  ;;  %7522 = vst [vmem:[#allocation10_spill] sm:$0xff] %v6009_v28  ;;  %vm262_vm13 = vcmp.eq.f32.partialorder %v6009_v28, 2.0  ;;  %v3969_v61 = vsel %vm2051_vm14, 1.0, %v7498_v5  ;;  %v6132_v51 = vsel %vm644_vm15, 1.0, %v7498_v5  ;;  %vm646_vm2 = vcmp.eq.f32.partialorder %v5969_v63, 1.0  ;;  %v877_v11 = vld [vmem:[%s7472_s3 + $0x18] sm:$0xff] }
  0x1d   :  { %4455 = vmatmul.mubr.msk.f32.gmra.mrb[4].mxu1 %vm273_vm6, %v5939_v54  ;;  %4401 = vmatprep.subr.mxu0 %v7498_v5  ;;  %v6048_v50 = vsel %vm262_vm13, 1.0, %v7498_v5  ;;  %vm2052_vm13 = vcmp.ge.f32.partialorder %v5917_v47, 4.0  ;;  %v6156_v0 = vsel %vm646_vm2, 1.0, %v7498_v5  ;;  %vm647_vm3 = vcmp.eq.f32.partialorder %v5987_v16, 1.0 }
  0x1e   :  { %4457 = vmatprep.mubr.msk.f32.mxu1 %vm5672_vm0, %v7498_v5  ;;  %5293 = vmatpush3.bf16.msra.mxu1 %v5812_v18  ;;  %v233_v18 = vadd.s32 64, %v5784_v8  ;;  %v70_v8 = vld [vmem:[%s7471_s7 + $0x10] sm:$0xff]  ;;  %v3970_v47 = vsel %vm2052_vm13, 1.0, %v7498_v5  ;;  %v6166_v6 = vsel %vm647_vm3, 1.0, %v7498_v5  ;;  %vm648_vm4 = vcmp.eq.f32.partialorder %v6009_v28, 1.0 }
  0x1f   :  { %5294 = vmatprep.subr.bf16.mxu1 %v7485_v1  ;;  %840 = vperm.xlu0 %5651, %v3882_v24   ;;  %v6174_v9 = vsel %vm648_vm4, 1.0, %v7498_v5  ;;  %v7524_v19 = vmov 0.0|0.0  }
  0x20   :  { %v242_v32 = vcvt.s32.f32 %v233_v18  ;;  %835 = vperm.xlu1 %5652, %v3881_v25   ;;  %4402 = vmatpush3.msra.mxu0 %v70_v8  ;;  %v5298_v25 = vpack.c.bf16 %v878_v17, %v877_v11 }
  0x21   :  { %4458 = vmatmul.mubr.msk.f32.gmra.mrb[6].mxu1 %vm273_vm6, %v5957_v60  ;;  %4404 = vmatmul.mubr.msk.f32.vlgmr.msra.gmra.mrb[0].mxu0 %vm78_vm9, %v5761_v2 }
  0x22   :  { %4460 = vmatprep.mubr.msk.f32.mxu1 %vm5672_vm0, %v7498_v5  ;;  %5296 = vmatpush3.bf16.msra.mxu1 %v5845_v27  ;;  %v6003_v27 = vsel %vm260_vm5, 1.0, %v7498_v5  ;;  %v6029_v39 = vsub.f32 %v242_v32, %v5806_v15  ;;  %v3885_v15 = vsel %vm802_vm12, 1.0, %v7498_v5  ;;  %vm2048_vm5 = vcmp.ge.f32.partialorder %v5854_v29, 4.0 }
  0x23   :  { %4524 = vmatprep.subr.mxu1 %v7498_v5  ;;  %4406 = vmatprep.mubr.msk.f32.mxu0 %vm5672_vm0, %v7498_v5  ;;  %v3966_v29 = vsel %vm2048_vm5, 1.0, %v7498_v5  ;;  %vm643_vm12 = vcmp.eq.f32.partialorder %v5893_v41, 1.0 }
  0x24   :  { %7523 = vst [vmem:[#allocation11_spill] sm:$0xff] %v6029_v39  ;;  %850 = vperm.xlu0 %5651, %v3884_v33   ;;  %5282 = vmatprep.subr.bf16.mxu0 %v7485_v1  ;;  %vm263_vm1 = vcmp.eq.f32.partialorder %v6029_v39, 2.0  ;;  %v6117_v59 = vsel %vm643_vm12, 1.0, %v7498_v5  ;;  %vm649_vm5 = vcmp.eq.f32.partialorder %v6029_v39, 1.0 }
  0x25   :  { %4461 = vmatmul.mubr.msk.f32.gmra.mrb[8].mxu1 %vm273_vm6, %v5981_v12  ;;  %845 = vperm.xlu1 %5652, %v3883_v34   ;;  %v6065_v53 = vsel %vm263_vm1, 1.0, %v7498_v5  ;;  %vm645_vm1 = vcmp.eq.f32.partialorder %v5945_v55, 1.0  ;;  %v6182_v10 = vsel %vm649_vm5, 1.0, %v7498_v5 }
  0x26   :  { %4463 = vmatprep.mubr.msk.f32.mxu1 %vm5672_vm0, %v7498_v5  ;;  %4525 = vmatpush3.msra.mxu1 %v5877_v36  ;;  %v6144_v62 = vsel %vm645_vm1, 1.0, %v7498_v5 }
  0x27   :  { %5303 = vmatprep.subr.bf16.mxu1 %v7485_v1  ;;  %4407 = vmatmul.mubr.msk.f32.gmra.mrb[2].mxu0 %vm78_vm9, %v5766_v3 }
  0x28   :  { %4409 = vmatprep.mubr.msk.f32.mxu0 %vm5672_vm0, %v7498_v5  ;;  %860 = vperm.xlu0 %5651, %v3886_v45   ;;  %v879_v45 = vld [vmem:[%s7472_s3 + $0x28] sm:$0xff] }
  0x29   :  { %4464 = vmatmul.mubr.msk.f32.gmra.mrb[10].mxu1 %vm273_vm6, %v6003_v27  ;;  %5284 = vmatpush3.bf16.msra.mxu0 %v5283_v49 }
  0x2a   :  { %4466 = vmatprep.mubr.msk.f32.mxu1 %vm5672_vm0, %v7498_v5  ;;  %855 = vperm.xlu1 %5652, %v3885_v15  }
  0x2b   :  { %4479 = vmatprep.subr.mxu0 %v7498_v5  ;;  %4410 = vmatmul.mubr.msk.f32.gmra.mrb[4].mxu0 %vm78_vm9, %v5771_v4 }
  0x2c   :  { %4412 = vmatprep.mubr.msk.f32.mxu0 %vm5672_vm0, %v7498_v5  ;;  %2073 = vperm.xlu0 %5651, %v3962_v22  }
  0x2d   :  { %4467 = vmatmul.mubr.msk.f32.gmra.mrb[12].mxu1 %vm273_vm6, %v6022_v38  ;;  %4480 = vmatpush3.msra.mxu0 %v494_v40 }
  0x2e   :  { %4469 = vmatprep.mubr.msk.f32.mxu1 %vm5672_vm0, %v7498_v5  ;;  %865 = vperm.xlu1 %5652, %v3887_v52  }
  0x2f   :  { %4413 = vmatmul.mubr.msk.f32.gmra.mrb[6].mxu0 %vm78_vm9, %v5782_v7  ;;  %5297 = vmatprep.subr.bf16.mxu0 %v7485_v1 }
  0x30   :  { %4415 = vmatprep.mubr.msk.f32.mxu0 %vm5672_vm0, %v7498_v5  ;;  %2083 = vperm.xlu0 %5651, %v3964_v30  }
  0x31   :  { %4470 = vmatmul.mubr.msk.f32.gmra.mrb[14].mxu1 %vm273_vm6, %v6048_v50 }
  0x32   :  { %4472 = vmatprep.mubr.msk.f32.mxu1 %vm5672_vm0, %v7498_v5  ;;  %2078 = vperm.xlu1 %5652, %v3963_v56  }
  0x33   :  { %4416 = vmatmul.mubr.msk.f32.gmra.mrb[8].mxu0 %vm78_vm9, %v5799_v13 }
  0x34   :  { %4418 = vmatprep.mubr.msk.f32.mxu0 %vm5672_vm0, %v7498_v5  ;;  %2093 = vperm.xlu0 %5651, %v3966_v29  }
  0x35   :  { %4473 = vmatmul.mubr.msk.f32.gmra.mrb[16].mxu1 %vm273_vm6, %v6065_v53 }
  0x36   :  { %4526 = vmatprep.mubr.msk.f32.mxu1 %vm5672_vm0, %v7498_v5  ;;  %2088 = vperm.xlu1 %5652, %v3965_v57  }
  0x37   :  { %4419 = vmatmul.mubr.msk.f32.gmra.mrb[10].mxu0 %vm78_vm9, %v5804_v14 }
  0x38   :  { %4421 = vmatprep.mubr.msk.f32.mxu0 %vm5672_vm0, %v7498_v5  ;;  %2103 = vperm.xlu0 %5651, %v3968_v58  }
  0x39   :  { %4527 = vmatmul.mubr.msk.f32.vlgmr.msra.gmra.mrb[18].mxu1 %vm273_vm6, %v6081_v26 }
  0x3a   :  { %4529 = vmatprep.mubr.msk.f32.mxu1 %vm5672_vm0, %v7498_v5  ;;  %2098 = vperm.xlu1 %5652, %v3967_v43  }
  0x3b   :  { %4422 = vmatmul.mubr.msk.f32.gmra.mrb[12].mxu0 %vm78_vm9, %v5821_v20 }
  0x3c   :  { %4424 = vmatprep.mubr.msk.f32.mxu0 %vm5672_vm0, %v7498_v5  ;;  %2113 = vperm.xlu0 %5651, %v3970_v47  }
  0x3d   :  { %4530 = vmatmul.mubr.msk.f32.gmra.mrb[20].mxu1 %vm273_vm6, %v6097_v35 }
  0x3e   :  { %4532 = vmatprep.mubr.msk.f32.mxu1 %vm5672_vm0, %v7498_v5  ;;  %2108 = vperm.xlu1 %5652, %v3969_v61  }
  0x3f   :  { %4425 = vmatmul.mubr.msk.f32.gmra.mrb[14].mxu0 %vm78_vm9, %v5826_v21 }
  0x40   :  { %4427 = vmatprep.mubr.msk.f32.mxu0 %vm5672_vm0, %v7498_v5 }
  0x41   :  { %4533 = vmatmul.mubr.msk.f32.gmra.mrb[22].mxu1 %vm273_vm6, %v6117_v59 }
  0x42   :  { %4535 = vmatprep.mubr.msk.f32.mxu1 %vm5672_vm0, %v7498_v5 }
  0x43   :  { %4428 = vmatmul.mubr.msk.f32.gmra.mrb[16].mxu0 %vm78_vm9, %v5877_v36 }
  0x44   :  { %4481 = vmatprep.mubr.msk.f32.mxu0 %vm5672_vm0, %v7498_v5 }
  0x45   :  { %4536 = vmatmul.mubr.msk.f32.gmra.mrb[24].mxu1 %vm273_vm6, %v6132_v51 }
  0x46   :  { %4538 = vmatprep.mubr.msk.f32.mxu1 %vm5672_vm0, %v7498_v5 }
  0x49   :  { %4539 = vmatmul.mubr.msk.f32.gmra.mrb[26].mxu1 %vm273_vm6, %v6144_v62 }
  0x4a   :  { %4541 = vmatprep.mubr.msk.f32.mxu1 %vm5672_vm0, %v7498_v5 }
  0x4d   :  { %4542 = vmatmul.mubr.msk.f32.gmra.mrb[28].mxu1 %vm273_vm6, %v6156_v0 }
  0x4e   :  { %4544 = vmatprep.mubr.msk.f32.mxu1 %vm5672_vm0, %v7498_v5 }
  0x51   :  { %4545 = vmatmul.mubr.msk.f32.gmra.mrb[30].mxu1 %vm273_vm6, %v6166_v6 }
  0x52   :  { %4547 = vmatprep.mubr.msk.f32.mxu1 %vm5672_vm0, %v7498_v5 }
  0x55   :  { %4548 = vmatmul.mubr.msk.f32.gmra.mrb[32].mxu1 %vm273_vm6, %v6174_v9 }
  0x56   :  { %4550 = vmatprep.mubr.msk.f32.mxu1 %vm5672_vm0, %v7498_v5 }
  0x59   :  { %4551 = vmatmul.mubr.msk.f32.gmra.mrb[34].mxu1 %vm273_vm6, %v6182_v10 }
  0x5a   :  { %4637 = vmatprep.mubr.msk.f32.mxu1 %vm5672_vm0, %v7498_v5 }
  0x86   :  { %v6194_v18 = vpop.permute.xlu0 %440 }
  0x89   :  { %v6207_v49 = vpop.permute.xlu1 %450 }
  0x8a   :  { %v6198_v33 = vpop.permute.xlu0 %445 }
  0x8d   :  { %v6215_v30 = vpop.permute.xlu1 %455 }
  0x8e   :  { %v6221_v40 = vpop.permute.xlu0 %460 }
  0x91   :  { %v6226_v61 = vpop.permute.xlu1 %465 }
  0xe8   :  { %v367_v24 = vpop.f32.mrb[0].mxu1 }
  0xe9   :  { %v483_v8 = vmul.f32 %v6194_v18, %v367_v24  ;;  %v4450_v32 = vpop.f32.mrb[1].mxu1 }
  0xea   :  { %v6234_v32 = vpop.permute.xlu0 %470 }
  0xeb   :  { %4482 = vmatmul.mubr.msk.f32.vlgmr.msra.gmra.mrb[18].mxu0 %vm78_vm9, %v483_v8 }
  0xec   :  { %v372_v34 = vpop.f32.mrb[2].mxu1  ;;  %4484 = vmatprep.mubr.msk.f32.mxu0 %vm5672_vm0, %v7498_v5  ;;  %5299 = vmatpush3.bf16.msra.mxu0 %v5298_v25 }
  0xed   :  { %v484_v42 = vmul.f32 %v6198_v33, %v372_v34  ;;  %v4453_v44 = vpop.f32.mrb[3].mxu1  ;;  %4557 = vmatprep.subr.mxu0 %v7498_v5 }
  0xef   :  { %4485 = vmatmul.mubr.msk.f32.gmra.mrb[20].mxu0 %vm78_vm9, %v484_v42 }
  0xf0   :  { %v377_v15 = vpop.f32.mrb[4].mxu1  ;;  %4487 = vmatprep.mubr.msk.f32.mxu0 %vm5672_vm0, %v7498_v5  ;;  %4558 = vmatpush3.msra.mxu0 %v879_v45 }
  0xf1   :  { %v485_v22 = vmul.f32 %v6207_v49, %v377_v15  ;;  %v4456_v52 = vpop.f32.mrb[5].mxu1  ;;  %5300 = vmatprep.subr.bf16.mxu0 %v7485_v1 }
  0xf3   :  { %4488 = vmatmul.mubr.msk.f32.gmra.mrb[22].mxu0 %vm78_vm9, %v485_v22  ;;  %v6242_v22 = vpop.permute.xlu1 %475 }
  0xf4   :  { %v382_v56 = vpop.f32.mrb[6].mxu1  ;;  %4490 = vmatprep.mubr.msk.f32.mxu0 %vm5672_vm0, %v7498_v5  ;;  %v6231_v17 = vpop.f32.mrb[0].mxu0 }
  0xf5   :  { %v486_v29 = vmul.f32 %v6215_v30, %v382_v56  ;;  %v4459_v57 = vpop.f32.mrb[7].mxu1  ;;  %v4405_v8 = vpop.f32.mrb[1].mxu0 }
  0xf6   :  { %v1026_v8 = vld [vmem:[%s7472_s3 + $0x30] sm:$0xff] }
  0xf7   :  { %4491 = vmatmul.mubr.msk.f32.gmra.mrb[24].mxu0 %vm78_vm9, %v486_v29 }
  0xf8   :  { %v387_v58 = vpop.f32.mrb[8].mxu1  ;;  %4493 = vmatprep.mubr.msk.f32.mxu0 %vm5672_vm0, %v7498_v5 }
  0xf9   :  { %v487_v43 = vmul.f32 %v6221_v40, %v387_v58  ;;  %v4462_v47 = vpop.f32.mrb[9].mxu1 }
  0xfa   :  { %v6239_v42 = vpop.f32.mrb[2].mxu0 }
  0xfb   :  { %4494 = vmatmul.mubr.msk.f32.gmra.mrb[26].mxu0 %vm78_vm9, %v487_v43  ;;  %v4408_v15 = vpop.f32.mrb[3].mxu0  ;;  %v6250_v43 = vpop.permute.xlu0 %480 }
  0xfc   :  { %v392_v11 = vpop.f32.mrb[10].mxu1  ;;  %4496 = vmatprep.mubr.msk.f32.mxu0 %vm5672_vm0, %v7498_v5 }
  0xfd   :  { %v488_v24 = vmul.f32 %v6226_v61, %v392_v11  ;;  %v4465_v25 = vpop.f32.mrb[11].mxu1 }
  0xfe   :  { %v6247_v56 = vpop.f32.mrb[4].mxu0 }
  0xff   :  { %4497 = vmatmul.mubr.msk.f32.gmra.mrb[28].mxu0 %vm78_vm9, %v488_v24  ;;  %v4411_v58 = vpop.f32.mrb[5].mxu0 }
 0x100   :  { %v397_v34 = vpop.f32.mrb[12].mxu1  ;;  %4499 = vmatprep.mubr.msk.f32.mxu0 %vm5672_vm0, %v7498_v5 }
 0x101   :  { %v489_v44 = vmul.f32 %v6234_v32, %v397_v34  ;;  %v4468_v45 = vpop.f32.mrb[13].mxu1  ;;  %v1027_v34 = vld [vmem:[%s7472_s3 + $0x38] sm:$0xff] }
 0x102   :  { %v6255_v11 = vpop.f32.mrb[6].mxu0  ;;  %v6264_v45 = vpop.permute.xlu1 %825 }
 0x103   :  { %4500 = vmatmul.mubr.msk.f32.gmra.mrb[30].mxu0 %vm78_vm9, %v489_v44  ;;  %v4414_v44 = vpop.f32.mrb[7].mxu0 }
 0x104   :  { %v402_v52 = vpop.f32.mrb[14].mxu1  ;;  %4502 = vmatprep.mubr.msk.f32.mxu0 %vm5672_vm0, %v7498_v5 }
 0x105   :  { %v490_v29 = vmul.f32 %v6242_v22, %v402_v52  ;;  %v4471_v57 = vpop.f32.mrb[15].mxu1  ;;  %v5301_v52 = vpack.c.bf16 %v1027_v34, %v1026_v8  ;;  %v1028_v34 = vld [vmem:[%s7472_s3 + $0x40] sm:$0xff] }
 0x107   :  { %4503 = vmatmul.mubr.msk.f32.gmra.mrb[32].mxu0 %vm78_vm9, %v490_v29  ;;  %v6269_v29 = vpop.f32.mrb[8].mxu0 }
 0x108   :  { %v407_v47 = vpop.f32.mrb[16].mxu1  ;;  %4505 = vmatprep.mubr.msk.f32.mxu0 %vm5672_vm0, %v7498_v5 }
 0x109   :  { %v491_v24 = vmul.f32 %v6250_v43, %v407_v47  ;;  %v4474_v25 = vpop.f32.mrb[17].mxu1  ;;  %v4417_v47 = vpop.f32.mrb[9].mxu0 }
 0x10a   :  { %v6272_v25 = vpop.permute.xlu0 %830 }
 0x10b   :  { %4506 = vmatmul.mubr.msk.f32.gmra.mrb[34].mxu0 %vm78_vm9, %v491_v24  ;;  %v6277_v24 = vpop.f32.mrb[10].mxu0 }
 0x10c   :  { %v752_v15 = vpop.f32.mrb[18].mxu1  ;;  %4559 = vmatprep.mubr.msk.f32.mxu0 %vm5672_vm0, %v7498_v5 }
 0x10d   :  { %v868_v57 = vmul.f32 %v6264_v45, %v752_v15  ;;  %v4528_v58 = vpop.f32.mrb[19].mxu1  ;;  %v4420_v15 = vpop.f32.mrb[11].mxu0 }
 0x10e   :  { %v6284_v58 = vpop.permute.xlu1 %835  ;;  %v6293_v39 = vpop.permute.xlu0 %840 }
 0x10f   :  { %4560 = vmatmul.mubr.msk.f32.vlgmr.msra.gmra.mrb[18].mxu0 %vm78_vm9, %v868_v57 }
 0x110   :  { %v757_v44 = vpop.f32.mrb[20].mxu1  ;;  %4562 = vmatprep.mubr.msk.f32.mxu0 %vm5672_vm0, %v7498_v5  ;;  %5302 = vmatpush3.bf16.msra.mxu0 %v5301_v52  ;;  %v6289_v52 = vpop.f32.mrb[12].mxu0 }
 0x111   :  { %v869_v1 = vmul.f32 %v6272_v25, %v757_v44  ;;  %v4531_v8 = vpop.f32.mrb[21].mxu1  ;;  %4590 = vmatprep.subr.mxu0 %v7498_v5 }
 0x112   :  { %v4423_v8 = vpop.f32.mrb[13].mxu0  ;;  %v6301_v63 = vpop.permute.xlu1 %845 }
 0x113   :  { %4563 = vmatmul.mubr.msk.f32.gmra.mrb[20].mxu0 %vm78_vm9, %v869_v1  ;;  %v6298_v1 = vpop.f32.mrb[14].mxu0  ;;  %v6310_v48 = vpop.permute.xlu0 %850 }
 0x114   :  { %v762_v57 = vpop.f32.mrb[22].mxu1  ;;  %4565 = vmatprep.mubr.msk.f32.mxu0 %vm5672_vm0, %v7498_v5  ;;  %4591 = vmatpush3.msra.mxu0 %v1028_v34  ;;  %v4426_v16 = vpop.f32.mrb[15].mxu0 }
 0x115   :  { %v870_v47 = vmul.f32 %v6284_v58, %v762_v57  ;;  %v4534_v44 = vpop.f32.mrb[23].mxu1  ;;  %5321 = vmatprep.subr.bf16.mxu0 %v7524_v19 }
 0x116   :  { %v6306_v44 = vpop.f32.mrb[16].mxu0 }
 0x117   :  { %4566 = vmatmul.mubr.msk.f32.gmra.mrb[22].mxu0 %vm78_vm9, %v870_v47  ;;  %7525 = vst [vmem:[#allocation12_spill] sm:$0xff] %v6306_v44  ;;  %v4429_v55 = vpop.f32.mrb[17].mxu0 }
 0x118   :  { %v767_v15 = vpop.f32.mrb[24].mxu1  ;;  %4568 = vmatprep.mubr.msk.f32.mxu0 %vm5672_vm0, %v7498_v5 }
 0x119   :  { %v871_v34 = vmul.f32 %v6293_v39, %v767_v15  ;;  %v4537_v28 = vpop.f32.mrb[25].mxu1 }
 0x11b   :  { %4569 = vmatmul.mubr.msk.f32.gmra.mrb[24].mxu0 %vm78_vm9, %v871_v34  ;;  %v6316_v34 = vpop.permute.xlu1 %855 }
 0x11c   :  { %v772_v57 = vpop.f32.mrb[26].mxu1  ;;  %4571 = vmatprep.mubr.msk.f32.mxu0 %vm5672_vm0, %v7498_v5 }
 0x11d   :  { %v872_v47 = vmul.f32 %v6301_v63, %v772_v57  ;;  %v4540_v8 = vpop.f32.mrb[27].mxu1 }
 0x11f   :  { %4572 = vmatmul.mubr.msk.f32.gmra.mrb[26].mxu0 %vm78_vm9, %v872_v47  ;;  %v6322_v47 = vpop.permute.xlu0 %860 }
 0x120   :  { %v777_v28 = vpop.f32.mrb[28].mxu1  ;;  %4574 = vmatprep.mubr.msk.f32.mxu0 %vm5672_vm0, %v7498_v5 }
 0x121   :  { %v873_v16 = vmul.f32 %v6310_v48, %v777_v28  ;;  %v4543_v15 = vpop.f32.mrb[29].mxu1 }
 0x122   :  { %v6328_v15 = vpop.permute.xlu1 %865 }
 0x123   :  { %4575 = vmatmul.mubr.msk.f32.gmra.mrb[28].mxu0 %vm78_vm9, %v873_v16 }
 0x124   :  { %v782_v41 = vpop.f32.mrb[30].mxu1  ;;  %4577 = vmatprep.mubr.msk.f32.mxu0 %vm5672_vm0, %v7498_v5 }
 0x125   :  { %v874_v55 = vmul.f32 %v6316_v34, %v782_v41  ;;  %v4546_v57 = vpop.f32.mrb[31].mxu1 }
 0x127   :  { %4578 = vmatmul.mubr.msk.f32.gmra.mrb[30].mxu0 %vm78_vm9, %v874_v55 }
 0x128   :  { %v787_v8 = vpop.f32.mrb[32].mxu1  ;;  %4580 = vmatprep.mubr.msk.f32.mxu0 %vm5672_vm0, %v7498_v5 }
 0x129   :  { %v875_v28 = vmul.f32 %v6322_v47, %v787_v8  ;;  %v4549_v16 = vpop.f32.mrb[33].mxu1 }
 0x12b   :  { %4581 = vmatmul.mubr.msk.f32.gmra.mrb[32].mxu0 %vm78_vm9, %v875_v28 }
 0x12c   :  { %v792_v31 = vpop.f32.mrb[34].mxu1  ;;  %4583 = vmatprep.mubr.msk.f32.mxu0 %vm5672_vm0, %v7498_v5 }
 0x12d   :  { %v876_v41 = vmul.f32 %v6328_v15, %v792_v31  ;;  %v4552_v55 = vpop.f32.mrb[35].mxu1 }
 0x12f   :  { %4584 = vmatmul.mubr.msk.f32.gmra.mrb[34].mxu0 %vm78_vm9, %v876_v41 }
 0x130   :  { %4592 = vmatprep.mubr.msk.f32.mxu0 %vm5672_vm0, %v7498_v5 }
 0x133   :  { %4593 = vmatmul.mubr.msk.f32.vlgmr.msra.gmra.mrb[18].mxu0 %vm78_vm9, %v5761_v2  ;;  %v3842_v2 = vld [vmem:[%s7473_s4] ss:$0 sm:$0xff] }
 0x134   :  { %4595 = vmatprep.mubr.msk.f32.mxu0 %vm5672_vm0, %v7498_v5 }
 0x137   :  { %4596 = vmatmul.mubr.msk.f32.gmra.mrb[20].mxu0 %vm78_vm9, %v5766_v3 }
 0x138   :  { %4598 = vmatprep.mubr.msk.f32.mxu0 %vm5672_vm0, %v7498_v5 }
 0x13b   :  { %4599 = vmatmul.mubr.msk.f32.gmra.mrb[22].mxu0 %vm78_vm9, %v5771_v4 }
 0x13c   :  { %4601 = vmatprep.mubr.msk.f32.mxu0 %vm5672_vm0, %v7498_v5 }
 0x13f   :  { %4602 = vmatmul.mubr.msk.f32.gmra.mrb[24].mxu0 %vm78_vm9, %v5782_v7 }
 0x140   :  { %4604 = vmatprep.mubr.msk.f32.mxu0 %vm5672_vm0, %v7498_v5 }
 0x143   :  { %4605 = vmatmul.mubr.msk.f32.gmra.mrb[26].mxu0 %vm78_vm9, %v5799_v13 }
 0x144   :  { %4607 = vmatprep.mubr.msk.f32.mxu0 %vm5672_vm0, %v7498_v5 }
 0x147   :  { %4608 = vmatmul.mubr.msk.f32.gmra.mrb[28].mxu0 %vm78_vm9, %v5804_v14 }
 0x148   :  { %4610 = vmatprep.mubr.msk.f32.mxu0 %vm5672_vm0, %v7498_v5 }
 0x14b   :  { %4611 = vmatmul.mubr.msk.f32.gmra.mrb[30].mxu0 %vm78_vm9, %v5821_v20 }
 0x14c   :  { %4613 = vmatprep.mubr.msk.f32.mxu0 %vm5672_vm0, %v7498_v5 }
 0x14f   :  { %4614 = vmatmul.mubr.msk.f32.gmra.mrb[32].mxu0 %vm78_vm9, %v5826_v21 }
 0x150   :  { %4616 = vmatprep.mubr.msk.f32.mxu0 %vm5672_vm0, %v7498_v5 }
 0x153   :  { %4617 = vmatmul.mubr.msk.f32.gmra.mrb[34].mxu0 %vm78_vm9, %v5877_v36  ;;  %vm1288_vm9 = vcmask 261120  }
 0x154   :  { %4717 = vmatprep.mubr.msk.f32.mxu0 %vm5672_vm0, %v7498_v5 }
 0x206   :  { %v1095_v3 = vpop.f32.mrb[18].mxu0 }
 0x207   :  { %v4594_v4 = vpop.f32.mrb[19].mxu0  ;;  %v6375_v7 = vadd.f32 %v3842_v2, %v1095_v3 }
 0x209   :  { %v7497_v21 = vmax.f32 %v6375_v7, 0.0 }
 0x20a   :  { %v1100_v13 = vpop.f32.mrb[20].mxu0 }
 0x20b   :  { %v6377_v14 = vadd.f32 %v3842_v2, %v1100_v13  ;;  %v4597_v20 = vpop.f32.mrb[21].mxu0 }
 0x20d   :  { %v7496_v31 = vmax.f32 %v6377_v14, 0.0 }
 0x20e   :  { %v1105_v36 = vpop.f32.mrb[22].mxu0 }
 0x20f   :  { %v5304_v57 = vpack.c.bf16 %v7496_v31, %v7497_v21  ;;  %v4600_v8 = vpop.f32.mrb[23].mxu0  ;;  %v6385_v28 = vadd.f32 %v3842_v2, %v1105_v36 }
 0x211   :  { %5305 = vmatpush3.bf16.msra.mxu1 %v5304_v57  ;;  %5323 = vmatpush3.bf16.msra.mxu0 %v5304_v57  ;;  %v7501_v3 = vmax.f32 %v6385_v28, 0.0 }
 0x212   :  { %v1110_v16 = vpop.f32.mrb[24].mxu0  ;;  %5306 = vmatprep.subr.bf16.mxu1 %v7524_v19  ;;  %5324 = vmatprep.subr.bf16.mxu0 %v7524_v19 }
 0x213   :  { %v6389_v41 = vadd.f32 %v3842_v2, %v1110_v16  ;;  %v4603_v55 = vpop.f32.mrb[25].mxu0 }
 0x215   :  { %v7500_v4 = vmax.f32 %v6389_v41, 0.0 }
 0x216   :  { %v1115_v13 = vpop.f32.mrb[26].mxu0 }
 0x217   :  { %v5307_v20 = vpack.c.bf16 %v7500_v4, %v7501_v3  ;;  %v4606_v36 = vpop.f32.mrb[27].mxu0  ;;  %v6397_v57 = vadd.f32 %v3842_v2, %v1115_v13 }
 0x219   :  { %5308 = vmatpush3.bf16.msra.mxu1 %v5307_v20  ;;  %5326 = vmatpush3.bf16.msra.mxu0 %v5307_v20  ;;  %v7504_v31 = vmax.f32 %v6397_v57, 0.0 }
 0x21a   :  { %v1120_v8 = vpop.f32.mrb[28].mxu0  ;;  %5309 = vmatprep.subr.bf16.mxu1 %v7524_v19  ;;  %5327 = vmatprep.subr.bf16.mxu0 %v7524_v19 }
 0x21b   :  { %v6401_v16 = vadd.f32 %v3842_v2, %v1120_v8  ;;  %v4609_v55 = vpop.f32.mrb[29].mxu0 }
 0x21d   :  { %v7503_v21 = vmax.f32 %v6401_v16, 0.0 }
 0x21e   :  { %v1125_v5 = vpop.f32.mrb[30].mxu0 }
 0x21f   :  { %v5310_v13 = vpack.c.bf16 %v7503_v21, %v7504_v31  ;;  %v4612_v36 = vpop.f32.mrb[31].mxu0  ;;  %v6409_v20 = vadd.f32 %v3842_v2, %v1125_v5  ;;  %v7526_v21 = vmov 0.0  }
 0x221   :  { %5311 = vmatpush3.bf16.msra.mxu1 %v5310_v13  ;;  %5329 = vmatpush3.bf16.msra.mxu0 %v5310_v13  ;;  %v7506_v3 = vmax.f32 %v6409_v20, 0.0 }
 0x222   :  { %v1130_v4 = vpop.f32.mrb[32].mxu0  ;;  %5312 = vmatprep.subr.bf16.mxu1 %v7524_v19  ;;  %5330 = vmatprep.subr.bf16.mxu0 %v7524_v19 }
 0x223   :  { %v6413_v8 = vadd.f32 %v3842_v2, %v1130_v4  ;;  %v4615_v55 = vpop.f32.mrb[33].mxu0  ;;  %v1284_v4 = vld [vmem:[%s7474_s5] sm:$0xff] }
 0x224   :  { %v1285_v55 = vld [vmem:[%s7474_s5 + $0x8] sm:$0xff] }
 0x225   :  { %v7505_v23 = vmax.f32 %v6413_v8, 0.0 }
 0x226   :  { %v1135_v44 = vpop.f32.mrb[34].mxu0 }
 0x227   :  { %v5313_v5 = vpack.c.bf16 %v7505_v23, %v7506_v3  ;;  %v5473_v36 = vadd.f32 %v3842_v2, %v1135_v44  ;;  %v4618_v13 = vpop.f32.mrb[35].mxu0  ;;  %v5316_v44 = vpack.c.bf16 %v1285_v55, %v1284_v4  ;;  %v1286_v2 = vld [vmem:[%s7474_s5 + $0x10] sm:$0xff] }
 0x228   :  { %v1557_v13 = vld [vmem:[%s7474_s5 + $0x38] sm:$0xff] }
 0x229   :  { %5314 = vmatpush3.bf16.msra.mxu1 %v5313_v5  ;;  %5332 = vmatpush3.bf16.msra.mxu0 %v5313_v5  ;;  %v6429_v31 = vmax.f32 %v5473_v36, 0.0  ;;  %v1287_v5 = vld [vmem:[%s7474_s5 + $0x18] sm:$0xff]  ;;  %v1556_v36 = vld [vmem:[%s7474_s5 + $0x30] sm:$0xff] }
 0x22a   :  { %4635 = vmatprep.subr.mxu1 %v7526_v21  ;;  %4715 = vmatprep.subr.mxu0 %v7526_v21 }
 0x22d   :  { %4636 = vmatpush3.msra.mxu1 %v6429_v31  ;;  %4716 = vmatpush3.msra.mxu0 %v6429_v31 }
 0x22e   :  { %4638 = vmatmul.mubr.msk.f32.vlgmr.msra.gmra.mrb[36].mxu1 %vm273_vm6, %v5882_v37  ;;  %4718 = vmatmul.mubr.msk.f32.vlgmr.msra.gmra.mrb[36].mxu0 %vm273_vm6, %v6081_v26  ;;  %v5319_v26 = vpack.c.bf16 %v1287_v5, %v1286_v2 }
 0x22f   :  { %4640 = vmatprep.mubr.msk.f32.mxu1 %vm5672_vm0, %v7526_v21  ;;  %4720 = vmatprep.mubr.msk.f32.mxu0 %vm5672_vm0, %v7526_v21 }
 0x230   :  { %5315 = vmatprep.subr.bf16.mxu1 %v7524_v19  ;;  %5345 = vmatprep.subr.bf16.mxu0 %v7524_v19 }
 0x231   :  { %5317 = vmatpush3.bf16.msra.mxu1 %v5316_v44  ;;  %v5337_v44 = vpack.c.bf16 %v1557_v13, %v1556_v36 }
 0x232   :  { %4641 = vmatmul.mubr.msk.f32.gmra.mrb[38].mxu1 %vm273_vm6, %v5911_v46  ;;  %4721 = vmatmul.mubr.msk.f32.gmra.mrb[38].mxu0 %vm273_vm6, %v6097_v35  ;;  %v1554_v35 = vld [vmem:[%s7474_s5 + $0x20] sm:$0xff] }
 0x233   :  { %4643 = vmatprep.mubr.msk.f32.mxu1 %vm5672_vm0, %v7526_v21  ;;  %4723 = vmatprep.mubr.msk.f32.mxu0 %vm5672_vm0, %v7526_v21 }
 0x234   :  { %5318 = vmatprep.subr.bf16.mxu1 %v7524_v19 }
 0x235   :  { %5320 = vmatpush3.bf16.msra.mxu1 %v5319_v26 }
 0x236   :  { %4644 = vmatmul.mubr.msk.f32.gmra.mrb[40].mxu1 %vm273_vm6, %v5939_v54  ;;  %4724 = vmatmul.mubr.msk.f32.gmra.mrb[40].mxu0 %vm273_vm6, %v6117_v59  ;;  %v1555_v59 = vld [vmem:[%s7474_s5 + $0x28] sm:$0xff] }
 0x237   :  { %4646 = vmatprep.mubr.msk.f32.mxu1 %vm5672_vm0, %v7526_v21  ;;  %4726 = vmatprep.mubr.msk.f32.mxu0 %vm5672_vm0, %v7526_v21 }
 0x238   :  { %5333 = vmatprep.subr.bf16.mxu1 %v7524_v19 }
 0x23a   :  { %4647 = vmatmul.mubr.msk.f32.gmra.mrb[42].mxu1 %vm273_vm6, %v5957_v60  ;;  %4727 = vmatmul.mubr.msk.f32.gmra.mrb[42].mxu0 %vm273_vm6, %v6132_v51 }
 0x23b   :  { %4649 = vmatprep.mubr.msk.f32.mxu1 %vm5672_vm0, %v7526_v21  ;;  %4729 = vmatprep.mubr.msk.f32.mxu0 %vm5672_vm0, %v7526_v21 }
 0x23e   :  { %4650 = vmatmul.mubr.msk.f32.gmra.mrb[44].mxu1 %vm273_vm6, %v5981_v12  ;;  %4730 = vmatmul.mubr.msk.f32.gmra.mrb[44].mxu0 %vm273_vm6, %v6144_v62 }
 0x23f   :  { %4652 = vmatprep.mubr.msk.f32.mxu1 %vm5672_vm0, %v7526_v21  ;;  %4732 = vmatprep.mubr.msk.f32.mxu0 %vm5672_vm0, %v7526_v21 }
 0x242   :  { %4653 = vmatmul.mubr.msk.f32.gmra.mrb[46].mxu1 %vm273_vm6, %v6003_v27  ;;  %4733 = vmatmul.mubr.msk.f32.gmra.mrb[46].mxu0 %vm273_vm6, %v6156_v0  ;;  %v5334_v0 = vpack.c.bf16 %v1555_v59, %v1554_v35 }
 0x243   :  { %4655 = vmatprep.mubr.msk.f32.mxu1 %vm5672_vm0, %v7526_v21  ;;  %4735 = vmatprep.mubr.msk.f32.mxu0 %vm5672_vm0, %v7526_v21 }
 0x246   :  { %4656 = vmatmul.mubr.msk.f32.gmra.mrb[48].mxu1 %vm273_vm6, %v6022_v38  ;;  %4736 = vmatmul.mubr.msk.f32.gmra.mrb[48].mxu0 %vm273_vm6, %v6166_v6 }
 0x247   :  { %4658 = vmatprep.mubr.msk.f32.mxu1 %vm5672_vm0, %v7526_v21  ;;  %4738 = vmatprep.mubr.msk.f32.mxu0 %vm5672_vm0, %v7526_v21 }
 0x24a   :  { %4659 = vmatmul.mubr.msk.f32.gmra.mrb[50].mxu1 %vm273_vm6, %v6048_v50  ;;  %4739 = vmatmul.mubr.msk.f32.gmra.mrb[50].mxu0 %vm273_vm6, %v6174_v9 }
 0x24b   :  { %4661 = vmatprep.mubr.msk.f32.mxu1 %vm5672_vm0, %v7526_v21  ;;  %4741 = vmatprep.mubr.msk.f32.mxu0 %vm5672_vm0, %v7526_v21 }
 0x24e   :  { %4662 = vmatmul.mubr.msk.f32.gmra.mrb[52].mxu1 %vm273_vm6, %v6065_v53  ;;  %4742 = vmatmul.mubr.msk.f32.gmra.mrb[52].mxu0 %vm273_vm6, %v6182_v10 }
 0x24f   :  { %4672 = vmatprep.mubr.msk.f32.mxu1 %vm5672_vm0, %v7526_v21  ;;  %4832 = vmatprep.mubr.msk.f32.mxu0 %vm5672_vm0, %v7526_v21 }
 0x301   :  { %v1231_v51 = vpop.f32.mrb[36].mxu1  ;;  %v6521_v62 = vpop.f32.mrb[36].mxu0 }
 0x302   :  { %v1275_v6 = vmul.f32 %v1231_v51, %v6194_v18  ;;  %v4639_v9 = vpop.f32.mrb[37].mxu1  ;;  %v4719_v10 = vpop.f32.mrb[37].mxu0 }
 0x304   :  { %4673 = vmatmul.mubr.msk.f32.vlgmr.msra.gmra.mrb[54].mxu1 %vm1288_vm9, %v1275_v6 }
 0x305   :  { %v1236_v4 = vpop.f32.mrb[38].mxu1  ;;  %v6531_v55 = vpop.f32.mrb[38].mxu0  ;;  %4675 = vmatprep.mubr.msk.f32.mxu1 %vm5672_vm0, %v7526_v21  ;;  %5335 = vmatpush3.bf16.msra.mxu1 %v5334_v0 }
 0x306   :  { %v1276_v2 = vmul.f32 %v1236_v4, %v6198_v33  ;;  %v4642_v5 = vpop.f32.mrb[39].mxu1  ;;  %v4722_v26 = vpop.f32.mrb[39].mxu0  ;;  %5336 = vmatprep.subr.bf16.mxu1 %v7524_v19 }
 0x308   :  { %4676 = vmatmul.mubr.msk.f32.gmra.mrb[56].mxu1 %vm1288_vm9, %v1276_v2 }
 0x309   :  { %v1241_v35 = vpop.f32.mrb[40].mxu1  ;;  %v6538_v59 = vpop.f32.mrb[40].mxu0  ;;  %4678 = vmatprep.mubr.msk.f32.mxu1 %vm5672_vm0, %v7526_v21  ;;  %5338 = vmatpush3.bf16.msra.mxu1 %v5337_v44 }
 0x30a   :  { %v1277_v51 = vmul.f32 %v1241_v35, %v6207_v49  ;;  %v4645_v6 = vpop.f32.mrb[41].mxu1  ;;  %v4725_v0 = vpop.f32.mrb[41].mxu0  ;;  %5339 = vmatprep.subr.bf16.mxu1 %v7524_v19 }
 0x30c   :  { %4679 = vmatmul.mubr.msk.f32.gmra.mrb[58].mxu1 %vm1288_vm9, %v1277_v51 }
 0x30d   :  { %v1246_v9 = vpop.f32.mrb[42].mxu1  ;;  %v1516_v10 = vpop.f32.mrb[42].mxu0  ;;  %4681 = vmatprep.mubr.msk.f32.mxu1 %vm5672_vm0, %v7526_v21 }
 0x30e   :  { %v1278_v36 = vmul.f32 %v1246_v9, %v6215_v30  ;;  %v4648_v13 = vpop.f32.mrb[43].mxu1  ;;  %v4728_v4 = vpop.f32.mrb[43].mxu0 }
 0x310   :  { %4682 = vmatmul.mubr.msk.f32.gmra.mrb[60].mxu1 %vm1288_vm9, %v1278_v36 }
 0x311   :  { %v1251_v44 = vpop.f32.mrb[44].mxu1  ;;  %v1521_v2 = vpop.f32.mrb[44].mxu0  ;;  %4684 = vmatprep.mubr.msk.f32.mxu1 %vm5672_vm0, %v7526_v21 }
 0x312   :  { %v1279_v5 = vmul.f32 %v1251_v44, %v6221_v40  ;;  %v4651_v26 = vpop.f32.mrb[45].mxu1  ;;  %v4731_v35 = vpop.f32.mrb[45].mxu0 }
 0x314   :  { %4685 = vmatmul.mubr.msk.f32.gmra.mrb[62].mxu1 %vm1288_vm9, %v1279_v5 }
 0x315   :  { %v1256_v51 = vpop.f32.mrb[46].mxu1  ;;  %v1526_v6 = vpop.f32.mrb[46].mxu0  ;;  %4687 = vmatprep.mubr.msk.f32.mxu1 %vm5672_vm0, %v7526_v21 }
 0x316   :  { %v1280_v0 = vmul.f32 %v1256_v51, %v6226_v61  ;;  %v4654_v9 = vpop.f32.mrb[47].mxu1  ;;  %v4734_v36 = vpop.f32.mrb[47].mxu0 }
 0x318   :  { %4688 = vmatmul.mubr.msk.f32.gmra.mrb[64].mxu1 %vm1288_vm9, %v1280_v0 }
 0x319   :  { %v1261_v13 = vpop.f32.mrb[48].mxu1  ;;  %v1531_v4 = vpop.f32.mrb[48].mxu0  ;;  %4690 = vmatprep.mubr.msk.f32.mxu1 %vm5672_vm0, %v7526_v21 }
 0x31a   :  { %v1281_v44 = vmul.f32 %v1261_v13, %v6234_v32  ;;  %v4657_v26 = vpop.f32.mrb[49].mxu1  ;;  %v4737_v5 = vpop.f32.mrb[49].mxu0 }
 0x31b   :  { %v1705_v5 = vld [vmem:[%s7474_s5 + $0x48] sm:$0xff] }
 0x31c   :  { %4691 = vmatmul.mubr.msk.f32.gmra.mrb[66].mxu1 %vm1288_vm9, %v1281_v44  ;;  %v1704_v44 = vld [vmem:[%s7474_s5 + $0x40] sm:$0xff] }
 0x31d   :  { %v1266_v35 = vpop.f32.mrb[50].mxu1  ;;  %v1536_v23 = vpop.f32.mrb[50].mxu0  ;;  %4693 = vmatprep.mubr.msk.f32.mxu1 %vm5672_vm0, %v7526_v21 }
 0x31e   :  { %v1282_v51 = vmul.f32 %v1266_v35, %v6242_v22  ;;  %v4660_v9 = vpop.f32.mrb[51].mxu1  ;;  %v4740_v0 = vpop.f32.mrb[51].mxu0 }
 0x31f   :  { %v1545_v9 = vmul.f32 %v6521_v62, %v6264_v45  ;;  %v1706_v0 = vld [vmem:[%s7474_s5 + $0x50] sm:$0xff]  ;;  %v1547_v45 = vmul.f32 %v6538_v59, %v6284_v58  ;;  %v1549_v62 = vmul.f32 %v1521_v2, %v6301_v63  ;;  %v1550_v58 = vmul.f32 %v1526_v6, %v6310_v48 }
 0x320   :  { %4694 = vmatmul.mubr.msk.f32.gmra.mrb[68].mxu1 %vm1288_vm9, %v1282_v51  ;;  %v5340_v51 = vpack.c.bf16 %v1705_v5, %v1704_v44  ;;  %v1552_v63 = vmul.f32 %v1536_v23, %v6322_v47  ;;  %v7528_v23 = vmax.f32 %v6377_v14, 0.0  ;;  %v7529_v47 = vmax.f32 %v6385_v28, 0.0 }
 0x321   :  { %v1271_v36 = vpop.f32.mrb[52].mxu1  ;;  %v1541_v3 = vpop.f32.mrb[52].mxu0  ;;  %4696 = vmatprep.mubr.msk.f32.mxu1 %vm5672_vm0, %v7526_v21  ;;  %v7532_v14 = vmax.f32 %v6401_v16, 0.0  ;;  %v7533_v28 = vmax.f32 %v6409_v20, 0.0 }
 0x322   :  { %v1283_v13 = vmul.f32 %v1271_v36, %v6250_v43  ;;  %v4663_v26 = vpop.f32.mrb[53].mxu1  ;;  %v4743_v35 = vpop.f32.mrb[53].mxu0  ;;  %v1707_v36 = vld [vmem:[%s7474_s5 + $0x58] sm:$0xff]  ;;  %v1553_v48 = vmul.f32 %v1541_v3, %v6328_v15  ;;  %v7530_v15 = vmax.f32 %v6389_v41, 0.0  ;;  %v7534_v41 = vmax.f32 %v6413_v8, 0.0 }
 0x323   :  { %v1546_v26 = vmul.f32 %v6531_v55, %v6272_v25  ;;  %v1548_v25 = vmul.f32 %v1516_v10, %v6293_v39  ;;  %v1551_v39 = vmul.f32 %v1531_v4, %v6316_v34  ;;  %v7527_v34 = vmax.f32 %v6375_v7, 0.0  ;;  %v6671_v3 = vld [vmem:[%s7475_s6] ss:$0 sm:$0xff] }
 0x324   :  { %4697 = vmatmul.mubr.msk.f32.gmra.mrb[70].mxu1 %vm1288_vm9, %v1283_v13  ;;  %v5343_v13 = vpack.c.bf16 %v1707_v36, %v1706_v0  ;;  %v7531_v7 = vmax.f32 %v6397_v57, 0.0  ;;  %v6676_v57 = vld [vmem:[%s7476_s8] ss:$0 sm:$0xff] }
 0x325   :  { %4752 = vmatprep.mubr.msk.f32.mxu1 %vm5672_vm0, %v7526_v21  ;;  %v178_v4 = vadd.f32 %v6676_v57, %v6239_v42  ;;  %v183_v0 = vadd.f32 %v6676_v57, %v6247_v56 }
 0x328   :  { %4753 = vmatmul.mubr.msk.f32.vlgmr.msra.gmra.mrb[54].mxu1 %vm1288_vm9, %v1545_v9 }
 0x329   :  { %4755 = vmatprep.mubr.msk.f32.mxu1 %vm5672_vm0, %v7526_v21  ;;  %5341 = vmatpush3.bf16.msra.mxu1 %v5340_v51 }
 0x32a   :  { %5342 = vmatprep.subr.bf16.mxu1 %v7524_v19 }
 0x32c   :  { %4756 = vmatmul.mubr.msk.f32.gmra.mrb[56].mxu1 %vm1288_vm9, %v1546_v26 }
 0x32d   :  { %4758 = vmatprep.mubr.msk.f32.mxu1 %vm5672_vm0, %v7526_v21  ;;  %5344 = vmatpush3.bf16.msra.mxu1 %v5343_v13 }
 0x32e   :  { %5363 = vmatprep.subr.bf16.mxu1 %v7524_v19 }
 0x330   :  { %4759 = vmatmul.mubr.msk.f32.gmra.mrb[58].mxu1 %vm1288_vm9, %v1547_v45 }
 0x331   :  { %4761 = vmatprep.mubr.msk.f32.mxu1 %vm5672_vm0, %v7526_v21 }
 0x334   :  { %4762 = vmatmul.mubr.msk.f32.gmra.mrb[60].mxu1 %vm1288_vm9, %v1548_v25 }
 0x335   :  { %4764 = vmatprep.mubr.msk.f32.mxu1 %vm5672_vm0, %v7526_v21 }
 0x338   :  { %4765 = vmatmul.mubr.msk.f32.gmra.mrb[62].mxu1 %vm1288_vm9, %v1549_v62 }
 0x339   :  { %4767 = vmatprep.mubr.msk.f32.mxu1 %vm5672_vm0, %v7526_v21 }
 0x33c   :  { %4768 = vmatmul.mubr.msk.f32.gmra.mrb[64].mxu1 %vm1288_vm9, %v1550_v58  ;;  %v188_v58 = vadd.f32 %v6676_v57, %v6255_v11 }
 0x33d   :  { %4770 = vmatprep.mubr.msk.f32.mxu1 %vm5672_vm0, %v7526_v21 }
 0x340   :  { %4771 = vmatmul.mubr.msk.f32.gmra.mrb[66].mxu1 %vm1288_vm9, %v1551_v39 }
 0x341   :  { %4773 = vmatprep.mubr.msk.f32.mxu1 %vm5672_vm0, %v7526_v21 }
 0x344   :  { %4774 = vmatmul.mubr.msk.f32.gmra.mrb[68].mxu1 %vm1288_vm9, %v1552_v63 }
 0x345   :  { %4776 = vmatprep.mubr.msk.f32.mxu1 %vm5672_vm0, %v7526_v21 }
 0x348   :  { %4777 = vmatmul.mubr.msk.f32.gmra.mrb[70].mxu1 %vm1288_vm9, %v1553_v48 }
 0x349   :  { %4787 = vmatprep.mubr.msk.f32.mxu1 %vm5672_vm0, %v7526_v21 }
 0x34c   :  { %4788 = vmatmul.mubr.msk.f32.vlgmr.msra.gmra.mrb[54].mxu1 %vm1288_vm9, %v7527_v34 }
 0x34d   :  { %4790 = vmatprep.mubr.msk.f32.mxu1 %vm5672_vm0, %v7526_v21 }
 0x350   :  { %4791 = vmatmul.mubr.msk.f32.gmra.mrb[56].mxu1 %vm1288_vm9, %v7528_v23  ;;  %v193_v23 = vadd.f32 %v6676_v57, %v6269_v29 }
 0x351   :  { %4793 = vmatprep.mubr.msk.f32.mxu1 %vm5672_vm0, %v7526_v21 }
 0x354   :  { %4794 = vmatmul.mubr.msk.f32.gmra.mrb[58].mxu1 %vm1288_vm9, %v7529_v47 }
 0x355   :  { %4796 = vmatprep.mubr.msk.f32.mxu1 %vm5672_vm0, %v7526_v21 }
 0x358   :  { %4797 = vmatmul.mubr.msk.f32.gmra.mrb[60].mxu1 %vm1288_vm9, %v7530_v15 }
 0x359   :  { %4799 = vmatprep.mubr.msk.f32.mxu1 %vm5672_vm0, %v7526_v21 }
 0x35c   :  { %4800 = vmatmul.mubr.msk.f32.gmra.mrb[62].mxu1 %vm1288_vm9, %v7531_v7 }
 0x35d   :  { %4802 = vmatprep.mubr.msk.f32.mxu1 %vm5672_vm0, %v7526_v21 }
 0x360   :  { %4803 = vmatmul.mubr.msk.f32.gmra.mrb[64].mxu1 %vm1288_vm9, %v7532_v14 }
 0x361   :  { %4805 = vmatprep.mubr.msk.f32.mxu1 %vm5672_vm0, %v7526_v21 }
 0x364   :  { %4806 = vmatmul.mubr.msk.f32.gmra.mrb[66].mxu1 %vm1288_vm9, %v7533_v28 }
 0x365   :  { %4808 = vmatprep.mubr.msk.f32.mxu1 %vm5672_vm0, %v7526_v21 }
 0x368   :  { %4809 = vmatmul.mubr.msk.f32.gmra.mrb[68].mxu1 %vm1288_vm9, %v7534_v41 }
 0x369   :  { %4811 = vmatprep.mubr.msk.f32.mxu1 %vm5672_vm0, %v7526_v21 }
 0x36c   :  { %4812 = vmatmul.mubr.msk.f32.gmra.mrb[70].mxu1 %vm1288_vm9, %v6429_v31  ;;  %v173_v31 = vadd.f32 %v6676_v57, %v6231_v17 }
 0x36d   :  { %4912 = vmatprep.mubr.msk.f32.mxu1 %vm5672_vm0, %v7526_v21 }
 0x41f   :  { %v1801_v16 = vpop.f32.mrb[54].mxu1 }
 0x420   :  { %v5474_v20 = vadd.f32 %v6671_v3, %v1801_v16  ;;  %v4789_v8 = vpop.f32.mrb[55].mxu1 }
 0x422   :  { %v1854_v55 = vmax.f32 %v5474_v20, 0.0  ;;  %v198_v20 = vadd.f32 %v6676_v57, %v6277_v24 }
 0x423   :  { %v1806_v59 = vpop.f32.mrb[56].mxu1 }
 0x424   :  { %v1863_v10 = vadd.f32 %v1854_v55, %v173_v31  ;;  %v5475_v2 = vadd.f32 %v6671_v3, %v1806_v59  ;;  %v4792_v6 = vpop.f32.mrb[57].mxu1 }
 0x426   :  { %v1855_v44 = vmax.f32 %v5475_v2, 0.0  ;;  %v6687_v36 = vmax.f32 %v1863_v10, 0.0  ;;  %v203_v10 = vadd.f32 %v6676_v57, %v6289_v52 }
 0x427   :  { %v1811_v5 = vpop.f32.mrb[58].mxu1 }
 0x428   :  { %v1864_v35 = vadd.f32 %v1855_v44, %v178_v4  ;;  %v5476_v51 = vadd.f32 %v6671_v3, %v1811_v5  ;;  %v4795_v9 = vpop.f32.mrb[59].mxu1 }
 0x429   :  { %v208_v9 = vadd.f32 %v6676_v57, %v6298_v1 }
 0x42a   :  { %v6689_v17 = vmax.f32 %v1864_v35, 0.0  ;;  %v1856_v13 = vmax.f32 %v5476_v51, 0.0 }
 0x42b   :  { %v1816_v26 = vpop.f32.mrb[60].mxu1 }
 0x42c   :  { %v1865_v45 = vadd.f32 %v1856_v13, %v183_v0  ;;  %v5477_v25 = vadd.f32 %v6671_v3, %v1816_v26  ;;  %v4798_v62 = vpop.f32.mrb[61].mxu1  ;;  %v5346_v42 = vpack.c.bf16 %v6689_v17, %v6687_v36 }
 0x42e   :  { %v1857_v39 = vmax.f32 %v5477_v25, 0.0  ;;  %5347 = vmatpush3.bf16.msra.mxu0 %v5346_v42  ;;  %5365 = vmatpush3.bf16.msra.mxu1 %v5346_v42  ;;  %v6701_v47 = vmax.f32 %v1865_v45, 0.0  ;;  %v7535_v25 = vld [vmem:[#allocation12_spill] sm:$0xff] }
 0x42f   :  { %v1821_v56 = vpop.f32.mrb[62].mxu1  ;;  %5348 = vmatprep.subr.bf16.mxu0 %v7524_v19  ;;  %5366 = vmatprep.subr.bf16.mxu1 %v7524_v19  ;;  %v213_v62 = vadd.f32 %v6676_v57, %v7535_v25  ;;  %v2126_v57 = vld [vmem:[%s7477_s9 + $0x8] sm:$0xff] }
 0x430   :  { %v1866_v63 = vadd.f32 %v1857_v39, %v188_v58  ;;  %v5478_v48 = vadd.f32 %v6671_v3, %v1821_v56  ;;  %v4801_v34 = vpop.f32.mrb[63].mxu1 }
 0x432   :  { %v6703_v15 = vmax.f32 %v1866_v63, 0.0  ;;  %v1858_v11 = vmax.f32 %v5478_v48, 0.0  ;;  %v7537_v63 = vld [vmem:[#allocation3_spill] sm:$0xff] }
 0x433   :  { %v1826_v7 = vpop.f32.mrb[64].mxu1  ;;  %vm1889_vm7 = vcmp.eq.f32.partialorder %v7537_v63, 4.0  ;;  %v6882_v63 = vpop.permute.xlu1 %2078 }
 0x434   :  { %v1867_v14 = vadd.f32 %v1858_v11, %v193_v23  ;;  %v5479_v28 = vadd.f32 %v6671_v3, %v1826_v7  ;;  %v4804_v41 = vpop.f32.mrb[65].mxu1  ;;  %v5349_v16 = vpack.c.bf16 %v6703_v15, %v6701_v47  ;;  %v6747_v34 = vsel %vm1889_vm7, 1.0, %v7526_v21  ;;  %v7539_v23 = vld [vmem:[#allocation4_spill] sm:$0xff] }
 0x435   :  { %vm1890_vm8 = vcmp.eq.f32.partialorder %v7539_v23, 4.0  ;;  %v2127_v7 = vld [vmem:[%s7477_s9 + $0x10] sm:$0xff]  ;;  %v7540_v41 = vld [vmem:[#allocation5_spill] sm:$0xff] }
 0x436   :  { %v1859_v8 = vmax.f32 %v5479_v28, 0.0  ;;  %5350 = vmatpush3.bf16.msra.mxu0 %v5349_v16  ;;  %5368 = vmatpush3.bf16.msra.mxu1 %v5349_v16  ;;  %v6715_v2 = vmax.f32 %v1867_v14, 0.0  ;;  %v2128_v14 = vld [vmem:[%s7477_s9 + $0x18] sm:$0xff]  ;;  %v6767_v28 = vsel %vm1890_vm8, 1.0, %v7526_v21  ;;  %vm1891_vm10 = vcmp.eq.f32.partialorder %v7540_v41, 4.0 }
 0x437   :  { %v1831_v29 = vpop.f32.mrb[66].mxu1  ;;  %5351 = vmatprep.subr.bf16.mxu0 %v7524_v19  ;;  %5369 = vmatprep.subr.bf16.mxu1 %v7524_v19  ;;  %v5361_v16 = vpack.c.bf16 %v2128_v14, %v2127_v7  ;;  %vm3825_vm8 = vcmask 785408  }
 0x438   :  { %v1868_v31 = vadd.f32 %v1859_v8, %v198_v20  ;;  %v5480_v55 = vadd.f32 %v6671_v3, %v1831_v29  ;;  %v4807_v59 = vpop.f32.mrb[67].mxu1  ;;  %v6781_v20 = vsel %vm1891_vm10, 1.0, %v7526_v21  ;;  %v7541_v8 = vld [vmem:[#allocation6_spill] sm:$0xff] }
 0x439   :  { %vm1892_vm11 = vcmp.eq.f32.partialorder %v7541_v8, 4.0  ;;  %v7543_v59 = vld [vmem:[#allocation8_spill] sm:$0xff] }
 0x43a   :  { %v6717_v6 = vmax.f32 %v1868_v31, 0.0  ;;  %v1860_v24 = vmax.f32 %v5480_v55, 0.0  ;;  %v6794_v29 = vsel %vm1892_vm11, 1.0, %v7526_v21  ;;  %v7542_v31 = vld [vmem:[#allocation7_spill] sm:$0xff]  ;;  %vm1894_vm13 = vcmp.eq.f32.partialorder %v7543_v59, 4.0 }
 0x43b   :  { %v1836_v4 = vpop.f32.mrb[68].mxu1  ;;  %vm1893_vm12 = vcmp.eq.f32.partialorder %v7542_v31, 4.0 }
 0x43c   :  { %v1869_v44 = vadd.f32 %v1860_v24, %v203_v10  ;;  %v5481_v5 = vadd.f32 %v6671_v3, %v1836_v4  ;;  %v4810_v35 = vpop.f32.mrb[69].mxu1  ;;  %v5352_v51 = vpack.c.bf16 %v6717_v6, %v6715_v2  ;;  %v6807_v55 = vsel %vm1893_vm12, 1.0, %v7526_v21  ;;  %v7544_v24 = vld [vmem:[#allocation9_spill] sm:$0xff] }
 0x43d   :  { %v6819_v10 = vsel %vm1894_vm13, 1.0, %v7526_v21  ;;  %vm1895_vm14 = vcmp.eq.f32.partialorder %v7544_v24, 4.0  ;;  %v7546_v35 = vld [vmem:[#allocation11_spill] sm:$0xff] }
 0x43e   :  { %v1861_v0 = vmax.f32 %v5481_v5, 0.0  ;;  %5353 = vmatpush3.bf16.msra.mxu0 %v5352_v51  ;;  %5371 = vmatpush3.bf16.msra.mxu1 %v5352_v51  ;;  %v6729_v42 = vmax.f32 %v1869_v44, 0.0  ;;  %v6831_v4 = vsel %vm1895_vm14, 1.0, %v7526_v21  ;;  %v7545_v44 = vld [vmem:[#allocation10_spill] sm:$0xff]  ;;  %vm1897_vm1 = vcmp.eq.f32.partialorder %v7546_v35, 4.0 }
 0x43f   :  { %v1841_v52 = vpop.f32.mrb[70].mxu1  ;;  %5354 = vmatprep.subr.bf16.mxu0 %v7524_v19  ;;  %5372 = vmatprep.subr.bf16.mxu1 %v7524_v19  ;;  %vm1896_vm15 = vcmp.eq.f32.partialorder %v7545_v44, 4.0  ;;  %v6855_v51 = vsel %vm1897_vm1, 1.0, %v7526_v21  ;;  %v6900_v44 = vpop.permute.xlu1 %2088 }
 0x440   :  { %v1870_v13 = vadd.f32 %v1861_v0, %v208_v9  ;;  %v5482_v26 = vadd.f32 %v6671_v3, %v1841_v52  ;;  %v4813_v45 = vpop.f32.mrb[71].mxu1  ;;  %v2125_v3 = vld [vmem:[%s7477_s9] sm:$0xff]  ;;  %v6843_v5 = vsel %vm1896_vm15, 1.0, %v7526_v21  ;;  %v2395_v0 = vld [vmem:[%s7477_s9 + $0x28] sm:$0xff]  ;;  %v6871_v52 = vpop.permute.xlu0 %2073 }
 0x441   :  { %v5358_v11 = vpack.c.bf16 %v2126_v57, %v2125_v3  ;;  %v2394_v9 = vld [vmem:[%s7477_s9 + $0x20] sm:$0xff] }
 0x442   :  { %v6731_v58 = vmax.f32 %v1870_v13, 0.0  ;;  %v1862_v1 = vmax.f32 %v5482_v26, 0.0  ;;  %v5376_v45 = vpack.c.bf16 %v2395_v0, %v2394_v9 }
 0x444   :  { %7536 = vst [vmem:[#allocation12_spill] sm:$0xff] %v6731_v58  ;;  %v1871_v39 = vadd.f32 %v1862_v1, %v213_v62  ;;  %v5355_v56 = vpack.c.bf16 %v6731_v58, %v6729_v42  ;;  %v6891_v41 = vpop.permute.xlu0 %2083 }
 0x446   :  { %5356 = vmatpush3.bf16.msra.mxu0 %v5355_v56  ;;  %5374 = vmatpush3.bf16.msra.mxu1 %v5355_v56  ;;  %v6744_v48 = vmax.f32 %v1871_v39, 0.0  ;;  %v2396_v39 = vld [vmem:[%s7477_s9 + $0x30] sm:$0xff]  ;;  %v2397_v56 = vld [vmem:[%s7477_s9 + $0x38] sm:$0xff] }
 0x447   :  { %4830 = vmatprep.subr.mxu0 %v7526_v21  ;;  %4910 = vmatprep.subr.mxu1 %v7526_v21  ;;  %v5379_v23 = vpack.c.bf16 %v2397_v56, %v2396_v39 }
 0x448   :  { %7538 = vst [vmem:[#allocation3_spill] sm:$0xff] %v6744_v48 }
 0x44a   :  { %4831 = vmatpush3.msra.mxu0 %v6744_v48  ;;  %4911 = vmatpush3.msra.mxu1 %v6744_v48 }
 0x44b   :  { %4833 = vmatmul.mubr.msk.f32.vlgmr.msra.gmra.mrb[54].mxu0 %vm273_vm6, %v6747_v34  ;;  %4913 = vmatmul.mubr.msk.f32.vlgmr.msra.gmra.mrb[72].mxu1 %vm273_vm6, %v5882_v37 }
 0x44c   :  { %4835 = vmatprep.mubr.msk.f32.mxu0 %vm5672_vm0, %v7526_v21  ;;  %4915 = vmatprep.mubr.msk.f32.mxu1 %vm5672_vm0, %v7526_v21 }
 0x44d   :  { %5357 = vmatprep.subr.bf16.mxu0 %v7524_v19  ;;  %5387 = vmatprep.subr.bf16.mxu1 %v7524_v19 }
 0x44e   :  { %5359 = vmatpush3.bf16.msra.mxu0 %v5358_v11 }
 0x44f   :  { %4836 = vmatmul.mubr.msk.f32.gmra.mrb[56].mxu0 %vm273_vm6, %v6767_v28  ;;  %4916 = vmatmul.mubr.msk.f32.gmra.mrb[74].mxu1 %vm273_vm6, %v5911_v46 }
 0x450   :  { %4838 = vmatprep.mubr.msk.f32.mxu0 %vm5672_vm0, %v7526_v21  ;;  %4918 = vmatprep.mubr.msk.f32.mxu1 %vm5672_vm0, %v7526_v21 }
 0x451   :  { %5360 = vmatprep.subr.bf16.mxu0 %v7524_v19 }
 0x452   :  { %5362 = vmatpush3.bf16.msra.mxu0 %v5361_v16 }
 0x453   :  { %4839 = vmatmul.mubr.msk.f32.gmra.mrb[58].mxu0 %vm273_vm6, %v6781_v20  ;;  %4919 = vmatmul.mubr.msk.f32.gmra.mrb[76].mxu1 %vm273_vm6, %v5939_v54 }
 0x454   :  { %4841 = vmatprep.mubr.msk.f32.mxu0 %vm5672_vm0, %v7526_v21  ;;  %4921 = vmatprep.mubr.msk.f32.mxu1 %vm5672_vm0, %v7526_v21 }
 0x455   :  { %5375 = vmatprep.subr.bf16.mxu0 %v7524_v19 }
 0x457   :  { %4842 = vmatmul.mubr.msk.f32.gmra.mrb[60].mxu0 %vm273_vm6, %v6794_v29  ;;  %4922 = vmatmul.mubr.msk.f32.gmra.mrb[78].mxu1 %vm273_vm6, %v5957_v60 }
 0x458   :  { %4844 = vmatprep.mubr.msk.f32.mxu0 %vm5672_vm0, %v7526_v21  ;;  %4924 = vmatprep.mubr.msk.f32.mxu1 %vm5672_vm0, %v7526_v21 }
 0x45b   :  { %4845 = vmatmul.mubr.msk.f32.gmra.mrb[62].mxu0 %vm273_vm6, %v6807_v55  ;;  %4925 = vmatmul.mubr.msk.f32.gmra.mrb[80].mxu1 %vm273_vm6, %v5981_v12 }
 0x45c   :  { %4847 = vmatprep.mubr.msk.f32.mxu0 %vm5672_vm0, %v7526_v21  ;;  %4927 = vmatprep.mubr.msk.f32.mxu1 %vm5672_vm0, %v7526_v21 }
 0x45f   :  { %4848 = vmatmul.mubr.msk.f32.gmra.mrb[64].mxu0 %vm273_vm6, %v6819_v10  ;;  %4928 = vmatmul.mubr.msk.f32.gmra.mrb[82].mxu1 %vm273_vm6, %v6003_v27 }
 0x460   :  { %4850 = vmatprep.mubr.msk.f32.mxu0 %vm5672_vm0, %v7526_v21  ;;  %4930 = vmatprep.mubr.msk.f32.mxu1 %vm5672_vm0, %v7526_v21 }
 0x463   :  { %4851 = vmatmul.mubr.msk.f32.gmra.mrb[66].mxu0 %vm273_vm6, %v6831_v4  ;;  %4931 = vmatmul.mubr.msk.f32.gmra.mrb[84].mxu1 %vm273_vm6, %v6022_v38 }
 0x464   :  { %4853 = vmatprep.mubr.msk.f32.mxu0 %vm5672_vm0, %v7526_v21  ;;  %4933 = vmatprep.mubr.msk.f32.mxu1 %vm5672_vm0, %v7526_v21 }
 0x467   :  { %4854 = vmatmul.mubr.msk.f32.gmra.mrb[68].mxu0 %vm273_vm6, %v6843_v5  ;;  %4934 = vmatmul.mubr.msk.f32.gmra.mrb[86].mxu1 %vm273_vm6, %v6048_v50 }
 0x468   :  { %4856 = vmatprep.mubr.msk.f32.mxu0 %vm5672_vm0, %v7526_v21  ;;  %4936 = vmatprep.mubr.msk.f32.mxu1 %vm5672_vm0, %v7526_v21 }
 0x46b   :  { %4857 = vmatmul.mubr.msk.f32.gmra.mrb[70].mxu0 %vm273_vm6, %v6855_v51  ;;  %4937 = vmatmul.mubr.msk.f32.gmra.mrb[88].mxu1 %vm273_vm6, %v6065_v53 }
 0x46c   :  { %4867 = vmatprep.mubr.msk.f32.mxu0 %vm5672_vm0, %v7526_v21  ;;  %5027 = vmatprep.mubr.msk.f32.mxu1 %vm5672_vm0, %v7526_v21 }
 0x51e   :  { %v2000_v13 = vpop.f32.mrb[54].mxu0  ;;  %v6873_v26 = vpop.f32.mrb[72].mxu1 }
 0x51f   :  { %v2116_v25 = vmul.f32 %v6871_v52, %v2000_v13  ;;  %v4834_v62 = vpop.f32.mrb[55].mxu0  ;;  %v4914_v1 = vpop.f32.mrb[73].mxu1 }
 0x521   :  { %4868 = vmatmul.mubr.msk.f32.vlgmr.msra.gmra.mrb[72].mxu0 %vm1288_vm9, %v2116_v25  ;;  %v6908_v25 = vpop.permute.xlu0 %2093 }
 0x522   :  { %v2005_v3 = vpop.f32.mrb[56].mxu0  ;;  %v6885_v57 = vpop.f32.mrb[74].mxu1  ;;  %4870 = vmatprep.mubr.msk.f32.mxu0 %vm5672_vm0, %v7526_v21  ;;  %5377 = vmatpush3.bf16.msra.mxu0 %v5376_v45 }
 0x523   :  { %v2117_v11 = vmul.f32 %v6882_v63, %v2005_v3  ;;  %v4837_v7 = vpop.f32.mrb[57].mxu0  ;;  %v4917_v14 = vpop.f32.mrb[75].mxu1  ;;  %5378 = vmatprep.subr.bf16.mxu0 %v7524_v19 }
 0x525   :  { %4871 = vmatmul.mubr.msk.f32.gmra.mrb[74].mxu0 %vm1288_vm9, %v2117_v11 }
 0x526   :  { %v2010_v16 = vpop.f32.mrb[58].mxu0  ;;  %v6894_v8 = vpop.f32.mrb[76].mxu1  ;;  %4873 = vmatprep.mubr.msk.f32.mxu0 %vm5672_vm0, %v7526_v21  ;;  %5380 = vmatpush3.bf16.msra.mxu0 %v5379_v23 }
 0x527   :  { %v2118_v31 = vmul.f32 %v6891_v41, %v2010_v16  ;;  %v4840_v59 = vpop.f32.mrb[59].mxu0  ;;  %v4920_v24 = vpop.f32.mrb[77].mxu1  ;;  %5381 = vmatprep.subr.bf16.mxu0 %v7524_v19 }
 0x528   :  { %v6914_v23 = vpop.permute.xlu1 %2098  ;;  %v6920_v59 = vpop.permute.xlu0 %2103 }
 0x529   :  { %4874 = vmatmul.mubr.msk.f32.gmra.mrb[76].mxu0 %vm1288_vm9, %v2118_v31 }
 0x52a   :  { %v2015_v35 = vpop.f32.mrb[60].mxu0  ;;  %v6903_v9 = vpop.f32.mrb[78].mxu1  ;;  %4876 = vmatprep.mubr.msk.f32.mxu0 %vm5672_vm0, %v7526_v21 }
 0x52b   :  { %v2119_v0 = vmul.f32 %v6900_v44, %v2015_v35  ;;  %v4843_v13 = vpop.f32.mrb[61].mxu0  ;;  %v4923_v45 = vpop.f32.mrb[79].mxu1 }
 0x52d   :  { %4877 = vmatmul.mubr.msk.f32.gmra.mrb[78].mxu0 %vm1288_vm9, %v2119_v0 }
 0x52e   :  { %v2020_v62 = vpop.f32.mrb[62].mxu0  ;;  %v2361_v1 = vpop.f32.mrb[80].mxu1  ;;  %4879 = vmatprep.mubr.msk.f32.mxu0 %vm5672_vm0, %v7526_v21 }
 0x52f   :  { %v2120_v39 = vmul.f32 %v6908_v25, %v2020_v62  ;;  %v4846_v56 = vpop.f32.mrb[63].mxu0  ;;  %v4926_v3 = vpop.f32.mrb[81].mxu1 }
 0x530   :  { %v6926_v62 = vpop.permute.xlu1 %2108 }
 0x531   :  { %4880 = vmatmul.mubr.msk.f32.gmra.mrb[80].mxu0 %vm1288_vm9, %v2120_v39 }
 0x532   :  { %v2025_v11 = vpop.f32.mrb[64].mxu0  ;;  %v2366_v7 = vpop.f32.mrb[82].mxu1  ;;  %4882 = vmatprep.mubr.msk.f32.mxu0 %vm5672_vm0, %v7526_v21 }
 0x533   :  { %v2121_v14 = vmul.f32 %v6914_v23, %v2025_v11  ;;  %v4849_v16 = vpop.f32.mrb[65].mxu0  ;;  %v4929_v31 = vpop.f32.mrb[83].mxu1 }
 0x534   :  { %v6932_v16 = vpop.permute.xlu0 %2113 }
 0x535   :  { %4883 = vmatmul.mubr.msk.f32.gmra.mrb[82].mxu0 %vm1288_vm9, %v2121_v14 }
 0x536   :  { %v2030_v24 = vpop.f32.mrb[66].mxu0  ;;  %v2371_v35 = vpop.f32.mrb[84].mxu1  ;;  %4885 = vmatprep.mubr.msk.f32.mxu0 %vm5672_vm0, %v7526_v21 }
 0x537   :  { %v2122_v0 = vmul.f32 %v6920_v59, %v2030_v24  ;;  %v4852_v13 = vpop.f32.mrb[67].mxu0  ;;  %v4932_v45 = vpop.f32.mrb[85].mxu1 }
 0x538   :  { %v2544_v45 = vld [vmem:[%s7477_s9 + $0x40] sm:$0xff] }
 0x539   :  { %4886 = vmatmul.mubr.msk.f32.gmra.mrb[84].mxu0 %vm1288_vm9, %v2122_v0 }
 0x53a   :  { %v2035_v39 = vpop.f32.mrb[68].mxu0  ;;  %v2376_v56 = vpop.f32.mrb[86].mxu1  ;;  %4888 = vmatprep.mubr.msk.f32.mxu0 %vm5672_vm0, %v7526_v21 }
 0x53b   :  { %v2123_v3 = vmul.f32 %v6926_v62, %v2035_v39  ;;  %v4855_v11 = vpop.f32.mrb[69].mxu0  ;;  %v4935_v14 = vpop.f32.mrb[87].mxu1  ;;  %v2545_v39 = vld [vmem:[%s7477_s9 + $0x48] sm:$0xff] }
 0x53c   :  { %v2385_v14 = vmul.f32 %v6873_v26, %v6194_v18  ;;  %v2387_v26 = vmul.f32 %v6894_v8, %v6207_v49  ;;  %v2390_v8 = vmul.f32 %v2366_v7, %v6226_v61 }
 0x53d   :  { %4889 = vmatmul.mubr.msk.f32.gmra.mrb[86].mxu0 %vm1288_vm9, %v2123_v3  ;;  %v5382_v3 = vpack.c.bf16 %v2545_v39, %v2544_v45  ;;  %v2386_v45 = vmul.f32 %v6885_v57, %v6198_v33  ;;  %v2388_v57 = vmul.f32 %v6903_v9, %v6215_v30  ;;  %v2389_v39 = vmul.f32 %v2361_v1, %v6221_v40 }
 0x53e   :  { %v2040_v31 = vpop.f32.mrb[70].mxu0  ;;  %v2381_v24 = vpop.f32.mrb[88].mxu1  ;;  %4891 = vmatprep.mubr.msk.f32.mxu0 %vm5672_vm0, %v7526_v21  ;;  %v2391_v9 = vmul.f32 %v2371_v35, %v6234_v32  ;;  %v2392_v1 = vmul.f32 %v2376_v56, %v6242_v22  ;;  %v3952_v35 = vld [vmem:[%s7478_s10] ss:$0 sm:$0xff] }
 0x53f   :  { %v2124_v0 = vmul.f32 %v6932_v16, %v2040_v31  ;;  %v4858_v13 = vpop.f32.mrb[71].mxu0  ;;  %v4938_v11 = vpop.f32.mrb[89].mxu1  ;;  %v2546_v31 = vld [vmem:[%s7477_s9 + $0x50] sm:$0xff]  ;;  %v2393_v7 = vmul.f32 %v2381_v24, %v6250_v43 }
 0x540   :  { %v2547_v13 = vld [vmem:[%s7477_s9 + $0x58] sm:$0xff] }
 0x541   :  { %4892 = vmatmul.mubr.msk.f32.gmra.mrb[88].mxu0 %vm1288_vm9, %v2124_v0  ;;  %v5385_v0 = vpack.c.bf16 %v2547_v13, %v2546_v31 }
 0x542   :  { %4947 = vmatprep.mubr.msk.f32.mxu0 %vm5672_vm0, %v7526_v21 }
 0x545   :  { %4948 = vmatmul.mubr.msk.f32.vlgmr.msra.gmra.mrb[72].mxu0 %vm1288_vm9, %v2385_v14 }
 0x546   :  { %4950 = vmatprep.mubr.msk.f32.mxu0 %vm5672_vm0, %v7526_v21  ;;  %5383 = vmatpush3.bf16.msra.mxu0 %v5382_v3 }
 0x547   :  { %5384 = vmatprep.subr.bf16.mxu0 %v7524_v19 }
 0x549   :  { %4951 = vmatmul.mubr.msk.f32.gmra.mrb[74].mxu0 %vm1288_vm9, %v2386_v45 }
 0x54a   :  { %4953 = vmatprep.mubr.msk.f32.mxu0 %vm5672_vm0, %v7526_v21  ;;  %5386 = vmatpush3.bf16.msra.mxu0 %v5385_v0 }
 0x54b   :  { %5405 = vmatprep.subr.bf16.mxu0 %v7524_v19 }
 0x54d   :  { %4954 = vmatmul.mubr.msk.f32.gmra.mrb[76].mxu0 %vm1288_vm9, %v2387_v26 }
 0x54e   :  { %4956 = vmatprep.mubr.msk.f32.mxu0 %vm5672_vm0, %v7526_v21 }
 0x551   :  { %4957 = vmatmul.mubr.msk.f32.gmra.mrb[78].mxu0 %vm1288_vm9, %v2388_v57 }
 0x552   :  { %4959 = vmatprep.mubr.msk.f32.mxu0 %vm5672_vm0, %v7526_v21 }
 0x555   :  { %4960 = vmatmul.mubr.msk.f32.gmra.mrb[80].mxu0 %vm1288_vm9, %v2389_v39 }
 0x556   :  { %4962 = vmatprep.mubr.msk.f32.mxu0 %vm5672_vm0, %v7526_v21 }
 0x559   :  { %4963 = vmatmul.mubr.msk.f32.gmra.mrb[82].mxu0 %vm1288_vm9, %v2390_v8 }
 0x55a   :  { %4965 = vmatprep.mubr.msk.f32.mxu0 %vm5672_vm0, %v7526_v21 }
 0x55d   :  { %4966 = vmatmul.mubr.msk.f32.gmra.mrb[84].mxu0 %vm1288_vm9, %v2391_v9 }
 0x55e   :  { %4968 = vmatprep.mubr.msk.f32.mxu0 %vm5672_vm0, %v7526_v21 }
 0x561   :  { %4969 = vmatmul.mubr.msk.f32.gmra.mrb[86].mxu0 %vm1288_vm9, %v2392_v1 }
 0x562   :  { %4971 = vmatprep.mubr.msk.f32.mxu0 %vm5672_vm0, %v7526_v21 }
 0x565   :  { %4972 = vmatmul.mubr.msk.f32.gmra.mrb[88].mxu0 %vm1288_vm9, %v2393_v7 }
 0x566   :  { %4982 = vmatprep.mubr.msk.f32.mxu0 %vm5672_vm0, %v7526_v21 }
 0x569   :  { %4983 = vmatmul.mubr.msk.f32.vlgmr.msra.gmra.mrb[72].mxu0 %vm1288_vm9, %v6687_v36 }
 0x56a   :  { %4985 = vmatprep.mubr.msk.f32.mxu0 %vm5672_vm0, %v7526_v21 }
 0x56d   :  { %4986 = vmatmul.mubr.msk.f32.gmra.mrb[74].mxu0 %vm1288_vm9, %v6689_v17 }
 0x56e   :  { %4988 = vmatprep.mubr.msk.f32.mxu0 %vm5672_vm0, %v7526_v21 }
 0x571   :  { %4989 = vmatmul.mubr.msk.f32.gmra.mrb[76].mxu0 %vm1288_vm9, %v6701_v47 }
 0x572   :  { %4991 = vmatprep.mubr.msk.f32.mxu0 %vm5672_vm0, %v7526_v21 }
 0x575   :  { %4992 = vmatmul.mubr.msk.f32.gmra.mrb[78].mxu0 %vm1288_vm9, %v6703_v15 }
 0x576   :  { %4994 = vmatprep.mubr.msk.f32.mxu0 %vm5672_vm0, %v7526_v21 }
 0x579   :  { %4995 = vmatmul.mubr.msk.f32.gmra.mrb[80].mxu0 %vm1288_vm9, %v6715_v2 }
 0x57a   :  { %4997 = vmatprep.mubr.msk.f32.mxu0 %vm5672_vm0, %v7526_v21 }
 0x57d   :  { %4998 = vmatmul.mubr.msk.f32.gmra.mrb[82].mxu0 %vm1288_vm9, %v6717_v6 }
 0x57e   :  { %5000 = vmatprep.mubr.msk.f32.mxu0 %vm5672_vm0, %v7526_v21 }
 0x581   :  { %5001 = vmatmul.mubr.msk.f32.gmra.mrb[84].mxu0 %vm1288_vm9, %v6729_v42 }
 0x582   :  { %5003 = vmatprep.mubr.msk.f32.mxu0 %vm5672_vm0, %v7526_v21 }
 0x585   :  { %5004 = vmatmul.mubr.msk.f32.gmra.mrb[86].mxu0 %vm1288_vm9, %v6731_v58 }
 0x586   :  { %5006 = vmatprep.mubr.msk.f32.mxu0 %vm5672_vm0, %v7526_v21 }
 0x589   :  { %5007 = vmatmul.mubr.msk.f32.gmra.mrb[88].mxu0 %vm1288_vm9, %v6744_v48 }
 0x58a   :  { %5107 = vmatprep.mubr.msk.f32.mxu0 %vm5672_vm0, %v7526_v21 }
 0x63c   :  { %v2641_v56 = vpop.f32.mrb[72].mxu0 }
 0x63d   :  { %v4984_v24 = vpop.f32.mrb[73].mxu0  ;;  %v7034_v11 = vadd.f32 %v3952_v35, %v2641_v56 }
 0x63f   :  { %v7508_v13 = vmax.f32 %v7034_v11, 0.0 }
 0x640   :  { %v2646_v3 = vpop.f32.mrb[74].mxu0 }
 0x641   :  { %v7036_v14 = vadd.f32 %v3952_v35, %v2646_v3  ;;  %v4987_v31 = vpop.f32.mrb[75].mxu0 }
 0x643   :  { %v7507_v0 = vmax.f32 %v7036_v14, 0.0 }
 0x644   :  { %v2651_v45 = vpop.f32.mrb[76].mxu0 }
 0x645   :  { %v5388_v26 = vpack.c.bf16 %v7507_v0, %v7508_v13  ;;  %v4990_v57 = vpop.f32.mrb[77].mxu0  ;;  %v7044_v39 = vadd.f32 %v3952_v35, %v2651_v45 }
 0x647   :  { %5389 = vmatpush3.bf16.msra.mxu1 %v5388_v26  ;;  %5407 = vmatpush3.bf16.msra.mxu0 %v5388_v26  ;;  %v7510_v7 = vmax.f32 %v7044_v39, 0.0 }
 0x648   :  { %v2656_v8 = vpop.f32.mrb[78].mxu0  ;;  %5390 = vmatprep.subr.bf16.mxu1 %v7524_v19  ;;  %5408 = vmatprep.subr.bf16.mxu0 %v7524_v19 }
 0x649   :  { %v7048_v9 = vadd.f32 %v3952_v35, %v2656_v8  ;;  %v4993_v1 = vpop.f32.mrb[79].mxu0 }
 0x64b   :  { %v7509_v56 = vmax.f32 %v7048_v9, 0.0 }
 0x64c   :  { %v2661_v24 = vpop.f32.mrb[80].mxu0 }
 0x64d   :  { %v5391_v3 = vpack.c.bf16 %v7509_v56, %v7510_v7  ;;  %v4996_v31 = vpop.f32.mrb[81].mxu0  ;;  %v7056_v45 = vadd.f32 %v3952_v35, %v2661_v24 }
 0x64f   :  { %5392 = vmatpush3.bf16.msra.mxu1 %v5391_v3  ;;  %5410 = vmatpush3.bf16.msra.mxu0 %v5391_v3  ;;  %v2698_v1 = vmax.f32 %v7056_v45, 0.0 }
 0x650   :  { %v2666_v26 = vpop.f32.mrb[82].mxu0  ;;  %5393 = vmatprep.subr.bf16.mxu1 %v7524_v19  ;;  %5411 = vmatprep.subr.bf16.mxu0 %v7524_v19 }
 0x651   :  { %v7060_v57 = vadd.f32 %v3952_v35, %v2666_v26  ;;  %v4999_v8 = vpop.f32.mrb[83].mxu0 }
 0x653   :  { %v7513_v0 = vmax.f32 %v7060_v57, 0.0 }
 0x654   :  { %v2671_v13 = vpop.f32.mrb[84].mxu0 }
 0x655   :  { %v5394_v24 = vpack.c.bf16 %v7513_v0, %v2698_v1  ;;  %v5002_v31 = vpop.f32.mrb[85].mxu0  ;;  %v7068_v3 = vadd.f32 %v3952_v35, %v2671_v13 }
 0x657   :  { %5395 = vmatpush3.bf16.msra.mxu1 %v5394_v24  ;;  %5413 = vmatpush3.bf16.msra.mxu0 %v5394_v24  ;;  %v2700_v7 = vmax.f32 %v7068_v3, 0.0 }
 0x658   :  { %v2676_v56 = vpop.f32.mrb[86].mxu0  ;;  %5396 = vmatprep.subr.bf16.mxu1 %v7524_v19  ;;  %5414 = vmatprep.subr.bf16.mxu0 %v7524_v19 }
 0x659   :  { %v7072_v26 = vadd.f32 %v3952_v35, %v2676_v56  ;;  %v5005_v8 = vpop.f32.mrb[87].mxu0  ;;  %v2830_v56 = vld [vmem:[%s7479_s11] sm:$0xff] }
 0x65a   :  { %v2831_v8 = vld [vmem:[%s7479_s11 + $0x8] sm:$0xff] }
 0x65b   :  { %v2701_v48 = vmax.f32 %v7072_v26, 0.0 }
 0x65c   :  { %v2681_v58 = vpop.f32.mrb[88].mxu0 }
 0x65d   :  { %v5397_v13 = vpack.c.bf16 %v2701_v48, %v2700_v7  ;;  %v5491_v31 = vadd.f32 %v3952_v35, %v2681_v58  ;;  %v5008_v24 = vpop.f32.mrb[89].mxu0  ;;  %v5400_v58 = vpack.c.bf16 %v2831_v8, %v2830_v56  ;;  %v2832_v35 = vld [vmem:[%s7479_s11 + $0x10] sm:$0xff] }
 0x65f   :  { %5398 = vmatpush3.bf16.msra.mxu1 %v5397_v13  ;;  %5416 = vmatpush3.bf16.msra.mxu0 %v5397_v13  ;;  %v7088_v0 = vmax.f32 %v5491_v31, 0.0  ;;  %v2833_v13 = vld [vmem:[%s7479_s11 + $0x18] sm:$0xff] }
 0x660   :  { %5025 = vmatprep.subr.mxu1 %v7526_v21  ;;  %5105 = vmatprep.subr.mxu0 %v7526_v21 }
 0x663   :  { %5026 = vmatpush3.msra.mxu1 %v7088_v0  ;;  %5106 = vmatpush3.msra.mxu0 %v7088_v0 }
 0x664   :  { %5028 = vmatmul.mubr.msk.f32.vlgmr.msra.gmra.mrb[90].mxu1 %vm273_vm6, %v6747_v34  ;;  %5108 = vmatmul.mubr.msk.f32.vlgmr.msra.gmra.mrb[90].mxu0 %vm273_vm6, %v5882_v37  ;;  %v5403_v37 = vpack.c.bf16 %v2833_v13, %v2832_v35  ;;  %v3101_v34 = vld [vmem:[%s7479_s11 + $0x30] sm:$0xff] }
 0x665   :  { %5030 = vmatprep.mubr.msk.f32.mxu1 %vm5672_vm0, %v7526_v21  ;;  %5110 = vmatprep.mubr.msk.f32.mxu0 %vm5672_vm0, %v7526_v21 }
 0x666   :  { %5399 = vmatprep.subr.bf16.mxu1 %v7524_v19  ;;  %5429 = vmatprep.subr.bf16.mxu0 %v7524_v19 }
 0x667   :  { %5401 = vmatpush3.bf16.msra.mxu1 %v5400_v58 }
 0x668   :  { %5031 = vmatmul.mubr.msk.f32.gmra.mrb[92].mxu1 %vm273_vm6, %v6767_v28  ;;  %5111 = vmatmul.mubr.msk.f32.gmra.mrb[92].mxu0 %vm273_vm6, %v5911_v46  ;;  %v3099_v46 = vld [vmem:[%s7479_s11 + $0x20] sm:$0xff]  ;;  %v3102_v28 = vld [vmem:[%s7479_s11 + $0x38] sm:$0xff] }
 0x669   :  { %5033 = vmatprep.mubr.msk.f32.mxu1 %vm5672_vm0, %v7526_v21  ;;  %5113 = vmatprep.mubr.msk.f32.mxu0 %vm5672_vm0, %v7526_v21 }
 0x66a   :  { %5402 = vmatprep.subr.bf16.mxu1 %v7524_v19 }
 0x66b   :  { %5404 = vmatpush3.bf16.msra.mxu1 %v5403_v37 }
 0x66c   :  { %5034 = vmatmul.mubr.msk.f32.gmra.mrb[94].mxu1 %vm273_vm6, %v6781_v20  ;;  %5114 = vmatmul.mubr.msk.f32.gmra.mrb[94].mxu0 %vm273_vm6, %v5939_v54  ;;  %v3100_v54 = vld [vmem:[%s7479_s11 + $0x28] sm:$0xff] }
 0x66d   :  { %5036 = vmatprep.mubr.msk.f32.mxu1 %vm5672_vm0, %v7526_v21  ;;  %5116 = vmatprep.mubr.msk.f32.mxu0 %vm5672_vm0, %v7526_v21 }
 0x66e   :  { %5417 = vmatprep.subr.bf16.mxu1 %v7524_v19 }
 0x670   :  { %5037 = vmatmul.mubr.msk.f32.gmra.mrb[96].mxu1 %vm273_vm6, %v6794_v29  ;;  %5117 = vmatmul.mubr.msk.f32.gmra.mrb[96].mxu0 %vm273_vm6, %v5957_v60 }
 0x671   :  { %5039 = vmatprep.mubr.msk.f32.mxu1 %vm5672_vm0, %v7526_v21  ;;  %5119 = vmatprep.mubr.msk.f32.mxu0 %vm5672_vm0, %v7526_v21 }
 0x674   :  { %5040 = vmatmul.mubr.msk.f32.gmra.mrb[98].mxu1 %vm273_vm6, %v6807_v55  ;;  %5120 = vmatmul.mubr.msk.f32.gmra.mrb[98].mxu0 %vm273_vm6, %v5981_v12  ;;  %v5421_v55 = vpack.c.bf16 %v3102_v28, %v3101_v34 }
 0x675   :  { %5042 = vmatprep.mubr.msk.f32.mxu1 %vm5672_vm0, %v7526_v21  ;;  %5122 = vmatprep.mubr.msk.f32.mxu0 %vm5672_vm0, %v7526_v21 }
 0x678   :  { %5043 = vmatmul.mubr.msk.f32.gmra.mrb[100].mxu1 %vm273_vm6, %v6819_v10  ;;  %5123 = vmatmul.mubr.msk.f32.gmra.mrb[100].mxu0 %vm273_vm6, %v6003_v27  ;;  %v5418_v27 = vpack.c.bf16 %v3100_v54, %v3099_v46 }
 0x679   :  { %5045 = vmatprep.mubr.msk.f32.mxu1 %vm5672_vm0, %v7526_v21  ;;  %5125 = vmatprep.mubr.msk.f32.mxu0 %vm5672_vm0, %v7526_v21 }
 0x67c   :  { %5046 = vmatmul.mubr.msk.f32.gmra.mrb[102].mxu1 %vm273_vm6, %v6831_v4  ;;  %5126 = vmatmul.mubr.msk.f32.gmra.mrb[102].mxu0 %vm273_vm6, %v6022_v38 }
 0x67d   :  { %5048 = vmatprep.mubr.msk.f32.mxu1 %vm5672_vm0, %v7526_v21  ;;  %5128 = vmatprep.mubr.msk.f32.mxu0 %vm5672_vm0, %v7526_v21 }
 0x680   :  { %5049 = vmatmul.mubr.msk.f32.gmra.mrb[104].mxu1 %vm273_vm6, %v6843_v5  ;;  %5129 = vmatmul.mubr.msk.f32.gmra.mrb[104].mxu0 %vm273_vm6, %v6048_v50 }
 0x681   :  { %5051 = vmatprep.mubr.msk.f32.mxu1 %vm5672_vm0, %v7526_v21  ;;  %5131 = vmatprep.mubr.msk.f32.mxu0 %vm5672_vm0, %v7526_v21 }
 0x684   :  { %5052 = vmatmul.mubr.msk.f32.gmra.mrb[106].mxu1 %vm273_vm6, %v6855_v51  ;;  %5132 = vmatmul.mubr.msk.f32.gmra.mrb[106].mxu0 %vm273_vm6, %v6065_v53 }
 0x685   :  { %5062 = vmatprep.mubr.msk.f32.mxu1 %vm5672_vm0, %v7526_v21  ;;  %5222 = vmatprep.mubr.msk.f32.mxu0 %vm5672_vm0, %v7526_v21 }
 0x737   :  { %v2777_v60 = vpop.f32.mrb[90].mxu1  ;;  %v7180_v12 = vpop.f32.mrb[90].mxu0 }
 0x738   :  { %v2821_v38 = vmul.f32 %v2777_v60, %v6871_v52  ;;  %v5029_v50 = vpop.f32.mrb[91].mxu1  ;;  %v5109_v53 = vpop.f32.mrb[91].mxu0 }
 0x73a   :  { %5063 = vmatmul.mubr.msk.f32.vlgmr.msra.gmra.mrb[108].mxu1 %vm1288_vm9, %v2821_v38 }
 0x73b   :  { %v2782_v20 = vpop.f32.mrb[92].mxu1  ;;  %v7190_v29 = vpop.f32.mrb[92].mxu0  ;;  %5065 = vmatprep.mubr.msk.f32.mxu1 %vm5672_vm0, %v7526_v21  ;;  %5419 = vmatpush3.bf16.msra.mxu1 %v5418_v27 }
 0x73c   :  { %v2822_v10 = vmul.f32 %v2782_v20, %v6882_v63  ;;  %v5032_v4 = vpop.f32.mrb[93].mxu1  ;;  %v5112_v5 = vpop.f32.mrb[93].mxu0  ;;  %5420 = vmatprep.subr.bf16.mxu1 %v7524_v19 }
 0x73e   :  { %5066 = vmatmul.mubr.msk.f32.gmra.mrb[110].mxu1 %vm1288_vm9, %v2822_v10 }
 0x73f   :  { %v2787_v51 = vpop.f32.mrb[94].mxu1  ;;  %v7197_v52 = vpop.f32.mrb[94].mxu0  ;;  %5068 = vmatprep.mubr.msk.f32.mxu1 %vm5672_vm0, %v7526_v21  ;;  %5422 = vmatpush3.bf16.msra.mxu1 %v5421_v55 }
 0x740   :  { %v2823_v31 = vmul.f32 %v2787_v51, %v6891_v41  ;;  %v5035_v24 = vpop.f32.mrb[95].mxu1  ;;  %v5115_v56 = vpop.f32.mrb[95].mxu0  ;;  %5423 = vmatprep.subr.bf16.mxu1 %v7524_v19 }
 0x742   :  { %5069 = vmatmul.mubr.msk.f32.gmra.mrb[112].mxu1 %vm1288_vm9, %v2823_v31 }
 0x743   :  { %v2792_v63 = vpop.f32.mrb[96].mxu1  ;;  %v3061_v8 = vpop.f32.mrb[96].mxu0  ;;  %5071 = vmatprep.mubr.msk.f32.mxu1 %vm5672_vm0, %v7526_v21 }
 0x744   :  { %v2824_v58 = vmul.f32 %v2792_v63, %v6900_v44  ;;  %v5038_v35 = vpop.f32.mrb[97].mxu1  ;;  %v5118_v13 = vpop.f32.mrb[97].mxu0  ;;  %v3249_v63 = vld [vmem:[%s7479_s11 + $0x40] sm:$0xff] }
 0x745   :  { %v3090_v13 = vmul.f32 %v7180_v12, %v6194_v18  ;;  %v3092_v18 = vmul.f32 %v7197_v52, %v6207_v49  ;;  %v3093_v12 = vmul.f32 %v3061_v8, %v6215_v30 }
 0x746   :  { %5072 = vmatmul.mubr.msk.f32.gmra.mrb[114].mxu1 %vm1288_vm9, %v2824_v58 }
 0x747   :  { %v2797_v37 = vpop.f32.mrb[98].mxu1  ;;  %v3066_v46 = vpop.f32.mrb[98].mxu0  ;;  %5074 = vmatprep.mubr.msk.f32.mxu1 %vm5672_vm0, %v7526_v21 }
 0x748   :  { %v2825_v41 = vmul.f32 %v2797_v37, %v6908_v25  ;;  %v5041_v54 = vpop.f32.mrb[99].mxu1  ;;  %v5121_v60 = vpop.f32.mrb[99].mxu0  ;;  %v3252_v37 = vld [vmem:[%s7479_s11 + $0x58] sm:$0xff] }
 0x749   :  { %v3091_v54 = vmul.f32 %v7190_v29, %v6198_v33  ;;  %v3094_v33 = vmul.f32 %v3066_v46, %v6221_v40 }
 0x74a   :  { %5075 = vmatmul.mubr.msk.f32.gmra.mrb[116].mxu1 %vm1288_vm9, %v2825_v41 }
 0x74b   :  { %v2802_v27 = vpop.f32.mrb[100].mxu1  ;;  %v3071_v38 = vpop.f32.mrb[100].mxu0  ;;  %5077 = vmatprep.mubr.msk.f32.mxu1 %vm5672_vm0, %v7526_v21 }
 0x74c   :  { %v2826_v44 = vmul.f32 %v2802_v27, %v6914_v23  ;;  %v5044_v50 = vpop.f32.mrb[101].mxu1  ;;  %v5124_v53 = vpop.f32.mrb[101].mxu0  ;;  %v3095_v49 = vmul.f32 %v3071_v38, %v6226_v61 }
 0x74e   :  { %5078 = vmatmul.mubr.msk.f32.gmra.mrb[118].mxu1 %vm1288_vm9, %v2826_v44 }
 0x74f   :  { %v2807_v34 = vpop.f32.mrb[102].mxu1  ;;  %v3076_v28 = vpop.f32.mrb[102].mxu0  ;;  %5080 = vmatprep.mubr.msk.f32.mxu1 %vm5672_vm0, %v7526_v21 }
 0x750   :  { %v2827_v25 = vmul.f32 %v2807_v34, %v6920_v59  ;;  %v5047_v20 = vpop.f32.mrb[103].mxu1  ;;  %v5127_v55 = vpop.f32.mrb[103].mxu0  ;;  %v3096_v30 = vmul.f32 %v3076_v28, %v6234_v32  ;;  %v7547_v32 = vmax.f32 %v7034_v11, 0.0  ;;  %v7550_v11 = vmax.f32 %v7048_v9, 0.0 }
 0x752   :  { %5081 = vmatmul.mubr.msk.f32.gmra.mrb[120].mxu1 %vm1288_vm9, %v2827_v25 }
 0x753   :  { %v2812_v10 = vpop.f32.mrb[104].mxu1  ;;  %v3081_v4 = vpop.f32.mrb[104].mxu0  ;;  %5083 = vmatprep.mubr.msk.f32.mxu1 %vm5672_vm0, %v7526_v21 }
 0x754   :  { %v2828_v23 = vmul.f32 %v2812_v10, %v6926_v62  ;;  %v5050_v5 = vpop.f32.mrb[105].mxu1  ;;  %v5130_v51 = vpop.f32.mrb[105].mxu0  ;;  %v3250_v62 = vld [vmem:[%s7479_s11 + $0x48] sm:$0xff]  ;;  %v3097_v40 = vmul.f32 %v3081_v4, %v6242_v22  ;;  %v7548_v22 = vmax.f32 %v7036_v14, 0.0  ;;  %v7551_v14 = vmax.f32 %v7060_v57, 0.0 }
 0x755   :  { %v5424_v35 = vpack.c.bf16 %v3250_v62, %v3249_v63 }
 0x756   :  { %5084 = vmatmul.mubr.msk.f32.gmra.mrb[122].mxu1 %vm1288_vm9, %v2828_v23 }
 0x757   :  { %v2817_v31 = vpop.f32.mrb[106].mxu1  ;;  %v3086_v24 = vpop.f32.mrb[106].mxu0  ;;  %5086 = vmatprep.mubr.msk.f32.mxu1 %vm5672_vm0, %v7526_v21 }
 0x758   :  { %v2829_v59 = vmul.f32 %v2817_v31, %v6932_v16  ;;  %v5053_v56 = vpop.f32.mrb[107].mxu1  ;;  %v5133_v58 = vpop.f32.mrb[107].mxu0  ;;  %v3251_v16 = vld [vmem:[%s7479_s11 + $0x50] sm:$0xff]  ;;  %v3098_v61 = vmul.f32 %v3086_v24, %v6250_v43  ;;  %v7549_v43 = vmax.f32 %v7044_v39, 0.0  ;;  %v4007_v39 = vld [vmem:[%s7480_s12] ss:$0 sm:$0xff] }
 0x759   :  { %v5427_v41 = vpack.c.bf16 %v3252_v37, %v3251_v16 }
 0x75a   :  { %5087 = vmatmul.mubr.msk.f32.gmra.mrb[124].mxu1 %vm1288_vm9, %v2829_v59 }
 0x75b   :  { %5142 = vmatprep.mubr.msk.f32.mxu1 %vm5672_vm0, %v7526_v21 }
 0x75e   :  { %5143 = vmatmul.mubr.msk.f32.vlgmr.msra.gmra.mrb[108].mxu1 %vm1288_vm9, %v3090_v13 }
 0x75f   :  { %5145 = vmatprep.mubr.msk.f32.mxu1 %vm5672_vm0, %v7526_v21  ;;  %5425 = vmatpush3.bf16.msra.mxu1 %v5424_v35 }
 0x760   :  { %5426 = vmatprep.subr.bf16.mxu1 %v7524_v19 }
 0x762   :  { %5146 = vmatmul.mubr.msk.f32.gmra.mrb[110].mxu1 %vm1288_vm9, %v3091_v54 }
 0x763   :  { %5148 = vmatprep.mubr.msk.f32.mxu1 %vm5672_vm0, %v7526_v21  ;;  %5428 = vmatpush3.bf16.msra.mxu1 %v5427_v41 }
 0x766   :  { %5149 = vmatmul.mubr.msk.f32.gmra.mrb[112].mxu1 %vm1288_vm9, %v3092_v18 }
 0x767   :  { %5151 = vmatprep.mubr.msk.f32.mxu1 %vm5672_vm0, %v7526_v21 }
 0x76a   :  { %5152 = vmatmul.mubr.msk.f32.gmra.mrb[114].mxu1 %vm1288_vm9, %v3093_v12 }
 0x76b   :  { %5154 = vmatprep.mubr.msk.f32.mxu1 %vm5672_vm0, %v7526_v21 }
 0x76e   :  { %5155 = vmatmul.mubr.msk.f32.gmra.mrb[116].mxu1 %vm1288_vm9, %v3094_v33 }
 0x76f   :  { %5157 = vmatprep.mubr.msk.f32.mxu1 %vm5672_vm0, %v7526_v21 }
 0x772   :  { %5158 = vmatmul.mubr.msk.f32.gmra.mrb[118].mxu1 %vm1288_vm9, %v3095_v49 }
 0x773   :  { %5160 = vmatprep.mubr.msk.f32.mxu1 %vm5672_vm0, %v7526_v21 }
 0x776   :  { %5161 = vmatmul.mubr.msk.f32.gmra.mrb[120].mxu1 %vm1288_vm9, %v3096_v30 }
 0x777   :  { %5163 = vmatprep.mubr.msk.f32.mxu1 %vm5672_vm0, %v7526_v21 }
 0x77a   :  { %5164 = vmatmul.mubr.msk.f32.gmra.mrb[122].mxu1 %vm1288_vm9, %v3097_v40 }
 0x77b   :  { %5166 = vmatprep.mubr.msk.f32.mxu1 %vm5672_vm0, %v7526_v21 }
 0x77e   :  { %5167 = vmatmul.mubr.msk.f32.gmra.mrb[124].mxu1 %vm1288_vm9, %v3098_v61 }
 0x77f   :  { %5177 = vmatprep.mubr.msk.f32.mxu1 %vm5672_vm0, %v7526_v21 }
 0x782   :  { %5178 = vmatmul.mubr.msk.f32.vlgmr.msra.gmra.mrb[108].mxu1 %vm1288_vm9, %v7547_v32 }
 0x783   :  { %5180 = vmatprep.mubr.msk.f32.mxu1 %vm5672_vm0, %v7526_v21 }
 0x786   :  { %5181 = vmatmul.mubr.msk.f32.gmra.mrb[110].mxu1 %vm1288_vm9, %v7548_v22 }
 0x787   :  { %5183 = vmatprep.mubr.msk.f32.mxu1 %vm5672_vm0, %v7526_v21 }
 0x78a   :  { %5184 = vmatmul.mubr.msk.f32.gmra.mrb[112].mxu1 %vm1288_vm9, %v7549_v43  ;;  %v7552_v43 = vld [vmem:[#allocation12_spill] sm:$0xff] }
 0x78b   :  { %5186 = vmatprep.mubr.msk.f32.mxu1 %vm5672_vm0, %v7526_v21 }
 0x78e   :  { %5187 = vmatmul.mubr.msk.f32.gmra.mrb[114].mxu1 %vm1288_vm9, %v7550_v11 }
 0x78f   :  { %5189 = vmatprep.mubr.msk.f32.mxu1 %vm5672_vm0, %v7526_v21 }
 0x792   :  { %5190 = vmatmul.mubr.msk.f32.gmra.mrb[116].mxu1 %vm1288_vm9, %v2698_v1 }
 0x793   :  { %5192 = vmatprep.mubr.msk.f32.mxu1 %vm5672_vm0, %v7526_v21 }
 0x796   :  { %5193 = vmatmul.mubr.msk.f32.gmra.mrb[118].mxu1 %vm1288_vm9, %v7551_v14 }
 0x797   :  { %5195 = vmatprep.mubr.msk.f32.mxu1 %vm5672_vm0, %v7526_v21 }
 0x79a   :  { %5196 = vmatmul.mubr.msk.f32.gmra.mrb[120].mxu1 %vm1288_vm9, %v2700_v7 }
 0x79b   :  { %5198 = vmatprep.mubr.msk.f32.mxu1 %vm5672_vm0, %v7526_v21 }
 0x79e   :  { %5199 = vmatmul.mubr.msk.f32.gmra.mrb[122].mxu1 %vm1288_vm9, %v2701_v48 }
 0x79f   :  { %5201 = vmatprep.mubr.msk.f32.mxu1 %vm5672_vm0, %v7526_v21 }
 0x7a2   :  { %5202 = vmatmul.mubr.msk.f32.gmra.mrb[124].mxu1 %vm1288_vm9, %v7088_v0 }
 0x855   :  { %v3346_v9 = vpop.f32.mrb[108].mxu1 }
 0x856   :  { %v5492_v45 = vadd.f32 %v4007_v39, %v3346_v9  ;;  %v5179_v7 = vpop.f32.mrb[109].mxu1 }
 0x858   :  { %v3399_v57 = vmax.f32 %v5492_v45, 0.0  ;;  %v7553_v45 = vld [vmem:[#allocation3_spill] sm:$0xff] }
 0x859   :  { %v3351_v1 = vpop.f32.mrb[110].mxu1 }
 0x85a   :  { %v5493_v3 = vadd.f32 %v4007_v39, %v3351_v1  ;;  %v5182_v29 = vpop.f32.mrb[111].mxu1  ;;  %v7328_v26 = vadd.f32 %v3399_v57, %v6687_v36 }
 0x85c   :  { %v3400_v48 = vmax.f32 %v5493_v3, 0.0  ;;  %v3417_v52 = vmax.f32 %v7328_v26, 0.0 }
 0x85d   :  { %v3356_v8 = vpop.f32.mrb[112].mxu1 }
 0x85e   :  { %v5494_v46 = vadd.f32 %v4007_v39, %v3356_v8  ;;  %v5185_v0 = vpop.f32.mrb[113].mxu1  ;;  %v3428_v60 = vsel %vm1288_vm9, %v3417_v52, 0.0  ;;  %v7335_v27 = vadd.f32 %v3400_v48, %v6689_v17 }
 0x85f   :  { %3429 = vadd.xlane.f32.xlu1 %v3428_v60 }
 0x860   :  { %v3401_v38 = vmax.f32 %v5494_v46, 0.0  ;;  %v3418_v44 = vmax.f32 %v7335_v27, 0.0 }
 0x861   :  { %v3361_v50 = vpop.f32.mrb[114].mxu1 }
 0x862   :  { %v5495_v36 = vadd.f32 %v4007_v39, %v3361_v50  ;;  %v5188_v53 = vpop.f32.mrb[115].mxu1  ;;  %v3431_v34 = vsel %vm1288_vm9, %v3418_v44, 0.0  ;;  %v7340_v28 = vadd.f32 %v3401_v38, %v6701_v47 }
 0x863   :  { %3432 = vadd.xlane.f32.xlu0 %v3431_v34 }
 0x864   :  { %v3402_v25 = vmax.f32 %v5495_v36, 0.0  ;;  %v3419_v20 = vmax.f32 %v7340_v28, 0.0 }
 0x865   :  { %v3366_v55 = vpop.f32.mrb[116].mxu1 }
 0x866   :  { %v5496_v10 = vadd.f32 %v4007_v39, %v3366_v55  ;;  %v5191_v17 = vpop.f32.mrb[117].mxu1  ;;  %v3434_v4 = vsel %vm1288_vm9, %v3419_v20, 0.0  ;;  %v3411_v23 = vadd.f32 %v3402_v25, %v6703_v15 }
 0x867   :  { %3435 = vadd.xlane.f32.xlu0 %v3434_v4 }
 0x868   :  { %v3403_v5 = vmax.f32 %v5496_v10, 0.0  ;;  %v3420_v51 = vmax.f32 %v3411_v23, 0.0 }
 0x869   :  { %v3371_v31 = vpop.f32.mrb[118].mxu1 }
 0x86a   :  { %v5497_v24 = vadd.f32 %v4007_v39, %v3371_v31  ;;  %v5194_v59 = vpop.f32.mrb[119].mxu1  ;;  %v3437_v47 = vsel %vm1288_vm9, %v3420_v51, 0.0  ;;  %v3412_v56 = vadd.f32 %v3403_v5, %v6715_v2 }
 0x86b   :  { %3438 = vadd.xlane.f32.xlu1 %v3437_v47 }
 0x86c   :  { %v3404_v63 = vmax.f32 %v5497_v24, 0.0  ;;  %v3421_v62 = vmax.f32 %v3412_v56, 0.0 }
 0x86d   :  { %v3376_v58 = vpop.f32.mrb[120].mxu1 }
 0x86e   :  { %v5498_v35 = vadd.f32 %v4007_v39, %v3376_v58  ;;  %v5197_v13 = vpop.f32.mrb[121].mxu1  ;;  %v3440_v16 = vsel %vm1288_vm9, %v3421_v62, 0.0  ;;  %v3413_v15 = vadd.f32 %v3404_v63, %v6717_v6 }
 0x86f   :  { %3441 = vadd.xlane.f32.xlu0 %v3440_v16 }
 0x870   :  { %v3405_v37 = vmax.f32 %v5498_v35, 0.0  ;;  %v3422_v41 = vmax.f32 %v3413_v15, 0.0 }
 0x871   :  { %v3381_v54 = vpop.f32.mrb[122].mxu1 }
 0x872   :  { %v5499_v18 = vadd.f32 %v4007_v39, %v3381_v54  ;;  %v5200_v12 = vpop.f32.mrb[123].mxu1  ;;  %v3443_v33 = vsel %vm1288_vm9, %v3422_v41, 0.0  ;;  %v3414_v2 = vadd.f32 %v3405_v37, %v6729_v42 }
 0x873   :  { %3444 = vadd.xlane.f32.xlu1 %v3443_v33  ;;  %v3586_v33 = vld [vmem:[%s7481_s2] sm:$0xff] }
 0x874   :  { %v3406_v49 = vmax.f32 %v5499_v18, 0.0  ;;  %v3423_v30 = vmax.f32 %v3414_v2, 0.0 }
 0x875   :  { %v3386_v40 = vpop.f32.mrb[124].mxu1 }
 0x876   :  { %v5500_v61 = vadd.f32 %v4007_v39, %v3386_v40  ;;  %v5203_v32 = vpop.f32.mrb[125].mxu1  ;;  %v3446_v22 = vsel %vm1288_vm9, %v3423_v30, 0.0  ;;  %v3415_v6 = vadd.f32 %v3406_v49, %v7552_v43 }
 0x877   :  { %3447 = vadd.xlane.f32.xlu0 %v3446_v22 }
 0x878   :  { %v3407_v11 = vmax.f32 %v5500_v61, 0.0  ;;  %v3424_v14 = vmax.f32 %v3415_v6, 0.0 }
 0x87a   :  { %v3449_v9 = vsel %vm1288_vm9, %v3424_v14, 0.0  ;;  %v3416_v7 = vadd.f32 %v3407_v11, %v7553_v45 }
 0x87b   :  { %3450 = vadd.xlane.f32.xlu1 %v3449_v9 }
 0x87c   :  { %v3425_v57 = vmax.f32 %v3416_v7, 0.0 }
 0x87e   :  { %v3452_v42 = vsel %vm1288_vm9, %v3425_v57, 0.0 }
 0x87f   :  { %3453 = vadd.xlane.f32.xlu0 %v3452_v42 }
 0x8ec   :  { %v3430_v1 = vpop.xlane.xlu1 %3429 }
 0x8ed   :  { %v3456_v3 = vmul.f32 0.03125, %v3430_v1  ;;  %v7410_v1 = vld [vmem:[%s7482_s13] ss:$0 sm:$0xff]  ;;  %s5675_s13 = smov 32  }
 0x8ef   :  { %v7358_v39 = vsub.f32 %v3417_v52, %v3456_v3 }
 0x8f0   :  { %v3433_v29 = vpop.xlane.xlu0 %3432 }
 0x8f1   :  { %v3457_v48 = vmul.f32 0.03125, %v3433_v29  ;;  %v3474_v8 = vmul.f32 %v7358_v39, %v7358_v39 }
 0x8f3   :  { %v7362_v46 = vsub.f32 %v3418_v44, %v3457_v48  ;;  %v3483_v0 = vsel %vm1288_vm9, %v3474_v8, 0.0 }
 0x8f4   :  { %v3436_v60 = vpop.xlane.xlu0 %3435  ;;  %3484 = vadd.xlane.f32.xlu1 %v3483_v0 }
 0x8f5   :  { %v3458_v27 = vmul.f32 0.03125, %v3436_v60  ;;  %v3475_v38 = vmul.f32 %v7362_v46, %v7362_v46 }
 0x8f7   :  { %v7367_v50 = vsub.f32 %v3419_v20, %v3458_v27  ;;  %v3486_v26 = vsel %vm1288_vm9, %v3475_v38, 0.0 }
 0x8f8   :  { %v3439_v52 = vpop.xlane.xlu1 %3438  ;;  %3487 = vadd.xlane.f32.xlu0 %v3486_v26 }
 0x8f9   :  { %v3459_v36 = vmul.f32 0.03125, %v3439_v52  ;;  %v3476_v53 = vmul.f32 %v7367_v50, %v7367_v50 }
 0x8fb   :  { %v7372_v44 = vsub.f32 %v3420_v51, %v3459_v36  ;;  %v3489_v34 = vsel %vm1288_vm9, %v3476_v53, 0.0 }
 0x8fc   :  { %v3442_v28 = vpop.xlane.xlu0 %3441  ;;  %3490 = vadd.xlane.f32.xlu1 %v3489_v34 }
 0x8fd   :  { %v3460_v25 = vmul.f32 0.03125, %v3442_v28  ;;  %v3477_v55 = vmul.f32 %v7372_v44, %v7372_v44 }
 0x8ff   :  { %v7377_v20 = vsub.f32 %v3421_v62, %v3460_v25  ;;  %v3492_v10 = vsel %vm1288_vm9, %v3477_v55, 0.0 }
 0x900   :  { %v3445_v17 = vpop.xlane.xlu1 %3444  ;;  %3493 = vadd.xlane.f32.xlu0 %v3492_v10 }
 0x901   :  { %v3461_v4 = vmul.f32 0.03125, %v3445_v17  ;;  %v3478_v23 = vmul.f32 %v7377_v20, %v7377_v20 }
 0x903   :  { %v7382_v5 = vsub.f32 %v3422_v41, %v3461_v4  ;;  %v3495_v51 = vsel %vm1288_vm9, %v3478_v23, 0.0 }
 0x904   :  { %v3448_v31 = vpop.xlane.xlu0 %3447  ;;  %3496 = vadd.xlane.f32.xlu1 %v3495_v51 }
 0x905   :  { %v3462_v24 = vmul.f32 0.03125, %v3448_v31  ;;  %v3479_v59 = vmul.f32 %v7382_v5, %v7382_v5 }
 0x907   :  { %v7387_v47 = vsub.f32 %v3423_v30, %v3462_v24  ;;  %v3498_v56 = vsel %vm1288_vm9, %v3479_v59, 0.0 }
 0x908   :  { %v3451_v63 = vpop.xlane.xlu1 %3450  ;;  %3499 = vadd.xlane.f32.xlu0 %v3498_v56 }
 0x909   :  { %v3463_v62 = vmul.f32 0.03125, %v3451_v63  ;;  %v3480_v58 = vmul.f32 %v7387_v47, %v7387_v47 }
 0x90b   :  { %v7392_v35 = vsub.f32 %v3424_v14, %v3463_v62  ;;  %v3501_v13 = vsel %vm1288_vm9, %v3480_v58, 0.0 }
 0x90c   :  { %3502 = vadd.xlane.f32.xlu1 %v3501_v13  ;;  %v3454_v16 = vpop.xlane.xlu0 %3453 }
 0x90d   :  { %v3464_v15 = vmul.f32 0.03125, %v3454_v16  ;;  %v3481_v37 = vmul.f32 %v7392_v35, %v7392_v35 }
 0x90f   :  { %v7397_v41 = vsub.f32 %v3425_v57, %v3464_v15  ;;  %v3504_v54 = vsel %vm1288_vm9, %v3481_v37, 0.0 }
 0x910   :  { %3505 = vadd.xlane.f32.xlu0 %v3504_v54 }
 0x911   :  { %v3482_v18 = vmul.f32 %v7397_v41, %v7397_v41 }
 0x913   :  { %v3507_v12 = vsel %vm1288_vm9, %v3482_v18, 0.0 }
 0x914   :  { %3508 = vadd.xlane.f32.xlu1 %v3507_v12 }
 0x926   :  { %3662 = vperm.xlu0 %5651, %v3586_v33  }
 0x981   :  { %v3485_v2 = vpop.xlane.xlu1 %3484 }
 0x982   :  { %v3510_v49 = vmul.f32 0.03125, %v3485_v2 }
 0x984   :  { %v3519_v30 = vadd.f32 1e-05, %v3510_v49 }
 0x985   :  { %v3488_v40 = vpop.xlane.xlu0 %3487 }
 0x986   :  { %5653 = vrsqrt.f32 %v3519_v30  ;;  %v3511_v61 = vmul.f32 0.03125, %v3488_v40 }
 0x988   :  { %v3520_v32 = vadd.f32 1e-05, %v3511_v61  ;;  %v7554_v61 = vld [vmem:[#allocation2_spill] sm:$0xff] }
 0x989   :  { %v3491_v22 = vpop.xlane.xlu1 %3490  ;;  %vm3578_vm2 = vcmp.ge.f32.partialorder %v7554_v61, 1.0  ;;  %vm3579_vm3 = vcmp.le.f32.partialorder %v7554_v61, 8.0  ;;  %vm3582_vm5 = vcmp.eq.f32.partialorder %v7554_v61, 0.0  ;;  %vm3584_vm7 = vcmp.eq.f32.partialorder %v7554_v61, 8.0 }
 0x98a   :  { %5655 = vrsqrt.f32 %v3520_v32  ;;  %v3512_v43 = vmul.f32 0.03125, %v3491_v22  ;;  %vm3580_vm4 = vmand %vm3578_vm2, %vm3579_vm3 }
 0x98c   :  { %v3521_v6 = vadd.f32 1e-05, %v3512_v43 }
 0x98d   :  { %v3494_v11 = vpop.xlane.xlu0 %3493 }
 0x98e   :  { %5657 = vrsqrt.f32 %v3521_v6  ;;  %v3513_v14 = vmul.f32 0.03125, %v3494_v11  ;;  %v3581_v11 = vsel %vm3580_vm4, 0.125, %v7526_v21 }
 0x990   :  { %v5654_v9 = vpop.eup %5653  ;;  %v3522_v45 = vadd.f32 1e-05, %v3513_v14  ;;  %v3585_v14 = vsel %vm3584_vm7, 1.0, %v7526_v21 }
 0x991   :  { %v3537_v7 = vmul.f32 %v5654_v9, %v7358_v39  ;;  %v3497_v57 = vpop.xlane.xlu1 %3496  ;;  %v4054_v39 = vld [vmem:[%s7483_s14] ss:$0 sm:$0xff]  ;;  %s5676_s14 = smov 64  }
 0x992   :  { %5659 = vrsqrt.f32 %v3522_v45  ;;  %v3514_v42 = vmul.f32 0.03125, %v3497_v57 }
 0x993   :  { %v3552_v0 = vmul.f32 %v7410_v1, %v3537_v7 }
 0x994   :  { %v5656_v3 = vpop.eup %5655  ;;  %v3523_v29 = vadd.f32 1e-05, %v3514_v42 }
 0x995   :  { %v3538_v48 = vmul.f32 %v5656_v3, %v7362_v46  ;;  %v3500_v8 = vpop.xlane.xlu0 %3499  ;;  %v3567_v53 = vadd.f32 %v4054_v39, %v3552_v0 }
 0x996   :  { %5661 = vrsqrt.f32 %v3523_v29  ;;  %v3515_v60 = vmul.f32 0.03125, %v3500_v8 }
 0x997   :  { %v3553_v27 = vmul.f32 %v7410_v1, %v3538_v48 }
 0x998   :  { %v5658_v38 = vpop.eup %5657  ;;  %v3524_v26 = vadd.f32 1e-05, %v3515_v60 }
 0x999   :  { %v3539_v52 = vmul.f32 %v5658_v38, %v7367_v50  ;;  %v3503_v36 = vpop.xlane.xlu1 %3502  ;;  %v3568_v34 = vadd.f32 %v4054_v39, %v3553_v27 }
 0x99a   :  { %5663 = vrsqrt.f32 %v3524_v26  ;;  %v3516_v46 = vmul.f32 0.03125, %v3503_v36 }
 0x99b   :  { %v7419_v28 = vpack.c.bf16 %v3568_v34, %v3567_v53  ;;  %v3554_v4 = vmul.f32 %v7410_v1, %v3539_v52 }
 0x99c   :  { %v5660_v25 = vpop.eup %5659  ;;  %v3525_v55 = vadd.f32 1e-05, %v3516_v46 }
 0x99d   :  { %v3540_v10 = vmul.f32 %v5660_v25, %v7372_v44  ;;  %5431 = vmatpush3.bf16.msra.mxu0 %v7419_v28  ;;  %v3506_v17 = vpop.xlane.xlu0 %3505  ;;  %v3569_v56 = vadd.f32 %v4054_v39, %v3554_v4 }
 0x99e   :  { %5665 = vrsqrt.f32 %v3525_v55  ;;  %v3517_v23 = vmul.f32 0.03125, %v3506_v17  ;;  %5432 = vmatprep.subr.bf16.mxu0 %v7524_v19 }
 0x99f   :  { %v3555_v50 = vmul.f32 %v7410_v1, %v3540_v10 }
 0x9a0   :  { %v5662_v51 = vpop.eup %5661  ;;  %v3526_v31 = vadd.f32 1e-05, %v3517_v23 }
 0x9a1   :  { %v3541_v24 = vmul.f32 %v5662_v51, %v7377_v20  ;;  %v3509_v59 = vpop.xlane.xlu1 %3508  ;;  %v3570_v63 = vadd.f32 %v4054_v39, %v3555_v50 }
 0x9a2   :  { %5667 = vrsqrt.f32 %v3526_v31  ;;  %v3518_v44 = vmul.f32 0.03125, %v3509_v59 }
 0x9a3   :  { %v5433_v62 = vpack.c.bf16 %v3570_v63, %v3569_v56  ;;  %v3556_v15 = vmul.f32 %v7410_v1, %v3541_v24 }
 0x9a4   :  { %v5664_v58 = vpop.eup %5663  ;;  %v3527_v13 = vadd.f32 1e-05, %v3518_v44 }
 0x9a5   :  { %v3542_v16 = vmul.f32 %v5664_v58, %v7382_v5  ;;  %5434 = vmatpush3.bf16.msra.mxu0 %v5433_v62  ;;  %v3571_v18 = vadd.f32 %v4054_v39, %v3556_v15  ;;  %v3663_v9 = vpop.permute.xlu0 %3662 }
 0x9a6   :  { %5669 = vrsqrt.f32 %v3527_v13  ;;  %5435 = vmatprep.subr.bf16.mxu0 %v7524_v19 }
 0x9a7   :  { %v3557_v37 = vmul.f32 %v7410_v1, %v3542_v16 }
 0x9a8   :  { %v5666_v54 = vpop.eup %5665 }
 0x9a9   :  { %v3543_v20 = vmul.f32 %v5666_v54, %v7387_v47  ;;  %v3572_v12 = vadd.f32 %v4054_v39, %v3557_v37 }
 0x9ab   :  { %v5436_v33 = vpack.c.bf16 %v3572_v12, %v3571_v18  ;;  %v3558_v5 = vmul.f32 %v7410_v1, %v3543_v20 }
 0x9ac   :  { %v5668_v2 = vpop.eup %5667 }
 0x9ad   :  { %v3544_v49 = vmul.f32 %v5668_v2, %v7392_v35  ;;  %5437 = vmatpush3.bf16.msra.mxu0 %v5436_v33  ;;  %v3573_v32 = vadd.f32 %v4054_v39, %v3558_v5 }
 0x9ae   :  { %5438 = vmatprep.subr.bf16.mxu0 %v7524_v19 }
 0x9af   :  { %v3559_v30 = vmul.f32 %v7410_v1, %v3544_v49 }
 0x9b0   :  { %v5670_v40 = vpop.eup %5669 }
 0x9b1   :  { %v3574_v22 = vadd.f32 %v4054_v39, %v3559_v30  ;;  %v3545_v47 = vmul.f32 %v5670_v40, %v7397_v41  ;;  %v3583_v41 = vsel %vm3582_vm5, 1.0, %v7526_v21 }
 0x9b3   :  { %v5439_v43 = vpack.c.bf16 %v3574_v22, %v3573_v32  ;;  %v3560_v6 = vmul.f32 %v7410_v1, %v3545_v47 }
 0x9b5   :  { %5440 = vmatpush3.bf16.msra.mxu0 %v5439_v43  ;;  %v3575_v35 = vadd.f32 %v4054_v39, %v3560_v6 }
 0x9b6   :  { %5220 = vmatprep.subr.mxu0 %v7526_v21 }
 0x9b9   :  { %5221 = vmatpush3.msra.mxu0 %v3575_v35 }
 0x9ba   :  { %5223 = vmatmul.mubr.msk.f32.vlgmr.msra.gmra.mrb[108].mxu0 %vm273_vm6, %v3581_v11  ;;  %5441 = vmatprep.subr.bf16.mxu0 %v7524_v19 }
 0x9bb   :  { %5443 = vmatpush3.bf16.msra.mxu0 %v7419_v28  ;;  %5243 = vmatprep.mubr.msk.f32.mxu0 %vm5672_vm0, %v7526_v21 }
 0x9bc   :  { %5444 = vmatprep.subr.bf16.mxu0 %v7524_v19 }
 0x9bf   :  { %5446 = vmatpush3.bf16.msra.mxu0 %v5433_v62 }
 0x9c0   :  { %5447 = vmatprep.subr.bf16.mxu0 %v7524_v19 }
 0x9c3   :  { %5449 = vmatpush3.bf16.msra.mxu0 %v5436_v33 }
 0x9c4   :  { %5450 = vmatprep.subr.bf16.mxu0 %v7524_v19 }
 0x9c7   :  { %5452 = vmatpush3.bf16.msra.mxu0 %v5439_v43 }
 0x9c8   :  { %5241 = vmatprep.subr.mxu0 %v7526_v21 }
 0x9cb   :  { %5242 = vmatpush3.msra.mxu0 %v3575_v35 }
 0x9cc   :  { %5244 = vmatmul.mubr.msk.f32.vlgmr.msra.gmra.mrb[110].mxu0 %vm273_vm6, %v3583_v41  ;;  %5453 = vmatprep.subr.bf16.mxu0 %v7524_v19 }
 0x9cd   :  { %5455 = vmatpush3.bf16.msra.mxu0 %v7419_v28  ;;  %5264 = vmatprep.mubr.msk.f32.mxu0 %vm5672_vm0, %v7526_v21  ;;  %vm3823_vm0 = vcmask 523264  }
 0x9ce   :  { %5456 = vmatprep.subr.bf16.mxu0 %v7524_v19 }
 0x9d1   :  { %5458 = vmatpush3.bf16.msra.mxu0 %v5433_v62 }
 0x9d2   :  { %5459 = vmatprep.subr.bf16.mxu0 %v7524_v19 }
 0x9d5   :  { %5461 = vmatpush3.bf16.msra.mxu0 %v5436_v33 }
 0x9d6   :  { %5462 = vmatprep.subr.bf16.mxu0 %v7524_v19 }
 0x9d9   :  { %5464 = vmatpush3.bf16.msra.mxu0 %v5439_v43 }
 0x9da   :  { %5262 = vmatprep.subr.mxu0 %v7526_v21 }
 0x9dd   :  { %5263 = vmatpush3.msra.mxu0 %v3575_v35 }
 0x9de   :  { %5265 = vmatmul.mubr.msk.f32.vlgmr.msra.gmra.mrb[112].mxu0 %vm273_vm6, %v3585_v14 }
 0xa8d   :  { %v3656_v45 = vpop.f32.mrb[108].mxu0 }
 0xa8e   :  { %v3665_v7 = vmul.f32 %v3663_v9, %v3656_v45  ;;  %v5224_v57 = vpop.f32.mrb[109].mxu0 }
 0xa9f   :  { %v3735_v42 = vpop.f32.mrb[110].mxu0 }
 0xaa0   :  { %v3739_v1 = vmul.f32 %v3735_v42, %v3663_v9  ;;  %v5245_v3 = vpop.f32.mrb[111].mxu0 }
 0xaa2   :  { %3815 = vrot.lane.b32.xlu1 %v3739_v1, %s5675_s13 }
 0xab1   :  { %v3809_v19 = vpop.f32.mrb[112].mxu0 }
 0xab2   :  { %v3813_v29 = vmul.f32 %v3809_v19, %v3663_v9  ;;  %v5266_v48 = vpop.f32.mrb[113].mxu0 }
 0xab4   :  { %3819 = vrot.lane.b32.xlu1 %v3813_v29, %s5676_s14 }
 0xb14   :  { %v3816_v8 = vpop.permute.xlu1 %3815 }
 0xb15   :  { %v3822_v21 = vsel %vm1288_vm9, %v3665_v7, %v3816_v8 }
 0xb26   :  { %v3820_v0 = vpop.permute.xlu1 %3819 }
 0xb27   :  { %v3824_v60 = vsel %vm3823_vm0, %v3822_v21, %v3820_v0 }
 0xb28   :  { %v3826_v39 = vsel %vm3825_vm8, %v3824_v60, 0.0 }
 0xb29   :  { %3827 = vst [vmem:[%s7484_s15] sm:$0xff] %v3826_v39 }

// kernel: forward.3
= control target key start
LH: loop header
LB: loop body
LE: loop exit
PB: predicated region body
PF: predicated region fallthrough
CT: control target
= control target key end

     0   :  { %s5165_s6 = smov 2   ;;  %vm186_vm0 = vcmask 261120   ;;  %v5166_v9 = vmov 0.0|0.0   ;;  %s5167_s10 = smov 7   ;;  %vm5168_vm1 = vmmov 0   ;;  %v5169_v10 = vmov 0.0   ;;  %s5946_s0 = inlined_call_operand.smem [shape: u32[43], index: -1, kind: input, shape index: {}] }
   0x1   :  { %s5234_s5 = sld [smem:[%s5946_s0]]   ;;  %4882 = vmatprep.subr.bf16.mxu0 %v5166_v9  ;;  %4513 = vmatprep.mubr.msk.f32.mxu0 %vm5168_vm1, %v5169_v10  ;;  %s5170_s14 = smov 5   ;;  %vm306_vm2 = vcmask 64512   ;;  %vm1396_vm3 = vcmask 523264   ;;  %vm2711_vm6 = vcmask 58400   ;;  %vm2385_vm7 = vcmask 25600  }
   0x2   :  { %s4225_s9 = sld [smem:[%s5946_s0 + %s5165_s6]]   ;;  %4516 = vmatprep.subr.mxu1 %v5169_v10  ;;  %4518 = vmatprep.mubr.msk.f32.mxu1 %vm5168_vm1, %v5169_v10  ;;  %s5171_s18 = smov 6   ;;  %vm3047_vm10 = vcmask 31744  }
   0x3   :  { %s4230_s13 = sld [smem:[%s5946_s0 + %s5167_s10]]   ;;  %s5172_s22 = smov 8  }
   0x4   :  { %s4228_s17 = sld [smem:[%s5946_s0 + %s5170_s14]]   ;;  %s5173_s26 = smov 120  }
   0x5   :  { %s4229_s21 = sld [smem:[%s5946_s0 + %s5171_s18]]   ;;  %s5174_s27 = smov 96  }
   0x6   :  { %s4231_s25 = sld [smem:[%s5946_s0 + %s5172_s22]]   ;;  %s5175_s28 = smov 88  }
   0x7   :  { %v5240_v0 = vld [vmem:[%s5234_s5] sm:$0xff]  ;;  %s5176_s29 = smov 3   ;;  %s5177_s3 = smov 56  }
   0x8   :  { %v182_v1 = vld [vmem:[%s4225_s9] sm:$0xff]  ;;  %s4226_s2 = sld [smem:[%s5946_s0 + %s5176_s29]]   ;;  %s5178_s4 = smov 64  }
   0x9   :  { %v5243_v2 = vadd.f32 %v182_v1, %v5240_v0  ;;  %v215_v11 = vld [vmem:[%s4230_s13] sm:$0xff]  ;;  %v216_v12 = vld [vmem:[%s4230_s13 + $0x8] sm:$0xff]  ;;  %v217_v13 = vld [vmem:[%s4230_s13 + $0x10] sm:$0xff]  ;;  %s5179_s6 = smov 80   ;;  %s5180_s7 = smov 112  }
   0xa   :  { %v4883_v14 = vpack.c.bf16 %v216_v12, %v215_v11  ;;  %v218_v15 = vld [vmem:[%s4230_s13 + $0x18] sm:$0xff]  ;;  %v4266_v21 = vld [vmem:[%s4228_s17] ss:$0 sm:$0xff]  ;;  %s5181_s8 = smov 9   ;;  %s5182_s12 = smov 48  }
   0xb   :  { %v187_v3 = vsel %vm186_vm0, %v5243_v2, 0.0  ;;  %v4886_v16 = vpack.c.bf16 %v218_v15, %v217_v13  ;;  %v4267_v23 = vld [vmem:[%s4229_s21] ss:$0 sm:$0xff]  ;;  %s5312_s11 = sld [smem:[%s5946_s0 + %s5181_s8]]   ;;  %s5183_s13 = smov 104  }
   0xc   :  { %188 = vadd.xlane.f32.xlu0 %v187_v3  ;;  %4884 = vmatpush3.bf16.msra.mxu0 %v4883_v14  ;;  %v4268_v26 = vld [vmem:[%s4231_s25] ss:$0 sm:$0xff]  ;;  %s5184_s14 = smov 72   ;;  %s5185_s15 = smov 40  }
   0xd   :  { %4885 = vmatprep.subr.bf16.mxu0 %v5166_v9  ;;  %s5186_s16 = smov 10   ;;  %s5187_s20 = smov 13  }
   0xe   :  { %v5294_v34 = vld [vmem:[%s4226_s2] sm:$0xff]  ;;  %s4233_s19 = sld [smem:[%s5946_s0 + %s5186_s16]]   ;;  %s5188_s25 = smov 15  }
   0xf   :  { %s4236_s24 = sld [smem:[%s5946_s0 + %s5187_s20]]   ;;  %s5189_s1 = smov 11  }
  0x10   :  { %4887 = vmatpush3.bf16.msra.mxu0 %v4886_v16  ;;  %s5391_s30 = sld [smem:[%s5946_s0 + %s5188_s25]]   ;;  %s5190_s9 = smov 12  }
  0x11   :  { %4526 = vmatprep.subr.mxu0 %v5169_v10  ;;  %v300_v54 = vld [vmem:[%s5312_s11 + $0x8] sm:$0xff]  ;;  %v299_v63 = vld [vmem:[%s5312_s11] sm:$0xff]  ;;  %s4234_s8 = sld [smem:[%s5946_s0 + %s5189_s1]]   ;;  %s5192_s18 = smov 16  }
  0x12   :  { %s4239_s21 = sld [smem:[%s5946_s0 + %s5192_s18]]   ;;  %s5194_s23 = smov 1  }
  0x13   :  { %s5198_s16 = smov 23   ;;  %s5199_s20 = smov 24  }
  0x14   :  { %s5200_s25 = smov 27  }
  0x15   :  { %s4250_s1 = sld [smem:[%s5946_s0 + %s5200_s25]]   ;;  %s5205_s25 = smov 20  }
  0x99   :  { %v189_v4 = vpop.xlane.xlu0 %188 }
  0x9a   :  { %v191_v5 = vmul.f32 0.03125, %v189_v4 }
  0x9c   :  { %v192_v6 = vsub.f32 %v5243_v2, %v191_v5 }
  0x9e   :  { %v193_v7 = vmul.f32 %v192_v6, %v192_v6 }
  0xa0   :  { %v194_v8 = vsel %vm186_vm0, %v193_v7, 0.0 }
  0xa1   :  { %195 = vadd.xlane.f32.xlu0 %v194_v8 }
 0x12e   :  { %v196_v17 = vpop.xlane.xlu0 %195 }
 0x12f   :  { %v197_v18 = vmul.f32 0.03125, %v196_v17 }
 0x131   :  { %v198_v19 = vadd.f32 1e-05, %v197_v18 }
 0x133   :  { %5097 = vrsqrt.f32 %v198_v19 }
 0x13d   :  { %v5098_v20 = vpop.eup %5097 }
 0x13e   :  { %v200_v22 = vmul.f32 %v5098_v20, %v192_v6 }
 0x140   :  { %v207_v24 = vmul.f32 %v4266_v21, %v200_v22 }
 0x142   :  { %v214_v25 = vadd.f32 %v4267_v23, %v207_v24 }
 0x144   :  { %4514 = vmatmul.mubr.msk.f32.vlgmr.msra.gmra.mrb[0].mxu0 %vm186_vm0, %v214_v25 }
 0x145   :  { %4528 = vmatprep.mubr.msk.f32.mxu0 %vm5168_vm1, %v5169_v10 }
 0x217   :  { %v295_v27 = vpop.f32.mrb[0].mxu0 }
 0x218   :  { %v5273_v28 = vadd.f32 %v4268_v26, %v295_v27  ;;  %v4515_v29 = vpop.f32.mrb[1].mxu0 }
 0x21a   :  { %470 = vrot.lane.b32.xlu0 %v5273_v28, %s5173_s26  ;;  %304 = vrot.lane.b32.xlu1 %v5273_v28, %s5174_s27  ;;  %s5429_s26 = sld [smem:[%s5946_s0 + %s5194_s23]]  }
 0x21e   :  { %472 = vrot.lane.b32.xlu1 %v5273_v28, %s5175_s28  ;;  %s5195_s28 = smov 17  }
 0x21f   :  { %s4240_s2 = sld [smem:[%s5946_s0 + %s5195_s28]]  }
 0x28c   :  { %v305_v30 = vpop.permute.xlu1 %304  ;;  %v471_v32 = vpop.permute.xlu0 %470 }
 0x28d   :  { %4517 = vmatpush3.xpose.msk.msra.mxu1 %vm306_vm2, %v305_v30 }
 0x28e   :  { %4521 = vmatprep.subr.mxu1 %v5169_v10 }
 0x290   :  { %4519 = vmatmul.mubr.msk.f32.vlgmr.msra.gmra.mrb[0].mxu1 %vm306_vm2, %v5273_v28  ;;  %v473_v31 = vpop.permute.xlu1 %472 }
 0x291   :  { %4527 = vmatpush3.xpose.msk.msra.mxu0 %vm306_vm2, %v473_v31  ;;  %4523 = vmatprep.mubr.msk.f32.mxu1 %vm5168_vm1, %v5169_v10 }
 0x292   :  { %4536 = vmatprep.subr.mxu0 %v5169_v10 }
 0x294   :  { %4529 = vmatmul.mubr.msk.f32.vlgmr.msra.gmra.mrb[2].mxu0 %vm306_vm2, %v471_v32  ;;  %v301_v32 = vld [vmem:[%s5312_s11 + $0x10] sm:$0xff] }
 0x295   :  { %4538 = vmatprep.mubr.msk.f32.mxu0 %vm5168_vm1, %v5169_v10  ;;  %4537 = vmatpush3.msra.mxu0 %v300_v54 }
 0x296   :  { %4546 = vmatprep.subr.mxu0 %v5169_v10 }
 0x363   :  { %v377_v33 = vpop.f32.mrb[0].mxu1 }
 0x364   :  { %v381_v35 = vmul.f32 0.35355338, %v377_v33  ;;  %v4520_v36 = vpop.f32.mrb[1].mxu1 }
 0x366   :  { %v382_v37 = vadd.f32 %v381_v35, %v5294_v34 }
 0x367   :  { %v544_v38 = vpop.f32.mrb[2].mxu0 }
 0x368   :  { %v548_v39 = vmul.f32 0.35355338, %v544_v38  ;;  %v4530_v40 = vpop.f32.mrb[3].mxu0  ;;  %v383_v41 = vsel %vm306_vm2, %v382_v37, -inf }
 0x369   :  { %384 = vmax.xlane.f32.xlu1 %v383_v41 }
 0x36a   :  { %v549_v42 = vadd.f32 %v548_v39, %v5294_v34 }
 0x36c   :  { %v550_v43 = vsel %vm306_vm2, %v549_v42, -inf }
 0x36d   :  { %551 = vmax.xlane.f32.xlu0 %v550_v43 }
 0x383   :  { %561 = vrot.lane.b32.xlu0 %v5273_v28, %s5177_s3  ;;  %s5196_s3 = smov 18  }
 0x384   :  { %s4241_s10 = sld [smem:[%s5946_s0 + %s5196_s3]]   ;;  %s5207_s3 = smov 28  }
 0x3f6   :  { %v385_v44 = vpop.xlane.xlu1 %384 }
 0x3f7   :  { %v386_v45 = vsub.f32 %v382_v37, %v385_v44 }
 0x3f9   :  { %v387_v46 = vmul.f32 1.442695, %v386_v45 }
 0x3fa   :  { %v552_v47 = vpop.xlane.xlu0 %551 }
 0x3fb   :  { %5099 = vpow2.f32 %v387_v46  ;;  %v553_v48 = vsub.f32 %v549_v42, %v552_v47 }
 0x3fd   :  { %v554_v49 = vmul.f32 1.442695, %v553_v48 }
 0x3fe   :  { %v562_v60 = vpop.permute.xlu0 %561 }
 0x3ff   :  { %5101 = vpow2.f32 %v554_v49 }
 0x405   :  { %v5100_v50 = vpop.eup %5099 }
 0x406   :  { %v389_v51 = vsel %vm306_vm2, %v5100_v50, 0.0 }
 0x407   :  { %390 = vadd.xlane.f32.xlu1 %v389_v51 }
 0x409   :  { %v5102_v52 = vpop.eup %5101 }
 0x40a   :  { %v556_v53 = vsel %vm306_vm2, %v5102_v52, 0.0 }
 0x40b   :  { %557 = vadd.xlane.f32.xlu1 %v556_v53 }
 0x41c   :  { %394 = vrot.lane.b32.xlu1 %v5273_v28, %s5178_s4 }
 0x420   :  { %785 = vrot.lane.b32.xlu1 %v5273_v28, %s5179_s6 }
 0x424   :  { %783 = vrot.lane.b32.xlu1 %v5273_v28, %s5180_s7 }
 0x494   :  { %v391_v55 = vpop.xlane.xlu1 %390 }
 0x495   :  { %5103 = vrcp.f32 %v391_v55 }
 0x498   :  { %v558_v56 = vpop.xlane.xlu1 %557 }
 0x499   :  { %5105 = vrcp.f32 %v558_v56  ;;  %v4286_v56 = vld [vmem:[%s4233_s19] ss:$0 sm:$0xff]  ;;  %s4246_s19 = sld [smem:[%s5946_s0 + %s5198_s16]]   ;;  %s5203_s16 = smov 21  }
 0x49c   :  { %v395_v57 = vpop.permute.xlu1 %394 }
 0x49d   :  { %4522 = vmatpush3.msra.mxu1 %v395_v57 }
 0x49e   :  { %4531 = vmatprep.subr.mxu1 %v5169_v10 }
 0x49f   :  { %v5104_v58 = vpop.eup %5103 }
 0x4a0   :  { %v393_v59 = vmul.f32 %v5104_v58, %v5100_v50  ;;  %v786_v4 = vpop.permute.xlu1 %785 }
 0x4a2   :  { %4524 = vmatmul.mubr.msk.f32.vlgmr.msra.gmra.mrb[2].mxu1 %vm306_vm2, %v393_v59 }
 0x4a3   :  { %v5106_v61 = vpop.eup %5105  ;;  %4532 = vmatpush3.msra.mxu1 %v562_v60  ;;  %4533 = vmatprep.mubr.msk.f32.mxu1 %vm5168_vm1, %v5169_v10 }
 0x4a4   :  { %v560_v62 = vmul.f32 %v5106_v61, %v5102_v52  ;;  %4541 = vmatprep.subr.mxu1 %v5169_v10  ;;  %v784_v7 = vpop.permute.xlu1 %783 }
 0x4a6   :  { %4534 = vmatmul.mubr.msk.f32.vlgmr.msra.gmra.mrb[4].mxu1 %vm306_vm2, %v560_v62 }
 0x4a7   :  { %4543 = vmatprep.mubr.msk.f32.mxu1 %vm5168_vm1, %v5169_v10  ;;  %4542 = vmatpush3.msra.mxu1 %v299_v63 }
 0x4a8   :  { %4551 = vmatprep.subr.mxu1 %v5169_v10 }
 0x575   :  { %v466_v1 = vpop.f32.mrb[2].mxu1 }
 0x576   :  { %v4525_v3 = vpop.f32.mrb[3].mxu1  ;;  %4544 = vmatmul.mubr.msk.f32.vlgmr.msra.gmra.mrb[6].mxu1 %vm306_vm2, %v466_v1 }
 0x577   :  { %4553 = vmatprep.mubr.msk.f32.mxu1 %vm5168_vm1, %v5169_v10  ;;  %v1304_v3 = vld [vmem:[%s4236_s24 + $0x8] sm:$0xff] }
 0x579   :  { %v633_v5 = vpop.f32.mrb[4].mxu1 }
 0x57a   :  { %v4535_v6 = vpop.f32.mrb[5].mxu1  ;;  %4539 = vmatmul.mubr.msk.f32.vlgmr.msra.gmra.mrb[4].mxu0 %vm306_vm2, %v633_v5  ;;  %v1305_v5 = vld [vmem:[%s4236_s24 + $0x10] sm:$0xff] }
 0x57b   :  { %4547 = vmatpush3.xpose.msk.msra.mxu0 %vm306_vm2, %v786_v4  ;;  %4548 = vmatprep.mubr.msk.f32.mxu0 %vm5168_vm1, %v5169_v10  ;;  %v1306_v6 = vld [vmem:[%s4236_s24 + $0x18] sm:$0xff] }
 0x57c   :  { %4556 = vmatprep.subr.mxu0 %v5169_v10 }
 0x57e   :  { %4549 = vmatmul.mubr.msk.f32.vlgmr.msra.gmra.mrb[6].mxu0 %vm306_vm2, %v784_v7  ;;  %v4892_v7 = vpack.c.bf16 %v1306_v6, %v1305_v5 }
 0x57f   :  { %4558 = vmatprep.mubr.msk.f32.mxu0 %vm5168_vm1, %v5169_v10  ;;  %4557 = vmatpush3.msra.mxu0 %v301_v32 }
 0x580   :  { %4566 = vmatprep.subr.mxu0 %v5169_v10 }
 0x649   :  { %v779_v8 = vpop.f32.mrb[6].mxu1 }
 0x64a   :  { %v4545_v11 = vpop.f32.mrb[7].mxu1 }
 0x64b   :  { %v1389_v11 = vld [vmem:[%s5391_s30 + $0x8] sm:$0xff] }
 0x64d   :  { %v706_v12 = vpop.f32.mrb[4].mxu0 }
 0x64e   :  { %v780_v13 = vadd.f32 %v779_v8, %v706_v12  ;;  %v4540_v14 = vpop.f32.mrb[5].mxu0  ;;  %v1388_v8 = vld [vmem:[%s5391_s30] sm:$0xff]  ;;  %v1390_v12 = vld [vmem:[%s5391_s30 + $0x10] sm:$0xff] }
 0x64f   :  { %v1391_v14 = vld [vmem:[%s5391_s30 + $0x18] sm:$0xff] }
 0x651   :  { %v857_v15 = vpop.f32.mrb[6].mxu0 }
 0x652   :  { %v861_v16 = vmul.f32 0.35355338, %v857_v15  ;;  %v4550_v17 = vpop.f32.mrb[7].mxu0  ;;  %v4898_v15 = vpack.c.bf16 %v1391_v14, %v1390_v12  ;;  %v1983_v14 = vld [vmem:[%s4250_s1 + $0x8] sm:$0xff] }
 0x653   :  { %v1393_v17 = vld [vmem:[%s5391_s30 + $0x28] sm:$0xff] }
 0x654   :  { %v862_v18 = vadd.f32 %v861_v16, %v5294_v34  ;;  %v1392_v16 = vld [vmem:[%s5391_s30 + $0x20] sm:$0xff] }
 0x656   :  { %v863_v19 = vsel %vm306_vm2, %v862_v18, -inf }
 0x657   :  { %864 = vmax.xlane.f32.xlu1 %v863_v19 }
 0x668   :  { %874 = vrot.lane.b32.xlu1 %v5273_v28, %s5182_s12  ;;  %s4235_s12 = sld [smem:[%s5946_s0 + %s5190_s9]]  }
 0x66c   :  { %1024 = vrot.lane.b32.xlu1 %v5273_v28, %s5183_s13  ;;  %s5191_s13 = smov 14  }
 0x66d   :  { %s4237_s17 = sld [smem:[%s5946_s0 + %s5191_s13]]   ;;  %s5218_s13 = smov 31  }
 0x673   :  { %v4289_v32 = vld [vmem:[%s4237_s17] ss:$0 sm:$0xff] }
 0x6e4   :  { %v865_v20 = vpop.xlane.xlu1 %864 }
 0x6e5   :  { %v866_v21 = vsub.f32 %v862_v18, %v865_v20  ;;  %v4901_v18 = vpack.c.bf16 %v1393_v17, %v1392_v16  ;;  %v1984_v16 = vld [vmem:[%s4250_s1 + $0x10] sm:$0xff]  ;;  %v1985_v17 = vld [vmem:[%s4250_s1 + $0x18] sm:$0xff] }
 0x6e7   :  { %v867_v22 = vmul.f32 1.442695, %v866_v21 }
 0x6e8   :  { %v875_v23 = vpop.permute.xlu1 %874 }
 0x6e9   :  { %5107 = vpow2.f32 %v867_v22  ;;  %4552 = vmatpush3.msra.mxu1 %v875_v23  ;;  %v4287_v23 = vld [vmem:[%s4234_s8] ss:$0 sm:$0xff]  ;;  %s4263_s8 = sld [smem:[%s5946_s0 + %s5185_s15]]  }
 0x6ea   :  { %4561 = vmatprep.subr.mxu1 %v5169_v10 }
 0x6ec   :  { %v1025_v31 = vpop.permute.xlu1 %1024 }
 0x6f3   :  { %v5108_v24 = vpop.eup %5107 }
 0x6f4   :  { %v869_v25 = vsel %vm306_vm2, %v5108_v24, 0.0 }
 0x6f5   :  { %870 = vadd.xlane.f32.xlu0 %v869_v25  ;;  %v4288_v25 = vld [vmem:[%s4235_s12] ss:$0 sm:$0xff]  ;;  %s5208_s12 = smov 22  }
 0x70b   :  { %1026 = vrot.lane.b32.xlu0 %v5273_v28, %s5184_s14 }
 0x782   :  { %v871_v26 = vpop.xlane.xlu0 %870 }
 0x783   :  { %5109 = vrcp.f32 %v871_v26 }
 0x786   :  { %v1027_v30 = vpop.permute.xlu0 %1026 }
 0x78d   :  { %v5110_v27 = vpop.eup %5109 }
 0x78e   :  { %v873_v29 = vmul.f32 %v5110_v27, %v5108_v24 }
 0x790   :  { %4554 = vmatmul.mubr.msk.f32.vlgmr.msra.gmra.mrb[8].mxu1 %vm306_vm2, %v873_v29  ;;  %v1394_v29 = vld [vmem:[%s5391_s30 + $0x30] sm:$0xff] }
 0x791   :  { %4562 = vmatpush3.xpose.msk.msra.mxu1 %vm306_vm2, %v1027_v30  ;;  %4563 = vmatprep.mubr.msk.f32.mxu1 %vm5168_vm1, %v5169_v10  ;;  %v1395_v30 = vld [vmem:[%s5391_s30 + $0x38] sm:$0xff] }
 0x792   :  { %4571 = vmatprep.subr.mxu1 %v5169_v10 }
 0x794   :  { %4564 = vmatmul.mubr.msk.f32.vlgmr.msra.gmra.mrb[10].mxu1 %vm306_vm2, %v1025_v31  ;;  %v4904_v31 = vpack.c.bf16 %v1395_v30, %v1394_v29 }
 0x795   :  { %4573 = vmatprep.mubr.msk.f32.mxu1 %vm5168_vm1, %v5169_v10 }
 0x863   :  { %v946_v33 = vpop.f32.mrb[8].mxu1 }
 0x864   :  { %v4555_v35 = vpop.f32.mrb[9].mxu1  ;;  %4559 = vmatmul.mubr.msk.f32.vlgmr.msra.gmra.mrb[8].mxu0 %vm306_vm2, %v946_v33 }
 0x865   :  { %4568 = vmatprep.mubr.msk.f32.mxu0 %vm5168_vm1, %v5169_v10 }
 0x867   :  { %v1098_v36 = vpop.f32.mrb[10].mxu1 }
 0x868   :  { %v1102_v37 = vmul.f32 0.35355338, %v1098_v36  ;;  %v4565_v38 = vpop.f32.mrb[11].mxu1 }
 0x86a   :  { %v1103_v39 = vadd.f32 %v1102_v37, %v5294_v34 }
 0x86c   :  { %v1104_v40 = vsel %vm306_vm2, %v1103_v39, -inf }
 0x86d   :  { %1105 = vmax.xlane.f32.xlu1 %v1104_v40 }
 0x8fa   :  { %v1106_v41 = vpop.xlane.xlu1 %1105 }
 0x8fb   :  { %v1107_v42 = vsub.f32 %v1103_v39, %v1106_v41  ;;  %v4292_v39 = vld [vmem:[%s4239_s21] ss:$0 sm:$0xff] }
 0x8fd   :  { %v1108_v43 = vmul.f32 1.442695, %v1107_v42 }
 0x8ff   :  { %5111 = vpow2.f32 %v1108_v43 }
 0x909   :  { %v5112_v44 = vpop.eup %5111 }
 0x90a   :  { %v1110_v45 = vsel %vm306_vm2, %v5112_v44, 0.0 }
 0x90b   :  { %1111 = vadd.xlane.f32.xlu0 %v1110_v45 }
 0x921   :  { %1115 = vrot.lane.b32.xlu0 %v5273_v28, %s5185_s15  ;;  %v302_v28 = vld [vmem:[%s5312_s11 + $0x18] sm:$0xff]  ;;  %s5197_s11 = smov 4  }
 0x922   :  { %4572 = vmatpush3.msra.mxu1 %v302_v28  ;;  %s4227_s14 = sld [smem:[%s5946_s0 + %s5197_s11]]  }
 0x923   :  { %4894 = vmatprep.subr.bf16.mxu1 %v5166_v9 }
 0x925   :  { %1669 = vrot.lane.b32.xlu0 %v5240_v0, %s5174_s27 }
 0x937   :  { %v1019_v34 = vpop.f32.mrb[8].mxu0 }
 0x938   :  { %v1023_v46 = vadd.f32 %v1019_v34, %v780_v13  ;;  %v4560_v47 = vpop.f32.mrb[9].mxu0  ;;  %v4895_v13 = vpack.c.bf16 %v1389_v11, %v1388_v8 }
 0x998   :  { %v1112_v48 = vpop.xlane.xlu0 %1111 }
 0x999   :  { %5113 = vrcp.f32 %v1112_v48 }
 0x99c   :  { %v1116_v49 = vpop.permute.xlu0 %1115 }
 0x99d   :  { %4567 = vmatpush3.msra.mxu0 %v1116_v49  ;;  %v5432_v49 = vld [vmem:[%s5429_s26] sm:$0xff] }
 0x99e   :  { %4888 = vmatprep.subr.bf16.mxu0 %v5166_v9 }
 0x9a3   :  { %v5114_v50 = vpop.eup %5113 }
 0x9a4   :  { %v1114_v51 = vmul.f32 %v5114_v50, %v5112_v44  ;;  %v5193_v44 = vmov 0  }
 0x9a5   :  { %5084 = vset.pattern.permute.xlu1 %v5193_v44 }
 0x9a6   :  { %4569 = vmatmul.mubr.msk.f32.vlgmr.msra.gmra.mrb[10].mxu0 %vm306_vm2, %v1114_v51 }
 0x9a7   :  { %4584 = vmatprep.mubr.msk.f32.mxu0 %vm5168_vm1, %v5169_v10 }
 0xa79   :  { %v1187_v0 = vpop.f32.mrb[10].mxu0 }
 0xa7a   :  { %v4570_v52 = vpop.f32.mrb[11].mxu0  ;;  %4574 = vmatmul.mubr.msk.f32.vlgmr.msra.gmra.mrb[12].mxu1 %vm306_vm2, %v1187_v0 }
 0xa7b   :  { %4603 = vmatprep.mubr.msk.f32.mxu1 %vm5168_vm1, %v5169_v10  ;;  %4896 = vmatpush3.bf16.msra.mxu1 %v4895_v13  ;;  %v4293_v52 = vld [vmem:[%s4240_s2] ss:$0 sm:$0xff]  ;;  %s5201_s2 = smov 25  }
 0xa7c   :  { %4897 = vmatprep.subr.bf16.mxu1 %v5166_v9  ;;  %v1982_v13 = vld [vmem:[%s4250_s1] sm:$0xff]  ;;  %s4248_s9 = sld [smem:[%s5946_s0 + %s5201_s2]]   ;;  %s5206_s2 = smov 124  }
 0xa7d   :  { %s4243_s1 = sld [smem:[%s5946_s0 + %s5205_s25]]  }
 0xa7f   :  { %4899 = vmatpush3.bf16.msra.mxu1 %v4898_v15  ;;  %v4925_v15 = vpack.c.bf16 %v1983_v14, %v1982_v13 }
 0xa80   :  { %4900 = vmatprep.subr.bf16.mxu1 %v5166_v9 }
 0xa82   :  { %v1896_v29 = vld [vmem:[%s4248_s9] sm:$0xff]  ;;  %v1897_v30 = vld [vmem:[%s4248_s9 + $0x8] sm:$0xff] }
 0xa83   :  { %4902 = vmatpush3.bf16.msra.mxu1 %v4901_v18 }
 0xa84   :  { %4903 = vmatprep.subr.bf16.mxu1 %v5166_v9 }
 0xa87   :  { %4905 = vmatpush3.bf16.msra.mxu1 %v4904_v31 }
 0xa88   :  { %4906 = vmatprep.subr.bf16.mxu1 %v5166_v9 }
 0xb4d   :  { %v1260_v53 = vpop.f32.mrb[12].mxu1 }
 0xb4e   :  { %v1264_v54 = vadd.f32 %v1260_v53, %v1023_v46  ;;  %v4575_v55 = vpop.f32.mrb[13].mxu1 }
 0xb50   :  { %v1265_v57 = vadd.f32 %v1264_v54, %v5243_v2  ;;  %v1303_v2 = vld [vmem:[%s4236_s24] sm:$0xff]  ;;  %s4247_s24 = sld [smem:[%s5946_s0 + %s5199_s20]]   ;;  %s5204_s20 = smov 26  }
 0xb51   :  { %v4889_v4 = vpack.c.bf16 %v1304_v3, %v1303_v2  ;;  %v4294_v54 = vld [vmem:[%s4241_s10] ss:$0 sm:$0xff]  ;;  %v1744_v2 = vld [vmem:[%s4246_s19 + $0x10] sm:$0xff]  ;;  %v1745_v3 = vld [vmem:[%s4246_s19 + $0x18] sm:$0xff]  ;;  %s5202_s10 = smov 19  }
 0xb52   :  { %v5377_v58 = vadd.f32 %v4286_v56, %v1265_v57 }
 0xb53   :  { %4890 = vmatpush3.bf16.msra.mxu0 %v4889_v4  ;;  %v4916_v4 = vpack.c.bf16 %v1745_v3, %v1744_v2 }
 0xb54   :  { %v1276_v59 = vsel %vm186_vm0, %v5377_v58, 0.0  ;;  %4891 = vmatprep.subr.bf16.mxu0 %v5166_v9 }
 0xb55   :  { %1277 = vadd.xlane.f32.xlu1 %v1276_v59  ;;  %v181_v59 = vld [vmem:[%s4227_s14] sm:$0x3]  ;;  %s4242_s14 = sld [smem:[%s5946_s0 + %s5202_s10]]  }
 0xb56   :  { %v1746_v5 = vld [vmem:[%s4247_s24] sm:$0xff]  ;;  %v1747_v6 = vld [vmem:[%s4247_s24 + $0x8] sm:$0xff]  ;;  %v1749_v11 = vld [vmem:[%s4247_s24 + $0x18] sm:$0xff]  ;;  %s4251_s10 = sld [smem:[%s5946_s0 + %s5207_s3]]  }
 0xb57   :  { %4893 = vmatpush3.bf16.msra.mxu0 %v4892_v7  ;;  %v1748_v7 = vld [vmem:[%s4247_s24 + $0x10] sm:$0xff]  ;;  %v4907_v8 = vpack.c.bf16 %v1747_v6, %v1746_v5  ;;  %s4249_s24 = sld [smem:[%s5946_s0 + %s5204_s20]]  }
 0xb58   :  { %4606 = vmatprep.subr.mxu0 %v5169_v10  ;;  %v4910_v12 = vpack.c.bf16 %v1749_v11, %v1748_v7 }
 0xbe2   :  { %v1278_v60 = vpop.xlane.xlu1 %1277 }
 0xbe3   :  { %v1279_v61 = vmul.f32 0.03125, %v1278_v60 }
 0xbe5   :  { %v1280_v62 = vsub.f32 %v5377_v58, %v1279_v61  ;;  %v1670_v61 = vpop.permute.xlu0 %1669 }
 0xbe7   :  { %v1281_v63 = vmul.f32 %v1280_v62, %v1280_v62 }
 0xbe9   :  { %v1282_v1 = vsel %vm186_vm0, %v1281_v63, 0.0  ;;  %v1743_v63 = vld [vmem:[%s4246_s19 + $0x8] sm:$0xff] }
 0xbea   :  { %1283 = vadd.xlane.f32.xlu1 %v1282_v1 }
 0xc77   :  { %v1284_v19 = vpop.xlane.xlu1 %1283 }
 0xc78   :  { %v1285_v20 = vmul.f32 0.03125, %v1284_v19 }
 0xc7a   :  { %v1286_v21 = vadd.f32 1e-05, %v1285_v20  ;;  %v4928_v20 = vpack.c.bf16 %v1985_v17, %v1984_v16 }
 0xc7c   :  { %5115 = vrsqrt.f32 %v1286_v21 }
 0xc86   :  { %v5116_v22 = vpop.eup %5115 }
 0xc87   :  { %v1288_v24 = vmul.f32 %v5116_v22, %v1280_v62  ;;  %v1742_v62 = vld [vmem:[%s4246_s19] sm:$0xff]  ;;  %s5515_s19 = sld [smem:[%s5946_s0 + %s5203_s16]]  }
 0xc88   :  { %v4913_v1 = vpack.c.bf16 %v1743_v63, %v1742_v62  ;;  %s4245_s16 = sld [smem:[%s5946_s0 + %s5208_s12]]  }
 0xc89   :  { %v1295_v26 = vmul.f32 %v4287_v23, %v1288_v24 }
 0xc8b   :  { %v1302_v27 = vadd.f32 %v4288_v25, %v1295_v26 }
 0xc8d   :  { %4585 = vmatmul.mubr.msk.f32.vlgmr.msra.gmra.mrb[12].mxu0 %vm186_vm0, %v1302_v27  ;;  %v2158_v63 = vld [vmem:[%s5515_s19 + $0x50] sm:$0xff]  ;;  %v2160_v3 = vld [vmem:[%s5515_s19 + $0x60] sm:$0xff]  ;;  %v2163_v7 = vld [vmem:[%s5515_s19 + $0x78] sm:$0xff] }
 0xc8e   :  { %4608 = vmatprep.mubr.msk.f32.mxu0 %vm5168_vm1, %v5169_v10  ;;  %v2162_v6 = vld [vmem:[%s5515_s19 + $0x70] sm:$0xff] }
 0xd60   :  { %v1383_v33 = vpop.f32.mrb[12].mxu0 }
 0xd61   :  { %v1384_v35 = vadd.f32 %v4289_v32, %v1383_v33  ;;  %v4586_v36 = vpop.f32.mrb[13].mxu0 }
 0xd63   :  { %v1387_v37 = vmax.f32 %v1384_v35, 0.0  ;;  %v4919_v35 = vpack.c.bf16 %v1897_v30, %v1896_v29 }
 0xd65   :  { %4604 = vmatmul.mubr.msk.f32.vlgmr.msra.gmra.mrb[14].mxu1 %vm1396_vm3, %v1387_v37  ;;  %v1898_v37 = vld [vmem:[%s4248_s9 + $0x10] sm:$0xff] }
 0xd66   :  { %4629 = vmatprep.mubr.msk.f32.mxu1 %vm5168_vm1, %v5169_v10  ;;  %4908 = vmatpush3.bf16.msra.mxu1 %v4907_v8  ;;  %v4958_v8 = vpack.c.bf16 %v2163_v7, %v2162_v6 }
 0xd67   :  { %4909 = vmatprep.subr.bf16.mxu1 %v5166_v9 }
 0xd6a   :  { %4911 = vmatpush3.bf16.msra.mxu1 %v4910_v12 }
 0xd6b   :  { %4918 = vmatprep.subr.bf16.mxu1 %v5166_v9 }
 0xe38   :  { %v1466_v38 = vpop.f32.mrb[14].mxu1 }
 0xe39   :  { %v1470_v40 = vadd.f32 %v1466_v38, %v5377_v58  ;;  %v4605_v41 = vpop.f32.mrb[15].mxu1  ;;  %v1899_v38 = vld [vmem:[%s4248_s9 + $0x18] sm:$0xff]  ;;  %s5216_s9 = smov 37  }
 0xe3a   :  { %v2066_v41 = vld [vmem:[%s4242_s14] sm:$0xff]  ;;  %s4260_s12 = sld [smem:[%s5946_s0 + %s5216_s9]]  }
 0xe3b   :  { %v1478_v42 = vadd.f32 %v4292_v39, %v1470_v40  ;;  %v4922_v40 = vpack.c.bf16 %v1899_v38, %v1898_v37 }
 0xe3d   :  { %v1481_v43 = vsel %vm186_vm0, %v1478_v42, 0.0 }
 0xe3e   :  { %1482 = vadd.xlane.f32.xlu1 %v1481_v43 }
 0xecb   :  { %v1483_v45 = vpop.xlane.xlu1 %1482 }
 0xecc   :  { %v1484_v34 = vmul.f32 0.03125, %v1483_v45  ;;  %v2068_v45 = vld [vmem:[%s4242_s14 + $0x10] sm:$0xff] }
 0xece   :  { %v1485_v46 = vsub.f32 %v1478_v42, %v1484_v34  ;;  %v2067_v42 = vld [vmem:[%s4242_s14 + $0x8] sm:$0xff]  ;;  %v2069_v34 = vld [vmem:[%s4242_s14 + $0x18] sm:$0xff] }
 0xecf   :  { %v4931_v43 = vpack.c.bf16 %v2067_v42, %v2066_v41 }
 0xed0   :  { %v1486_v47 = vmul.f32 %v1485_v46, %v1485_v46 }
 0xed2   :  { %v1487_v48 = vsel %vm186_vm0, %v1486_v47, 0.0  ;;  %v2148_v47 = vld [vmem:[%s5515_s19] sm:$0xff] }
 0xed3   :  { %1488 = vadd.xlane.f32.xlu1 %v1487_v48  ;;  %v2149_v48 = vld [vmem:[%s5515_s19 + $0x8] sm:$0xff] }
 0xee4   :  { %1510 = vperm.xlu1 %5084, %v5432_v49  }
 0xf60   :  { %v1489_v50 = vpop.xlane.xlu1 %1488 }
 0xf61   :  { %v1490_v51 = vmul.f32 0.03125, %v1489_v50  ;;  %v2150_v50 = vld [vmem:[%s5515_s19 + $0x10] sm:$0xff] }
 0xf63   :  { %v1491_v28 = vadd.f32 1e-05, %v1490_v51  ;;  %v4937_v51 = vpack.c.bf16 %v2149_v48, %v2148_v47 }
 0xf64   :  { %v5445_v56 = vpop.permute.xlu1 %1510 }
 0xf65   :  { %5117 = vrsqrt.f32 %v1491_v28  ;;  %v2151_v28 = vld [vmem:[%s5515_s19 + $0x18] sm:$0xff] }
 0xf6f   :  { %v5118_v0 = vpop.eup %5117 }
 0xf70   :  { %v1493_v53 = vmul.f32 %v5118_v0, %v1485_v46  ;;  %v4934_v46 = vpack.c.bf16 %v2069_v34, %v2068_v45  ;;  %v4940_v0 = vpack.c.bf16 %v2151_v28, %v2150_v50  ;;  %v4302_v34 = vld [vmem:[%s4251_s10] ss:$0 sm:$0xff]  ;;  %s5223_s10 = smov 32  }
 0xf71   :  { %v5595_v28 = vld [vmem:[%s4245_s16] ss:$0 sm:$0xff] }
 0xf72   :  { %v1500_v55 = vmul.f32 %v4293_v52, %v1493_v53  ;;  %v2152_v52 = vld [vmem:[%s5515_s19 + $0x20] sm:$0xff]  ;;  %v2153_v53 = vld [vmem:[%s5515_s19 + $0x28] sm:$0xff] }
 0xf74   :  { %v1507_v57 = vadd.f32 %v4294_v54, %v1500_v55  ;;  %v4943_v54 = vpack.c.bf16 %v2153_v53, %v2152_v52  ;;  %v2154_v55 = vld [vmem:[%s5515_s19 + $0x30] sm:$0xff] }
 0xf76   :  { %v5451_v58 = vmul.f32 %v5445_v56, %v1507_v57  ;;  %v2155_v57 = vld [vmem:[%s5515_s19 + $0x38] sm:$0xff] }
 0xf78   :  { %4607 = vmatpush3.msra.mxu0 %v5451_v58  ;;  %v1587_v60 = vmul.f32 %v5451_v58, %v5451_v58 }
 0xf79   :  { %4609 = vmatmul.mubr.msk.f32.vlgmr.msra.gmra.mrb[14].mxu0 %vm306_vm2, %v181_v59  ;;  %4611 = vmatprep.subr.mxu0 %v5169_v10 }
 0xf7a   :  { %4612 = vmatpush3.msra.mxu0 %v1587_v60  ;;  %4613 = vmatprep.mubr.msk.f32.mxu0 %vm5168_vm1, %v5169_v10  ;;  %v2156_v60 = vld [vmem:[%s5515_s19 + $0x40] sm:$0xff] }
 0xf7b   :  { %4616 = vmatprep.subr.mxu0 %v5169_v10 }
 0xf7d   :  { %4614 = vmatmul.mubr.msk.f32.vlgmr.msra.gmra.mrb[16].mxu0 %vm306_vm2, %v181_v59 }
 0xf7e   :  { %4617 = vmatpush3.msra.mxu0 %v1670_v61  ;;  %4618 = vmatprep.mubr.msk.f32.mxu0 %vm5168_vm1, %v5169_v10  ;;  %v2157_v61 = vld [vmem:[%s5515_s19 + $0x48] sm:$0xff] }
 0xf7f   :  { %4912 = vmatprep.subr.bf16.mxu0 %v5166_v9  ;;  %v4949_v62 = vpack.c.bf16 %v2157_v61, %v2156_v60 }
 0xf81   :  { %4619 = vmatmul.mubr.msk.f32.vlgmr.msra.gmra.mrb[18].mxu0 %vm306_vm2, %v181_v59  ;;  %v4946_v59 = vpack.c.bf16 %v2155_v57, %v2154_v55 }
 0xf82   :  { %4914 = vmatpush3.bf16.msra.mxu0 %v4913_v1  ;;  %4640 = vmatprep.mubr.msk.f32.mxu0 %vm5168_vm1, %v5169_v10  ;;  %v2159_v1 = vld [vmem:[%s5515_s19 + $0x58] sm:$0xff] }
 0xf83   :  { %4915 = vmatprep.subr.bf16.mxu0 %v5166_v9  ;;  %v4952_v2 = vpack.c.bf16 %v2159_v1, %v2158_v63 }
 0xf86   :  { %4917 = vmatpush3.bf16.msra.mxu0 %v4916_v4  ;;  %v2161_v4 = vld [vmem:[%s5515_s19 + $0x68] sm:$0xff]  ;;  %s5214_s19 = smov 33  }
 0xf87   :  { %4924 = vmatprep.subr.bf16.mxu0 %v5166_v9  ;;  %v4955_v5 = vpack.c.bf16 %v2161_v4, %v2160_v3  ;;  %s4256_s23 = sld [smem:[%s5946_s0 + %s5214_s19]]   ;;  %s5220_s19 = smov 35  }
0x104c   :  { %v1583_v18 = vpop.f32.mrb[14].mxu0 }
0x104d   :  { %v4610_v19 = vpop.f32.mrb[15].mxu0  ;;  %4641 = vmatmul.mubr.msk.f32.vlgmr.msra.gmra.mrb[20].mxu0 %vm186_vm0, %v1583_v18  ;;  %v1658_v21 = vmul.f32 %v1583_v18, %v1583_v18 }
0x104e   :  { %4926 = vmatpush3.bf16.msra.mxu0 %v4925_v15  ;;  %4662 = vmatprep.mubr.msk.f32.mxu0 %vm5168_vm1, %v5169_v10  ;;  %v4301_v19 = vld [vmem:[%s4249_s24] ss:$0 sm:$0xff]  ;;  %s5215_s24 = smov 36  }
0x104f   :  { %4927 = vmatprep.subr.bf16.mxu0 %v5166_v9  ;;  %s4259_s30 = sld [smem:[%s5946_s0 + %s5215_s24]]   ;;  %s5221_s24 = smov 38  }
0x1050   :  { %v1654_v22 = vpop.f32.mrb[16].mxu0 }
0x1051   :  { %v1659_v23 = vsub.f32 %v1654_v22, %v1658_v21  ;;  %v4615_v24 = vpop.f32.mrb[17].mxu0 }
0x1052   :  { %4929 = vmatpush3.bf16.msra.mxu0 %v4928_v20 }
0x1053   :  { %v1660_v25 = vmax.f32 %v1659_v23, 1e-06  ;;  %4936 = vmatprep.subr.bf16.mxu0 %v5166_v9 }
0x1054   :  { %v1738_v26 = vpop.f32.mrb[18].mxu0 }
0x1055   :  { %5119 = vrsqrt.f32 %v1660_v25  ;;  %4663 = vmatmul.mubr.msk.f32.vlgmr.msra.gmra.mrb[22].mxu0 %vm186_vm0, %v5451_v58  ;;  %v4620_v27 = vpop.f32.mrb[19].mxu0  ;;  %vm1663_vm4 = vcmp.eq.f32.partialorder %v1660_v25, inf  ;;  %v1666_v33 = vand.u32 2147483648, %v1660_v25  ;;  %vm1665_vm5 = vcmp.eq.f32.partialorder %v1660_v25, 0.0 }
0x1056   :  { %4708 = vmatprep.mubr.msk.f32.mxu0 %vm5168_vm1, %v5169_v10  ;;  %4938 = vmatpush3.bf16.msra.mxu0 %v4937_v51 }
0x1057   :  { %4939 = vmatprep.subr.bf16.mxu0 %v5166_v9 }
0x105a   :  { %4941 = vmatpush3.bf16.msra.mxu0 %v4940_v0 }
0x105b   :  { %4942 = vmatprep.subr.bf16.mxu0 %v5166_v9 }
0x105e   :  { %4944 = vmatpush3.bf16.msra.mxu0 %v4943_v54 }
0x105f   :  { %v5120_v31 = vpop.eup %5119  ;;  %4945 = vmatprep.subr.bf16.mxu0 %v5166_v9 }
0x1060   :  { %v1662_v32 = vmul.f32 %v5120_v31, %v1660_v25 }
0x1062   :  { %v1664_v36 = vsel %vm1663_vm4, %v1660_v25, %v1662_v32  ;;  %4947 = vmatpush3.bf16.msra.mxu0 %v4946_v59  ;;  %v4304_v25 = vld [vmem:[%s4243_s1] ss:$0 sm:$0xff]  ;;  %v2382_v32 = vlaneseq  ;;  %s5222_s1 = smov 39  }
0x1063   :  { %v1667_v39 = vsel %vm1665_vm5, %v1666_v33, %v1664_v36  ;;  %4948 = vmatprep.subr.bf16.mxu0 %v5166_v9  ;;  %s4262_s9 = sld [smem:[%s5946_s0 + %s5222_s1]]  }
0x1064   :  { %4630 = vmatmul.mubr.msk.f32.vlgmr.msra.gmra.mrb[16].mxu1 %vm186_vm0, %v1667_v39  ;;  %v2383_v37 = vand.u32 127, %v2382_v32 }
0x1065   :  { %4920 = vmatpush3.bf16.msra.mxu1 %v4919_v35  ;;  %4651 = vmatprep.mubr.msk.f32.mxu1 %vm5168_vm1, %v5169_v10 }
0x1066   :  { %4921 = vmatprep.subr.bf16.mxu1 %v5166_v9  ;;  %4950 = vmatpush3.bf16.msra.mxu0 %v4949_v62  ;;  %v5566_v38 = vcvt.s32.f32 %v2383_v37 }
0x1067   :  { %4951 = vmatprep.subr.bf16.mxu0 %v5166_v9 }
0x1069   :  { %4923 = vmatpush3.bf16.msra.mxu1 %v4922_v40 }
0x106a   :  { %4930 = vmatprep.subr.bf16.mxu1 %v5166_v9  ;;  %4953 = vmatpush3.bf16.msra.mxu0 %v4952_v2 }
0x106b   :  { %4954 = vmatprep.subr.bf16.mxu0 %v5166_v9 }
0x106c   :  { %4652 = vmatmul.mubr.msk.f32.vlgmr.msra.gmra.mrb[18].mxu1 %vm186_vm0, %v1738_v26 }
0x106d   :  { %4932 = vmatpush3.bf16.msra.mxu1 %v4931_v43  ;;  %4673 = vmatprep.mubr.msk.f32.mxu1 %vm5168_vm1, %v5169_v10 }
0x106e   :  { %4933 = vmatprep.subr.bf16.mxu1 %v5166_v9  ;;  %4956 = vmatpush3.bf16.msra.mxu0 %v4955_v5 }
0x106f   :  { %4957 = vmatprep.subr.bf16.mxu0 %v5166_v9 }
0x1071   :  { %4935 = vmatpush3.bf16.msra.mxu1 %v4934_v46 }
0x1072   :  { %4960 = vmatprep.subr.bf16.mxu1 %v5166_v9  ;;  %4959 = vmatpush3.bf16.msra.mxu0 %v4958_v8 }
0x1073   :  { %4757 = vmatprep.subr.mxu0 %v5169_v10 }
0x1074   :  { %4674 = vmatmul.mubr.msk.f32.vlgmr.msra.gmra.mrb[20].mxu1 %vm186_vm0, %v1583_v18 }
0x1075   :  { %4962 = vmatpush3.bf16.msra.mxu1 %v4931_v43  ;;  %4719 = vmatprep.mubr.msk.f32.mxu1 %vm5168_vm1, %v5169_v10 }
0x1076   :  { %4963 = vmatprep.subr.bf16.mxu1 %v5166_v9 }
0x1079   :  { %4965 = vmatpush3.bf16.msra.mxu1 %v4934_v46 }
0x107a   :  { %4966 = vmatprep.subr.bf16.mxu1 %v5166_v9 }
0x107c   :  { %4720 = vmatmul.mubr.msk.f32.vlgmr.msra.gmra.mrb[22].mxu1 %vm186_vm0, %v5451_v58 }
0x107d   :  { %4754 = vmatprep.mubr.msk.f32.mxu1 %vm5168_vm1, %v5169_v10  ;;  %4968 = vmatpush3.bf16.msra.mxu1 %v4937_v51 }
0x107e   :  { %4969 = vmatprep.subr.bf16.mxu1 %v5166_v9 }
0x1081   :  { %4971 = vmatpush3.bf16.msra.mxu1 %v4940_v0 }
0x1082   :  { %4972 = vmatprep.subr.bf16.mxu1 %v5166_v9 }
0x1085   :  { %4974 = vmatpush3.bf16.msra.mxu1 %v4943_v54 }
0x1086   :  { %4975 = vmatprep.subr.bf16.mxu1 %v5166_v9 }
0x1089   :  { %4977 = vmatpush3.bf16.msra.mxu1 %v4946_v59 }
0x108a   :  { %4978 = vmatprep.subr.bf16.mxu1 %v5166_v9 }
0x108d   :  { %4980 = vmatpush3.bf16.msra.mxu1 %v4949_v62 }
0x108e   :  { %4981 = vmatprep.subr.bf16.mxu1 %v5166_v9 }
0x1091   :  { %4983 = vmatpush3.bf16.msra.mxu1 %v4952_v2 }
0x1092   :  { %4984 = vmatprep.subr.bf16.mxu1 %v5166_v9 }
0x1095   :  { %4986 = vmatpush3.bf16.msra.mxu1 %v4955_v5 }
0x1096   :  { %4987 = vmatprep.subr.bf16.mxu1 %v5166_v9 }
0x1099   :  { %4989 = vmatpush3.bf16.msra.mxu1 %v4958_v8 }
0x109a   :  { %4777 = vmatprep.subr.mxu1 %v5169_v10 }
0x1120   :  { %v1892_v11 = vpop.f32.mrb[20].mxu0 }
0x1121   :  { %v4642_v12 = vpop.f32.mrb[21].mxu0 }
0x1128   :  { %v2062_v13 = vpop.f32.mrb[22].mxu0 }
0x1129   :  { %v4664_v14 = vpop.f32.mrb[23].mxu0  ;;  %v5586_v47 = vadd.f32 %v4302_v34, %v2062_v13 }
0x112b   :  { %v3048_v48 = vsel %vm3047_vm10, %v5586_v47, -inf }
0x1137   :  { %v1819_v15 = vpop.f32.mrb[16].mxu1 }
0x1138   :  { %v1893_v16 = vadd.f32 %v1892_v11, %v1819_v15  ;;  %v4631_v17 = vpop.f32.mrb[17].mxu1 }
0x1139   :  { %v5209_v17 = vmov 2  }
0x113a   :  { %5086 = vset.pattern.permute.xlu0 %v5209_v17 }
0x113f   :  { %v1969_v18 = vpop.f32.mrb[18].mxu1 }
0x1140   :  { %v1973_v20 = vadd.f32 %v1969_v18, %v1893_v16  ;;  %v4653_v21 = vpop.f32.mrb[19].mxu1  ;;  %v5210_v18 = vmov 1  }
0x1141   :  { %5085 = vset.pattern.permute.xlu1 %v5210_v18 }
0x1142   :  { %v5555_v22 = vadd.f32 %v4301_v19, %v1973_v20 }
0x1144   :  { %v2712_v23 = vsel %vm2711_vm6, %v5555_v22, -inf  ;;  %v2386_v24 = vsel %vm2385_vm7, %v5555_v22, -inf }
0x1145   :  { %2713 = vmax.xlane.f32.xlu1 %v2712_v23  ;;  %2387 = vmax.xlane.f32.xlu0 %v2386_v24 }
0x1147   :  { %v2143_v26 = vpop.f32.mrb[20].mxu1 }
0x1148   :  { %v2144_v27 = vadd.f32 %v4304_v25, %v2143_v26  ;;  %v4675_v29 = vpop.f32.mrb[21].mxu1 }
0x114a   :  { %v2147_v30 = vmax.f32 %v2144_v27, 0.0 }
0x114c   :  { %4709 = vmatmul.mubr.f32.vlgmr.msra.gmra.mrb[24].mxu0 %v2147_v30 }
0x114d   :  { %4759 = vmatprep.mubr.msk.f32.mxu0 %vm5168_vm1, %v5169_v10 }
0x114f   :  { %v2307_v31 = vpop.f32.mrb[22].mxu1 }
0x1150   :  { %v2308_v33 = vadd.f32 %v4304_v25, %v2307_v31  ;;  %v4721_v35 = vpop.f32.mrb[23].mxu1 }
0x1152   :  { %v2311_v36 = vmax.f32 %v2308_v33, 0.0 }
0x1154   :  { %4755 = vmatmul.mubr.f32.vlgmr.msra.gmra.mrb[24].mxu1 %v2311_v36 }
0x1155   :  { %4779 = vmatprep.mubr.msk.f32.mxu1 %vm5168_vm1, %v5169_v10 }
0x115b   :  { %2717 = vrot.lane.b32.xlu0 %v5566_v38, %s5197_s11 }
0x115f   :  { %2728 = vrot.lane.b32.xlu0 %v5555_v22, %s5206_s2 }
0x11d2   :  { %v5575_v39 = vpop.xlane.xlu0 %2387  ;;  %v5577_v40 = vpop.xlane.xlu1 %2713 }
0x11d3   :  { %vm2389_vm8 = vcmp.ge.f32.partialorder %v5555_v22, %v5575_v39  ;;  %vm2715_vm9 = vcmp.ge.f32.partialorder %v5555_v22, %v5577_v40  ;;  %v2408_v20 = vsub.f32 %v5575_v39, %v5575_v39  ;;  %v2742_v25 = vsub.f32 %v5577_v40, %v5577_v40 }
0x11d4   :  { %v2390_v41 = vsel %vm2389_vm8, %v5566_v38, 4.0  ;;  %v5642_v36 = vsub.f32 %v5555_v22, %v5577_v40 }
0x11d5   :  { %v2391_v43 = vsel %vm2385_vm7, %v2390_v41, inf  ;;  %v2409_v23 = vmul.f32 1.442695, %v2408_v20  ;;  %v2743_v27 = vmul.f32 1.442695, %v2742_v25 }
0x11d6   :  { %v2718_v42 = vpop.permute.xlu0 %2717  ;;  %2392 = vmin.xlane.f32.xlu1 %v2391_v43 }
0x11d7   :  { %v2720_v45 = vsel %vm2715_vm9, %v2718_v42, 4.0  ;;  %v2796_v42 = vmul.f32 1.442695, %v5642_v36 }
0x11d8   :  { %v2721_v46 = vsel %vm2711_vm6, %v2720_v45, inf }
0x11da   :  { %2722 = vmin.xlane.f32.xlu1 %v2721_v46  ;;  %v2729_v62 = vpop.permute.xlu0 %2728 }
0x11de   :  { %3049 = vmax.xlane.f32.xlu1 %v3048_v48 }
0x121f   :  { %v5593_v50 = vpop.f32.mrb[24].mxu0 }
0x1220   :  { %v4710_v51 = vpop.f32.mrb[25].mxu0 }
0x1227   :  { %v2378_v0 = vpop.f32.mrb[24].mxu1 }
0x1228   :  { %v5598_v52 = vadd.f32 %v5595_v28, %v2378_v0  ;;  %v4756_v53 = vpop.f32.mrb[25].mxu1 }
0x1263   :  { %v2393_v54 = vpop.xlane.xlu1 %2392 }
0x1264   :  { %vm2394_vm11 = vcmp.eq.f32.partialorder %v5566_v38, %v2393_v54 }
0x1265   :  { %v5602_v55 = vsel %vm2394_vm11, 1.0, %v5169_v10  ;;  %vm2480_vm11 = vcmask 1041408  }
0x1266   :  { %vm2396_vm12 = vcmp.gt.f32.partialorder %v5602_v55, 0.0 }
0x1267   :  { %v2723_v57 = vpop.xlane.xlu1 %2722  ;;  %v2397_v59 = vsel %vm2396_vm12, -1e+30, %v5555_v22 }
0x1268   :  { %vm2724_vm13 = vcmp.eq.f32.partialorder %v5566_v38, %v2723_v57  ;;  %v2398_v60 = vsel %vm2385_vm7, %v2397_v59, -inf }
0x1269   :  { %v5609_v61 = vsel %vm2724_vm13, 1.0, %v5169_v10  ;;  %2399 = vmax.xlane.f32.xlu0 %v2398_v60  ;;  %vm2476_vm13 = vcmask 15360  }
0x126a   :  { %vm2726_vm14 = vcmp.gt.f32.partialorder %v5609_v61, 0.0 }
0x126b   :  { %v5612_v63 = vpop.xlane.xlu1 %3049  ;;  %v2731_v1 = vsel %vm2726_vm14, -1e+30, %v2729_v62 }
0x126c   :  { %v2732_v2 = vsel %vm2385_vm7, %v2731_v1, -inf  ;;  %vm3051_vm15 = vcmp.ge.f32.partialorder %v5586_v47, %v5612_v63  ;;  %v3070_v25 = vsub.f32 %v5612_v63, %v5612_v63 }
0x126d   :  { %2733 = vmax.xlane.f32.xlu1 %v2732_v2  ;;  %v3052_v3 = vsel %vm3051_vm15, %v5566_v38, 4.0  ;;  %v5211_v2 = vmov 3  }
0x126e   :  { %v3053_v4 = vsel %vm3047_vm10, %v3052_v3, inf }
0x1271   :  { %3054 = vmin.xlane.f32.xlu1 %v3053_v4 }
0x12f6   :  { %v2400_v5 = vpop.xlane.xlu0 %2399 }
0x12f7   :  { %vm2401_vm3 = vcmp.ge.f32.partialorder %v2397_v59, %v2400_v5  ;;  %v2411_v19 = vsub.f32 %v2400_v5, %v5575_v39 }
0x12f8   :  { %v2402_v6 = vsel %vm2401_vm3, %v5566_v38, 4.0 }
0x12f9   :  { %v2403_v7 = vsel %vm2385_vm7, %v2402_v6, inf  ;;  %v2412_v21 = vmul.f32 1.442695, %v2411_v19 }
0x12fa   :  { %2404 = vmin.xlane.f32.xlu1 %v2403_v7  ;;  %v2734_v8 = vpop.xlane.xlu1 %2733 }
0x12fb   :  { %vm2735_vm4 = vcmp.ge.f32.partialorder %v2731_v1, %v2734_v8  ;;  %5121 = vpow2.f32 %v2412_v21  ;;  %v2745_v24 = vsub.f32 %v2734_v8, %v5577_v40  ;;  %v5678_v8 = vadd.f32 %v5595_v28, %v5593_v50 }
0x12fc   :  { %v2736_v11 = vsel %vm2735_vm4, %v5566_v38, 4.0  ;;  %5123 = vpow2.f32 %v2409_v23  ;;  %v5163_v23 = vld [vmem:[%s5234_s5] sm:$0xff]  ;;  %s5213_s5 = smov 29  }
0x12fd   :  { %v2737_v12 = vsel %vm2385_vm7, %v2736_v11, inf  ;;  %v2746_v26 = vmul.f32 1.442695, %v2745_v24  ;;  %s4252_s18 = sld [smem:[%s5946_s0 + %s5213_s5]]  }
0x12fe   :  { %2738 = vmin.xlane.f32.xlu1 %v2737_v12  ;;  %v3055_v13 = vpop.xlane.xlu1 %3054  ;;  %s4254_s5 = sld [smem:[%s5946_s0 + %s5218_s13]]  }
0x12ff   :  { %vm3056_vm5 = vcmp.eq.f32.partialorder %v5566_v38, %v3055_v13  ;;  %5125 = vpow2.f32 %v2746_v26 }
0x1300   :  { %v5625_v14 = vsel %vm3056_vm5, 1.0, %v5169_v10  ;;  %5127 = vpow2.f32 %v2743_v27  ;;  %v5699_v27 = vsub.f32 %v5586_v47, %v5612_v63  ;;  %vm3695_vm5 = vcmask 130048  }
0x1301   :  { %vm3058_vm6 = vcmp.gt.f32.partialorder %v5625_v14, 0.0 }
0x1302   :  { %v5629_v15 = vsel %vm3058_vm6, -1e+30, %v5586_v47 }
0x1303   :  { %v3060_v16 = vsel %vm3047_vm10, %v5629_v15, -inf }
0x1304   :  { %3061 = vmax.xlane.f32.xlu1 %v3060_v16 }
0x1305   :  { %v5122_v29 = vpop.eup %5121 }
0x1306   :  { %v5124_v30 = vpop.eup %5123 }
0x1307   :  { %v2414_v31 = vadd.f32 %v5124_v30, %v5122_v29 }
0x1309   :  { %5129 = vrcp.f32 %v2414_v31  ;;  %v5126_v33 = vpop.eup %5125  ;;  %v3124_v31 = vmul.f32 1.442695, %v5699_v27 }
0x130a   :  { %v5128_v35 = vpop.eup %5127 }
0x130b   :  { %v2748_v37 = vadd.f32 %v5128_v35, %v5126_v33 }
0x130d   :  { %5131 = vrcp.f32 %v2748_v37 }
0x130e   :  { %5133 = vpow2.f32 %v2796_v42 }
0x1313   :  { %v5130_v41 = vpop.eup %5129 }
0x1314   :  { %v2416_v43 = vmul.f32 %v5130_v41, %v5124_v30  ;;  %v2420_v34 = vmul.f32 %v5130_v41, %v5122_v29  ;;  %v5703_v29 = vsub.f32 %v5555_v22, %v5575_v39  ;;  %v3071_v30 = vmul.f32 1.442695, %v3070_v25 }
0x1316   :  { %v2417_v48 = vmul.f32 %v2416_v43, %v5602_v55 }
0x1317   :  { %v5132_v53 = vpop.eup %5131 }
0x1318   :  { %v2750_v59 = vmul.f32 %v5132_v53, %v5128_v35  ;;  %v2754_v60 = vmul.f32 %v5132_v53, %v5126_v33  ;;  %v5655_v62 = vpop.eup %5133  ;;  %v2462_v33 = vmul.f32 1.442695, %v5703_v29 }
0x131a   :  { %v2751_v3 = vmul.f32 %v2750_v59, %v5609_v61 }
0x1387   :  { %v2405_v45 = vpop.xlane.xlu1 %2404 }
0x1388   :  { %vm2406_vm8 = vcmp.eq.f32.partialorder %v5566_v38, %v2405_v45 }
0x1389   :  { %v5647_v46 = vsel %vm2406_vm8, 1.0, %v5169_v10  ;;  %vm4217_vm8 = vcmask 72704  }
0x138a   :  { %v2421_v51 = vmul.f32 %v2420_v34, %v5647_v46 }
0x138b   :  { %v2739_v40 = vpop.xlane.xlu1 %2738 }
0x138c   :  { %v2422_v0 = vadd.f32 %v2421_v51, %v2417_v48  ;;  %vm2740_vm9 = vcmp.eq.f32.partialorder %v5566_v38, %v2739_v40 }
0x138d   :  { %v2741_v54 = vsel %vm2740_vm9, 1.0, %v5169_v10 }
0x138e   :  { %v2757_v57 = vadd.f32 %v2741_v54, %v5609_v61  ;;  %2442 = vperm.xlu0 %5086, %v2422_v0   ;;  %2432 = vperm.xlu1 %5085, %v2422_v0   ;;  %v2755_v1 = vmul.f32 %v2754_v60, %v2741_v54  ;;  %v5212_v61 = vmov 1.0   ;;  %v3458_v60 = vadd.f32 1.0, %v5566_v38 }
0x1390   :  { %4778 = vmatpush3.msk.msra.mxu1 %vm2480_vm11, %v2757_v57  ;;  %v2756_v4 = vadd.f32 %v2755_v1, %v2751_v3  ;;  %v3459_v3 = vmul.f32 4.0, %v3458_v60 }
0x1391   :  { %4787 = vmatprep.subr.mxu1 %v5169_v10  ;;  %v3062_v5 = vpop.xlane.xlu1 %3061  ;;  %4780 = vmatmul.mubr.msk.f32.vlgmr.msra.gmra.mrb[26].mxu1 %vm2476_vm13, %v5212_v61 }
0x1392   :  { %2799 = vrot.lane.b32.xlu0 %v5655_v62, %s5206_s2  ;;  %5087 = vset.pattern.permute.xlu1 %v5211_v2  ;;  %vm3063_vm12 = vcmp.ge.f32.partialorder %v5629_v15, %v3062_v5  ;;  %v3073_v24 = vsub.f32 %v3062_v5, %v5612_v63 }
0x1393   :  { %2452 = vperm.xlu1 %5087, %v2422_v0   ;;  %5091 = vset.pattern.permute.xlu0 %v5193_v44  ;;  %v3064_v6 = vsel %vm3063_vm12, %v5566_v38, 4.0 }
0x1394   :  { %v3065_v7 = vsel %vm3047_vm10, %v3064_v6, inf  ;;  %4788 = vmatpush3.msra.mxu1 %v5432_v49  ;;  %4789 = vmatprep.mubr.msk.f32.mxu1 %vm5168_vm1, %v5169_v10  ;;  %v3074_v26 = vmul.f32 1.442695, %v3073_v24  ;;  %v3787_v24 = vld [vmem:[%s4256_s23 + $0x8] sm:$0xff] }
0x1395   :  { %4797 = vmatprep.subr.mxu1 %v5169_v10  ;;  %4790 = vmatmul.mubr.msk.f32.vlgmr.msra.gmra.mrb[28].mxu1 %vm306_vm2, %v5212_v61 }
0x1396   :  { %2426 = vperm.xlu0 %5091, %v2422_v0   ;;  %4799 = vmatprep.mubr.msk.f32.mxu1 %vm5168_vm1, %v5169_v10  ;;  %5135 = vpow2.f32 %v3074_v26 }
0x1397   :  { %5088 = vset.pattern.permute.xlu1 %v5210_v18  ;;  %5137 = vpow2.f32 %v3071_v30 }
0x1398   :  { %2766 = vperm.xlu1 %5088, %v2756_v4   ;;  %5139 = vpow2.f32 %v3124_v31 }
0x1399   :  { %5141 = vpow2.f32 %v2462_v33  ;;  %v3952_v33 = vld [vmem:[%s4259_s30] sm:$0xff] }
0x139c   :  { %5089 = vset.pattern.permute.xlu1 %v5209_v17 }
0x139d   :  { %2776 = vperm.xlu1 %5089, %v2756_v4  }
0x13a0   :  { %v5136_v35 = vpop.eup %5135 }
0x13a1   :  { %5090 = vset.pattern.permute.xlu1 %v5211_v2  ;;  %v5138_v41 = vpop.eup %5137 }
0x13a2   :  { %2786 = vperm.xlu1 %5090, %v2756_v4   ;;  %v3076_v42 = vadd.f32 %v5138_v41, %v5136_v35  ;;  %v5708_v63 = vpop.eup %5139 }
0x13a3   :  { %v5710_v22 = vpop.eup %5141  ;;  %v3126_v39 = vsel %vm3047_vm10, %v5708_v63, 0.0 }
0x13a4   :  { %5143 = vrcp.f32 %v3076_v42  ;;  %v2464_v43 = vsel %vm2385_vm7, %v5710_v22, 0.0 }
0x13a6   :  { %5092 = vset.pattern.permute.xlu1 %v5210_v18 }
0x13ae   :  { %v5144_v45 = vpop.eup %5143 }
0x13af   :  { %v3078_v34 = vmul.f32 %v5144_v45, %v5138_v41  ;;  %v3082_v51 = vmul.f32 %v5144_v45, %v5136_v35  ;;  %v3953_v35 = vld [vmem:[%s4259_s30 + $0x8] sm:$0xff] }
0x13b1   :  { %v3079_v0 = vmul.f32 %v3078_v34, %v5625_v14 }
0x13c6   :  { %3066 = vmin.xlane.f32.xlu1 %v3065_v7 }
0x140d   :  { %v2443_v11 = vpop.permute.xlu0 %2442  ;;  %v2433_v12 = vpop.permute.xlu1 %2432 }
0x140e   :  { %v2445_v13 = vmul.f32 %v2443_v11, %v5678_v8  ;;  %v2435_v49 = vmul.f32 %v2433_v12, %v5678_v8  ;;  %v3541_v11 = vld [vmem:[%s4252_s18] sm:$0xff]  ;;  %v3542_v12 = vld [vmem:[%s4252_s18 + $0x8] sm:$0xff] }
0x1410   :  { %2447 = vrot.lane.b32.xlu1 %v2445_v13, %s5174_s27  ;;  %2437 = vrot.lane.b32.xlu0 %v2435_v49, %s5180_s7 }
0x1411   :  { %v2800_v37 = vpop.permute.xlu0 %2799 }
0x1412   :  { %v2453_v15 = vpop.permute.xlu1 %2452  ;;  %v2802_v47 = vsel %vm2385_vm7, %v2800_v37, 0.0 }
0x1413   :  { %v2455_v16 = vmul.f32 %v2453_v15, %v5678_v8 }
0x1414   :  { %2760 = vperm.xlu0 %5091, %v2756_v4  }
0x1415   :  { %v2427_v1 = vpop.permute.xlu0 %2426 }
0x1416   :  { %v2429_v5 = vmul.f32 %v2427_v1, %v5678_v8 }
0x1417   :  { %v2767_v18 = vpop.permute.xlu1 %2766 }
0x1418   :  { %2457 = vrot.lane.b32.xlu0 %v2455_v16, %s5179_s6  ;;  %v2769_v50 = vmul.f32 %v2767_v18, %v5678_v8  ;;  %v4997_v18 = vpack.c.bf16 %v3542_v12, %v3541_v11  ;;  %v2423_v11 = vadd.f32 %v5647_v46, %v5602_v55 }
0x1419   :  { %5094 = vset.pattern.permute.xlu0 %v5211_v2 }
0x141c   :  { %v2777_v28 = vpop.permute.xlu1 %2776  ;;  %2771 = vrot.lane.b32.xlu0 %v2769_v50, %s5180_s7  ;;  %v3543_v50 = vld [vmem:[%s4252_s18 + $0x10] sm:$0xff] }
0x141d   :  { %v2779_v19 = vmul.f32 %v2777_v28, %v5678_v8  ;;  %v3544_v28 = vld [vmem:[%s4252_s18 + $0x18] sm:$0xff] }
0x1420   :  { %2781 = vrot.lane.b32.xlu0 %v2779_v19, %s5174_s27 }
0x1421   :  { %v2787_v20 = vpop.permute.xlu1 %2786 }
0x1422   :  { %v2789_v21 = vmul.f32 %v2787_v20, %v5678_v8  ;;  %v5000_v20 = vpack.c.bf16 %v3544_v28, %v3543_v50 }
0x1424   :  { %2791 = vrot.lane.b32.xlu1 %v2789_v21, %s5179_s6  ;;  %3619 = vrot.lane.b32.xlu0 %v5163_v23, %s5178_s4  ;;  %v3786_v23 = vld [vmem:[%s4256_s23] sm:$0xff]  ;;  %s4258_s23 = sld [smem:[%s5946_s0 + %s5220_s19]]  }
0x1425   :  { %v5006_v30 = vpack.c.bf16 %v3787_v24, %v3786_v23  ;;  %v3778_v23 = vld [vmem:[%s4263_s8] sm:$0xff] }
0x1426   :  { %v4096_v24 = vld [vmem:[%s4260_s12] sm:$0xff] }
0x1443   :  { %2803 = vadd.xlane.f32.xlu0 %v2802_v47  ;;  %v3954_v47 = vld [vmem:[%s4259_s30 + $0x10] sm:$0xff] }
0x1447   :  { %3127 = vadd.xlane.f32.xlu0 %v3126_v39  ;;  %v3955_v39 = vld [vmem:[%s4259_s30 + $0x18] sm:$0xff]  ;;  %s4261_s30 = sld [smem:[%s5946_s0 + %s5221_s24]]  }
0x1448   :  { %2465 = vadd.xlane.f32.xlu1 %v2464_v43  ;;  %v5012_v43 = vpack.c.bf16 %v3955_v39, %v3954_v47 }
0x1453   :  { %v3067_v48 = vpop.xlane.xlu1 %3066 }
0x1454   :  { %vm3068_vm14 = vcmp.eq.f32.partialorder %v5566_v38, %v3067_v48 }
0x1455   :  { %v3069_v40 = vsel %vm3068_vm14, 1.0, %v5169_v10 }
0x1456   :  { %v3083_v53 = vmul.f32 %v3082_v51, %v3069_v40  ;;  %v3085_v54 = vadd.f32 %v3069_v40, %v5625_v14  ;;  %v5733_v14 = vshrl.u32 %v2382_v32, 7 }
0x1458   :  { %v5720_v57 = vadd.f32 %v3083_v53, %v3079_v0  ;;  %v3289_v59 = vmul.f32 %v3085_v54, %v5445_v56  ;;  %v5740_v2 = vcvt.s32.f32 %v5733_v14 }
0x145a   :  { %4798 = vmatpush3.msra.mxu1 %v3289_v59  ;;  %3094 = vperm.xlu1 %5092, %v5720_v57   ;;  %vm3460_vm3 = vcmp.lt.f32.partialorder %v5740_v2, %v3459_v3  ;;  %vm3463_vm6 = vcmp.eq.f32.partialorder %v5740_v2, %v5566_v38 }
0x145b   :  { %4800 = vmatmul.mubr.msk.f32.vlgmr.msra.gmra.mrb[30].mxu1 %vm306_vm2, %v5212_v61  ;;  %4807 = vmatprep.subr.mxu1 %v5169_v10 }
0x145c   :  { %4809 = vmatprep.mubr.msk.f32.mxu1 %vm5168_vm1, %v5169_v10 }
0x145e   :  { %5093 = vset.pattern.permute.xlu1 %v5209_v17  ;;  %v3456_v17 = vmul.f32 4.0, %v5566_v38 }
0x145f   :  { %3104 = vperm.xlu1 %5093, %v5720_v57  }
0x1460   :  { %vm3457_vm15 = vcmp.ge.f32.partialorder %v5740_v2, %v3456_v17 }
0x1461   :  { %vm3461_vm4 = vmand %vm3457_vm15, %vm3460_vm3 }
0x1462   :  { %v3462_v16 = vsel %vm3461_vm4, 1.0, %v5169_v10 }
0x1463   :  { %5095 = vset.pattern.permute.xlu1 %v5193_v44 }
0x1464   :  { %v5777_v51 = vpop.f32.mrb[26].mxu1 }
0x1465   :  { %v4781_v40 = vpop.f32.mrb[27].mxu1 }
0x1468   :  { %v3206_v46 = vpop.f32.mrb[28].mxu1 }
0x1469   :  { %v4791_v12 = vpop.f32.mrb[29].mxu1  ;;  %v5813_v28 = vmax.f32 %v3206_v46, 1.0 }
0x1482   :  { %v2438_v4 = vpop.permute.xlu0 %2437  ;;  %v2448_v7 = vpop.permute.xlu1 %2447 }
0x1483   :  { %v2440_v6 = vadd.f32 %v2438_v4, %v2429_v5 }
0x1485   :  { %v2450_v13 = vadd.f32 %v2448_v7, %v2440_v6 }
0x1493   :  { %v2761_v32 = vpop.permute.xlu0 %2760 }
0x1494   :  { %v2763_v21 = vmul.f32 %v2761_v32, %v5678_v8  ;;  %v5009_v8 = vpack.c.bf16 %v3953_v35, %v3952_v33 }
0x1496   :  { %v2792_v41 = vpop.permute.xlu1 %2791 }
0x1497   :  { %v2458_v49 = vpop.permute.xlu0 %2457 }
0x1498   :  { %v2460_v15 = vadd.f32 %v2458_v49, %v2450_v13 }
0x149a   :  { %4808 = vmatpush3.msk.msra.mxu1 %vm2480_vm11, %v2460_v15 }
0x149b   :  { %v2772_v19 = vpop.permute.xlu0 %2771  ;;  %4996 = vmatprep.subr.bf16.mxu1 %v5166_v9  ;;  %4810 = vmatmul.mubr.msk.f32.vlgmr.msra.gmra.mrb[32].mxu1 %vm2476_vm13, %v3462_v16 }
0x149c   :  { %4998 = vmatpush3.bf16.msra.mxu1 %v4997_v18  ;;  %4831 = vmatprep.mubr.msk.f32.mxu1 %vm5168_vm1, %v5169_v10  ;;  %v2774_v26 = vadd.f32 %v2772_v19, %v2763_v21  ;;  %v3433_v19 = vmul.f32 2.0, %v5813_v28 }
0x149d   :  { %4999 = vmatprep.subr.bf16.mxu1 %v5166_v9 }
0x149f   :  { %v2782_v25 = vpop.permute.xlu0 %2781 }
0x14a0   :  { %5001 = vmatpush3.bf16.msra.mxu1 %v5000_v20  ;;  %v2784_v31 = vadd.f32 %v2782_v25, %v2774_v26  ;;  %v4097_v25 = vld [vmem:[%s4260_s12 + $0x8] sm:$0xff] }
0x14a1   :  { %5005 = vmatprep.subr.bf16.mxu1 %v5166_v9 }
0x14a2   :  { %v2794_v42 = vadd.f32 %v2792_v41, %v2784_v31  ;;  %v5021_v31 = vpack.c.bf16 %v4097_v25, %v4096_v24  ;;  %v3041_v25 = vmul.f32 0.25, %v5777_v51 }
0x14a3   :  { %v5761_v37 = vpop.permute.xlu0 %3619 }
0x14a4   :  { %4832 = vmatmul.mubr.msk.f32.vlgmr.msra.gmra.mrb[34].mxu1 %vm186_vm0, %v5761_v37 }
0x14a5   :  { %5007 = vmatpush3.bf16.msra.mxu1 %v5006_v30  ;;  %4845 = vmatprep.mubr.msk.f32.mxu1 %vm5168_vm1, %v5169_v10 }
0x14a6   :  { %5008 = vmatprep.subr.bf16.mxu1 %v5166_v9 }
0x14a8   :  { %4846 = vmatmul.mubr.msk.f32.vlgmr.msra.gmra.mrb[36].mxu1 %vm3695_vm5, %v2794_v42 }
0x14a9   :  { %5010 = vmatpush3.bf16.msra.mxu1 %v5009_v8  ;;  %4861 = vmatprep.mubr.msk.f32.mxu1 %vm5168_vm1, %v5169_v10 }
0x14aa   :  { %5011 = vmatprep.subr.bf16.mxu1 %v5166_v9 }
0x14ad   :  { %5013 = vmatpush3.bf16.msra.mxu1 %v5012_v43 }
0x14ae   :  { %5020 = vmatprep.subr.bf16.mxu1 %v5166_v9 }
0x14b0   :  { %4862 = vmatmul.mubr.msk.f32.vlgmr.msra.gmra.mrb[38].mxu1 %vm186_vm0, %v5451_v58 }
0x14b1   :  { %4879 = vmatprep.mubr.msk.f32.mxu1 %vm5168_vm1, %v5169_v10  ;;  %5022 = vmatpush3.bf16.msra.mxu1 %v5021_v31 }
0x14d0   :  { %v2804_v45 = vpop.xlane.xlu0 %2803 }
0x14d1   :  { %5145 = vrcp.f32 %v2804_v45 }
0x14d2   :  { %5147 = vlog2.f32 %v2804_v45 }
0x14d4   :  { %v3128_v34 = vpop.xlane.xlu0 %3127 }
0x14d5   :  { %v2466_v48 = vpop.xlane.xlu1 %2465  ;;  %5149 = vlog2.f32 %v3128_v34 }
0x14d6   :  { %5151 = vrcp.f32 %v2466_v48 }
0x14d7   :  { %5153 = vlog2.f32 %v2466_v48 }
0x14d8   :  { %5155 = vrcp.f32 %v3128_v34 }
0x14db   :  { %v5146_v0 = vpop.eup %5145 }
0x14dc   :  { %v5148_v53 = vpop.eup %5147  ;;  %v2806_v59 = vmul.f32 %v5146_v0, %v5655_v62 }
0x14dd   :  { %v2808_v54 = vmul.f32 0.6931472, %v5148_v53 }
0x14df   :  { %v2809_v60 = vsub.f32 %v5642_v36, %v2808_v54  ;;  %v5150_v1 = vpop.eup %5149 }
0x14e0   :  { %v5152_v17 = vpop.eup %5151  ;;  %v3132_v3 = vmul.f32 0.6931472, %v5150_v1 }
0x14e1   :  { %v2810_v4 = vmul.f32 %v2809_v60, %v2806_v59  ;;  %v5154_v5 = vpop.eup %5153  ;;  %v2468_v6 = vmul.f32 %v5152_v17, %v5710_v22 }
0x14e2   :  { %v2470_v32 = vmul.f32 0.6931472, %v5154_v5  ;;  %v5156_v7 = vpop.eup %5155  ;;  %v3133_v62 = vsub.f32 %v5699_v27, %v3132_v3 }
0x14e3   :  { %2812 = vrot.lane.b32.xlu0 %v2810_v4, %s5206_s2  ;;  %4758 = vmatpush3.msk.msra.mxu0 %vm2480_vm11, %v2468_v6  ;;  %v5796_v55 = vmul.f32 %v5156_v7, %v5708_v63  ;;  %v3095_v63 = vpop.permute.xlu1 %3094 }
0x14e4   :  { %4762 = vmatprep.subr.mxu0 %v5169_v10  ;;  %4760 = vmatmul.mubr.msk.f32.vlgmr.msra.gmra.mrb[26].mxu0 %vm2476_vm13, %v5212_v61  ;;  %v2471_v36 = vsub.f32 %v5703_v29, %v2470_v32  ;;  %v3097_v49 = vmul.f32 %v3095_v63, %v5598_v52  ;;  %v3693_v63 = vld [vmem:[%s4254_s5] sm:$0xff] }
0x14e5   :  { %4763 = vmatpush3.msk.msra.mxu0 %vm2480_vm11, %v2423_v11  ;;  %4764 = vmatprep.mubr.msk.f32.mxu0 %vm5168_vm1, %v5169_v10  ;;  %v3134_v29 = vmul.f32 %v3133_v62, %v5796_v55 }
0x14e6   :  { %v2472_v22 = vmul.f32 %v2471_v36, %v2468_v6  ;;  %4767 = vmatprep.subr.mxu0 %v5169_v10 }
0x14e7   :  { %3114 = vperm.xlu0 %5094, %v5720_v57   ;;  %v3135_v27 = vsel %vm3047_vm10, %v3134_v29, 0.0  ;;  %v3105_v20 = vpop.permute.xlu1 %3104 }
0x14e8   :  { %v2473_v13 = vsel %vm2385_vm7, %v2472_v22, 0.0  ;;  %4765 = vmatmul.mubr.msk.f32.vlgmr.msra.gmra.mrb[28].mxu0 %vm2476_vm13, %v5212_v61  ;;  %v3107_v26 = vmul.f32 %v3105_v20, %v5598_v52  ;;  %v5871_v22 = vld [vmem:[%s5429_s26] sm:$0xff]  ;;  %s5219_s26 = smov 34   ;;  %v3951_v20 = vld [vmem:[%s4258_s23 + $0x18] sm:$0xff] }
0x14e9   :  { %2474 = vadd.xlane.f32.xlu1 %v2473_v13  ;;  %4769 = vmatprep.mubr.msk.f32.mxu0 %vm5168_vm1, %v5169_v10  ;;  %s4257_s18 = sld [smem:[%s5946_s0 + %s5219_s26]]  }
0x14eb   :  { %5096 = vset.pattern.permute.xlu0 %v5193_v44 }
0x14ed   :  { %3136 = vadd.xlane.f32.xlu1 %v3135_v27 }
0x14fe   :  { %3088 = vperm.xlu1 %5095, %v5720_v57  }
0x1502   :  { %3099 = vrot.lane.b32.xlu1 %v3097_v49, %s5180_s7  ;;  %v3694_v49 = vld [vmem:[%s4254_s5 + $0x8] sm:$0xff] }
0x152e   :  { %v5810_v15 = vpop.f32.mrb[30].mxu1 }
0x152f   :  { %v4801_v16 = vpop.f32.mrb[31].mxu1 }
0x1530   :  { %v5003_v16 = vpack.c.bf16 %v3694_v49, %v3693_v63 }
0x1555   :  { %v2813_v18 = vpop.permute.xlu0 %2812 }
0x1556   :  { %v2815_v50 = vsel %vm2385_vm7, %v2813_v18, 0.0  ;;  %vm2706_vm7 = vcmask 24576   ;;  %v4330_v18 = vld [vmem:[%s4257_s18] ss:$0 sm:$0xff] }
0x1557   :  { %2816 = vadd.xlane.f32.xlu0 %v2815_v50  ;;  %v3949_v50 = vld [vmem:[%s4258_s23 + $0x8] sm:$0xff] }
0x1566   :  { %v3115_v44 = vpop.permute.xlu0 %3114 }
0x1567   :  { %v3117_v57 = vmul.f32 %v3115_v44, %v5598_v52 }
0x1569   :  { %3119 = vrot.lane.b32.xlu1 %v3117_v57, %s5179_s6  ;;  %s5224_s6 = smov 41  }
0x156a   :  { %s4264_s13 = sld [smem:[%s5946_s0 + %s5224_s6]]  }
0x156d   :  { %2819 = vrot.lane.b32.xlu0 %v2806_v59, %s5206_s2  ;;  %3436 = vperm.xlu1 %5095, %v3433_v19   ;;  %v3950_v19 = vld [vmem:[%s4258_s23 + $0x10] sm:$0xff] }
0x156e   :  { %v5826_v21 = vpop.f32.mrb[32].mxu1  ;;  %v5018_v38 = vpack.c.bf16 %v3951_v20, %v3950_v19 }
0x156f   :  { %v4811_v30 = vpop.f32.mrb[33].mxu1 }
0x1571   :  { %3109 = vrot.lane.b32.xlu0 %v3107_v26, %s5174_s27  ;;  %3781 = vperm.xlu1 %5095, %v3778_v23   ;;  %s5217_s27 = smov 30   ;;  %v90_v23 = vstv %s4261_s30 }
0x1572   :  { %s5847_s2 = sld [smem:[%s5946_s0 + %s5217_s27]]   ;;  %91 = vst [vmem:[#allocation2] sm:$0x1] %v90_v23 }
0x1573   :  { %s4255_s27 = sld [smem:[%s5946_s0 + %s5223_s10]]  }
0x1575   :  { %3284 = vperm.xlu0 %5096, %v5813_v28  }
0x1576   :  { %v2475_v33 = vpop.xlane.xlu1 %2474 }
0x1577   :  { %v5831_v35 = vpop.f32.mrb[34].mxu1  ;;  %4768 = vmatpush3.msk.msra.mxu0 %vm2480_vm11, %v2475_v33 }
0x1578   :  { %v4833_v41 = vpop.f32.mrb[35].mxu1  ;;  %4770 = vmatmul.mubr.msk.f32.vlgmr.msra.gmra.mrb[30].mxu0 %vm2476_vm13, %v5212_v61  ;;  %4772 = vmatprep.subr.mxu0 %v5169_v10  ;;  %v3545_v36 = vld [vmem:[%s5847_s2] sm:$0xff]  ;;  %v3546_v62 = vld [vmem:[%s5847_s2 + $0x8] sm:$0xff]  ;;  %v3547_v13 = vld [vmem:[%s5847_s2 + $0x10] sm:$0xff] }
0x1579   :  { %4774 = vmatprep.mubr.msk.f32.mxu0 %vm5168_vm1, %v5169_v10  ;;  %v4991_v12 = vpack.c.bf16 %v3546_v62, %v3545_v36  ;;  %v3548_v29 = vld [vmem:[%s5847_s2 + $0x18] sm:$0xff] }
0x157a   :  { %v3137_v59 = vpop.xlane.xlu1 %3136  ;;  %v4994_v27 = vpack.c.bf16 %v3548_v29, %v3547_v13  ;;  %v3944_v29 = vld [vmem:[%s4264_s13] sm:$0xff] }
0x157b   :  { %v5839_v8 = vpop.f32.mrb[36].mxu1 }
0x157c   :  { %v4847_v42 = vpop.f32.mrb[37].mxu1  ;;  %v3865_v44 = vadd.f32 %v4330_v18, %v5839_v8 }
0x157e   :  { %v3089_v60 = vpop.permute.xlu1 %3088 }
0x157f   :  { %v3091_v4 = vmul.f32 %v3089_v60, %v5598_v52  ;;  %v3211_v52 = vmul.f32 %v5796_v55, %v5445_v56  ;;  %v3360_v55 = vmul.f32 %v5871_v22, %v3137_v59 }
0x1582   :  { %v3100_v17 = vpop.permute.xlu1 %3099 }
0x1583   :  { %v5841_v47 = vpop.f32.mrb[38].mxu1  ;;  %v3102_v5 = vadd.f32 %v3100_v17, %v3091_v4 }
0x1584   :  { %v4863_v39 = vpop.f32.mrb[39].mxu1 }
0x15b7   :  { %v2550_v43 = vpop.f32.mrb[26].mxu0 }
0x15b8   :  { %v4761_v45 = vpop.f32.mrb[27].mxu0  ;;  %v2555_v34 = vmul.f32 0.5, %v2550_v43 }
0x15bb   :  { %v2625_v48 = vpop.f32.mrb[28].mxu0 }
0x15bc   :  { %v2704_v40 = vmul.f32 0.25, %v2625_v48  ;;  %v4766_v0 = vpop.f32.mrb[29].mxu0 }
0x15be   :  { %v2705_v53 = vmul.f32 %v2704_v40, %v2555_v34 }
0x15c0   :  { %v2707_v54 = vsel %vm2706_vm7, %v2705_v53, 0.0 }
0x15c1   :  { %2708 = vadd.xlane.f32.xlu0 %v2707_v54 }
0x15db   :  { %v3120_v7 = vpop.permute.xlu1 %3119 }
0x15e4   :  { %v2817_v1 = vpop.xlane.xlu0 %2816 }
0x15e8   :  { %v2820_v3 = vpop.permute.xlu0 %2819 }
0x15e9   :  { %4773 = vmatpush3.msk.msra.mxu0 %vm2480_vm11, %v2820_v3 }
0x15ea   :  { %4775 = vmatmul.mubr.msk.f32.vlgmr.msra.gmra.mrb[32].mxu0 %vm2476_vm13, %v5212_v61  ;;  %4782 = vmatprep.subr.mxu0 %v5169_v10 }
0x15eb   :  { %4783 = vmatpush3.msk.msra.mxu0 %vm2480_vm11, %v2817_v1  ;;  %4784 = vmatprep.mubr.msk.f32.mxu0 %vm5168_vm1, %v5169_v10 }
0x15ec   :  { %v3110_v6 = vpop.permute.xlu0 %3109  ;;  %4792 = vmatprep.subr.mxu0 %v5169_v10 }
0x15ed   :  { %v3112_v32 = vadd.f32 %v3110_v6, %v3102_v5 }
0x15ee   :  { %4785 = vmatmul.mubr.msk.f32.vlgmr.msra.gmra.mrb[34].mxu0 %vm2476_vm13, %v5212_v61 }
0x15ef   :  { %v3122_v11 = vadd.f32 %v3120_v7, %v3112_v32  ;;  %4793 = vmatpush3.msra.mxu0 %v3211_v52  ;;  %4794 = vmatprep.mubr.msk.f32.mxu0 %vm5168_vm1, %v5169_v10  ;;  %v4329_v32 = vld [vmem:[%s4255_s27] ss:$0 sm:$0xff] }
0x15f0   :  { %4802 = vmatprep.subr.mxu0 %v5169_v10 }
0x15f1   :  { %v3446_v46 = vmul.f32 %v3122_v11, %v5445_v56 }
0x15f2   :  { %4795 = vmatmul.mubr.msk.f32.vlgmr.msra.gmra.mrb[36].mxu0 %vm306_vm2, %v5212_v61 }
0x15f3   :  { %4803 = vmatpush3.msra.mxu0 %v3360_v55  ;;  %4880 = vmatmul.mubr.msk.f32.vlgmr.msra.gmra.mrb[40].mxu1 %vm3695_vm5, %v3446_v46  ;;  %v4191_v55 = vsub.s32 0, %v5733_v14 }
0x15f4   :  { %4804 = vmatprep.mubr.msk.f32.mxu0 %vm5168_vm1, %v5169_v10  ;;  %4990 = vmatprep.subr.bf16.mxu0 %v5166_v9  ;;  %v3285_v24 = vpop.permute.xlu0 %3284 }
0x15f6   :  { %4805 = vmatmul.mubr.msk.f32.vlgmr.msra.gmra.mrb[38].mxu0 %vm306_vm2, %v5212_v61  ;;  %v3948_v61 = vld [vmem:[%s4258_s23] sm:$0xff] }
0x15f7   :  { %4992 = vmatpush3.bf16.msra.mxu0 %v4991_v12  ;;  %4820 = vmatprep.mubr.msk.f32.mxu0 %vm5168_vm1, %v5169_v10  ;;  %v5015_v57 = vpack.c.bf16 %v3949_v50, %v3948_v61  ;;  %v4337_v61 = vld [vmem:[#allocation2] ss:$0 sm:$0xff] }
0x15f8   :  { %4993 = vmatprep.subr.bf16.mxu0 %v5166_v9 }
0x15fb   :  { %4995 = vmatpush3.bf16.msra.mxu0 %v4994_v27 }
0x15fc   :  { %5002 = vmatprep.subr.bf16.mxu0 %v5166_v9 }
0x15fe   :  { %4821 = vmatmul.mubr.msk.f32.vlgmr.msra.gmra.mrb[40].mxu0 %vm186_vm0, %v5451_v58  ;;  %v3464_v58 = vsel %vm3463_vm6, 1.0, %v5169_v10 }
0x15ff   :  { %5004 = vmatpush3.bf16.msra.mxu0 %v5003_v16  ;;  %4838 = vmatprep.mubr.msk.f32.mxu0 %vm5168_vm1, %v5169_v10 }
0x1600   :  { %4848 = vmatprep.subr.mxu0 %v5169_v10 }
0x1602   :  { %4839 = vmatmul.mubr.msk.f32.vlgmr.msra.gmra.mrb[42].mxu0 %vm3695_vm5, %v5826_v21 }
0x1603   :  { %4849 = vmatpush3.msk.msra.mxu0 %vm2480_vm11, %v3865_v44  ;;  %4850 = vmatprep.mubr.msk.f32.mxu0 %vm5168_vm1, %v5169_v10 }
0x1604   :  { %5014 = vmatprep.subr.bf16.mxu0 %v5166_v9 }
0x1606   :  { %4851 = vmatmul.mubr.msk.f32.vlgmr.msra.gmra.mrb[44].mxu0 %vm2476_vm13, %v3464_v58 }
0x1607   :  { %5016 = vmatpush3.bf16.msra.mxu0 %v5015_v57  ;;  %4872 = vmatprep.mubr.msk.f32.mxu0 %vm5168_vm1, %v5169_v10  ;;  %v92_v10 = vstv %s4262_s9  ;;  %vm4214_vm1 = vcmask 56320  }
0x1608   :  { %5017 = vmatprep.subr.bf16.mxu0 %v5166_v9  ;;  %93 = vst [vmem:[#allocation3] sm:$0x1] %v92_v10  ;;  %v3437_v9 = vpop.permute.xlu1 %3436 }
0x1609   :  { %5157 = vrcp.f32 %v3437_v9 }
0x160a   :  { %5159 = vrcp.f32 %v3285_v24 }
0x160b   :  { %5019 = vmatpush3.bf16.msra.mxu0 %v5018_v38  ;;  %5161 = vrcp.f32 %v5813_v28 }
0x160c   :  { %v3782_v46 = vpop.permute.xlu1 %3781 }
0x160e   :  { %4873 = vmatmul.mubr.msk.f32.vlgmr.msra.gmra.mrb[46].mxu0 %vm186_vm0, %v5761_v37  ;;  %vm4211_vm0 = vcmask 23552  }
0x160f   :  { %v4338_v19 = vld [vmem:[#allocation3] ss:$0 sm:$0xff] }
0x1613   :  { %v5158_v43 = vpop.eup %5157 }
0x1614   :  { %v5160_v34 = vpop.eup %5159  ;;  %v3440_v51 = vmul.f32 %v5158_v43, %v5810_v15 }
0x1615   :  { %v5162_v28 = vpop.eup %5161 }
0x164b   :  { %v2698_v2 = vpop.f32.mrb[30].mxu0 }
0x164c   :  { %v4771_v21 = vpop.f32.mrb[31].mxu0  ;;  %v2702_v41 = vmul.f32 0.5, %v2698_v2 }
0x164e   :  { %v2709_v2 = vpop.xlane.xlu0 %2708 }
0x164f   :  { %v2710_v23 = vmul.f32 4.0, %v2709_v2 }
0x16bd   :  { %v2889_v37 = vpop.f32.mrb[32].mxu0 }
0x16be   :  { %v2893_v26 = vmul.f32 0.5, %v2889_v37  ;;  %v4776_v30 = vpop.f32.mrb[33].mxu0 }
0x16c0   :  { %v3042_v31 = vmul.f32 %v3041_v25, %v2893_v26 }
0x16c1   :  { %v3036_v33 = vpop.f32.mrb[34].mxu0 }
0x16c2   :  { %v3040_v8 = vmul.f32 0.5, %v3036_v33  ;;  %v3043_v42 = vsel %vm2706_vm7, %v3042_v31, 0.0  ;;  %v4786_v39 = vpop.f32.mrb[35].mxu0 }
0x16c3   :  { %3044 = vadd.xlane.f32.xlu1 %v3043_v42 }
0x16c4   :  { %v3450_v45 = vadd.f32 %v3040_v8, %v2702_v41 }
0x16c5   :  { %v3278_v48 = vpop.f32.mrb[36].mxu0 }
0x16c6   :  { %v3288_v40 = vmul.f32 %v5160_v34, %v3278_v48  ;;  %v4167_v0 = vpop.f32.mrb[40].mxu1  ;;  %v4796_v53 = vpop.f32.mrb[37].mxu0 }
0x16c7   :  { %v4881_v54 = vpop.f32.mrb[41].mxu1 }
0x16c8   :  { %v3441_v59 = vmul.f32 %v3440_v51, %v3288_v40 }
0x16c9   :  { %v3427_v60 = vpop.f32.mrb[38].mxu0 }
0x16ca   :  { %v3432_v1 = vmul.f32 %v5162_v28, %v3427_v60  ;;  %v3442_v17 = vsel %vm2706_vm7, %v3441_v59, 0.0  ;;  %v4806_v3 = vpop.f32.mrb[39].mxu0 }
0x16cb   :  { %3443 = vadd.xlane.f32.xlu0 %v3442_v17 }
0x16cc   :  { %v3451_v4 = vadd.f32 %v3450_v45, %v3432_v1 }
0x16ce   :  { %v3452_v36 = vmul.f32 -0.001, %v3451_v4 }
0x16d0   :  { %v4197_v63 = vrot.slane %v3452_v36, %v4191_v55 }
0x16d1   :  { %v3615_v5 = vpop.f32.mrb[40].mxu0 }
0x16d2   :  { %v3690_v6 = vadd.f32 %v5831_v35, %v3615_v5  ;;  %v4822_v52 = vpop.f32.mrb[41].mxu0 }
0x16d5   :  { %v3765_v15 = vpop.f32.mrb[42].mxu0 }
0x16d6   :  { %v3769_v7 = vadd.f32 %v3765_v15, %v3690_v6  ;;  %v4840_v11 = vpop.f32.mrb[43].mxu0 }
0x16d8   :  { %v3777_v62 = vadd.f32 %v4329_v32, %v3769_v7 }
0x16d9   :  { %v3940_v12 = vpop.f32.mrb[44].mxu0 }
0x16da   :  { %v3784_v13 = vadd.f32 %v3782_v46, %v3777_v62  ;;  %4204 = vrot.lane.b32.xlu1 %v3940_v12, %s5197_s11  ;;  %v4852_v35 = vpop.f32.mrb[45].mxu0 }
0x16dc   :  { %v3785_v27 = vmul.f32 %v3784_v13, %v5445_v56 }
0x16de   :  { %v3945_v49 = vsub.f32 %v3785_v27, %v3944_v29  ;;  %4208 = vrot.lane.b32.xlu1 %v4197_v63, %s5172_s22  ;;  %s5225_s22 = smov 42  }
0x16df   :  { %s4265_s16 = sld [smem:[%s5946_s0 + %s5225_s22]]  }
0x16e0   :  { %v3946_v16 = vand.u32 2147483647, %v3945_v49 }
0x16e1   :  { %v4092_v18 = vpop.f32.mrb[46].mxu0 }
0x16e2   :  { %v3947_v50 = vmul.f32 %v5871_v22, %v3946_v16  ;;  %v4093_v14 = vadd.f32 %v4092_v18, %v5841_v47  ;;  %v4874_v44 = vpop.f32.mrb[47].mxu0 }
0x16e4   :  { %v4171_v58 = vadd.f32 %v4167_v0, %v4093_v14  ;;  %v4179_v57 = vmul.f32 %v4337_v61, %v3947_v50 }
0x16e6   :  { %v4180_v20 = vadd.f32 %v4179_v57, %v4171_v58 }
0x16e8   :  { %v4188_v38 = vadd.f32 %v4338_v19, %v4180_v20 }
0x16ea   :  { %4200 = vrot.lane.b32.xlu0 %v4188_v38, %s5176_s29 }
0x1750   :  { %v3045_v56 = vpop.xlane.xlu1 %3044 }
0x1751   :  { %v3046_v21 = vmul.f32 4.0, %v3045_v56 }
0x1753   :  { %v3447_v9 = vadd.f32 %v3046_v21, %v2710_v23 }
0x1754   :  { %v4205_v37 = vpop.permute.xlu1 %4204 }
0x1758   :  { %v3444_v10 = vpop.xlane.xlu0 %3443  ;;  %v4209_v33 = vpop.permute.xlu1 %4208 }
0x1759   :  { %v3445_v24 = vmul.f32 4.0, %v3444_v10 }
0x175b   :  { %v3448_v22 = vadd.f32 %v3447_v9, %v3445_v24 }
0x175c   :  { %v4201_v47 = vpop.permute.xlu0 %4200 }
0x175d   :  { %v3449_v25 = vmul.f32 0.01, %v3448_v22  ;;  %v4212_v26 = vsel %vm4211_vm0, %v3785_v27, %v4201_v47 }
0x175e   :  { %v4213_v31 = vsel %vm3047_vm10, %v4212_v26, %v4205_v37 }
0x175f   :  { %v4192_v30 = vrot.slane %v3449_v25, %v4191_v55 }
0x1761   :  { %v4215_v41 = vsel %vm4214_vm1, %v4213_v31, %v4192_v30 }
0x1762   :  { %v4216_v8 = vsel %vm306_vm2, %v4215_v41, %v4209_v33 }
0x1763   :  { %v4218_v42 = vsel %vm4217_vm8, %v4216_v8, 0.0 }
0x1764   :  { %4219 = vst [vmem:[%s4265_s16] sm:$0xff] %v4218_v42 }

</bundles_post_ra>
